<compile_context>
chip_gen: v5e
topology: v5e:2x2
jax: 0.10.0
libtpu: 0.0.40
codegen_flags: <defaults>
</compile_context>

<pallas_src>
import functools

import jax
import jax.numpy as jnp
from jax.experimental import pallas as pl
from jax.experimental.pallas import tpu as pltpu

_LANE = 128


# ------------------------------- Pallas kernel --------------------------------
def _conv_bn_relu_kernel(x_ref, w_ref, s_ref, b_ref, o_ref, *,
                         kh_taps, kw_taps, stride, dilation, th, ow,
                         fold_taps, apply_relu):
    # x_ref: (Hp, Wp, C)   padded NHWC image for this batch element (bf16)
    # w_ref: (KH*KW*C, TN) if fold_taps else (KH, KW, C, TN)   weight (bf16)
    # s_ref: (1, TN) f32   folded BN scale
    # b_ref: (1, TN) f32   folded BN bias
    # o_ref: (TH, OW, TN)  output tile (bf16)
    c = x_ref.shape[-1]
    tn = o_ref.shape[-1]
    m = th * ow

    i = pl.program_id(2)                      # row-tile index (innermost axis)
    row0 = i * (th * stride)                  # first padded-input row of tile
    if (th * stride) % 8 == 0:
        row0 = pl.multiple_of(row0, 8)        # aligned sublane loads

    def tap_slab(kh, kw):
        h0 = row0 + kh * dilation
        w0 = kw * dilation                    # static python int
        if stride == 1:
            return x_ref[pl.ds(h0, th), pl.ds(w0, ow), :]
        return x_ref[pl.ds(h0, th, stride=stride),
                     pl.ds(w0, ow, stride=stride), :]

    if fold_taps:
        # In-VMEM im2col: pack all KH*KW taps into the contraction so the MXU
        # sees one K = KH*KW*C GEMM per tile instead of KH*KW tiny K = C GEMMs
        # (better K / lane occupancy for small C, single acc pass).
        slabs = [tap_slab(kh, kw)
                 for kh in range(kh_taps) for kw in range(kw_taps)]
        patch = jnp.concatenate(slabs, axis=-1)           # (TH, OW, KH*KW*C)
        acc = jnp.dot(patch.reshape(m, kh_taps * kw_taps * c), w_ref[...],
                      preferred_element_type=jnp.float32)
    else:
        acc = jnp.zeros((m, tn), jnp.float32)
        for kh in range(kh_taps):             # static unroll over filter taps
            for kw in range(kw_taps):
                xs = tap_slab(kh, kw)
                acc = acc + jnp.dot(xs.reshape(m, c), w_ref[kh, kw],
                                    preferred_element_type=jnp.float32)

    # f32 epilogue: per-channel BN scale + bias, optional ReLU, cast at store.
    y = acc * s_ref[...] + b_ref[...]
    if apply_relu:
        y = jnp.maximum(y, 0.0)
    o_ref[...] = y.reshape(th, ow, tn).astype(o_ref.dtype)


def _pick_row_tile(oh, ow, tn):
    """Largest divisor TH of OH s.t. the f32 acc (TH*OW x TN) is <= ~128 KiB."""
    target_rows = (128 * 1024) // (4 * max(tn, _LANE))
    th = max(1, min(oh, target_rows // max(1, ow)))
    while oh % th:
        th -= 1
    return th


# ------------------------------ Module wrapper --------------------------------
def std_conv_br(x_nchw, conv_w, gamma=None, beta=None, run_mean=None,
                run_var=None, *, conv_bias=None, stride=1, padding=1,
                dilation=1, bn_eps=1e-5, bn=True, relu=True, fold_taps=None):
    """Forward of StdConvBR: Conv2d(groups=1) -> eval-mode BN -> ReLU."""
    N, C, H, W = x_nchw.shape
    O, _, KH, KW = conv_w.shape

    OH = (H + 2 * padding - dilation * (KH - 1) - 1) // stride + 1
    OW = (W + 2 * padding - dilation * (KW - 1) - 1) // stride + 1
    Hp, Wp = H + 2 * padding, W + 2 * padding

    # --- glue: NCHW -> NHWC, spatial zero-pad, bf16 for the MXU ---------------
    x = jnp.transpose(x_nchw, (0, 2, 3, 1))
    x = jnp.pad(x, ((0, 0), (padding, padding), (padding, padding), (0, 0)))
    x = x.astype(jnp.bfloat16)

    # --- BN (eval mode) folded into per-output-channel scale/bias (f32) ------
    f32 = jnp.float32
    if bn:
        inv_std = jax.lax.rsqrt(run_var.astype(f32) + bn_eps)
        scale = gamma.astype(f32) * inv_std                        # (O,)
        bias = beta.astype(f32) - run_mean.astype(f32) * scale
        if conv_bias is not None:
            bias = bias + conv_bias.astype(f32) * scale
    else:
        scale = jnp.ones((O,), f32)
        bias = (conv_bias.astype(f32) if conv_bias is not None
                else jnp.zeros((O,), f32))

    # Weight: (O,C,KH,KW) -> (KH,KW,C,O) bf16.  BN scale is applied in the f32
    # epilogue, NOT folded into bf16 weights (numerics).
    w = jnp.transpose(conv_w, (2, 3, 1, 0)).astype(jnp.bfloat16)

    # --- output-channel tiling: no 128-padding for small O --------------------
    if O >= _LANE:
        O_out = ((O + _LANE - 1) // _LANE) * _LANE
        TN = _LANE                      # 128 suits all generations (v5e MXU=128)
    else:
        O_out = O                       # full-dim block, masked stores, no 128/O
        TN = O                          # writeback amplification
    if O_out != O:
        w = jnp.pad(w, ((0, 0), (0, 0), (0, 0), (0, O_out - O)))
        scale = jnp.pad(scale, (0, O_out - O))
        bias = jnp.pad(bias, (0, O_out - O))

    fold = bool(fold_taps) if fold_taps is not None else (C < _LANE)
    if fold:
        # Row order (kh major, kw, then channel) matches the in-kernel concat.
        w = w.reshape(KH * KW * C, O_out)
    scale2 = scale.reshape(1, O_out)
    bias2 = bias.reshape(1, O_out)

    # --- spatial tiling ---------------------------------------------------------
    TH = _pick_row_tile(OH, OW, TN)
    M = TH * OW
    n_o, n_row = O_out // TN, OH // TH
    # Row tiles innermost -> weight/scale/bias blocks (depend only on j) stay
    # VMEM-resident across all row tiles; image resident across (j, i).
    grid = (N, n_o, n_row)

    kernel = functools.partial(
        _conv_bn_relu_kernel,
        kh_taps=KH, kw_taps=KW, stride=stride, dilation=dilation,
        th=TH, ow=OW, fold_taps=fold, apply_relu=relu)

    w_spec = (pl.BlockSpec((KH * KW * C, TN), lambda n, j, i: (0, j)) if fold
              else pl.BlockSpec((KH, KW, C, TN), lambda n, j, i: (0, 0, 0, j)))
    in_specs = [
        # whole padded image for batch n; resident across O-tile / row-tile axes
        pl.BlockSpec((None, Hp, Wp, C), lambda n, j, i: (n, 0, 0, 0)),
        w_spec,
        pl.BlockSpec((1, TN), lambda n, j, i: (0, j)),
        pl.BlockSpec((1, TN), lambda n, j, i: (0, j)),
    ]
    out_specs = pl.BlockSpec((None, TH, OW, TN), lambda n, j, i: (n, i, 0, j))

    # --- VMEM budget derived from the actual tiles (default 2-deep pipeline) --
    img_b = Hp * Wp * C * 2
    w_b = KH * KW * C * TN * 2
    out_b = TH * OW * TN * 2
    acc_b = M * TN * 4 + (M * KH * KW * C * 2 if fold else 0)
    need = 2 * (img_b + w_b + 2 * TN * 4 + out_b) + acc_b + (4 << 20)
    phys = 64 << 20                                   # conservative (v7x / TC)
    try:
        phys = int(getattr(pltpu.get_tpu_info(), "vmem_capacity_bytes", phys))
    except Exception:
        pass
    vmem_limit = int(max(min(max(need, 32 << 20), phys - (8 << 20)), need))

    # Megacore: split on the batch axis when N >= 2 so each core keeps its own
    # resident image (no duplicated image DMA on v7x).
    if N >= 2:
        dim_sem = ("parallel", "arbitrary", "arbitrary")
    else:
        dim_sem = ("parallel", "parallel", "arbitrary")

    flops = 2 * N * OH * OW * KH * KW * C * O_out
    bytes_accessed = (N * img_b                       # image: once per batch elem
                      + N * n_o * w_b                 # weight: per (n, O-tile)
                      + N * n_o * 2 * TN * 4          # scale + bias
                      + N * OH * OW * O_out * 2)      # bf16 output writeback

    out = pl.pallas_call(
        kernel,
        out_shape=jax.ShapeDtypeStruct((N, OH, OW, O_out), jnp.bfloat16),
        grid_spec=pltpu.PrefetchScalarGridSpec(
            num_scalar_prefetch=0,
            grid=grid,
            in_specs=in_specs,
            out_specs=out_specs,
        ),
        compiler_params=pltpu.CompilerParams(
            dimension_semantics=dim_sem,
            vmem_limit_bytes=vmem_limit,
        ),
        cost_estimate=pl.CostEstimate(
            flops=flops, transcendentals=0, bytes_accessed=bytes_accessed),
    )(x, w, scale2, bias2)

    # --- glue: drop channel padding (if any), back to NCHW f32 ----------------
    if O_out != O:
        out = out[..., :O]
    return jnp.transpose(out, (0, 3, 1, 2)).astype(jnp.float32)


# ------------------------------ reference (plain JAX) -------------------------
def _reference(x, w, gamma, beta, mean, var, *, stride, padding, dilation,
               eps, bn=True, relu=True):
    y = jax.lax.conv_general_dilated(
        x, w, window_strides=(stride, stride),
        padding=[(padding, padding), (padding, padding)],
        rhs_dilation=(dilation, dilation),
        dimension_numbers=("NCHW", "OIHW", "NCHW"))
    if bn:
        inv = jax.lax.rsqrt(var + eps)
        y = ((y - mean[None, :, None, None]) * (gamma * inv)[None, :, None, None]
             + beta[None, :, None, None])
    if relu:
        y = jnp.maximum(y, 0.0)
    return y


# ---------------------------------- main --------------------------------------
if __name__ == "__main__":
    # StdConvBR(in_channels=4, out_channels=8, ksize=3, stride=1, padding=1)
    # with module defaults bn=True, relu=True, bias=False.
    N, C, H, W = 2, 4, 16, 16
    O, KH, KW = 8, 3, 3

    key = jax.random.PRNGKey(0)
    k_x, k_w, k_g, k_b, k_m, k_v = jax.random.split(key, 6)

    x = jax.random.normal(k_x, (N, C, H, W), dtype=jnp.float32)
    conv_w = jax.random.normal(k_w, (O, C, KH, KW), dtype=jnp.float32) * 0.1
    gamma = 1.0 + 0.1 * jax.random.normal(k_g, (O,), dtype=jnp.float32)
    beta = 0.1 * jax.random.normal(k_b, (O,), dtype=jnp.float32)
    run_mean = 0.1 * jax.random.normal(k_m, (O,), dtype=jnp.float32)
    run_var = jax.random.uniform(k_v, (O,), dtype=jnp.float32,
                                 minval=0.5, maxval=1.5)

    def run(fold):
        fwd = jax.jit(functools.partial(std_conv_br, stride=1, padding=1,
                                        dilation=1, bn_eps=1e-5,
                                        fold_taps=fold))
        return jax.block_until_ready(
            fwd(x, conv_w, gamma, beta, run_mean, run_var))

    try:
        y = run(None)     # auto: packed-K (in-VMEM im2col) path for small C
    except Exception:
        # Fallback: per-tap implicit-GEMM path (same math, no lane-dim concat)
        # in case this toolchain rejects the packed-K lowering.
        y = run(False)

    assert y.shape == (N, O, H, W), y.shape
    assert bool(jnp.all(y >= 0.0))        # ReLU applied

    # Correctness vs. plain-JAX reference (bf16 MXU inputs/outputs -> loose tol).
    y_ref = _reference(x, conv_w, gamma, beta, run_mean, run_var,
                       stride=1, padding=1, dilation=1, eps=1e-5)
    max_err = float(jnp.max(jnp.abs(y - y_ref)))
    assert bool(jnp.allclose(y, y_ref, rtol=2e-2, atol=2e-2)), max_err

    print("KERNEL_OK")
</pallas_src>

<mosaic_0001>
module attributes {stable_mosaic.version = 11 : i64} {
  func.func @_conv_bn_relu_kernel(%arg0: i32, %arg1: i32, %arg2: i32, %arg3: memref<1x18x18x4xbf16, #tpu.memory_space<vmem>>, %arg4: memref<36x8xbf16, #tpu.memory_space<vmem>>, %arg5: memref<1x8xf32, #tpu.memory_space<vmem>>, %arg6: memref<1x8xf32, #tpu.memory_space<vmem>>, %arg7: memref<1x16x16x8xbf16, #tpu.memory_space<vmem>>) attributes {dimension_semantics = [#tpu.dimension_semantics<parallel>, #tpu.dimension_semantics<arbitrary>, #tpu.dimension_semantics<arbitrary>], iteration_bounds = array<i64: 2, 1, 1>, scalar_prefetch = 0 : i64, scratch_operands = 0 : i64, tpu.core_type = #tpu.core_type<tc>, window_params = [{transform_indices = @transform_0, window_bounds = array<i64: 1, 18, 18, 4>}, {transform_indices = @transform_1, window_bounds = array<i64: 36, 8>}, {transform_indices = @transform_2, window_bounds = array<i64: 1, 8>}, {transform_indices = @transform_3, window_bounds = array<i64: 1, 8>}, {transform_indices = @transform_4, window_bounds = array<i64: 1, 16, 16, 8>}]} {
    %c16_i32 = arith.constant 16 : i32
    %0 = arith.muli %arg2, %c16_i32 : i32
    %1 = tpu.assume_multiple %0, 8 : i32
    %c0_i32 = arith.constant 0 : i32
    %2 = arith.addi %1, %c0_i32 : i32
    %c0 = arith.constant 0 : index
    %3 = arith.index_cast %2 : i32 to index
    %c0_0 = arith.constant 0 : index
    %c0_1 = arith.constant 0 : index
    %4 = vector.load %arg3[%c0, %3, %c0_0, %c0_1] : memref<1x18x18x4xbf16, #tpu.memory_space<vmem>>, vector<1x16x16x4xbf16>
    %5 = vector.shape_cast %4 : vector<1x16x16x4xbf16> to vector<16x16x4xbf16>
    %c0_i32_2 = arith.constant 0 : i32
    %6 = arith.addi %1, %c0_i32_2 : i32
    %c0_3 = arith.constant 0 : index
    %7 = arith.index_cast %6 : i32 to index
    %c1 = arith.constant 1 : index
    %c0_4 = arith.constant 0 : index
    %8 = vector.load %arg3[%c0_3, %7, %c1, %c0_4] : memref<1x18x18x4xbf16, #tpu.memory_space<vmem>>, vector<1x16x16x4xbf16>
    %9 = vector.shape_cast %8 : vector<1x16x16x4xbf16> to vector<16x16x4xbf16>
    %c0_i32_5 = arith.constant 0 : i32
    %10 = arith.addi %1, %c0_i32_5 : i32
    %c0_6 = arith.constant 0 : index
    %11 = arith.index_cast %10 : i32 to index
    %c2 = arith.constant 2 : index
    %c0_7 = arith.constant 0 : index
    %12 = vector.load %arg3[%c0_6, %11, %c2, %c0_7] : memref<1x18x18x4xbf16, #tpu.memory_space<vmem>>, vector<1x16x16x4xbf16>
    %13 = vector.shape_cast %12 : vector<1x16x16x4xbf16> to vector<16x16x4xbf16>
    %c1_i32 = arith.constant 1 : i32
    %14 = arith.addi %1, %c1_i32 : i32
    %c0_8 = arith.constant 0 : index
    %15 = arith.index_cast %14 : i32 to index
    %c0_9 = arith.constant 0 : index
    %c0_10 = arith.constant 0 : index
    %16 = vector.load %arg3[%c0_8, %15, %c0_9, %c0_10] : memref<1x18x18x4xbf16, #tpu.memory_space<vmem>>, vector<1x16x16x4xbf16>
    %17 = vector.shape_cast %16 : vector<1x16x16x4xbf16> to vector<16x16x4xbf16>
    %c1_i32_11 = arith.constant 1 : i32
    %18 = arith.addi %1, %c1_i32_11 : i32
    %c0_12 = arith.constant 0 : index
    %19 = arith.index_cast %18 : i32 to index
    %c1_13 = arith.constant 1 : index
    %c0_14 = arith.constant 0 : index
    %20 = vector.load %arg3[%c0_12, %19, %c1_13, %c0_14] : memref<1x18x18x4xbf16, #tpu.memory_space<vmem>>, vector<1x16x16x4xbf16>
    %21 = vector.shape_cast %20 : vector<1x16x16x4xbf16> to vector<16x16x4xbf16>
    %c1_i32_15 = arith.constant 1 : i32
    %22 = arith.addi %1, %c1_i32_15 : i32
    %c0_16 = arith.constant 0 : index
    %23 = arith.index_cast %22 : i32 to index
    %c2_17 = arith.constant 2 : index
    %c0_18 = arith.constant 0 : index
    %24 = vector.load %arg3[%c0_16, %23, %c2_17, %c0_18] : memref<1x18x18x4xbf16, #tpu.memory_space<vmem>>, vector<1x16x16x4xbf16>
    %25 = vector.shape_cast %24 : vector<1x16x16x4xbf16> to vector<16x16x4xbf16>
    %c2_i32 = arith.constant 2 : i32
    %26 = arith.addi %1, %c2_i32 : i32
    %c0_19 = arith.constant 0 : index
    %27 = arith.index_cast %26 : i32 to index
    %c0_20 = arith.constant 0 : index
    %c0_21 = arith.constant 0 : index
    %28 = vector.load %arg3[%c0_19, %27, %c0_20, %c0_21] : memref<1x18x18x4xbf16, #tpu.memory_space<vmem>>, vector<1x16x16x4xbf16>
    %29 = vector.shape_cast %28 : vector<1x16x16x4xbf16> to vector<16x16x4xbf16>
    %c2_i32_22 = arith.constant 2 : i32
    %30 = arith.addi %1, %c2_i32_22 : i32
    %c0_23 = arith.constant 0 : index
    %31 = arith.index_cast %30 : i32 to index
    %c1_24 = arith.constant 1 : index
    %c0_25 = arith.constant 0 : index
    %32 = vector.load %arg3[%c0_23, %31, %c1_24, %c0_25] : memref<1x18x18x4xbf16, #tpu.memory_space<vmem>>, vector<1x16x16x4xbf16>
    %33 = vector.shape_cast %32 : vector<1x16x16x4xbf16> to vector<16x16x4xbf16>
    %c2_i32_26 = arith.constant 2 : i32
    %34 = arith.addi %1, %c2_i32_26 : i32
    %c0_27 = arith.constant 0 : index
    %35 = arith.index_cast %34 : i32 to index
    %c2_28 = arith.constant 2 : index
    %c0_29 = arith.constant 0 : index
    %36 = vector.load %arg3[%c0_27, %35, %c2_28, %c0_29] : memref<1x18x18x4xbf16, #tpu.memory_space<vmem>>, vector<1x16x16x4xbf16>
    %37 = vector.shape_cast %36 : vector<1x16x16x4xbf16> to vector<16x16x4xbf16>
    %38 = tpu.concatenate %5, %9, %13, %17, %21, %25, %29, %33, %37 in 2 : vector<16x16x4xbf16>, vector<16x16x4xbf16>, vector<16x16x4xbf16>, vector<16x16x4xbf16>, vector<16x16x4xbf16>, vector<16x16x4xbf16>, vector<16x16x4xbf16>, vector<16x16x4xbf16>, vector<16x16x4xbf16> -> vector<16x16x36xbf16>
    %39 = vector.shape_cast %38 : vector<16x16x36xbf16> to vector<256x36xbf16>
    %c0_30 = arith.constant 0 : index
    %c0_31 = arith.constant 0 : index
    %40 = vector.load %arg4[%c0_30, %c0_31] : memref<36x8xbf16, #tpu.memory_space<vmem>>, vector<36x8xbf16>
    %cst = arith.constant dense<0.000000e+00> : vector<256x8xf32>
    %41 = tpu.matmul %39, %40, %cst {dimension_numbers = #tpu.dot_dimension_numbers<[1], [0], [0], [1], [0, 0, 1, 1], [], []>} : vector<256x36xbf16>, vector<36x8xbf16>, vector<256x8xf32> -> vector<256x8xf32>
    %c0_32 = arith.constant 0 : index
    %c0_33 = arith.constant 0 : index
    %42 = vector.load %arg5[%c0_32, %c0_33] : memref<1x8xf32, #tpu.memory_space<vmem>>, vector<1x8xf32>
    %43 = vector.broadcast %42 : vector<1x8xf32> to vector<256x8xf32>
    %44 = arith.mulf %41, %43 : vector<256x8xf32>
    %c0_34 = arith.constant 0 : index
    %c0_35 = arith.constant 0 : index
    %45 = vector.load %arg6[%c0_34, %c0_35] : memref<1x8xf32, #tpu.memory_space<vmem>>, vector<1x8xf32>
    %46 = vector.broadcast %45 : vector<1x8xf32> to vector<256x8xf32>
    %47 = arith.addf %44, %46 : vector<256x8xf32>
    %cst_36 = arith.constant 0.000000e+00 : f32
    %48 = vector.broadcast %cst_36 : f32 to vector<256x8xf32>
    %49 = arith.maximumf %47, %48 : vector<256x8xf32>
    %50 = vector.shape_cast %49 : vector<256x8xf32> to vector<16x16x8xf32>
    %51 = arith.truncf %50 : vector<16x16x8xf32> to vector<16x16x8xbf16>
    %c0_37 = arith.constant 0 : index
    %c0_38 = arith.constant 0 : index
    %c0_39 = arith.constant 0 : index
    %c0_40 = arith.constant 0 : index
    %52 = vector.load %arg7[%c0_37, %c0_38, %c0_39, %c0_40] : memref<1x16x16x8xbf16, #tpu.memory_space<vmem>>, vector<1x16x16x8xbf16>
    %53 = vector.shape_cast %52 : vector<1x16x16x8xbf16> to vector<16x16x8xbf16>
    %54 = vector.shape_cast %51 : vector<16x16x8xbf16> to vector<1x16x16x8xbf16>
    tpu.vector_store %arg7[%c0_37, %c0_38, %c0_39, %c0_40], %54 {strides = array<i32>} : memref<1x16x16x8xbf16, #tpu.memory_space<vmem>>, vector<1x16x16x8xbf16>,
    return
  }
  func.func @transform_0(%arg0: i32, %arg1: i32, %arg2: i32) -> (i32, i32, i32, i32) {
    %c0_i32 = arith.constant 0 : i32
    %c0_i32_0 = arith.constant 0 : i32
    %c0_i32_1 = arith.constant 0 : i32
    %c0_i32_2 = arith.constant 0 : i32
    return %arg0, %c0_i32, %c0_i32_0, %c0_i32_1 : i32, i32, i32, i32
  }
  func.func @transform_1(%arg0: i32, %arg1: i32, %arg2: i32) -> (i32, i32) {
    %c0_i32 = arith.constant 0 : i32
    %c0_i32_0 = arith.constant 0 : i32
    return %c0_i32, %arg1 : i32, i32
  }
  func.func @transform_2(%arg0: i32, %arg1: i32, %arg2: i32) -> (i32, i32) {
    %c0_i32 = arith.constant 0 : i32
    %c0_i32_0 = arith.constant 0 : i32
    return %c0_i32, %arg1 : i32, i32
  }
  func.func @transform_3(%arg0: i32, %arg1: i32, %arg2: i32) -> (i32, i32) {
    %c0_i32 = arith.constant 0 : i32
    %c0_i32_0 = arith.constant 0 : i32
    return %c0_i32, %arg1 : i32, i32
  }
  func.func @transform_4(%arg0: i32, %arg1: i32, %arg2: i32) -> (i32, i32, i32, i32) {
    %c0_i32 = arith.constant 0 : i32
    %c0_i32_0 = arith.constant 0 : i32
    return %arg0, %arg2, %c0_i32, %arg1 : i32, i32, i32, i32
  }
}

module attributes {stable_mosaic.version = 11 : i64} {
  func.func @_conv_bn_relu_kernel(%arg0: i32, %arg1: i32, %arg2: i32, %arg3: memref<1x18x18x4xbf16, #tpu.memory_space<vmem>>, %arg4: memref<3x3x4x8xbf16, #tpu.memory_space<vmem>>, %arg5: memref<1x8xf32, #tpu.memory_space<vmem>>, %arg6: memref<1x8xf32, #tpu.memory_space<vmem>>, %arg7: memref<1x16x16x8xbf16, #tpu.memory_space<vmem>>) attributes {dimension_semantics = [#tpu.dimension_semantics<parallel>, #tpu.dimension_semantics<arbitrary>, #tpu.dimension_semantics<arbitrary>], iteration_bounds = array<i64: 2, 1, 1>, scalar_prefetch = 0 : i64, scratch_operands = 0 : i64, tpu.core_type = #tpu.core_type<tc>, window_params = [{transform_indices = @transform_0, window_bounds = array<i64: 1, 18, 18, 4>}, {transform_indices = @transform_1, window_bounds = array<i64: 3, 3, 4, 8>}, {transform_indices = @transform_2, window_bounds = array<i64: 1, 8>}, {transform_indices = @transform_3, window_bounds = array<i64: 1, 8>}, {transform_indices = @transform_4, window_bounds = array<i64: 1, 16, 16, 8>}]} {
    %c16_i32 = arith.constant 16 : i32
    %0 = arith.muli %arg2, %c16_i32 : i32
    %1 = tpu.assume_multiple %0, 8 : i32
    %cst = arith.constant 0.000000e+00 : f32
    %2 = vector.broadcast %cst : f32 to vector<256x8xf32>
    %c0_i32 = arith.constant 0 : i32
    %3 = arith.addi %1, %c0_i32 : i32
    %c0 = arith.constant 0 : index
    %4 = arith.index_cast %3 : i32 to index
    %c0_0 = arith.constant 0 : index
    %c0_1 = arith.constant 0 : index
    %5 = vector.load %arg3[%c0, %4, %c0_0, %c0_1] : memref<1x18x18x4xbf16, #tpu.memory_space<vmem>>, vector<1x16x16x4xbf16>
    %6 = vector.shape_cast %5 : vector<1x16x16x4xbf16> to vector<16x16x4xbf16>
    %7 = vector.shape_cast %6 : vector<16x16x4xbf16> to vector<256x4xbf16>
    %c0_2 = arith.constant 0 : index
    %c0_3 = arith.constant 0 : index
    %c0_4 = arith.constant 0 : index
    %c0_5 = arith.constant 0 : index
    %8 = vector.load %arg4[%c0_2, %c0_3, %c0_4, %c0_5] : memref<3x3x4x8xbf16, #tpu.memory_space<vmem>>, vector<1x1x4x8xbf16>
    %9 = vector.shape_cast %8 : vector<1x1x4x8xbf16> to vector<4x8xbf16>
    %cst_6 = arith.constant dense<0.000000e+00> : vector<256x8xf32>
    %10 = tpu.matmul %7, %9, %cst_6 {dimension_numbers = #tpu.dot_dimension_numbers<[1], [0], [0], [1], [0, 0, 1, 1], [], []>} : vector<256x4xbf16>, vector<4x8xbf16>, vector<256x8xf32> -> vector<256x8xf32>
    %11 = arith.addf %2, %10 : vector<256x8xf32>
    %c0_i32_7 = arith.constant 0 : i32
    %12 = arith.addi %1, %c0_i32_7 : i32
    %c0_8 = arith.constant 0 : index
    %13 = arith.index_cast %12 : i32 to index
    %c1 = arith.constant 1 : index
    %c0_9 = arith.constant 0 : index
    %14 = vector.load %arg3[%c0_8, %13, %c1, %c0_9] : memref<1x18x18x4xbf16, #tpu.memory_space<vmem>>, vector<1x16x16x4xbf16>
    %15 = vector.shape_cast %14 : vector<1x16x16x4xbf16> to vector<16x16x4xbf16>
    %16 = vector.shape_cast %15 : vector<16x16x4xbf16> to vector<256x4xbf16>
    %c0_10 = arith.constant 0 : index
    %c1_11 = arith.constant 1 : index
    %c0_12 = arith.constant 0 : index
    %c0_13 = arith.constant 0 : index
    %17 = vector.load %arg4[%c0_10, %c1_11, %c0_12, %c0_13] : memref<3x3x4x8xbf16, #tpu.memory_space<vmem>>, vector<1x1x4x8xbf16>
    %18 = vector.shape_cast %17 : vector<1x1x4x8xbf16> to vector<4x8xbf16>
    %cst_14 = arith.constant dense<0.000000e+00> : vector<256x8xf32>
    %19 = tpu.matmul %16, %18, %cst_14 {dimension_numbers = #tpu.dot_dimension_numbers<[1], [0], [0], [1], [0, 0, 1, 1], [], []>} : vector<256x4xbf16>, vector<4x8xbf16>, vector<256x8xf32> -> vector<256x8xf32>
    %20 = arith.addf %11, %19 : vector<256x8xf32>
    %c0_i32_15 = arith.constant 0 : i32
    %21 = arith.addi %1, %c0_i32_15 : i32
    %c0_16 = arith.constant 0 : index
    %22 = arith.index_cast %21 : i32 to index
    %c2 = arith.constant 2 : index
    %c0_17 = arith.constant 0 : index
    %23 = vector.load %arg3[%c0_16, %22, %c2, %c0_17] : memref<1x18x18x4xbf16, #tpu.memory_space<vmem>>, vector<1x16x16x4xbf16>
    %24 = vector.shape_cast %23 : vector<1x16x16x4xbf16> to vector<16x16x4xbf16>
    %25 = vector.shape_cast %24 : vector<16x16x4xbf16> to vector<256x4xbf16>
    %c0_18 = arith.constant 0 : index
    %c2_19 = arith.constant 2 : index
    %c0_20 = arith.constant 0 : index
    %c0_21 = arith.constant 0 : index
    %26 = vector.load %arg4[%c0_18, %c2_19, %c0_20, %c0_21] : memref<3x3x4x8xbf16, #tpu.memory_space<vmem>>, vector<1x1x4x8xbf16>
    %27 = vector.shape_cast %26 : vector<1x1x4x8xbf16> to vector<4x8xbf16>
    %cst_22 = arith.constant dense<0.000000e+00> : vector<256x8xf32>
    %28 = tpu.matmul %25, %27, %cst_22 {dimension_numbers = #tpu.dot_dimension_numbers<[1], [0], [0], [1], [0, 0, 1, 1], [], []>} : vector<256x4xbf16>, vector<4x8xbf16>, vector<256x8xf32> -> vector<256x8xf32>
    %29 = arith.addf %20, %28 : vector<256x8xf32>
    %c1_i32 = arith.constant 1 : i32
    %30 = arith.addi %1, %c1_i32 : i32
    %c0_23 = arith.constant 0 : index
    %31 = arith.index_cast %30 : i32 to index
    %c0_24 = arith.constant 0 : index
    %c0_25 = arith.constant 0 : index
    %32 = vector.load %arg3[%c0_23, %31, %c0_24, %c0_25] : memref<1x18x18x4xbf16, #tpu.memory_space<vmem>>, vector<1x16x16x4xbf16>
    %33 = vector.shape_cast %32 : vector<1x16x16x4xbf16> to vector<16x16x4xbf16>
    %34 = vector.shape_cast %33 : vector<16x16x4xbf16> to vector<256x4xbf16>
    %c1_26 = arith.constant 1 : index
    %c0_27 = arith.constant 0 : index
    %c0_28 = arith.constant 0 : index
    %c0_29 = arith.constant 0 : index
    %35 = vector.load %arg4[%c1_26, %c0_27, %c0_28, %c0_29] : memref<3x3x4x8xbf16, #tpu.memory_space<vmem>>, vector<1x1x4x8xbf16>
    %36 = vector.shape_cast %35 : vector<1x1x4x8xbf16> to vector<4x8xbf16>
    %cst_30 = arith.constant dense<0.000000e+00> : vector<256x8xf32>
    %37 = tpu.matmul %34, %36, %cst_30 {dimension_numbers = #tpu.dot_dimension_numbers<[1], [0], [0], [1], [0, 0, 1, 1], [], []>} : vector<256x4xbf16>, vector<4x8xbf16>, vector<256x8xf32> -> vector<256x8xf32>
    %38 = arith.addf %29, %37 : vector<256x8xf32>
    %c1_i32_31 = arith.constant 1 : i32
    %39 = arith.addi %1, %c1_i32_31 : i32
    %c0_32 = arith.constant 0 : index
    %40 = arith.index_cast %39 : i32 to index
    %c1_33 = arith.constant 1 : index
    %c0_34 = arith.constant 0 : index
    %41 = vector.load %arg3[%c0_32, %40, %c1_33, %c0_34] : memref<1x18x18x4xbf16, #tpu.memory_space<vmem>>, vector<1x16x16x4xbf16>
    %42 = vector.shape_cast %41 : vector<1x16x16x4xbf16> to vector<16x16x4xbf16>
    %43 = vector.shape_cast %42 : vector<16x16x4xbf16> to vector<256x4xbf16>
    %c1_35 = arith.constant 1 : index
    %c1_36 = arith.constant 1 : index
    %c0_37 = arith.constant 0 : index
    %c0_38 = arith.constant 0 : index
    %44 = vector.load %arg4[%c1_35, %c1_36, %c0_37, %c0_38] : memref<3x3x4x8xbf16, #tpu.memory_space<vmem>>, vector<1x1x4x8xbf16>
    %45 = vector.shape_cast %44 : vector<1x1x4x8xbf16> to vector<4x8xbf16>
    %cst_39 = arith.constant dense<0.000000e+00> : vector<256x8xf32>
    %46 = tpu.matmul %43, %45, %cst_39 {dimension_numbers = #tpu.dot_dimension_numbers<[1], [0], [0], [1], [0, 0, 1, 1], [], []>} : vector<256x4xbf16>, vector<4x8xbf16>, vector<256x8xf32> -> vector<256x8xf32>
    %47 = arith.addf %38, %46 : vector<256x8xf32>
    %c1_i32_40 = arith.constant 1 : i32
    %48 = arith.addi %1, %c1_i32_40 : i32
    %c0_41 = arith.constant 0 : index
    %49 = arith.index_cast %48 : i32 to index
    %c2_42 = arith.constant 2 : index
    %c0_43 = arith.constant 0 : index
    %50 = vector.load %arg3[%c0_41, %49, %c2_42, %c0_43] : memref<1x18x18x4xbf16, #tpu.memory_space<vmem>>, vector<1x16x16x4xbf16>
    %51 = vector.shape_cast %50 : vector<1x16x16x4xbf16> to vector<16x16x4xbf16>
    %52 = vector.shape_cast %51 : vector<16x16x4xbf16> to vector<256x4xbf16>
    %c1_44 = arith.constant 1 : index
    %c2_45 = arith.constant 2 : index
    %c0_46 = arith.constant 0 : index
    %c0_47 = arith.constant 0 : index
    %53 = vector.load %arg4[%c1_44, %c2_45, %c0_46, %c0_47] : memref<3x3x4x8xbf16, #tpu.memory_space<vmem>>, vector<1x1x4x8xbf16>
    %54 = vector.shape_cast %53 : vector<1x1x4x8xbf16> to vector<4x8xbf16>
    %cst_48 = arith.constant dense<0.000000e+00> : vector<256x8xf32>
    %55 = tpu.matmul %52, %54, %cst_48 {dimension_numbers = #tpu.dot_dimension_numbers<[1], [0], [0], [1], [0, 0, 1, 1], [], []>} : vector<256x4xbf16>, vector<4x8xbf16>, vector<256x8xf32> -> vector<256x8xf32>
    %56 = arith.addf %47, %55 : vector<256x8xf32>
    %c2_i32 = arith.constant 2 : i32
    %57 = arith.addi %1, %c2_i32 : i32
    %c0_49 = arith.constant 0 : index
    %58 = arith.index_cast %57 : i32 to index
    %c0_50 = arith.constant 0 : index
    %c0_51 = arith.constant 0 : index
    %59 = vector.load %arg3[%c0_49, %58, %c0_50, %c0_51] : memref<1x18x18x4xbf16, #tpu.memory_space<vmem>>, vector<1x16x16x4xbf16>
    %60 = vector.shape_cast %59 : vector<1x16x16x4xbf16> to vector<16x16x4xbf16>
    %61 = vector.shape_cast %60 : vector<16x16x4xbf16> to vector<256x4xbf16>
    %c2_52 = arith.constant 2 : index
    %c0_53 = arith.constant 0 : index
    %c0_54 = arith.constant 0 : index
    %c0_55 = arith.constant 0 : index
    %62 = vector.load %arg4[%c2_52, %c0_53, %c0_54, %c0_55] : memref<3x3x4x8xbf16, #tpu.memory_space<vmem>>, vector<1x1x4x8xbf16>
    %63 = vector.shape_cast %62 : vector<1x1x4x8xbf16> to vector<4x8xbf16>
    %cst_56 = arith.constant dense<0.000000e+00> : vector<256x8xf32>
    %64 = tpu.matmul %61, %63, %cst_56 {dimension_numbers = #tpu.dot_dimension_numbers<[1], [0], [0], [1], [0, 0, 1, 1], [], []>} : vector<256x4xbf16>, vector<4x8xbf16>, vector<256x8xf32> -> vector<256x8xf32>
    %65 = arith.addf %56, %64 : vector<256x8xf32>
    %c2_i32_57 = arith.constant 2 : i32
    %66 = arith.addi %1, %c2_i32_57 : i32
    %c0_58 = arith.constant 0 : index
    %67 = arith.index_cast %66 : i32 to index
    %c1_59 = arith.constant 1 : index
    %c0_60 = arith.constant 0 : index
    %68 = vector.load %arg3[%c0_58, %67, %c1_59, %c0_60] : memref<1x18x18x4xbf16, #tpu.memory_space<vmem>>, vector<1x16x16x4xbf16>
    %69 = vector.shape_cast %68 : vector<1x16x16x4xbf16> to vector<16x16x4xbf16>
    %70 = vector.shape_cast %69 : vector<16x16x4xbf16> to vector<256x4xbf16>
    %c2_61 = arith.constant 2 : index
    %c1_62 = arith.constant 1 : index
    %c0_63 = arith.constant 0 : index
    %c0_64 = arith.constant 0 : index
    %71 = vector.load %arg4[%c2_61, %c1_62, %c0_63, %c0_64] : memref<3x3x4x8xbf16, #tpu.memory_space<vmem>>, vector<1x1x4x8xbf16>
    %72 = vector.shape_cast %71 : vector<1x1x4x8xbf16> to vector<4x8xbf16>
    %cst_65 = arith.constant dense<0.000000e+00> : vector<256x8xf32>
    %73 = tpu.matmul %70, %72, %cst_65 {dimension_numbers = #tpu.dot_dimension_numbers<[1], [0], [0], [1], [0, 0, 1, 1], [], []>} : vector<256x4xbf16>, vector<4x8xbf16>, vector<256x8xf32> -> vector<256x8xf32>
    %74 = arith.addf %65, %73 : vector<256x8xf32>
    %c2_i32_66 = arith.constant 2 : i32
    %75 = arith.addi %1, %c2_i32_66 : i32
    %c0_67 = arith.constant 0 : index
    %76 = arith.index_cast %75 : i32 to index
    %c2_68 = arith.constant 2 : index
    %c0_69 = arith.constant 0 : index
    %77 = vector.load %arg3[%c0_67, %76, %c2_68, %c0_69] : memref<1x18x18x4xbf16, #tpu.memory_space<vmem>>, vector<1x16x16x4xbf16>
    %78 = vector.shape_cast %77 : vector<1x16x16x4xbf16> to vector<16x16x4xbf16>
    %79 = vector.shape_cast %78 : vector<16x16x4xbf16> to vector<256x4xbf16>
    %c2_70 = arith.constant 2 : index
    %c2_71 = arith.constant 2 : index
    %c0_72 = arith.constant 0 : index
    %c0_73 = arith.constant 0 : index
    %80 = vector.load %arg4[%c2_70, %c2_71, %c0_72, %c0_73] : memref<3x3x4x8xbf16, #tpu.memory_space<vmem>>, vector<1x1x4x8xbf16>
    %81 = vector.shape_cast %80 : vector<1x1x4x8xbf16> to vector<4x8xbf16>
    %cst_74 = arith.constant dense<0.000000e+00> : vector<256x8xf32>
    %82 = tpu.matmul %79, %81, %cst_74 {dimension_numbers = #tpu.dot_dimension_numbers<[1], [0], [0], [1], [0, 0, 1, 1], [], []>} : vector<256x4xbf16>, vector<4x8xbf16>, vector<256x8xf32> -> vector<256x8xf32>
    %83 = arith.addf %74, %82 : vector<256x8xf32>
    %c0_75 = arith.constant 0 : index
    %c0_76 = arith.constant 0 : index
    %84 = vector.load %arg5[%c0_75, %c0_76] : memref<1x8xf32, #tpu.memory_space<vmem>>, vector<1x8xf32>
    %85 = vector.broadcast %84 : vector<1x8xf32> to vector<256x8xf32>
    %86 = arith.mulf %83, %85 : vector<256x8xf32>
    %c0_77 = arith.constant 0 : index
    %c0_78 = arith.constant 0 : index
    %87 = vector.load %arg6[%c0_77, %c0_78] : memref<1x8xf32, #tpu.memory_space<vmem>>, vector<1x8xf32>
    %88 = vector.broadcast %87 : vector<1x8xf32> to vector<256x8xf32>
    %89 = arith.addf %86, %88 : vector<256x8xf32>
    %cst_79 = arith.constant 0.000000e+00 : f32
    %90 = vector.broadcast %cst_79 : f32 to vector<256x8xf32>
    %91 = arith.maximumf %89, %90 : vector<256x8xf32>
    %92 = vector.shape_cast %91 : vector<256x8xf32> to vector<16x16x8xf32>
    %93 = arith.truncf %92 : vector<16x16x8xf32> to vector<16x16x8xbf16>
    %c0_80 = arith.constant 0 : index
    %c0_81 = arith.constant 0 : index
    %c0_82 = arith.constant 0 : index
    %c0_83 = arith.constant 0 : index
    %94 = vector.load %arg7[%c0_80, %c0_81, %c0_82, %c0_83] : memref<1x16x16x8xbf16, #tpu.memory_space<vmem>>, vector<1x16x16x8xbf16>
    %95 = vector.shape_cast %94 : vector<1x16x16x8xbf16> to vector<16x16x8xbf16>
    %96 = vector.shape_cast %93 : vector<16x16x8xbf16> to vector<1x16x16x8xbf16>
    tpu.vector_store %arg7[%c0_80, %c0_81, %c0_82, %c0_83], %96 {strides = array<i32>} : memref<1x16x16x8xbf16, #tpu.memory_space<vmem>>, vector<1x16x16x8xbf16>,
    return
  }
  func.func @transform_0(%arg0: i32, %arg1: i32, %arg2: i32) -> (i32, i32, i32, i32) {
    %c0_i32 = arith.constant 0 : i32
    %c0_i32_0 = arith.constant 0 : i32
    %c0_i32_1 = arith.constant 0 : i32
    %c0_i32_2 = arith.constant 0 : i32
    return %arg0, %c0_i32, %c0_i32_0, %c0_i32_1 : i32, i32, i32, i32
  }
  func.func @transform_1(%arg0: i32, %arg1: i32, %arg2: i32) -> (i32, i32, i32, i32) {
    %c0_i32 = arith.constant 0 : i32
    %c0_i32_0 = arith.constant 0 : i32
    %c0_i32_1 = arith.constant 0 : i32
    %c0_i32_2 = arith.constant 0 : i32
    return %c0_i32, %c0_i32_0, %c0_i32_1, %arg1 : i32, i32, i32, i32
  }
  func.func @transform_2(%arg0: i32, %arg1: i32, %arg2: i32) -> (i32, i32) {
    %c0_i32 = arith.constant 0 : i32
    %c0_i32_0 = arith.constant 0 : i32
    return %c0_i32, %arg1 : i32, i32
  }
  func.func @transform_3(%arg0: i32, %arg1: i32, %arg2: i32) -> (i32, i32) {
    %c0_i32 = arith.constant 0 : i32
    %c0_i32_0 = arith.constant 0 : i32
    return %c0_i32, %arg1 : i32, i32
  }
  func.func @transform_4(%arg0: i32, %arg1: i32, %arg2: i32) -> (i32, i32, i32, i32) {
    %c0_i32 = arith.constant 0 : i32
    %c0_i32_0 = arith.constant 0 : i32
    return %arg0, %arg2, %c0_i32, %arg1 : i32, i32, i32, i32
  }
}

</mosaic_0001>

<bundles_post_ra>
// kernel: std_conv_br.1
= control target key start
LH: loop header
LB: loop body
LE: loop exit
PB: predicated region body
PF: predicated region fallthrough
CT: control target
= control target key end

     0   :  { %s3259_s15 = smov 0   ;;  %s3261_s16 = smov 0   ;;  %s4565_s0 = inlined_call_operand.vmem [shape: bf16[2,18,18,4], index: 0, kind: input, shape index: {}]   ;;  %s4566_s1 = inlined_call_operand.vmem [shape: bf16[36,8], index: 1, kind: input, shape index: {}]   ;;  %s4567_s2 = inlined_call_operand.vmem [shape: f32[1,8], index: 2, kind: input, shape index: {}]   ;;  %s4568_s3 = inlined_call_operand.vmem [shape: f32[1,8], index: 3, kind: input, shape index: {}]   ;;  %s4569_s4 = inlined_call_operand.vmem [shape: bf16[2,16,16,8], index: 4, kind: output, shape index: {}]  }
   0x1   :  { %s3263_s17 = smov 0  }
   0x2 LB: > { %s33_s18 = sadd.s32 1, %s3220_s16  ;;  %p2729_p0 = scmp.ge.s32.totalorder %s3224_s17, 1  ;;  %s3224_s17 = sphi %s3263_s17, %s14_s17   ;;  %s3220_s16 = sphi %s3261_s16, %s4577_s16   ;;  %s3216_s15 = sphi %s3259_s15, %s4576_s15  }
   0x3   : > { %p35_p1 = scmp.ge.s32.totalorder %s33_s18, 2  ;;  %p210_p2 = scmp.lt.s32.totalorder %s3224_s17, 3 }
   0x5   : > { %s4579_s18 = smov (%p35_p1, %s33_s18), 0  ;;  %p211_p3 = pnand %p2729_p0, %p210_p2 }
   0x7   : > { %214 = sbr.rel (%p211_p3) target bundleno = 625 (0x271), region = 36 }
   0xc   : > { %p254_p4 = scmp.lt.s32.totalorder %s3216_s15, 1  ;;  %vm616_vm0 = vsmask.f32 7424  ;;  %s3226_s23 = smov 4   ;;  %vm889_vm1 = vcmask 1046528   ;;  %vm1994_vm2 = vcmask 31744  }
   0xd   : > { %s3227_s24 = smov 8   ;;  %s3228_s25 = smov 12   ;;  %vm2027_vm3 = vcmask 64512   ;;  %vm2060_vm4 = vcmask 97280   ;;  %vm2311_vm5 = vcmask 1041408   ;;  %vm2093_vm6 = vcmask 130048  }
   0xe   : > { %s4581_s15 = smov (!%p254_p4, %s3216_s15), 1  ;;  %s3229_s26 = smov 20   ;;  %vm2126_vm7 = vcmask 162816   ;;  %vm2159_vm8 = vcmask 195584   ;;  %vm2192_vm9 = vcmask 228352   ;;  %vm2225_vm10 = vcmask 261120  }
   0xf   : > { %s3090_s19 = smul.u32 216, %s4581_s15  ;;  %s3230_s27 = smov 16   ;;  %vm2278_vm11 = vcmask 293888   ;;  %vm2540_vm12 = vcmask 60416  }
  0x10   : > { %s3231_s28 = smov 24   ;;  %s3232_s29 = smov 32  }
  0x11   : > { %s3283_s22 = scalar_lea.vmem %s4565_s0, %s3090_s19  ;;  %s3233_s30 = smov 28  }
  0x12   : > { %v3286_v0 = vld [vmem:[%s3283_s22 + $0x30] sm:$0xff]   ;;  %v324_v1 = vld [vmem:[%s3283_s22 + $0x38] sm:$0x1]  ;;  %v322_v6 = vld [vmem:[%s3283_s22 + $0x20] sm:$0x1]  ;;  %s2887_s19 = sshll.u32 %s4581_s15, 7 }
  0x13   : > { %v3290_v2 = vld [vmem:[%s3283_s22 + $0x18] sm:$0xff]   ;;  %v588_v3 = vunpack.c.l.b16 %v324_v1  ;;  %v666_v4 = vshrl.u32 %v3286_v0, 16  ;;  %v668_v5 = vshll.u32 %v3286_v0, 16  ;;  %v2891_v8 = vld [vmem:[%s3283_s22] sm:$0xff]   ;;  %v586_v9 = vunpack.c.l.b16 %v322_v6  ;;  %v320_v11 = vld [vmem:[%s3283_s22 + $0x8] sm:$0x1] }
  0x14   : > { %v642_v7 = vshrl.u32 %v3290_v2, 16  ;;  %v644_v10 = vshll.u32 %v3290_v2, 16  ;;  %v618_v12 = vshrl.u32 %v2891_v8, 16  ;;  %v620_v13 = vshll.u32 %v2891_v8, 16  ;;  %v3300_v14 = vld [vmem:[%s3283_s22 + $0x60] sm:$0xff]   ;;  %v3330_v42 = vld [vmem:[%s3283_s22 + $0x48] sm:$0xff]  }
  0x15   : > { %v3302_v15 = vpack.c.b16 %v588_v3, %v588_v3  ;;  %v670_v16 = vrot.slane %v668_v5, 1  ;;  %v584_v17 = vunpack.c.l.b16 %v320_v11  ;;  %v328_v18 = vld [vmem:[%s3283_s22 + $0x68] sm:$0x1]  ;;  %v714_v19 = vshrl.u32 %v3300_v14, 16  ;;  %v323_v30 = vld [vmem:[%s3283_s22 + $0x2c] sm:$0x1] }
  0x16   : > { %v3306_v20 = vpack.c.b16 %v586_v9, %v586_v9  ;;  %v646_v21 = vrot.slane %v644_v10, 1  ;;  %v622_v22 = vrot.slane %v620_v13, 1  ;;  %v592_v23 = vunpack.c.l.b16 %v328_v18  ;;  %v3309_v24 = vld [vmem:[%s3283_s22 + $0x24] sm:$0xff]   ;;  %v326_v35 = vld [vmem:[%s3283_s22 + $0x50] sm:$0x1]  ;;  %v3342_v50 = vld [vmem:[%s3283_s22 + $0x3c] sm:$0xff]  }
  0x17   : > { %v3312_v25 = vld [vmem:[%s3283_s22 + $0x24] sm:$0xf0]  ;;  %v3314_v26 = vor.u32 %v670_v16, %v666_v4  ;;  %v673_v27 = vshll.u32 %v3302_v15, 16  ;;  %v3317_v28 = vpack.c.b16 %v584_v17, %v584_v17  ;;  %v716_v29 = vshll.u32 %v3300_v14, 16  ;;  %v3345_v51 = vld [vmem:[%s3283_s22 + $0x3c] sm:$0xf0] }
  0x18   : > { %v3321_v31 = vor.u32 %v646_v21, %v642_v7  ;;  %v649_v32 = vshll.u32 %v3306_v20, 16  ;;  %v623_v33 = vor.u32 %v622_v22, %v618_v12  ;;  %v3324_v34 = vpack.c.b16 %v592_v23, %v592_v23  ;;  %v325_v56 = vld [vmem:[%s3283_s22 + $0x44] sm:$0x1]  ;;  %v3355_v57 = vld [vmem:[%s3283_s22 + $0x54] sm:$0xff]   ;;  %v327_v3 = vld [vmem:[%s3283_s22 + $0x5c] sm:$0x1] }
  0x19   : > { %4572 = vst [vmem:[#allocation2_spill] sm:$0xff] %v3314_v26  ;;  %v675_v36 = vrot.slane %v673_v27, 1  ;;  %v625_v37 = vshll.u32 %v3317_v28, 16  ;;  %v718_v38 = vrot.slane %v716_v29, 1  ;;  %v587_v41 = vunpack.c.l.b16 %v323_v30  ;;  %v3358_v58 = vld [vmem:[%s3283_s22 + $0x54] sm:$0xf0] }
  0x1a   : > { %v651_v39 = vrot.slane %v649_v32, 1  ;;  %v721_v40 = vshll.u32 %v3324_v34, 16  ;;  %v590_v46 = vunpack.c.l.b16 %v326_v35  ;;  %v690_v54 = vshrl.u32 %v3330_v42, 16  ;;  %v3369_v4 = vld [vmem:[%s3283_s22 + $0xc] sm:$0xff]   ;;  %v321_v16 = vld [vmem:[%s3283_s22 + $0x14] sm:$0x1] }
  0x1b   : > { %v676_v43 = vsel %vm616_vm0, %v3314_v26, %v675_v36  ;;  %v627_v44 = vrot.slane %v625_v37, 1  ;;  %v3334_v45 = vor.u32 %v718_v38, %v714_v19  ;;  %v3339_v49 = vpack.c.b16 %v587_v41, %v587_v41  ;;  %v3372_v5 = vld [vmem:[%s3283_s22 + $0xc] sm:$0xf0]  ;;  %v3384_v21 = vld [vmem:[%s3283_s22 + $0x84] sm:$0xff]   ;;  %v331_v36 = vld [vmem:[%s3283_s22 + $0x8c] sm:$0x1] }
  0x1c   : > { %817 = vrot.lane.b32.xlu2 %v676_v43, %s3226_s23  ;;  %v652_v47 = vsel %vm616_vm0, %v3321_v31, %v651_v39  ;;  %v723_v48 = vrot.slane %v721_v40, 1  ;;  %v3349_v53 = vpack.c.b16 %v590_v46, %v590_v46  ;;  %v692_v55 = vshll.u32 %v3330_v42, 16  ;;  %v3387_v22 = vld [vmem:[%s3283_s22 + $0x84] sm:$0xf0]  ;;  %v330_v43 = vld [vmem:[%s3283_s22 + $0x80] sm:$0x1] }
  0x1d   : > { %4573 = vst [vmem:[#allocation3_spill] sm:$0xff] %v3334_v45  ;;  %813 = vrot.lane.b32.xlu1 %v652_v47, %s3226_s23  ;;  %v628_v52 = vsel %vm616_vm0, %v623_v33, %v627_v44  ;;  %v654_v60 = vshrl.u32 %v3309_v24, 16  ;;  %v656_v61 = vshll.u32 %v3309_v24, 16  ;;  %v661_v62 = vshll.u32 %v3339_v49, 16 }
  0x1e   : > { %809 = vrot.lane.b32.xlu0 %v628_v52, %s3226_s23  ;;  %v724_v59 = vsel %vm616_vm0, %v3334_v45, %v723_v48  ;;  %v694_v63 = vrot.slane %v692_v55, 1  ;;  %v697_v1 = vshll.u32 %v3349_v53, 16  ;;  %v589_v8 = vunpack.c.l.b16 %v325_v56  ;;  %v3408_v56 = vld [vmem:[%s3283_s22 + $0x78] sm:$0xff]   ;;  %v3134_v45 = vld [vmem:[%s3283_s22 + $0x24] sm:$0xe] }
  0x1f   : > { %v658_v6 = vrot.slane %v656_v61, 1  ;;  %v663_v7 = vrot.slane %v661_v62, 1  ;;  %v591_v13 = vunpack.c.l.b16 %v327_v3  ;;  %v678_v18 = vshrl.u32 %v3342_v50, 16  ;;  %v329_v3 = vld [vmem:[%s3283_s22 + $0x74] sm:$0x1] }
  0x20   : > { %v3374_v9 = vor.u32 %v694_v63, %v690_v54  ;;  %v699_v10 = vrot.slane %v697_v1, 1  ;;  %v3376_v12 = vpack.c.b16 %v589_v8, %v589_v8  ;;  %v680_v19 = vshll.u32 %v3342_v50, 16  ;;  %v3414_v63 = vld [vmem:[%s3283_s22 + $0x6c] sm:$0xff]  }
  0x21   : > { %v659_v11 = vor.u32 %v658_v6, %v654_v60  ;;  %v3392_v29 = vpack.c.b16 %v591_v13, %v591_v13  ;;  %v702_v32 = vshrl.u32 %v3355_v57, 16  ;;  %v704_v33 = vshll.u32 %v3355_v57, 16  ;;  %v3417_v1 = vld [vmem:[%s3283_s22 + $0x6c] sm:$0xf0] }
  0x22   : > { %v700_v17 = vsel %vm616_vm0, %v3374_v9, %v699_v10  ;;  %v685_v27 = vshll.u32 %v3376_v12, 16  ;;  %v682_v30 = vrot.slane %v680_v19, 1  ;;  %v585_v35 = vunpack.c.l.b16 %v321_v16 }
  0x23   : > { %v664_v23 = vsel %vm616_vm0, %v659_v11, %v663_v7  ;;  %v709_v38 = vshll.u32 %v3392_v29, 16  ;;  %v706_v40 = vrot.slane %v704_v33, 1  ;;  %v630_v46 = vshrl.u32 %v3369_v4, 16 }
  0x24   : > { %825 = vrot.lane.b32.xlu2 %v724_v59, %s3226_s23  ;;  %v687_v37 = vrot.slane %v685_v27, 1  ;;  %v683_v39 = vor.u32 %v682_v30, %v678_v18  ;;  %v3400_v41 = vpack.c.b16 %v585_v35, %v585_v35  ;;  %v632_v47 = vshll.u32 %v3369_v4, 16  ;;  %v334_v18 = vld [vmem:[%s3283_s22 + $0xb0] sm:$0x1]  ;;  %v3431_v27 = vld [vmem:[%s3283_s22 + $0xa8] sm:$0xff]  }
  0x25   : > { %815 = vrot.lane.b32.xlu1 %v664_v23, %s3226_s23  ;;  %v711_v44 = vrot.slane %v709_v38, 1  ;;  %v595_v48 = vunpack.c.l.b16 %v331_v36  ;;  %v707_v54 = vor.u32 %v706_v40, %v702_v32  ;;  %v594_v61 = vunpack.c.l.b16 %v330_v43  ;;  %v3442_v40 = vld [vmem:[%s3283_s22 + $0x9c] sm:$0xf0] }
  0x26   : > { %821 = vrot.lane.b32.xlu0 %v700_v17, %s3226_s23  ;;  %v688_v52 = vsel %vm616_vm0, %v683_v39, %v687_v37  ;;  %v637_v55 = vshll.u32 %v3400_v41, 16  ;;  %v634_v59 = vrot.slane %v632_v47, 1  ;;  %v738_v62 = vshrl.u32 %v3408_v56, 16  ;;  %v3439_v39 = vld [vmem:[%s3283_s22 + $0x9c] sm:$0xff]  }
  0x27   : > { %v3410_v60 = vpack.c.b16 %v595_v48, %v595_v48  ;;  %v712_v6 = vsel %vm616_vm0, %v707_v54, %v711_v44  ;;  %v750_v8 = vshrl.u32 %v3384_v21, 16  ;;  %v752_v10 = vshll.u32 %v3384_v21, 16  ;;  %v333_v48 = vld [vmem:[%s3283_s22 + $0xa4] sm:$0x1] }
  0x28   : > { %v639_v7 = vrot.slane %v637_v55, 1  ;;  %v635_v11 = vor.u32 %v634_v59, %v630_v46  ;;  %v3425_v16 = vpack.c.b16 %v594_v61, %v594_v61  ;;  %v740_v17 = vshll.u32 %v3408_v56, 16  ;;  %v332_v61 = vld [vmem:[%s3283_s22 + $0x98] sm:$0x1] }
  0x29   : > { %v757_v13 = vshll.u32 %v3410_v60, 16  ;;  %v754_v19 = vrot.slane %v752_v10, 1  ;;  %v593_v23 = vunpack.c.l.b16 %v329_v3  ;;  %v598_v38 = vunpack.c.l.b16 %v334_v18 }
  0x2a   : > { %v640_v30 = vsel %vm616_vm0, %v635_v11, %v639_v7  ;;  %v742_v33 = vrot.slane %v740_v17, 1  ;;  %v745_v35 = vshll.u32 %v3425_v16, 16  ;;  %v786_v46 = vshrl.u32 %v3431_v27, 16  ;;  %v3459_v7 = vld [vmem:[%s3283_s22 + $0x90] sm:$0xff]  }
  0x2b   : > { %v759_v32 = vrot.slane %v757_v13, 1  ;;  %v755_v36 = vor.u32 %v754_v19, %v750_v8  ;;  %v3436_v37 = vpack.c.b16 %v593_v23, %v593_v23  ;;  %v788_v47 = vshll.u32 %v3431_v27, 16  ;;  %v3131_v13 = vld [vmem:[%s3283_s22 + $0xc] sm:$0xe] }
  0x2c   : > { %819 = vrot.lane.b32.xlu2 %v688_v52, %s3226_s23  ;;  %v3444_v43 = vor.u32 %v742_v33, %v738_v62  ;;  %v747_v44 = vrot.slane %v745_v35, 1  ;;  %v726_v54 = vshrl.u32 %v3414_v63, 16  ;;  %v728_v55 = vshll.u32 %v3414_v63, 16 }
  0x2d   : > { %823 = vrot.lane.b32.xlu1 %v712_v6, %s3226_s23  ;;  %v760_v52 = vsel %vm616_vm0, %v755_v36, %v759_v32  ;;  %v733_v59 = vshll.u32 %v3436_v37, 16  ;;  %v3456_v3 = vpack.c.b16 %v598_v38, %v598_v38  ;;  %v790_v6 = vrot.slane %v788_v47, 1 }
  0x2e   : > { %811 = vrot.lane.b32.xlu0 %v640_v30, %s3226_s23  ;;  %v748_v62 = vsel %vm616_vm0, %v3444_v43, %v747_v44  ;;  %v730_v8 = vrot.slane %v728_v55, 1  ;;  %v597_v11 = vunpack.c.l.b16 %v333_v48  ;;  %v596_v19 = vunpack.c.l.b16 %v332_v61  ;;  %v3478_v48 = vld [vmem:[%s3283_s22 + $0xb4] sm:$0xff]   ;;  %v3010_v61 = vld [vmem:[%s3283_s22] sm:$0xe] }
  0x2f   : > { %v735_v10 = vrot.slane %v733_v59, 1  ;;  %v3463_v17 = vor.u32 %v790_v6, %v786_v46  ;;  %v793_v18 = vshll.u32 %v3456_v3, 16  ;;  %v764_v32 = vshll.u32 %v3459_v7, 16  ;;  %v3009_v59 = vld [vmem:[%s3283_s22] sm:$0xf0] }
  0x30   : > { %v731_v23 = vor.u32 %v730_v8, %v726_v54  ;;  %v3467_v30 = vpack.c.b16 %v597_v11, %v597_v11  ;;  %v3470_v35 = vpack.c.b16 %v596_v19, %v596_v19  ;;  %v762_v36 = vshrl.u32 %v3459_v7, 16  ;;  %v335_v11 = vld [vmem:[%s3283_s22 + $0xbc] sm:$0x1] }
  0x31   : > { %v795_v33 = vrot.slane %v793_v18, 1  ;;  %v774_v44 = vshrl.u32 %v3439_v39, 16  ;;  %v776_v46 = vshll.u32 %v3439_v39, 16  ;;  %v766_v54 = vrot.slane %v764_v32, 1 }
  0x32   : > { %v736_v38 = vsel %vm616_vm0, %v731_v23, %v735_v10  ;;  %v781_v47 = vshll.u32 %v3467_v30, 16  ;;  %v769_v55 = vshll.u32 %v3470_v35, 16  ;;  %v3132_v10 = vor.u32 %v3131_v13, %v3372_v5 }
  0x33   : > { %v778_v6 = vrot.slane %v776_v46, 1  ;;  %v3491_v18 = vor.u32 %v766_v54, %v762_v36  ;;  %v3011_v32 = vor.u32 %v3010_v61, %v3009_v59  ;;  %v599_v26 = vunpack.c.l.b16 %v335_v11 }
  0x34   : > { %831 = vrot.lane.b32.xlu2 %v760_v52, %s3226_s23  ;;  %v3481_v52 = vld [vmem:[%s3283_s22 + $0xb4] sm:$0xf0]  ;;  %v783_v8 = vrot.slane %v781_v47, 1  ;;  %v771_v19 = vrot.slane %v769_v55, 1  ;;  %v893_v5 = vrot.slane %v3132_v10, 1  ;;  %v891_v13 = vrot.slane %v3317_v28, 1 }
  0x35   : > { %829 = vrot.lane.b32.xlu1 %v748_v62, %s3226_s23  ;;  %v796_v62 = vsel %vm616_vm0, %v3463_v17, %v795_v33  ;;  %v779_v23 = vor.u32 %v778_v6, %v774_v44  ;;  %v3501_v36 = vpack.c.b16 %v599_v26, %v599_v26  ;;  %v3015_v44 = vld [vmem:[%s3283_s22 + $0x30] sm:$0xf0]  ;;  %v890_v47 = vrot.slane %v3011_v32, 1  ;;  %v3013_v26 = vld [vmem:[%s3283_s22 + $0x18] sm:$0xe] }
  0x36   : > { %827 = vrot.lane.b32.xlu0 %v736_v38, %s3226_s23  ;;  %v894_v38 = vrot.slane %v3400_v41, 1  ;;  %v772_v46 = vsel %vm616_vm0, %v3491_v18, %v771_v19  ;;  %v3016_v41 = vld [vmem:[%s3283_s22 + $0x30] sm:$0xe]  ;;  %v798_v54 = vshrl.u32 %v3478_v48, 16  ;;  %v800_v55 = vshll.u32 %v3478_v48, 16 }
  0x37   : > { %v784_v33 = vsel %vm616_vm0, %v779_v23, %v783_v8  ;;  %v805_v59 = vshll.u32 %v3501_v36, 16  ;;  %v3017_v6 = vor.u32 %v3016_v41, %v3015_v44  ;;  %v3012_v8 = vld [vmem:[%s3283_s22 + $0x18] sm:$0xf0]  ;;  %v3137_v10 = vld [vmem:[%s3283_s22 + $0x54] sm:$0xe]  ;;  %v892_v11 = vsel %vm889_vm1, %v890_v47, %v891_v13 }
  0x38   : > { %v895_v61 = vsel %vm889_vm1, %v893_v5, %v894_v38  ;;  %v3135_v23 = vor.u32 %v3134_v45, %v3312_v25  ;;  %v903_v32 = vrot.slane %v3302_v15, 1  ;;  %v3140_v5 = vld [vmem:[%s3283_s22 + $0x3c] sm:$0xe]  ;;  %v900_v13 = vrot.slane %v3339_v49, 1  ;;  %v3018_v45 = vld [vmem:[%s3283_s22 + $0x48] sm:$0xf0] }
  0x39   : > { %v807_v28 = vrot.slane %v805_v59, 1  ;;  %v897_v25 = vrot.slane %v3306_v20, 1  ;;  %v3019_v41 = vld [vmem:[%s3283_s22 + $0x48] sm:$0xe]  ;;  %v3143_v49 = vld [vmem:[%s3283_s22 + $0x6c] sm:$0xe] }
  0x3a   : > { %v899_v44 = vrot.slane %v3135_v23, 1  ;;  %v3020_v59 = vor.u32 %v3019_v41, %v3018_v45  ;;  %v915_v45 = vrot.slane %v3324_v34, 1  ;;  %v3028_v41 = vld [vmem:[%s3283_s22 + $0x90] sm:$0xe] }
  0x3c   : > { %837 = vrot.lane.b32.xlu2 %v796_v62, %s3226_s23  ;;  %v802_v62 = vrot.slane %v800_v55, 1  ;;  %v901_v55 = vsel %vm889_vm1, %v899_v44, %v900_v13 }
  0x3d   : > { %835 = vrot.lane.b32.xlu1 %v784_v33, %s3226_s23  ;;  %v902_v33 = vrot.slane %v3017_v6, 1  ;;  %v3141_v6 = vor.u32 %v3140_v5, %v3345_v51  ;;  %v3146_v51 = vld [vmem:[%s3283_s22 + $0x9c] sm:$0xe] }
  0x3e   : > { %833 = vrot.lane.b32.xlu0 %v772_v46, %s3226_s23  ;;  %v803_v19 = vor.u32 %v802_v62, %v798_v54  ;;  %v3014_v46 = vor.u32 %v3013_v26, %v3012_v8  ;;  %v3138_v54 = vor.u32 %v3137_v10, %v3358_v58  ;;  %v912_v62 = vrot.slane %v3392_v29, 1  ;;  %v3024_v8 = vld [vmem:[%s3283_s22 + $0x78] sm:$0xf0]  ;;  %v3025_v58 = vld [vmem:[%s3283_s22 + $0x78] sm:$0xe] }
  0x3f   : > { %v904_v15 = vsel %vm889_vm1, %v902_v33, %v903_v32  ;;  %v909_v26 = vrot.slane %v3349_v53, 1  ;;  %v3026_v23 = vor.u32 %v3025_v58, %v3024_v8  ;;  %v3021_v32 = vld [vmem:[%s3283_s22 + $0x60] sm:$0xf0]  ;;  %v3022_v29 = vld [vmem:[%s3283_s22 + $0x60] sm:$0xe]  ;;  %v3144_v33 = vor.u32 %v3143_v49, %v3417_v1  ;;  %v3569_v58 = vld [vmem:[%s3283_s22 + $0xc] sm:$0xff]  }
  0x40   : > { %v808_v38 = vsel %vm616_vm0, %v803_v19, %v807_v28  ;;  %v896_v47 = vrot.slane %v3014_v46, 1  ;;  %v911_v20 = vrot.slane %v3138_v54, 1  ;;  %v908_v28 = vrot.slane %v3020_v59, 1  ;;  %v3027_v1 = vld [vmem:[%s3283_s22 + $0x90] sm:$0xf0] }
  0x41   : > { %v906_v19 = vrot.slane %v3376_v12, 1  ;;  %v921_v53 = vrot.slane %v3425_v16, 1  ;;  %v920_v5 = vrot.slane %v3026_v23, 1  ;;  %v3023_v44 = vor.u32 %v3022_v29, %v3021_v32  ;;  %v3149_v12 = vld [vmem:[%s3283_s22 + $0x84] sm:$0xe] }
  0x42   : > { %v913_v10 = vsel %vm889_vm1, %v911_v20, %v912_v62  ;;  %v917_v13 = vrot.slane %v3144_v33, 1  ;;  %v930_v49 = vrot.slane %v3467_v30, 1  ;;  %v927_v20 = vrot.slane %v3470_v35, 1  ;;  %v3030_v30 = vld [vmem:[%s3283_s22 + $0xa8] sm:$0xf0]  ;;  %v3586_v29 = vld [vmem:[%s3283_s22 + $0x24] sm:$0xff]  }
  0x43   : > { %v914_v16 = vrot.slane %v3023_v44, 1  ;;  %v924_v8 = vrot.slane %v3410_v60, 1  ;;  %v933_v32 = vrot.slane %v3456_v3, 1  ;;  %v3597_v3 = vld [vmem:[%s3283_s22 + $0x54] sm:$0xff]   ;;  %v3605_v33 = vld [vmem:[%s3283_s22 + $0x3c] sm:$0xff]  }
  0x44   : > { %940 = vrot.lane.b32.xlu2 %v895_v61, %s3227_s24  ;;  %v898_v61 = vsel %vm889_vm1, %v896_v47, %v897_v25  ;;  %v918_v25 = vrot.slane %v3436_v37, 1  ;;  %v3147_v47 = vor.u32 %v3146_v51, %v3442_v40  ;;  %v3152_v37 = vld [vmem:[%s3283_s22 + $0xb4] sm:$0xe]  ;;  %v3589_v51 = vld [vmem:[%s3283_s22 + $0x24] sm:$0xf0] }
  0x45   : > { %938 = vrot.lane.b32.xlu1 %v892_v11, %s3227_s24  ;;  %v905_v11 = vrot.slane %v3141_v6, 1  ;;  %v916_v59 = vsel %vm889_vm1, %v914_v16, %v915_v45  ;;  %v3154_v44 = vld [vmem:[%s3283_s22 + $0x6c] sm:$0xf0]  ;;  %v3636_v45 = vld [vmem:[%s3283_s22 + $0x84] sm:$0xf0]  ;;  %v3647_v16 = vld [vmem:[%s3283_s22 + $0xb4] sm:$0xff]  }
  0x46   : > { %839 = vrot.lane.b32.xlu0 %v808_v38, %s3226_s23  ;;  %v910_v38 = vsel %vm889_vm1, %v908_v28, %v909_v26  ;;  %v919_v54 = vsel %vm889_vm1, %v917_v13, %v918_v25  ;;  %v929_v34 = vrot.slane %v3147_v47, 1  ;;  %v3572_v28 = vld [vmem:[%s3283_s22 + $0xc] sm:$0xf0]  ;;  %v2757_v13 = vld [vmem:[%s3283_s22 + $0x9c] sm:$0xff]   ;;  %v3650_v47 = vld [vmem:[%s3283_s22 + $0xb4] sm:$0xf0] }
  0x47   : > { %v907_v46 = vsel %vm889_vm1, %v905_v11, %v906_v19  ;;  %v936_v19 = vrot.slane %v3501_v36, 1  ;;  %v3628_v25 = vld [vmem:[%s3283_s22 + $0x9c] sm:$0xf0] }
  0x48   : > { %v931_v62 = vsel %vm889_vm1, %v929_v34, %v930_v49 }
  0x4c   : > { %946 = vrot.lane.b32.xlu2 %v904_v15, %s3227_s24  ;;  %v922_v15 = vsel %vm889_vm1, %v920_v5, %v921_v53  ;;  %v3608_v53 = vld [vmem:[%s3283_s22 + $0x3c] sm:$0xf0]  ;;  %v2749_v5 = vld [vmem:[%s3283_s22 + $0x6c] sm:$0xff]  }
  0x4d   : > { %944 = vrot.lane.b32.xlu1 %v901_v55, %s3227_s24  ;;  %v3029_v55 = vor.u32 %v3028_v41, %v3027_v1  ;;  %v2773_v41 = vld [vmem:[%s3283_s22 + $0x74] sm:$0x1] }
  0x4e   : > { %942 = vrot.lane.b32.xlu0 %v898_v61, %s3227_s24  ;;  %v3150_v61 = vor.u32 %v3149_v12, %v3387_v22  ;;  %v3031_v22 = vld [vmem:[%s3283_s22 + $0xa8] sm:$0xe] }
  0x4f   : > { %v926_v40 = vrot.slane %v3029_v55, 1  ;;  %v3032_v11 = vor.u32 %v3031_v22, %v3030_v30  ;;  %v1106_v55 = vunpack.c.l.b16 %v2773_v41  ;;  %v2837_v41 = vld [vmem:[%s3283_s22 + $0x80] sm:$0x1] }
  0x50   : > { %v923_v6 = vrot.slane %v3150_v61, 1  ;;  %v1229_v61 = vshll.u32 %v2749_v5, 16 }
  0x51   : > { %v928_v26 = vsel %vm889_vm1, %v926_v40, %v927_v20  ;;  %v932_v23 = vrot.slane %v3032_v11, 1  ;;  %v3666_v40 = vld [vmem:[%s3283_s22 + $0xc0] sm:$0xff]   ;;  %v1122_v20 = vpack.c.b16 %v1106_v55, %v1106_v55  ;;  %v1618_v55 = vunpack.c.l.b16 %v2837_v41 }
  0x52   : > { %v925_v35 = vsel %vm889_vm1, %v923_v6, %v924_v8  ;;  %v1275_v6 = vshrl.u32 %v2757_v13, 16 }
  0x53   : > { %v934_v36 = vsel %vm889_vm1, %v932_v23, %v933_v32  ;;  %v1427_v22 = vrot.slane %v1122_v20, 1  ;;  %v1234_v11 = vshll.u32 %v1122_v20, 16 }
  0x54   : > { %952 = vrot.lane.b32.xlu2 %v913_v10, %s3227_s24  ;;  %v3153_v10 = vor.u32 %v3152_v37, %v3481_v52 }
  0x55   : > { %950 = vrot.lane.b32.xlu1 %v910_v38, %s3227_s24  ;;  %v3600_v38 = vld [vmem:[%s3283_s22 + $0x54] sm:$0xf0] }
  0x56   : > { %948 = vrot.lane.b32.xlu0 %v907_v46, %s3227_s24  ;;  %v935_v60 = vrot.slane %v3153_v10, 1  ;;  %v1227_v10 = vshrl.u32 %v2749_v5, 16 }
  0x58   : > { %v937_v52 = vsel %vm889_vm1, %v935_v60, %v936_v19  ;;  %v3158_v19 = vld [vmem:[%s3283_s22 + $0x9c] sm:$0xe] }
  0x5c   : > { %958 = vrot.lane.b32.xlu2 %v922_v15, %s3227_s24  ;;  %v3155_v15 = vld [vmem:[%s3283_s22 + $0x6c] sm:$0xe] }
  0x5d   : > { %956 = vrot.lane.b32.xlu1 %v919_v54, %s3227_s24 }
  0x5e   : > { %954 = vrot.lane.b32.xlu0 %v916_v59, %s3227_s24  ;;  %v1277_v59 = vshll.u32 %v2757_v13, 16 }
  0x60   : > { %v1279_v8 = vrot.slane %v1277_v59, 1 }
  0x62   : > { %v1280_v32 = vor.u32 %v1279_v8, %v1275_v6  ;;  %v3070_v6 = vld [vmem:[%s3283_s22 + $0x78] sm:$0xe]  ;;  %v2769_v8 = vld [vmem:[%s3283_s22 + $0x44] sm:$0x1] }
  0x64   : > { %964 = vrot.lane.b32.xlu2 %v931_v62, %s3227_s24  ;;  %v3156_v62 = vor.u32 %v3155_v15, %v3154_v44  ;;  %v2841_v44 = vld [vmem:[%s3283_s22 + $0xb0] sm:$0x1] }
  0x65   : > { %962 = vrot.lane.b32.xlu1 %v928_v26, %s3227_s24 }
  0x66   : > { %960 = vrot.lane.b32.xlu0 %v925_v35, %s3227_s24  ;;  %v1426_v26 = vrot.slane %v3156_v62, 1  ;;  %v1231_v35 = vrot.slane %v1229_v61, 1  ;;  %v3159_v61 = vor.u32 %v3158_v19, %v3628_v25  ;;  %v3069_v62 = vld [vmem:[%s3283_s22 + $0x78] sm:$0xf0] }
  0x67   : > { %v3071_v19 = vor.u32 %v3070_v6, %v3069_v62 }
  0x6c   : > { %1050 = vrot.lane.b32.xlu2 %v3569_v58, %s3228_s25 }
  0x6d   : > { %968 = vrot.lane.b32.xlu1 %v937_v52, %s3227_s24 }
  0x6e   : > { %966 = vrot.lane.b32.xlu0 %v934_v36, %s3227_s24 }
  0x74   : > { %1056 = vrot.lane.b32.xlu2 %v3286_v0, %s3228_s25 }
  0x75   : > { %1054 = vrot.lane.b32.xlu1 %v3586_v29, %s3228_s25 }
  0x76   : > { %v3612_v46 = vpop.permute.xlu2 %817  ;;  %1052 = vrot.lane.b32.xlu0 %v3290_v2, %s3228_s25  ;;  %v3633_v2 = vld [vmem:[%s3283_s22 + $0x84] sm:$0xff]  }
  0x7c   : > { %1062 = vrot.lane.b32.xlu2 %v3597_v3, %s3228_s25 }
  0x7d   : > { %1060 = vrot.lane.b32.xlu1 %v3330_v42, %s3228_s25  ;;  %v2777_v42 = vld [vmem:[%s3283_s22 + $0xa4] sm:$0x1] }
  0x7e   : > { %v3622_v12 = vpop.permute.xlu2 %825  ;;  %1058 = vrot.lane.b32.xlu0 %v3605_v33, %s3228_s25  ;;  %v1110_v54 = vunpack.c.l.b16 %v2777_v42  ;;  %v1236_v42 = vrot.slane %v1234_v11, 1  ;;  %v1438_v11 = vrot.slane %v3159_v61, 1 }
  0x84   : > { %1068 = vrot.lane.b32.xlu2 %v3408_v56, %s3228_s25 }
  0x85   : > { %1066 = vrot.lane.b32.xlu1 %v2749_v5, %s3228_s25  ;;  %v1428_v5 = vsel %vm889_vm1, %v1426_v26, %v1427_v22  ;;  %v1634_v26 = vpack.c.b16 %v1618_v55, %v1618_v55 }
  0x86   : > { %v3639_v1 = vpop.permute.xlu2 %819  ;;  %1064 = vrot.lane.b32.xlu0 %v3300_v14, %s3228_s25  ;;  %v3659_v14 = vpack.c.b16 %v1110_v54, %v1110_v54  ;;  %v1622_v54 = vunpack.c.l.b16 %v2841_v44 }
  0x88   : > { %v1282_v30 = vshll.u32 %v3659_v14, 16  ;;  %v3693_v22 = vpack.c.b16 %v1622_v54, %v1622_v54  ;;  %v1439_v25 = vrot.slane %v3659_v14, 1  ;;  %v1939_v54 = vrot.slane %v1634_v26, 1 }
  0x8a   : > { %v1284_v52 = vrot.slane %v1282_v30, 1  ;;  %v1794_v44 = vshll.u32 %v3693_v22, 16  ;;  %v1440_v14 = vsel %vm889_vm1, %v1438_v11, %v1439_v25  ;;  %v3075_v11 = vld [vmem:[%s3283_s22 + $0xa8] sm:$0xf0]  ;;  %v3076_v25 = vld [vmem:[%s3283_s22 + $0xa8] sm:$0xe] }
  0x8c   : > { %1074 = vrot.lane.b32.xlu2 %v2757_v13, %s3228_s25  ;;  %v1232_v13 = vor.u32 %v1231_v35, %v1227_v10  ;;  %v1285_v15 = vsel %vm616_vm0, %v1280_v32, %v1284_v52  ;;  %v2765_v10 = vld [vmem:[%s3283_s22 + $0x14] sm:$0x1]  ;;  %v1102_v32 = vunpack.c.l.b16 %v2769_v8  ;;  %v1796_v62 = vrot.slane %v1794_v44, 1 }
  0x8d   : > { %1072 = vrot.lane.b32.xlu1 %v3459_v7, %s3228_s25 }
  0x8e   : > { %v3655_v37 = vpop.permute.xlu2 %831  ;;  %1070 = vrot.lane.b32.xlu0 %v3633_v2, %s3228_s25  ;;  %v1237_v59 = vsel %vm616_vm0, %v1232_v13, %v1236_v42  ;;  %v1181_v13 = vshll.u32 %v3605_v33, 16  ;;  %v1746_v42 = vshll.u32 %v1634_v26, 16  ;;  %v3708_v55 = vpack.c.b16 %v1102_v32, %v1102_v32 }
  0x8f   : > { %v3657_v34 = vpop.permute.xlu1 %813  ;;  %v1131_v32 = vshrl.u32 %v3569_v58, 16 }
  0x90   : > { %v3663_v49 = vpop.permute.xlu0 %809  ;;  %v1748_v8 = vrot.slane %v1746_v42, 1  ;;  %v1183_v26 = vrot.slane %v1181_v13, 1 }
  0x94   : > { %1080 = vrot.lane.b32.xlu2 %v3666_v40, %s3228_s25 }
  0x95   : > { %1078 = vrot.lane.b32.xlu1 %v3647_v16, %s3228_s25 }
  0x96   : > { %v3673_v60 = vpop.permute.xlu2 %837  ;;  %1076 = vrot.lane.b32.xlu0 %v3431_v27, %s3228_s25 }
  0x97   : > { %v3676_v23 = vpop.permute.xlu1 %815 }
  0x98   : > { %v3680_v36 = vpop.permute.xlu0 %821 }
  0x9c   : > { %1466 = vrot.lane.b32.xlu2 %v1428_v5, %s3229_s26  ;;  %v1098_v5 = vunpack.c.l.b16 %v2765_v10  ;;  %v1186_v10 = vshll.u32 %v3708_v55, 16 }
  0x9d   : > { %1346 = vrot.lane.b32.xlu1 %v1285_v15, %s3230_s27  ;;  %v1938_v15 = vrot.slane %v3071_v19, 1  ;;  %v1797_v19 = vsel %vm616_vm0, %v3463_v17, %v1796_v62 }
  0x9e   : > { %v941_v20 = vpop.permute.xlu2 %940  ;;  %1338 = vrot.lane.b32.xlu0 %v1237_v59, %s3230_s27  ;;  %v1133_v59 = vshll.u32 %v3569_v58, 16  ;;  %v3719_v6 = vpack.c.b16 %v1098_v5, %v1098_v5  ;;  %v1749_v5 = vsel %vm616_vm0, %v3444_v43, %v1748_v8  ;;  %v1188_v42 = vrot.slane %v1186_v10, 1 }
  0x9f   : > { %v824_v30 = vpop.permute.xlu1 %823 }
  0xa0   : > { %v812_v35 = vpop.permute.xlu0 %811  ;;  %v1138_v44 = vshll.u32 %v3719_v6, 16 }
  0xa1   : > { %v1998_v52 = vsel %vm1994_vm2, %v3369_v4, %v812_v35  ;;  %v2004_v4 = vsel %vm1994_vm2, %v3286_v0, %v3612_v46  ;;  %v1940_v0 = vsel %vm889_vm1, %v1938_v15, %v1939_v54  ;;  %v1179_v46 = vshrl.u32 %v3605_v33, 16  ;;  %v3161_v33 = vld [vmem:[%s3283_s22 + $0x3c] sm:$0xe]  ;;  %v3164_v15 = vld [vmem:[%s3283_s22 + $0xc] sm:$0xe] }
  0xa2   : > { %v3705_v41 = vsel %vm2027_vm3, %v1998_v52, %v941_v20  ;;  %v1135_v52 = vrot.slane %v1133_v59, 1  ;;  %v2010_v54 = vsel %vm1994_vm2, %v3355_v57, %v824_v30  ;;  %v1140_v62 = vrot.slane %v1138_v44, 1 }
  0xa3   : > { %v1184_v13 = vor.u32 %v1183_v26, %v1179_v46  ;;  %v1951_v57 = vrot.slane %v3693_v22, 1  ;;  %v3165_v44 = vor.u32 %v3164_v15, %v3572_v28  ;;  %v1415_v28 = vrot.slane %v3708_v55, 1 }
  0xa4   : > { %1586 = vrot.lane.b32.xlu2 %v3431_v27, %s3231_s28  ;;  %v1136_v59 = vor.u32 %v1135_v52, %v1131_v32  ;;  %v3162_v32 = vor.u32 %v3161_v33, %v3608_v53  ;;  %v2774_v53 = vld [vmem:[%s3283_s22 + $0x80] sm:$0x1] }
  0xa5   : > { %1578 = vrot.lane.b32.xlu1 %v3408_v56, %s3231_s28  ;;  %v1189_v46 = vsel %vm616_vm0, %v1184_v13, %v1188_v42  ;;  %v1107_v55 = vunpack.c.l.b16 %v2774_v53 }
  0xa6   : > { %v947_v27 = vpop.permute.xlu2 %946  ;;  %1474 = vrot.lane.b32.xlu0 %v1440_v14, %s3229_s26  ;;  %v3077_v14 = vor.u32 %v3076_v25, %v3075_v11  ;;  %v3752_v11 = vld [vmem:[%s3283_s22 + $0x48] sm:$0xff]   ;;  %v1141_v25 = vsel %vm616_vm0, %v1136_v59, %v1140_v62  ;;  %v1403_v62 = vrot.slane %v3719_v6, 1 }
  0xa7   : > { %v830_v61 = vpop.permute.xlu1 %829  ;;  %v3717_v20 = vsel %vm2027_vm3, %v2004_v4, %v947_v27  ;;  %v2833_v4 = vld [vmem:[%s3283_s22 + $0x50] sm:$0x1]  ;;  %v1693_v13 = vshll.u32 %v3752_v11, 16 }
  0xa8   : > { %v3725_v35 = vpop.permute.xlu0 %827  ;;  %v1950_v26 = vrot.slane %v3077_v14, 1  ;;  %v1614_v30 = vunpack.c.l.b16 %v2833_v4  ;;  %v2016_v42 = vsel %vm1994_vm2, %v3408_v56, %v830_v61  ;;  %v3125_v4 = vld [vmem:[%s3283_s22] sm:$0xff]   ;;  %v1402_v61 = vrot.slane %v3165_v44, 1 }
  0xa9   : > { %v1996_v59 = vsel %vm1994_vm2, %v3125_v4, %v3663_v49  ;;  %v3057_v4 = vld [vmem:[%s3283_s22 + $0x18] sm:$0xf0] }
  0xaa   : > { %v3760_v22 = vpack.c.b16 %v1614_v30, %v1614_v30  ;;  %v1404_v6 = vsel %vm889_vm1, %v1402_v61, %v1403_v62  ;;  %v3058_v62 = vld [vmem:[%s3283_s22 + $0x18] sm:$0xe] }
  0xac   : > { %1978 = vrot.lane.b32.xlu2 %v1940_v0, %s3232_s29  ;;  %v2829_v0 = vld [vmem:[%s3283_s22 + $0x20] sm:$0x1] }
  0xad   : > { %1858 = vrot.lane.b32.xlu1 %v1797_v19, %s3233_s30  ;;  %v3001_v19 = vld [vmem:[%s3283_s22 + $0x18] sm:$0xff]   ;;  %v1610_v52 = vunpack.c.l.b16 %v2829_v0  ;;  %v1691_v0 = vshrl.u32 %v3752_v11, 16 }
  0xae   : > { %v953_v58 = vpop.permute.xlu2 %952  ;;  %1850 = vrot.lane.b32.xlu0 %v1749_v5, %s3233_s30  ;;  %v1952_v5 = vsel %vm889_vm1, %v1950_v26, %v1951_v57  ;;  %v1695_v26 = vrot.slane %v1693_v13, 1  ;;  %v1698_v57 = vshll.u32 %v3760_v22, 16  ;;  %v3787_v13 = vpack.c.b16 %v1107_v55, %v1107_v55  ;;  %v3814_v55 = vld [vmem:[%s3283_s22 + $0x84] sm:$0xf0] }
  0xaf   : > { %v3743_v27 = vsel %vm2027_vm3, %v2010_v54, %v953_v58  ;;  %v836_v8 = vpop.permute.xlu1 %835  ;;  %v1645_v54 = vshll.u32 %v3001_v19, 16  ;;  %v1414_v58 = vrot.slane %v3162_v32, 1  ;;  %v3771_v15 = vpack.c.b16 %v1610_v52, %v1610_v52 }
  0xb0   : > { %v3749_v10 = vpop.permute.xlu0 %833  ;;  %v1696_v44 = vor.u32 %v1695_v26, %v1691_v0  ;;  %v1246_v61 = vshll.u32 %v3787_v13, 16  ;;  %v2778_v0 = vld [vmem:[%s3283_s22 + $0xb0] sm:$0x1]  ;;  %v3126_v26 = vld [vmem:[%s3283_s22 + $0x18] sm:$0xff]  }
  0xb1   : > { %v1647_v32 = vrot.slane %v1645_v54, 1  ;;  %v1416_v49 = vsel %vm889_vm1, %v1414_v58, %v1415_v28  ;;  %v1650_v52 = vshll.u32 %v3771_v15, 16  ;;  %v2002_v58 = vsel %vm1994_vm2, %v3309_v24, %v3676_v23 }
  0xb2   : > { %v2000_v24 = vsel %vm1994_vm2, %v3126_v26, %v3657_v34  ;;  %v3051_v34 = vld [vmem:[%s3283_s22 + $0xa8] sm:$0xf0]  ;;  %v3046_v26 = vld [vmem:[%s3283_s22 + $0x78] sm:$0xe] }
  0xb4   : > { %1330 = vrot.lane.b32.xlu2 %v1189_v46, %s3230_s27 }
  0xb5   : > { %1322 = vrot.lane.b32.xlu1 %v1141_v25, %s3230_s27  ;;  %v1643_v25 = vshrl.u32 %v3001_v19, 16 }
  0xb6   : > { %v959_v14 = vpop.permute.xlu2 %958  ;;  %1986 = vrot.lane.b32.xlu0 %v1952_v5, %s3232_s29  ;;  %v1700_v5 = vrot.slane %v1698_v57, 1  ;;  %v3811_v57 = vld [vmem:[%s3283_s22 + $0x84] sm:$0xff]  }
  0xb7   : > { %v3768_v33 = vsel %vm2027_vm3, %v2016_v42, %v959_v14  ;;  %v939_v56 = vpop.permute.xlu1 %938  ;;  %v2022_v42 = vsel %vm1994_vm2, %v3439_v39, %v836_v8  ;;  %v1648_v54 = vor.u32 %v1647_v32, %v1643_v25  ;;  %v3063_v39 = vld [vmem:[%s3283_s22 + $0x48] sm:$0xf0]  ;;  %v3064_v8 = vld [vmem:[%s3283_s22 + $0x48] sm:$0xe] }
  0xb8   : > { %v2029_v46 = vsel %vm2027_vm3, %v1996_v59, %v939_v56  ;;  %v3781_v30 = vpop.permute.xlu0 %839  ;;  %v1701_v56 = vsel %vm616_vm0, %v1696_v44, %v1700_v5  ;;  %v1248_v44 = vrot.slane %v1246_v61, 1  ;;  %v3052_v5 = vld [vmem:[%s3283_s22 + $0xa8] sm:$0xe] }
  0xbc   : > { %1562 = vrot.lane.b32.xlu2 %v3001_v19, %s3231_s28  ;;  %v1652_v19 = vrot.slane %v1650_v52, 1  ;;  %v3059_v52 = vor.u32 %v3058_v62, %v3057_v4  ;;  %v3053_v62 = vor.u32 %v3052_v5, %v3051_v34  ;;  %v3853_v5 = vld [vmem:[%s3283_s22 + $0xb4] sm:$0xff]  }
  0xbd   : > { %1458 = vrot.lane.b32.xlu1 %v1416_v49, %s3229_s26  ;;  %v3065_v49 = vor.u32 %v3064_v8, %v3063_v39  ;;  %v1927_v39 = vrot.slane %v3760_v22, 1 }
  0xbe   : > { %v965_v14 = vpop.permute.xlu2 %964  ;;  %1450 = vrot.lane.b32.xlu0 %v1404_v6, %s3229_s26  ;;  %v1653_v32 = vsel %vm616_vm0, %v1648_v54, %v1652_v19  ;;  %v1111_v6 = vunpack.c.l.b16 %v2778_v0  ;;  %v1914_v4 = vrot.slane %v3059_v52, 1  ;;  %v3045_v0 = vld [vmem:[%s3283_s22 + $0x78] sm:$0xf0] }
  0xbf   : > { %v3793_v53 = vsel %vm2027_vm3, %v2022_v42, %v965_v14  ;;  %v945_v28 = vpop.permute.xlu1 %944  ;;  %v2838_v14 = vld [vmem:[%s3283_s22 + $0x8c] sm:$0x1]  ;;  %v1926_v19 = vrot.slane %v3065_v49, 1  ;;  %v1441_v49 = vrot.slane %v3053_v62, 1 }
  0xc0   : > { %v2035_v59 = vsel %vm2027_vm3, %v2002_v58, %v945_v28  ;;  %v943_v23 = vpop.permute.xlu0 %942  ;;  %v3127_v58 = vld [vmem:[%s3283_s22 + $0x48] sm:$0xff]   ;;  %v1127_v61 = vpack.c.b16 %v1111_v6, %v1111_v6 }
  0xc1   : > { %v3817_v25 = vsel %vm2027_vm3, %v2000_v24, %v943_v23  ;;  %v2008_v28 = vsel %vm1994_vm2, %v3127_v58, %v3680_v36  ;;  %v1619_v24 = vunpack.c.l.b16 %v2838_v14 }
  0xc2   : > { %v1442_v52 = vrot.slane %v1127_v61, 1  ;;  %v1294_v6 = vshll.u32 %v1127_v61, 16 }
  0xc4   : > { %1842 = vrot.lane.b32.xlu2 %v1701_v56, %s3233_s30  ;;  %v1915_v56 = vrot.slane %v3771_v15, 1  ;;  %v1928_v15 = vsel %vm889_vm1, %v1926_v19, %v1927_v39  ;;  %v1443_v39 = vsel %vm889_vm1, %v1441_v49, %v1442_v52  ;;  %v2020_v52 = vsel %vm1994_vm2, %v3459_v7, %v3749_v10  ;;  %v2766_v10 = vld [vmem:[%s3283_s22 + $0x20] sm:$0x1] }
  0xc5   : > { %1834 = vrot.lane.b32.xlu1 %v1653_v32, %s3233_s30  ;;  %v3047_v32 = vor.u32 %v3046_v26, %v3045_v0  ;;  %v3167_v0 = vld [vmem:[%s3283_s22 + $0xb4] sm:$0xe] }
  0xc6   : > { %v1051_v42 = vpop.permute.xlu2 %1050  ;;  %1570 = vrot.lane.b32.xlu0 %v3752_v11, %s3231_s28  ;;  %v2006_v11 = vsel %vm1994_vm2, %v3342_v50, %v3639_v1  ;;  %v1916_v34 = vsel %vm889_vm1, %v1914_v4, %v1915_v56  ;;  %v3166_v50 = vld [vmem:[%s3283_s22 + $0xb4] sm:$0xf0]  ;;  %v1751_v56 = vshrl.u32 %v3811_v57, 16 }
  0xc7   : > { %v3829_v54 = vsel %vm2060_vm4, %v2029_v46, %v1051_v42  ;;  %v951_v8 = vpop.permute.xlu1 %950  ;;  %v1249_v46 = vsel %vm616_vm0, %v3444_v43, %v1248_v44  ;;  %v3849_v43 = vpack.c.b16 %v1619_v24, %v1619_v24  ;;  %v1753_v44 = vshll.u32 %v3811_v57, 16 }
  0xc8   : > { %v2041_v36 = vsel %vm2027_vm3, %v2008_v28, %v951_v8  ;;  %v949_v22 = vpop.permute.xlu0 %948  ;;  %v2014_v42 = vsel %vm1994_vm2, %v3414_v63, %v3725_v35  ;;  %v1429_v58 = vrot.slane %v3047_v32, 1  ;;  %v1430_v28 = vrot.slane %v3787_v13, 1  ;;  %v2842_v35 = vld [vmem:[%s3283_s22 + $0xbc] sm:$0x1] }
  0xc9   : > { %v3844_v23 = vsel %vm2027_vm3, %v2006_v11, %v949_v22  ;;  %v1296_v8 = vrot.slane %v1294_v6, 1  ;;  %v1755_v61 = vrot.slane %v1753_v44, 1  ;;  %v1758_v63 = vshll.u32 %v3849_v43, 16  ;;  %v3170_v11 = vld [vmem:[%s3283_s22 + $0x84] sm:$0xe] }
  0xca   : > { %v1623_v24 = vunpack.c.l.b16 %v2842_v35  ;;  %v1099_v35 = vunpack.c.l.b16 %v2766_v10 }
  0xcb   : > { %v1297_v22 = vsel %vm616_vm0, %v3463_v17, %v1296_v8  ;;  %v1760_v32 = vrot.slane %v1758_v63, 1  ;;  %v2770_v17 = vld [vmem:[%s3283_s22 + $0x50] sm:$0x1]  ;;  %v1799_v8 = vshrl.u32 %v3853_v5, 16 }
  0xcc   : > { %1340 = vrot.lane.b32.xlu2 %v1249_v46, %s3230_s27  ;;  %v1431_v46 = vsel %vm889_vm1, %v1429_v58, %v1430_v28  ;;  %v1639_v44 = vpack.c.b16 %v1623_v24, %v1623_v24  ;;  %v3168_v58 = vor.u32 %v3167_v0, %v3166_v50 }
  0xcd   : > { %1970 = vrot.lane.b32.xlu1 %v1928_v15, %s3232_s29  ;;  %v1756_v15 = vor.u32 %v1755_v61, %v1751_v56 }
  0xce   : > { %v1057_v1 = vpop.permute.xlu2 %1056  ;;  %1962 = vrot.lane.b32.xlu0 %v1916_v34, %s3232_s29  ;;  %v1801_v34 = vshll.u32 %v3853_v5, 16  ;;  %v1806_v50 = vshll.u32 %v1639_v44, 16  ;;  %v1953_v61 = vrot.slane %v3168_v58, 1  ;;  %v1954_v63 = vrot.slane %v1639_v44, 1  ;;  %v3939_v44 = vld [vmem:[%s3283_s22 + $0x24] sm:$0xff]  }
  0xcf   : > { %v3861_v14 = vsel %vm2060_vm4, %v2035_v59, %v1057_v1  ;;  %v957_v19 = vpop.permute.xlu1 %956  ;;  %v3128_v59 = vld [vmem:[%s3283_s22 + $0x60] sm:$0xff]  }
  0xd0   : > { %v2047_v4 = vsel %vm2027_vm3, %v2014_v42, %v957_v19  ;;  %v2012_v62 = vsel %vm1994_vm2, %v3128_v59, %v3622_v12  ;;  %v955_v13 = vpop.permute.xlu0 %954  ;;  %v1761_v42 = vsel %vm616_vm0, %v1756_v15, %v1760_v32  ;;  %v3171_v19 = vor.u32 %v3170_v11, %v3814_v55  ;;  %v3034_v59 = vld [vmem:[%s3283_s22 + $0x18] sm:$0xe]  ;;  %v3129_v32 = vld [vmem:[%s3283_s22 + $0xa8] sm:$0xff]  }
  0xd1   : > { %v3875_v26 = vsel %vm2027_vm3, %v2012_v62, %v955_v13  ;;  %v1803_v56 = vrot.slane %v1801_v34, 1  ;;  %v1942_v13 = vrot.slane %v3849_v43, 1  ;;  %v1955_v43 = vsel %vm889_vm1, %v1953_v61, %v1954_v63  ;;  %v3935_v34 = vld [vmem:[%s3283_s22 + $0x54] sm:$0xf0]  ;;  %v2830_v61 = vld [vmem:[%s3283_s22 + $0x2c] sm:$0x1] }
  0xd2   : > { %v1941_v55 = vrot.slane %v3171_v19, 1  ;;  %v2834_v19 = vld [vmem:[%s3283_s22 + $0x5c] sm:$0x1]  ;;  %v3173_v63 = vld [vmem:[%s3283_s22 + $0x24] sm:$0xe] }
  0xd3   : > { %v1804_v24 = vor.u32 %v1803_v56, %v1799_v8 }
  0xd4   : > { %1476 = vrot.lane.b32.xlu2 %v1443_v39, %s3229_s26  ;;  %v1103_v39 = vunpack.c.l.b16 %v2770_v17 }
  0xd5   : > { %1468 = vrot.lane.b32.xlu1 %v1431_v46, %s3229_s26  ;;  %v2026_v46 = vsel %vm1994_vm2, %v3478_v48, %v3781_v30 }
  0xd6   : > { %v1063_v12 = vpop.permute.xlu2 %1062  ;;  %1348 = vrot.lane.b32.xlu0 %v1297_v22, %s3230_s27  ;;  %v3914_v0 = vpack.c.b16 %v1103_v39, %v1103_v39  ;;  %v1115_v22 = vpack.c.b16 %v1099_v35, %v1099_v35 }
  0xd7   : > { %v3884_v49 = vsel %vm2060_vm4, %v2041_v36, %v1063_v12  ;;  %v963_v6 = vpop.permute.xlu1 %962  ;;  %v2018_v36 = vsel %vm1994_vm2, %v3384_v21, %v3655_v37  ;;  %v3033_v37 = vld [vmem:[%s3283_s22 + $0x18] sm:$0xf0]  ;;  %v2024_v12 = vsel %vm1994_vm2, %v3129_v32, %v3673_v60  ;;  %v3172_v60 = vld [vmem:[%s3283_s22 + $0x24] sm:$0xf0] }
  0xd8   : > { %v3893_v1 = vsel %vm2027_vm3, %v2020_v52, %v963_v6  ;;  %v961_v7 = vpop.permute.xlu0 %960  ;;  %v3035_v15 = vor.u32 %v3034_v59, %v3033_v37  ;;  %v1198_v52 = vshll.u32 %v3914_v0, 16  ;;  %v3932_v6 = vld [vmem:[%s3283_s22 + $0x54] sm:$0xff]   ;;  %v1406_v58 = vrot.slane %v1115_v22, 1  ;;  %v3040_v37 = vld [vmem:[%s3283_s22 + $0x48] sm:$0xe] }
  0xd9   : > { %v3901_v28 = vsel %vm2027_vm3, %v2018_v36, %v961_v7  ;;  %v1150_v36 = vshll.u32 %v1115_v22, 16  ;;  %v1615_v59 = vunpack.c.l.b16 %v2834_v19 }
  0xda   : > { %v1200_v10 = vrot.slane %v1198_v52, 1  ;;  %v1418_v52 = vrot.slane %v3914_v0, 1 }
  0xdc   : > { %1852 = vrot.lane.b32.xlu2 %v1761_v42, %s3233_s30  ;;  %v1405_v42 = vrot.slane %v3035_v15, 1 }
  0xdd   : > { %1588 = vrot.lane.b32.xlu1 %v3853_v5, %s3231_s28 }
  0xde   : > { %v1069_v21 = vpop.permute.xlu2 %1068  ;;  %1580 = vrot.lane.b32.xlu0 %v3811_v57, %s3231_s28  ;;  %v1943_v57 = vsel %vm889_vm1, %v1941_v55, %v1942_v13  ;;  %v1407_v56 = vsel %vm889_vm1, %v1405_v42, %v1406_v58  ;;  %v1201_v13 = vsel %vm616_vm0, %v3374_v9, %v1200_v10  ;;  %v1657_v9 = vshll.u32 %v3939_v44, 16 }
  0xdf   : > { %v3911_v62 = vsel %vm2060_vm4, %v2047_v4, %v1069_v21  ;;  %v969_v5 = vpop.permute.xlu1 %968  ;;  %v1808_v4 = vrot.slane %v1806_v50, 1  ;;  %v1152_v50 = vrot.slane %v1150_v36, 1  ;;  %v3039_v21 = vld [vmem:[%s3283_s22 + $0x48] sm:$0xf0] }
  0xe0   : > { %v2059_v11 = vsel %vm2027_vm3, %v2026_v46, %v969_v5  ;;  %v967_v48 = vpop.permute.xlu0 %966  ;;  %v3041_v5 = vor.u32 %v3040_v37, %v3039_v21  ;;  %v1659_v19 = vrot.slane %v1657_v9, 1 }
  0xe1   : > { %v3927_v30 = vsel %vm2027_vm3, %v2024_v12, %v967_v48  ;;  %v1809_v17 = vsel %vm616_vm0, %v1804_v24, %v1808_v4  ;;  %v1153_v46 = vsel %vm616_vm0, %v3321_v31, %v1152_v50  ;;  %v1705_v4 = vshll.u32 %v3932_v6, 16  ;;  %v2775_v31 = vld [vmem:[%s3283_s22 + $0x8c] sm:$0x1]  ;;  %v2262_v50 = vld [vmem:[%s4566_s1 + $0x10] sm:$0x3] }
  0xe2   : > { %v3174_v12 = vor.u32 %v3173_v63, %v3172_v60  ;;  %v1655_v60 = vshrl.u32 %v3939_v44, 16  ;;  %v2272_v21 = vunpack.c.l.b16 %v2262_v50 }
  0xe3   : > { %v1707_v58 = vrot.slane %v1705_v4, 1 }
  0xe4   : > { %1988 = vrot.lane.b32.xlu2 %v1955_v43, %s3232_s29  ;;  %v3968_v43 = vpack.c.b16 %v1615_v59, %v1615_v59  ;;  %v1917_v0 = vrot.slane %v3174_v12, 1 }
  0xe5   : > { %1980 = vrot.lane.b32.xlu1 %v1943_v57, %s3232_s29  ;;  %v1417_v57 = vrot.slane %v3041_v5, 1  ;;  %v2275_v5 = vpack.c.b16 %v2272_v21, %v2272_v21 }
  0xe6   : > { %v3944_v7 = vpop.permute.xlu2 %1074  ;;  %1860 = vrot.lane.b32.xlu0 %v1809_v17, %s3233_s30  ;;  %v1710_v36 = vshll.u32 %v3968_v43, 16  ;;  %v1930_v50 = vrot.slane %v3968_v43, 1 }
  0xe7   : > { %v1055_v39 = vpop.permute.xlu1 %1054  ;;  %v1419_v63 = vsel %vm889_vm1, %v1417_v57, %v1418_v52  ;;  %v1251_v52 = vshrl.u32 %v3633_v2, 16 }
  0xe8   : > { %v3950_v8 = vsel %vm2060_vm4, %v3817_v25, %v1055_v39  ;;  %v1053_v35 = vpop.permute.xlu0 %1052  ;;  %v1611_v25 = vunpack.c.l.b16 %v2830_v61  ;;  %v1301_v61 = vshll.u32 %v3647_v16, 16  ;;  %v1712_v59 = vrot.slane %v1710_v36, 1 }
  0xe9   : > { %v3959_v55 = vsel %vm2060_vm4, %v3705_v41, %v1053_v35  ;;  %v2779_v41 = vld [vmem:[%s3283_s22 + $0xbc] sm:$0x1]  ;;  %v3176_v35 = vld [vmem:[%s3283_s22 + $0x54] sm:$0xe] }
  0xea   : > { %v1627_v32 = vpack.c.b16 %v1611_v25, %v1611_v25  ;;  %v1112_v17 = vunpack.c.l.b16 %v2779_v41  ;;  %v1660_v25 = vor.u32 %v1659_v19, %v1655_v60  ;;  %v1303_v9 = vrot.slane %v1301_v61, 1  ;;  %v2839_v61 = vld [vmem:[%s3283_s22 + $0x98] sm:$0x1] }
  0xeb   : > { %v3177_v60 = vor.u32 %v3176_v35, %v3935_v34  ;;  %v2888_v34 = vld [vmem:[%s4566_s1] sm:$0xff] }
  0xec   : > { %1452 = vrot.lane.b32.xlu2 %v1407_v56, %s3229_s26  ;;  %v1918_v39 = vrot.slane %v1627_v32, 1  ;;  %v1662_v56 = vshll.u32 %v1627_v32, 16  ;;  %v2313_v32 = vsel %vm2311_vm5, %v2275_v5, 0  ;;  %v1620_v5 = vunpack.c.l.b16 %v2839_v61 }
  0xed   : > { %1332 = vrot.lane.b32.xlu1 %v1201_v13, %s3230_s27  ;;  %v1253_v13 = vshll.u32 %v3633_v2, 16  ;;  %3082 = vmatpush.bf16.msra.mxu2 %v2313_v32  ;;  %v3182_v2 = vld [vmem:[%s3283_s22 + $0x84] sm:$0xe]  ;;  %v1929_v21 = vrot.slane %v3177_v60, 1 }
  0xee   : > { %v1081_v24 = vpop.permute.xlu2 %1080  ;;  %1324 = vrot.lane.b32.xlu0 %v1153_v46, %s3230_s27  ;;  %v1919_v4 = vsel %vm889_vm1, %v1917_v0, %v1918_v39  ;;  %v1664_v41 = vrot.slane %v1662_v56, 1  ;;  %3083 = vmatpush.bf16.msra.mxu3 %v2313_v32 }
  0xef   : > { %v3972_v22 = vsel %vm2060_vm4, %v2059_v11, %v1081_v24  ;;  %v1061_v15 = vpop.permute.xlu1 %1060  ;;  %v1703_v11 = vshrl.u32 %v3932_v6, 16  ;;  %2320 = vmatpush.bf16.msra.mxu0 %v2313_v32  ;;  %3081 = vmatpush.bf16.msra.mxu1 %v2313_v32 }
  0xf0   : > { %v3979_v48 = vsel %vm2060_vm4, %v3844_v23, %v1061_v15  ;;  %v1059_v42 = vpop.permute.xlu0 %1058  ;;  %v1108_v23 = vunpack.c.l.b16 %v2775_v31 }
  0xf1   : > { %v3986_v10 = vsel %vm2060_vm4, %v3717_v20, %v1059_v42  ;;  %v3996_v20 = vpack.c.b16 %v1112_v17, %v1112_v17  ;;  %v1255_v17 = vrot.slane %v1253_v13, 1  ;;  %v2889_v42 = vld [vmem:[%s4566_s1 + $0x8] sm:$0xff] }
  0xf2   : > { %v4004_v46 = vpack.c.b16 %v1108_v23, %v1108_v23  ;;  %v2843_v23 = vld [vmem:[%s3283_s22 + $0xc8] sm:$0x1]  ;;  %3085 = vmatpush.bf16.msra.mxu2 %v2889_v42  ;;  %3086 = vmatpush.bf16.msra.mxu3 %v2889_v42 }
  0xf3   : > { %v1306_v15 = vshll.u32 %v3996_v20, 16  ;;  %v1256_v0 = vor.u32 %v1255_v17, %v1251_v52  ;;  %2321 = vmatpush.bf16.msra.mxu0 %v2889_v42  ;;  %3084 = vmatpush.bf16.msra.mxu1 %v2889_v42  ;;  %v1311_v52 = vshrl.u32 %v3666_v40, 16 }
  0xf4   : > { %1572 = vrot.lane.b32.xlu2 %v3932_v6, %s3231_s28  ;;  %v1708_v6 = vor.u32 %v1707_v58, %v1703_v11  ;;  %v3179_v11 = vld [vmem:[%s3283_s22 + $0xb4] sm:$0xe]  ;;  %v1665_v58 = vsel %vm616_vm0, %v1660_v25, %v1664_v41  ;;  %v3183_v41 = vor.u32 %v3182_v2, %v3636_v45 }
  0xf5   : > { %1564 = vrot.lane.b32.xlu1 %v3939_v44, %s3231_s28  ;;  %v1299_v44 = vshrl.u32 %v3647_v16, 16  ;;  %v1258_v16 = vshll.u32 %v4004_v46, 16  ;;  %v1308_v36 = vrot.slane %v1306_v15, 1  ;;  %v3180_v25 = vor.u32 %v3179_v11, %v3650_v47  ;;  %v2767_v47 = vld [vmem:[%s3283_s22 + $0x2c] sm:$0x1] }
  0xf6   : > { %v4001_v37 = vpop.permute.xlu2 %1466  ;;  %1460 = vrot.lane.b32.xlu0 %v1419_v63, %s3229_s26  ;;  %v1713_v31 = vsel %vm616_vm0, %v1708_v6, %v1712_v59  ;;  %v1624_v6 = vunpack.c.l.b16 %v2843_v23  ;;  %3088 = vmatpush.bf16.msra.mxu2 %v2888_v34  ;;  %v1433_v11 = vrot.slane %v4004_v46, 1 }
  0xf7   : > { %v4007_v24 = vpop.permute.xlu1 %1066  ;;  %v1260_v39 = vrot.slane %v1258_v16, 1  ;;  %3089 = vmatpush.bf16.msra.mxu3 %v2888_v34  ;;  %2322 = vmatpush.bf16.msra.mxu0 %v2888_v34  ;;  %v1444_v32 = vrot.slane %v3180_v25, 1  ;;  %v1432_v16 = vrot.slane %v3183_v41, 1 }
  0xf8   : > { %v1065_v12 = vpop.permute.xlu0 %1064  ;;  %3087 = vmatpush.bf16.msra.mxu1 %v2888_v34 }
  0xf9   : > { %v4015_v57 = vsel %vm2060_vm4, %v3743_v27, %v1065_v12  ;;  %v1304_v27 = vor.u32 %v1303_v9, %v1299_v44  ;;  %v1261_v13 = vsel %vm616_vm0, %v1256_v0, %v1260_v39  ;;  %v1931_v44 = vsel %vm889_vm1, %v1929_v21, %v1930_v50 }
  0xfa   : > { %v4053_v9 = vpack.c.b16 %v1624_v6, %v1624_v6  ;;  %v1445_v12 = vrot.slane %v3996_v20, 1  ;;  %v1434_v39 = vsel %vm889_vm1, %v1432_v16, %v1433_v11  ;;  %v1155_v21 = vshrl.u32 %v3586_v29, 16  ;;  %v3078_v6 = vld [vmem:[%s3283_s22 + $0xc0] sm:$0xf0]  ;;  %v2831_v11 = vld [vmem:[%s3283_s22 + $0x38] sm:$0x1] }
  0xfb   : > { %v1309_v35 = vsel %vm616_vm0, %v1304_v27, %v1308_v36  ;;  %v1100_v27 = vunpack.c.l.b16 %v2767_v47  ;;  %v3073_v47 = vld [vmem:[%s3283_s22 + $0x90] sm:$0xe] }
  0xfc   : > { %1964 = vrot.lane.b32.xlu2 %v1919_v4, %s3232_s29  ;;  %v3006_v4 = vld [vmem:[%s3283_s22 + $0x90] sm:$0xff]   ;;  %v1446_v23 = vsel %vm889_vm1, %v1444_v32, %v1445_v12  ;;  %v3188_v12 = vld [vmem:[%s3283_s22 + $0x24] sm:$0xe] }
  0xfd   : > { %1844 = vrot.lane.b32.xlu1 %v1713_v31, %s3233_s30  ;;  %v1765_v15 = vshll.u32 %v3006_v4, 16  ;;  %v4060_v31 = vpack.c.b16 %v1620_v5, %v1620_v5  ;;  %v1763_v20 = vshrl.u32 %v3006_v4, 16 }
  0xfe   : > { %v4028_v19 = vpop.permute.xlu2 %1586  ;;  %1836 = vrot.lane.b32.xlu0 %v1665_v58, %s3233_s30  ;;  %v1818_v58 = vshll.u32 %v4053_v9, 16 }
  0xff   : > { %v1073_v56 = vpop.permute.xlu1 %1072  ;;  %v1767_v2 = vrot.slane %v1765_v15, 1  ;;  %v1770_v0 = vshll.u32 %v4060_v31, 16 }
 0x100   : > { %v4039_v63 = vsel %vm2060_vm4, %v3901_v28, %v1073_v56  ;;  %v1071_v59 = vpop.permute.xlu0 %1070  ;;  %v1313_v28 = vshll.u32 %v3666_v40, 16  ;;  %v1820_v56 = vrot.slane %v1818_v58, 1 }
 0x101   : > { %v4044_v43 = vsel %vm2060_vm4, %v3768_v33, %v1071_v59  ;;  %v1768_v61 = vor.u32 %v1767_v2, %v1763_v20  ;;  %v1772_v34 = vrot.slane %v1770_v0, 1  ;;  %v3079_v59 = vld [vmem:[%s3283_s22 + $0xc0] sm:$0xe] }
 0x102   : > { %v1315_v17 = vrot.slane %v1313_v28, 1  ;;  %v2771_v28 = vld [vmem:[%s3283_s22 + $0x5c] sm:$0x1]  ;;  %v3080_v32 = vor.u32 %v3079_v59, %v3078_v6 }
 0x103   : > { %v1773_v15 = vsel %vm616_vm0, %v1768_v61, %v1772_v34  ;;  %v4114_v34 = vld [vmem:[%s3283_s22 + $0x30] sm:$0xff]  }
 0x104   : > { %1350 = vrot.lane.b32.xlu2 %v1309_v35, %s3230_s27  ;;  %v4078_v46 = vor.u32 %v1315_v17, %v1311_v52  ;;  %v1956_v58 = vrot.slane %v3080_v32, 1  ;;  %v1667_v32 = vshrl.u32 %v4114_v34, 16 }
 0x105   : > { %1342 = vrot.lane.b32.xlu1 %v1261_v13, %s3230_s27 }
 0x106   : > { %v4056_v33 = vpop.permute.xlu2 %1978  ;;  %1972 = vrot.lane.b32.xlu0 %v1931_v44, %s3232_s29  ;;  %v1821_v13 = vsel %vm616_vm0, %v4078_v46, %v1820_v56  ;;  %v3072_v44 = vld [vmem:[%s3283_s22 + $0x90] sm:$0xf0]  ;;  %v1612_v56 = vunpack.c.l.b16 %v2831_v11 }
 0x107   : > { %v1079_v45 = vpop.permute.xlu1 %1078 }
 0x108   : > { %v4066_v42 = vsel %vm2060_vm4, %v3927_v30, %v1079_v45  ;;  %v1077_v36 = vpop.permute.xlu0 %1076  ;;  %v1157_v30 = vshll.u32 %v3586_v29, 16  ;;  %v1104_v29 = vunpack.c.l.b16 %v2771_v28  ;;  %v3074_v45 = vor.u32 %v3073_v47, %v3072_v44 }
 0x109   : > { %v4072_v60 = vsel %vm2060_vm4, %v3793_v53, %v1077_v36  ;;  %v4081_v53 = vpack.c.b16 %v1100_v27, %v1100_v27  ;;  %v1957_v27 = vrot.slane %v4053_v9, 1  ;;  %v1205_v36 = vshll.u32 %v3597_v3, 16 }
 0x10a   : > { %v1159_v25 = vrot.slane %v1157_v30, 1  ;;  %v1120_v2 = vpack.c.b16 %v1104_v29, %v1104_v29  ;;  %v1944_v30 = vrot.slane %v3074_v45, 1  ;;  %v1669_v28 = vshll.u32 %v4114_v34, 16 }
 0x10b   : > { %v1162_v5 = vshll.u32 %v4081_v53, 16  ;;  %v1958_v9 = vsel %vm889_vm1, %v1956_v58, %v1957_v27  ;;  %v1207_v59 = vrot.slane %v1205_v36, 1  ;;  %v1409_v44 = vrot.slane %v4081_v53, 1  ;;  %v3004_v36 = vld [vmem:[%s3283_s22 + $0x60] sm:$0xff]  }
 0x10c   : > { %1582 = vrot.lane.b32.xlu2 %v3006_v4, %s3231_s28  ;;  %v3185_v4 = vld [vmem:[%s3283_s22 + $0x54] sm:$0xe]  ;;  %v1160_v52 = vor.u32 %v1159_v25, %v1155_v21  ;;  %v3189_v21 = vor.u32 %v3188_v12, %v3589_v51  ;;  %v1671_v29 = vrot.slane %v1669_v28, 1 }
 0x10d   : > { %1478 = vrot.lane.b32.xlu1 %v1446_v23, %s3229_s26  ;;  %v1164_v17 = vrot.slane %v1162_v5, 1  ;;  %v3186_v23 = vor.u32 %v3185_v4, %v3600_v38  ;;  %v1421_v38 = vrot.slane %v1120_v2, 1  ;;  %v4124_v5 = vpack.c.b16 %v1612_v56, %v1612_v56 }
 0x10e   : > { %v4084_v50 = vpop.permute.xlu2 %1330  ;;  %1470 = vrot.lane.b32.xlu0 %v1434_v39, %s3229_s26  ;;  %v1945_v39 = vrot.slane %v4060_v31, 1  ;;  %v2078_v31 = vsel %vm2060_vm4, %v3875_v26, %v4007_v24  ;;  %v1408_v4 = vrot.slane %v3189_v21, 1  ;;  %v2780_v21 = vld [vmem:[%s3283_s22 + $0xc8] sm:$0x1] }
 0x10f   : > { %v4087_v35 = vpop.permute.xlu1 %1346  ;;  %v1165_v0 = vsel %vm616_vm0, %v1160_v52, %v1164_v17  ;;  %v1420_v6 = vrot.slane %v3186_v23, 1  ;;  %v1674_v12 = vshll.u32 %v4124_v5, 16  ;;  %v2835_v17 = vld [vmem:[%s3283_s22 + $0x68] sm:$0x1] }
 0x110   : > { %v1339_v41 = vpop.permute.xlu0 %1338  ;;  %v1946_v25 = vsel %vm889_vm1, %v1944_v30, %v1945_v39  ;;  %v1410_v11 = vsel %vm889_vm1, %v1408_v4, %v1409_v44  ;;  %v3067_v30 = vld [vmem:[%s3283_s22 + $0x60] sm:$0xe]  ;;  %v1717_v39 = vshll.u32 %v3004_v36, 16  ;;  %v1715_v4 = vshrl.u32 %v3004_v36, 16 }
 0x111   : > { %v2111_v51 = vsel %vm2093_vm6, %v2078_v31, %v1339_v41  ;;  %v1422_v24 = vsel %vm889_vm1, %v1420_v6, %v1421_v38  ;;  %v1676_v23 = vrot.slane %v1674_v12, 1  ;;  %v2776_v31 = vld [vmem:[%s3283_s22 + $0x98] sm:$0x1]  ;;  %v1921_v12 = vrot.slane %v4124_v5, 1 }
 0x114   : > { %1862 = vrot.lane.b32.xlu2 %v1821_v13, %s3233_s30  ;;  %v1210_v13 = vshll.u32 %v1120_v2, 16  ;;  %v1672_v2 = vor.u32 %v1671_v29, %v1667_v32  ;;  %v3049_v32 = vld [vmem:[%s3283_s22 + $0x90] sm:$0xe] }
 0x115   : > { %1854 = vrot.lane.b32.xlu1 %v1773_v15, %s3233_s30  ;;  %v2144_v15 = vsel %vm2126_vm7, %v2111_v51, %v4001_v37  ;;  %v2086_v37 = vsel %vm2060_vm4, %v3893_v1, %v3944_v7  ;;  %v1113_v51 = vunpack.c.l.b16 %v2780_v21  ;;  %v3054_v21 = vld [vmem:[%s3283_s22 + $0xc0] sm:$0xf0] }
 0x116   : > { %v4103_v16 = vpop.permute.xlu2 %1562  ;;  %1590 = vrot.lane.b32.xlu0 %v3666_v40, %s3231_s28  ;;  %v1203_v40 = vshrl.u32 %v3597_v3, 16  ;;  %v1212_v41 = vrot.slane %v1210_v13, 1 }
 0x117   : > { %v1579_v20 = vpop.permute.xlu1 %1578 }
 0x118   : > { %v1475_v61 = vpop.permute.xlu0 %1474  ;;  %v1208_v47 = vor.u32 %v1207_v59, %v1203_v40  ;;  %v2177_v52 = vsel %vm2159_vm8, %v2144_v15, %v1579_v20  ;;  %v2119_v20 = vsel %vm2093_vm6, %v2086_v37, %v4087_v35  ;;  %v3060_v35 = vld [vmem:[%s3283_s22 + $0x30] sm:$0xf0] }
 0x119   : > { %v2152_v1 = vsel %vm2126_vm7, %v2119_v20, %v1475_v61  ;;  %v1677_v61 = vsel %vm616_vm0, %v1672_v2, %v1676_v23  ;;  %v3048_v15 = vld [vmem:[%s3283_s22 + $0x90] sm:$0xf0]  ;;  %v4188_v20 = vld [vmem:[%s3283_s22 + $0xcc] sm:$0xff]  }
 0x11a   : > { %v1213_v27 = vsel %vm616_vm0, %v1208_v47, %v1212_v41  ;;  %v2185_v40 = vsel %vm2159_vm8, %v2152_v1, %v4028_v19  ;;  %v1719_v19 = vrot.slane %v1717_v39, 1  ;;  %v1109_v41 = vunpack.c.l.b16 %v2776_v31 }
 0x11c   : > { %1326 = vrot.lane.b32.xlu2 %v1165_v0, %s3230_s27  ;;  %v1616_v0 = vunpack.c.l.b16 %v2835_v17  ;;  %v1125_v37 = vpack.c.b16 %v1109_v41, %v1109_v41 }
 0x11d   : > { %1990 = vrot.lane.b32.xlu1 %v1958_v9, %s3232_s29  ;;  %v3061_v9 = vld [vmem:[%s3283_s22 + $0x30] sm:$0xe] }
 0x11e   : > { %v4129_v3 = vpop.permute.xlu2 %1842  ;;  %1982 = vrot.lane.b32.xlu0 %v1946_v25, %s3232_s29  ;;  %v1632_v6 = vpack.c.b16 %v1616_v0, %v1616_v0  ;;  %v3062_v28 = vor.u32 %v3061_v9, %v3060_v35  ;;  %v1436_v0 = vrot.slane %v1125_v37, 1  ;;  %v1270_v1 = vshll.u32 %v1125_v37, 16 }
 0x11f   : > { %v1859_v26 = vpop.permute.xlu1 %1858 }
 0x120   : > { %v1851_v53 = vpop.permute.xlu0 %1850  ;;  %v2218_v59 = vsel %vm2192_vm9, %v2185_v40, %v1859_v26  ;;  %v1722_v47 = vshll.u32 %v1632_v6, 16  ;;  %v1920_v29 = vrot.slane %v3062_v28, 1  ;;  %v3055_v40 = vld [vmem:[%s3283_s22 + $0xc0] sm:$0xe] }
 0x121   : > { %v2210_v45 = vsel %vm2192_vm9, %v2177_v52, %v1851_v53  ;;  %v4179_v52 = vpack.c.b16 %v1113_v51, %v1113_v51  ;;  %v1720_v53 = vor.u32 %v1719_v19, %v1715_v4  ;;  %v3056_v51 = vor.u32 %v3055_v40, %v3054_v21  ;;  %v3194_v40 = vld [vmem:[%s3283_s22 + $0xcc] sm:$0xe] }
 0x122   : > { %v2243_v58 = vsel %vm2225_vm10, %v2210_v45, %v4056_v33  ;;  %v3066_v33 = vld [vmem:[%s3283_s22 + $0x60] sm:$0xf0] }
 0x123   : > { %2877 = vmatmul.msk.bf16.vlgmr.msra.gmra.mxu2 %vm2278_vm11, %v2243_v58  ;;  %v3068_v38 = vor.u32 %v3067_v30, %v3066_v33  ;;  %v3050_v58 = vor.u32 %v3049_v32, %v3048_v15  ;;  %v1318_v5 = vshll.u32 %v4179_v52, 16  ;;  %v4195_v33 = vld [vmem:[%s3283_s22 + $0x9c] sm:$0xff]   ;;  %v1825_v15 = vshll.u32 %v4188_v20, 16 }
 0x124   : > { %1462 = vrot.lane.b32.xlu2 %v1422_v24, %s3229_s26  ;;  %v1933_v24 = vrot.slane %v1632_v6, 1  ;;  %v3190_v30 = vld [vmem:[%s3283_s22 + $0x9c] sm:$0xf0]  ;;  %v1447_v32 = vrot.slane %v3056_v51, 1 }
 0x125   : > { %1454 = vrot.lane.b32.xlu1 %v1410_v11, %s3229_s26  ;;  %v1932_v44 = vrot.slane %v3068_v38, 1  ;;  %v1724_v11 = vrot.slane %v1722_v47, 1  ;;  %v1435_v23 = vrot.slane %v3050_v58, 1  ;;  %v1320_v35 = vrot.slane %v1318_v5, 1 }
 0x126   : > { %v4155_v7 = vpop.permute.xlu2 %1340  ;;  %1334 = vrot.lane.b32.xlu0 %v1213_v27, %s3230_s27  ;;  %v1272_v38 = vrot.slane %v1270_v1, 1 }
 0x127   : > { %v4160_v56 = vpop.permute.xlu1 %1322  ;;  %v1934_v45 = vsel %vm889_vm1, %v1932_v44, %v1933_v24  ;;  %v1725_v2 = vsel %vm616_vm0, %v1720_v53, %v1724_v11  ;;  %v1437_v6 = vsel %vm889_vm1, %v1435_v23, %v1436_v0  ;;  %v1321_v28 = vsel %vm616_vm0, %v4078_v46, %v1320_v35  ;;  %v2772_v46 = vld [vmem:[%s3283_s22 + $0x68] sm:$0x1] }
 0x128   : > { %v1987_v13 = vpop.permute.xlu0 %1986  ;;  %v2095_v24 = vsel %vm2093_vm6, %v3829_v54, %v4160_v56  ;;  %v1105_v58 = vunpack.c.l.b16 %v2772_v46  ;;  %v1775_v0 = vshrl.u32 %v4195_v33, 16  ;;  %v3043_v46 = vld [vmem:[%s3283_s22 + $0x60] sm:$0xe] }
 0x129   : > { %v2251_v25 = vsel %vm2225_vm10, %v2218_v59, %v1987_v13  ;;  %v2840_v59 = vld [vmem:[%s3283_s22 + $0xa4] sm:$0x1]  ;;  %v2103_v13 = vsel %vm2093_vm6, %v3986_v10, %v4084_v50  ;;  %v1273_v10 = vsel %vm616_vm0, %v3491_v18, %v1272_v38  ;;  %v1777_v18 = vshll.u32 %v4195_v33, 16 }
 0x12a   : > { %2881 = vmatmul.msk.bf16.vlgmr.msra.gmra.mxu3 %vm2278_vm11, %v2251_v25  ;;  %v3191_v25 = vld [vmem:[%s3283_s22 + $0x9c] sm:$0xe]  ;;  %v1621_v44 = vunpack.c.l.b16 %v2840_v59  ;;  %v4248_v21 = vpack.c.b16 %v1105_v58, %v1105_v58  ;;  %v3037_v58 = vld [vmem:[%s3283_s22 + $0x30] sm:$0xe] }
 0x12b   : > { %v3192_v37 = vor.u32 %v3191_v25, %v3190_v30  ;;  %v1779_v1 = vrot.slane %v1777_v18, 1  ;;  %v2832_v18 = vld [vmem:[%s3283_s22 + $0x44] sm:$0x1] }
 0x12c   : > { %1838 = vrot.lane.b32.xlu2 %v1677_v61, %s3233_s30  ;;  %v2844_v61 = vld [vmem:[%s3283_s22 + $0xd4] sm:$0x1]  ;;  %v1637_v53 = vpack.c.b16 %v1621_v44, %v1621_v44  ;;  %v4267_v44 = vld [vmem:[%s3283_s22 + $0x3c] sm:$0xf0] }
 0x12d   : > { %1574 = vrot.lane.b32.xlu1 %v3004_v36, %s3231_s28  ;;  %v1922_v36 = vsel %vm889_vm1, %v1920_v29, %v1921_v12  ;;  %v1625_v4 = vunpack.c.l.b16 %v2844_v61  ;;  %v1448_v12 = vrot.slane %v4179_v52, 1  ;;  %v1827_v52 = vrot.slane %v1825_v15, 1 }
 0x12e   : > { %v4174_v26 = vpop.permute.xlu2 %1476  ;;  %1566 = vrot.lane.b32.xlu0 %v4114_v34, %s3231_s28  ;;  %v4191_v34 = vld [vmem:[%s3283_s22 + $0xcc] sm:$0xf0]  ;;  %v1947_v30 = vrot.slane %v3192_v37, 1  ;;  %v1948_v35 = vrot.slane %v1637_v53, 1  ;;  %v1780_v59 = vor.u32 %v1779_v1, %v1775_v0  ;;  %v3036_v37 = vld [vmem:[%s3283_s22 + $0x30] sm:$0xf0] }
 0x12f   : > { %v1459_v17 = vpop.permute.xlu1 %1458  ;;  %v4227_v29 = vpack.c.b16 %v1625_v4, %v1625_v4  ;;  %v3038_v1 = vor.u32 %v3037_v58, %v3036_v37 }
 0x130   : > { %v1451_v27 = vpop.permute.xlu0 %1450  ;;  %v2136_v19 = vsel %vm2126_vm7, %v2103_v13, %v1459_v17  ;;  %v2768_v17 = vld [vmem:[%s3283_s22 + $0x38] sm:$0x1] }
 0x131   : > { %v2128_v50 = vsel %vm2126_vm7, %v2095_v24, %v1451_v27  ;;  %v1101_v23 = vunpack.c.l.b16 %v2768_v17 }
 0x133   : > { %v4253_v38 = vpack.c.b16 %v1101_v23, %v1101_v23 }
 0x134   : > { %1974 = vrot.lane.b32.xlu2 %v1934_v45, %s3232_s29  ;;  %v2161_v45 = vsel %vm2159_vm8, %v2128_v50, %v4103_v16  ;;  %v1449_v16 = vsel %vm889_vm1, %v1447_v32, %v1448_v12  ;;  %v3042_v50 = vld [vmem:[%s3283_s22 + $0x60] sm:$0xf0]  ;;  %v4275_v32 = vld [vmem:[%s3283_s22 + $0x6c] sm:$0xff]  }
 0x135   : > { %1966 = vrot.lane.b32.xlu1 %v1922_v36, %s3232_s29  ;;  %v1174_v4 = vshll.u32 %v4253_v38, 16  ;;  %v4574_v12 = vld [vmem:[#allocation3_spill] sm:$0xff] }
 0x136   : > { %v4199_v39 = vpop.permute.xlu2 %1852  ;;  %1846 = vrot.lane.b32.xlu0 %v1725_v2, %s3233_s30  ;;  %v1830_v2 = vshll.u32 %v4227_v29, 16 }
 0x137   : > { %v1835_v9 = vpop.permute.xlu1 %1834  ;;  %v1176_v15 = vrot.slane %v1174_v4, 1 }
 0x138   : > { %v1571_v31 = vpop.permute.xlu0 %1570  ;;  %v2194_v27 = vsel %vm2192_vm9, %v2161_v45, %v1835_v9  ;;  %v1782_v9 = vshll.u32 %v1637_v53, 16  ;;  %v3044_v45 = vor.u32 %v3043_v46, %v3042_v50 }
 0x139   : > { %v2169_v47 = vsel %vm2159_vm8, %v2136_v19, %v1571_v31  ;;  %v1949_v31 = vsel %vm889_vm1, %v1947_v30, %v1948_v35  ;;  %v4264_v19 = vld [vmem:[%s3283_s22 + $0x3c] sm:$0xff]  }
 0x13a   : > { %v2202_v56 = vsel %vm2192_vm9, %v2169_v47, %v4129_v3  ;;  %v1823_v3 = vshrl.u32 %v4188_v20, 16  ;;  %v1784_v25 = vrot.slane %v1782_v9, 1  ;;  %v1423_v0 = vrot.slane %v3044_v45, 1 }
 0x13b   : > { %v1681_v9 = vshll.u32 %v4264_v19, 16 }
 0x13c   : > { %1472 = vrot.lane.b32.xlu2 %v1437_v6, %s3229_s26  ;;  %v1828_v61 = vor.u32 %v1827_v52, %v1823_v3  ;;  %v1832_v6 = vrot.slane %v1830_v2, 1  ;;  %v1785_v24 = vsel %vm616_vm0, %v1780_v59, %v1784_v25  ;;  %v4575_v3 = vld [vmem:[#allocation2_spill] sm:$0xff]  ;;  %v1613_v52 = vunpack.c.l.b16 %v2832_v18  ;;  %v2836_v2 = vld [vmem:[%s3283_s22 + $0x74] sm:$0x1] }
 0x13d   : > { %1352 = vrot.lane.b32.xlu1 %v1321_v28, %s3230_s27  ;;  %v1617_v30 = vunpack.c.l.b16 %v2836_v2  ;;  %v1411_v59 = vrot.slane %v3038_v1, 1  ;;  %v1683_v4 = vrot.slane %v1681_v9, 1 }
 0x13e   : > { %v4224_v41 = vpop.permute.xlu2 %1988  ;;  %1344 = vrot.lane.b32.xlu0 %v1273_v10, %s3230_s27  ;;  %v1833_v51 = vsel %vm616_vm0, %v1828_v61, %v1832_v6  ;;  %v3195_v10 = vor.u32 %v3194_v40, %v4191_v34  ;;  %v1960_v34 = vrot.slane %v4227_v29, 1  ;;  %v1629_v35 = vpack.c.b16 %v1613_v52, %v1613_v52 }
 0x13f   : > { %v1971_v54 = vpop.permute.xlu1 %1970  ;;  %v1729_v6 = vshll.u32 %v4275_v32, 16 }
 0x140   : > { %v2235_v11 = vsel %vm2225_vm10, %v2202_v56, %v1971_v54  ;;  %v1963_v36 = vpop.permute.xlu0 %1962  ;;  %v4278_v54 = vld [vmem:[%s3283_s22 + $0x6c] sm:$0xf0]  ;;  %v1959_v17 = vrot.slane %v3195_v10, 1  ;;  %v1924_v2 = vrot.slane %v1629_v35, 1 }
 0x141   : > { %2873 = vmatmul.msk.bf16.vlgmr.msra.gmra.mxu1 %vm2278_vm11, %v2235_v11  ;;  %v2227_v5 = vsel %vm2225_vm10, %v2194_v27, %v1963_v36  ;;  %v2113_v27 = vsel %vm2093_vm6, %v3911_v62, %v4155_v7  ;;  %v1424_v7 = vrot.slane %v4248_v21, 1  ;;  %v1731_v10 = vrot.slane %v1729_v6, 1 }
 0x142   : > { %2869 = vmatmul.msk.bf16.vlgmr.msra.gmra.mxu0 %vm2278_vm11, %v2227_v5  ;;  %v1177_v5 = vsel %vm616_vm0, %v4575_v3, %v1176_v15 }
 0x144   : > { %1592 = vrot.lane.b32.xlu2 %v4188_v20, %s3231_s28 }
 0x145   : > { %1584 = vrot.lane.b32.xlu1 %v4195_v33, %s3231_s28  ;;  %v1222_v33 = vshll.u32 %v4248_v21, 16  ;;  %v1412_v21 = vrot.slane %v4253_v38, 1  ;;  %v1727_v38 = vshrl.u32 %v4275_v32, 16 }
 0x146   : > { %1480 = vrot.lane.b32.xlu0 %v1449_v16, %s3229_s26  ;;  %v4256_v13 = vpop.permute.xlu2 %1452  ;;  %v1961_v16 = vsel %vm889_vm1, %v1959_v17, %v1960_v34 }
 0x147   : > { %v1469_v20 = vpop.permute.xlu1 %1468  ;;  %v1224_v47 = vrot.slane %v1222_v33, 1  ;;  %v1425_v33 = vsel %vm889_vm1, %v1423_v0, %v1424_v7  ;;  %v1413_v15 = vsel %vm889_vm1, %v1411_v59, %v1412_v21  ;;  %v1732_v18 = vor.u32 %v1731_v10, %v1727_v38 }
 0x148   : > { %v1349_v28 = vpop.permute.xlu0 %1348  ;;  %v2146_v23 = vsel %vm2126_vm7, %v2113_v27, %v1469_v20 }
 0x149   : > { %v1225_v53 = vsel %vm616_vm0, %v4574_v12, %v1224_v47  ;;  %v2121_v62 = vsel %vm2093_vm6, %v4072_v60, %v1349_v28  ;;  %v3197_v47 = vld [vmem:[%s3283_s22 + $0x6c] sm:$0xe] }
 0x14a   : > { %v2154_v60 = vsel %vm2126_vm7, %v2121_v62, %v4174_v26  ;;  %v1686_v26 = vshll.u32 %v1629_v35, 16 }
 0x14c   : > { %1984 = vrot.lane.b32.xlu2 %v1949_v31, %s3232_s29 }
 0x14d   : > { %1864 = vrot.lane.b32.xlu1 %v1833_v51, %s3233_s30  ;;  %v1679_v51 = vshrl.u32 %v4264_v19, 16 }
 0x14e   : > { %1856 = vrot.lane.b32.xlu0 %v1785_v24, %s3233_s30  ;;  %v4290_v36 = vpop.permute.xlu2 %1572 }
 0x14f   : > { %v1589_v56 = vpop.permute.xlu1 %1588 }
 0x150   : > { %v1581_v11 = vpop.permute.xlu0 %1580  ;;  %v2187_v31 = vsel %vm2159_vm8, %v2154_v60, %v1589_v56  ;;  %v3200_v56 = vld [vmem:[%s3283_s22 + $0x3c] sm:$0xe]  ;;  %s4400_s22 = scalar_lea.vmem %s4569_s4, %s2887_s19 }
 0x151   : > { %v2179_v29 = vsel %vm2159_vm8, %v2146_v23, %v1581_v11  ;;  %v3198_v11 = vor.u32 %v3197_v47, %v4278_v54  ;;  %v3201_v37 = vor.u32 %v3200_v56, %v4267_v44 }
 0x152   : > { %v2212_v61 = vsel %vm2192_vm9, %v2179_v29, %v4199_v39  ;;  %v1633_v39 = vpack.c.b16 %v1617_v30, %v1617_v30 }
 0x153   : > { %v1935_v27 = vrot.slane %v3198_v11, 1  ;;  %v1923_v52 = vrot.slane %v3201_v37, 1 }
 0x154   : > { %1336 = vrot.lane.b32.xlu2 %v1225_v53, %s3230_s27  ;;  %v1734_v50 = vshll.u32 %v1633_v39, 16  ;;  %v1684_v53 = vor.u32 %v1683_v4, %v1679_v51  ;;  %v1936_v3 = vrot.slane %v1633_v39, 1 }
 0x155   : > { %1328 = vrot.lane.b32.xlu1 %v1177_v5, %s3230_s27  ;;  %v1925_v54 = vsel %vm889_vm1, %v1923_v52, %v1924_v2 }
 0x156   : > { %1992 = vrot.lane.b32.xlu0 %v1961_v16, %s3232_s29  ;;  %v1965_v46 = vpop.permute.xlu2 %1964  ;;  %v1736_v12 = vrot.slane %v1734_v50, 1  ;;  %v1937_v29 = vsel %vm889_vm1, %v1935_v27, %v1936_v3 }
 0x157   : > { %v1981_v40 = vpop.permute.xlu1 %1980 }
 0x158   : > { %v2245_v20 = vsel %vm2225_vm10, %v2212_v61, %v1981_v40  ;;  %v1861_v25 = vpop.permute.xlu0 %1860 }
 0x159   : > { %2878 = vmatmul.msk.bf16.gmra.mxu2 %vm2278_vm11, %v2245_v20  ;;  %v2220_v28 = vsel %vm2192_vm9, %v2187_v31, %v1861_v25 }
 0x15a   : > { %v2253_v24 = vsel %vm2225_vm10, %v2220_v28, %v4224_v41  ;;  %v1688_v41 = vrot.slane %v1686_v26, 1 }
 0x15b   : > { %2882 = vmatmul.msk.bf16.gmra.mxu3 %vm2278_vm11, %v2253_v24 }
 0x15c   : > { %1568 = vrot.lane.b32.xlu2 %v4264_v19, %s3231_s28  ;;  %v1737_v19 = vsel %vm616_vm0, %v1732_v18, %v1736_v12  ;;  %v1689_v45 = vsel %vm616_vm0, %v1684_v53, %v1688_v41 }
 0x15d   : > { %1464 = vrot.lane.b32.xlu1 %v1425_v33, %s3229_s26 }
 0x15e   : > { %1456 = vrot.lane.b32.xlu0 %v1413_v15, %s3229_s26  ;;  %v1351_v58 = vpop.permute.xlu2 %1350 }
 0x15f   : > { %v1333_v17 = vpop.permute.xlu1 %1332  ;;  %v2123_v25 = vsel %vm2093_vm6, %v4066_v42, %v1351_v58 }
 0x160   : > { %v1325_v34 = vpop.permute.xlu0 %1324  ;;  %v2105_v35 = vsel %vm2093_vm6, %v3979_v48, %v1333_v17  ;;  %v4377_v17 = vld [vmem:[%s4567_s2] ss:$0 sm:$0xff] }
 0x161   : > { %v2097_v16 = vsel %vm2093_vm6, %v3959_v55, %v1325_v34  ;;  %v4384_v34 = vld [vmem:[%s4568_s3] ss:$0 sm:$0xff] }
 0x164   : > { %1848 = vrot.lane.b32.xlu2 %v1737_v19, %s3233_s30 }
 0x165   : > { %1840 = vrot.lane.b32.xlu1 %v1689_v45, %s3233_s30 }
 0x166   : > { %1576 = vrot.lane.b32.xlu0 %v4275_v32, %s3231_s28  ;;  %v1583_v0 = vpop.permute.xlu2 %1582  ;;  %v2130_v32 = vsel %vm2126_vm7, %v2097_v16, %v4256_v13 }
 0x167   : > { %v1565_v5 = vpop.permute.xlu1 %1564 }
 0x168   : > { %v1461_v23 = vpop.permute.xlu0 %1460  ;;  %v2163_v1 = vsel %vm2159_vm8, %v2130_v32, %v1565_v5 }
 0x169   : > { %v2138_v55 = vsel %vm2126_vm7, %v2105_v35, %v1461_v23 }
 0x16a   : > { %v2171_v40 = vsel %vm2159_vm8, %v2138_v55, %v4290_v36 }
 0x16d   : > { %1976 = vrot.lane.b32.xlu1 %v1937_v29, %s3232_s29 }
 0x16e   : > { %1968 = vrot.lane.b32.xlu0 %v1925_v54, %s3232_s29  ;;  %v1863_v6 = vpop.permute.xlu2 %1862 }
 0x16f   : > { %v1845_v44 = vpop.permute.xlu1 %1844 }
 0x170   : > { %v1837_v62 = vpop.permute.xlu0 %1836  ;;  %v2204_v13 = vsel %vm2192_vm9, %v2171_v40, %v1845_v44 }
 0x171   : > { %v2196_v7 = vsel %vm2192_vm9, %v2163_v1, %v1837_v62 }
 0x172   : > { %v2229_v30 = vsel %vm2225_vm10, %v2196_v7, %v1965_v46 }
 0x173   : > { %2870 = vmatmul.msk.bf16.gmra.mxu0 %vm2278_vm11, %v2229_v30 }
 0x176   : > { %v1327_v21 = vpop.permute.xlu2 %1326 }
 0x177   : > { %v1343_v9 = vpop.permute.xlu1 %1342  ;;  %v2099_v18 = vsel %vm2093_vm6, %v3950_v8, %v1327_v21 }
 0x178   : > { %v1973_v61 = vpop.permute.xlu0 %1972  ;;  %v2115_v36 = vsel %vm2093_vm6, %v4044_v43, %v1343_v9 }
 0x179   : > { %v2237_v60 = vsel %vm2225_vm10, %v2204_v13, %v1973_v61 }
 0x17a   : > { %2874 = vmatmul.msk.bf16.gmra.mxu1 %vm2278_vm11, %v2237_v60 }
 0x17e   : > { %v1463_v51 = vpop.permute.xlu2 %1462 }
 0x17f   : > { %v1479_v20 = vpop.permute.xlu1 %1478 }
 0x180   : > { %v1471_v59 = vpop.permute.xlu0 %1470  ;;  %v2156_v33 = vsel %vm2126_vm7, %v2123_v25, %v1479_v20 }
 0x181   : > { %v2148_v28 = vsel %vm2126_vm7, %v2115_v36, %v1471_v59 }
 0x182   : > { %v2181_v24 = vsel %vm2159_vm8, %v2148_v28, %v1583_v0 }
 0x186   : > { %v1839_v50 = vpop.permute.xlu2 %1838 }
 0x187   : > { %v1855_v48 = vpop.permute.xlu1 %1854 }
 0x188   : > { %v1591_v31 = vpop.permute.xlu0 %1590  ;;  %v2214_v38 = vsel %vm2192_vm9, %v2181_v24, %v1855_v48 }
 0x189   : > { %v2189_v39 = vsel %vm2159_vm8, %v2156_v33, %v1591_v31 }
 0x18a   : > { %v2222_v26 = vsel %vm2192_vm9, %v2189_v39, %v1863_v6 }
 0x18e   : > { %v1975_v12 = vpop.permute.xlu2 %1974 }
 0x18f   : > { %v1991_v4 = vpop.permute.xlu1 %1990 }
 0x190   : > { %v2255_v47 = vsel %vm2225_vm10, %v2222_v26, %v1991_v4  ;;  %v1983_v42 = vpop.permute.xlu0 %1982 }
 0x191   : > { %2883 = vmatmul.msk.bf16.gmra.mxu3 %vm2278_vm11, %v2255_v47  ;;  %v2247_v10 = vsel %vm2225_vm10, %v2214_v38, %v1983_v42 }
 0x192   : > { %2879 = vmatmul.msk.bf16.gmra.mxu2 %vm2278_vm11, %v2247_v10 }
 0x196   : > { %v1473_v23 = vpop.permute.xlu2 %1472 }
 0x197   : > { %v1455_v43 = vpop.permute.xlu1 %1454 }
 0x198   : > { %v1335_v46 = vpop.permute.xlu0 %1334  ;;  %v2132_v53 = vsel %vm2126_vm7, %v2099_v18, %v1455_v43 }
 0x199   : > { %v2107_v19 = vsel %vm2093_vm6, %v3884_v49, %v1335_v46 }
 0x19a   : > { %v2140_v37 = vsel %vm2126_vm7, %v2107_v19, %v1463_v51 }
 0x19e   : > { %v1593_v40 = vpop.permute.xlu2 %1592 }
 0x19f   : > { %v1575_v15 = vpop.permute.xlu1 %1574 }
 0x1a0   : > { %v1567_v56 = vpop.permute.xlu0 %1566  ;;  %v2173_v3 = vsel %vm2159_vm8, %v2140_v37, %v1575_v15 }
 0x1a1   : > { %v2165_v41 = vsel %vm2159_vm8, %v2132_v53, %v1567_v56 }
 0x1a2   : > { %v2198_v11 = vsel %vm2192_vm9, %v2165_v41, %v1839_v50 }
 0x1a6   : > { %v2364_v8 = vpop.f32.mrf.mxu2  ;;  %v1985_v39 = vpop.permute.xlu2 %1984 }
 0x1a7   : > { %v1967_v45 = vpop.permute.xlu1 %1966  ;;  %v2424_v58 = vmul.f32 %v4377_v17, %v2364_v8 }
 0x1a8   : > { %v2231_v27 = vsel %vm2225_vm10, %v2198_v11, %v1967_v45  ;;  %v1847_v5 = vpop.permute.xlu0 %1846 }
 0x1a9   : > { %2871 = vmatmul.msk.bf16.gmra.mxu0 %vm2278_vm11, %v2231_v27  ;;  %v2460_v49 = vadd.f32 %v4384_v34, %v2424_v58  ;;  %v2206_v52 = vsel %vm2192_vm9, %v2173_v3, %v1847_v5 }
 0x1aa   : > { %v2239_v2 = vsel %vm2225_vm10, %v2206_v52, %v1975_v12 }
 0x1ab   : > { %v2492_v29 = vmax.f32 %v2460_v49, 0.0  ;;  %2875 = vmatmul.msk.bf16.gmra.mxu1 %vm2278_vm11, %v2239_v2 }
 0x1ad   : > { %v2524_v54 = vpack.c.bf16 %v2492_v29, %v2492_v29  ;;  %v2384_v16 = vpop.f32.mrf.mxu3 }
 0x1ae   : > { %v2432_v44 = vmul.f32 %v4377_v17, %v2384_v16  ;;  %v2366_v0 = vpop.f32.mrf.mxu2  ;;  %v1337_v37 = vpop.permute.xlu2 %1336 }
 0x1af   : > { %v1353_v32 = vpop.permute.xlu1 %1352  ;;  %2557 = vst.msk [vmem:[%s4400_s22 + $0x40] sm:$0xf] %vm2540_vm12, %v2524_v54  ;;  %v2425_v1 = vmul.f32 %v4377_v17, %v2366_v0 }
 0x1b0   : > { %v2468_v62 = vadd.f32 %v4384_v34, %v2432_v44  ;;  %v1345_v7 = vpop.permute.xlu0 %1344  ;;  %v2125_v43 = vsel %vm2093_vm6, %v3972_v22, %v1353_v32  ;;  %v2109_v44 = vsel %vm2093_vm6, %v4015_v57, %v1337_v37 }
 0x1b1   : > { %v2461_v30 = vadd.f32 %v4384_v34, %v2425_v1  ;;  %v2117_v48 = vsel %vm2093_vm6, %v4039_v63, %v1345_v7 }
 0x1b2   : > { %v2500_v35 = vmax.f32 %v2468_v62, 0.0  ;;  %v2150_v28 = vsel %vm2126_vm7, %v2117_v48, %v1473_v23 }
 0x1b3   : > { %v2493_v55 = vmax.f32 %v2461_v30, 0.0 }
 0x1b4   : > { %v2532_v9 = vpack.c.bf16 %v2500_v35, %v2500_v35 }
 0x1b5   : > { %v2525_v13 = vpack.c.bf16 %v2493_v55, %v2493_v55  ;;  %v2386_v61 = vpop.f32.mrf.mxu3 }
 0x1b6   : > { %2565 = vst.msk [vmem:[%s4400_s22 + $0x60] sm:$0xf] %vm2540_vm12, %v2532_v9  ;;  %v2433_v6 = vmul.f32 %v4377_v17, %v2386_v61  ;;  %v1569_v29 = vpop.permute.xlu2 %1568 }
 0x1b7   : > { %v1585_v60 = vpop.permute.xlu1 %1584  ;;  %2558 = vst.msk [vmem:[%s4400_s22 + $0x44] sm:$0xf] %vm2540_vm12, %v2525_v13 }
 0x1b8   : > { %v2469_v20 = vadd.f32 %v4384_v34, %v2433_v6  ;;  %v1481_v59 = vpop.permute.xlu0 %1480  ;;  %v2183_v4 = vsel %vm2159_vm8, %v2150_v28, %v1585_v60 }
 0x1b9   : > { %v2158_v50 = vsel %vm2126_vm7, %v2125_v43, %v1481_v59 }
 0x1ba   : > { %v2501_v21 = vmax.f32 %v2469_v20, 0.0  ;;  %v2191_v41 = vsel %vm2159_vm8, %v2158_v50, %v1593_v40 }
 0x1bc   : > { %v2533_v31 = vpack.c.bf16 %v2501_v21, %v2501_v21 }
 0x1be   : > { %v2344_v25 = vpop.f32.mrf.mxu1  ;;  %2566 = vst.msk [vmem:[%s4400_s22 + $0x64] sm:$0xf] %vm2540_vm12, %v2533_v31  ;;  %v1849_v62 = vpop.permute.xlu2 %1848 }
 0x1bf   : > { %v2416_v33 = vmul.f32 %v4377_v17, %v2344_v25  ;;  %v1865_v36 = vpop.permute.xlu1 %1864  ;;  %v2324_v51 = vpop.f32.mrf.mxu0 }
 0x1c0   : > { %v2408_v26 = vmul.f32 %v4377_v17, %v2324_v51  ;;  %v1857_v47 = vpop.permute.xlu0 %1856  ;;  %v2224_v22 = vsel %vm2192_vm9, %v2191_v41, %v1865_v36 }
 0x1c1   : > { %v2452_v24 = vadd.f32 %v4384_v34, %v2416_v33  ;;  %v2216_v63 = vsel %vm2192_vm9, %v2183_v4, %v1857_v47 }
 0x1c2   : > { %v2444_v38 = vadd.f32 %v4384_v34, %v2408_v26  ;;  %v2249_v10 = vsel %vm2225_vm10, %v2216_v63, %v1985_v39 }
 0x1c3   : > { %v2484_v42 = vmax.f32 %v2452_v24, 0.0  ;;  %2880 = vmatmul.msk.bf16.gmra.mxu2 %vm2278_vm11, %v2249_v10 }
 0x1c4   : > { %v2476_v46 = vmax.f32 %v2444_v38, 0.0 }
 0x1c5   : > { %v2516_v15 = vpack.c.bf16 %v2484_v42, %v2484_v42 }
 0x1c6   : > { %v2346_v56 = vpop.f32.mrf.mxu1  ;;  %v2508_v18 = vpack.c.bf16 %v2476_v46, %v2476_v46 }
 0x1c7   : > { %2549 = vst.msk [vmem:[%s4400_s22 + $0x20] sm:$0xf] %vm2540_vm12, %v2516_v15  ;;  %v2417_v12 = vmul.f32 %v4377_v17, %v2346_v56  ;;  %v1329_v53 = vpop.permute.xlu1 %1328  ;;  %v2326_v19 = vpop.f32.mrf.mxu0 }
 0x1c8   : > { %2541 = vst.msk [vmem:[%s4400_s22] sm:$0xf] %vm2540_vm12, %v2508_v18  ;;  %v2409_v8 = vmul.f32 %v4377_v17, %v2326_v19  ;;  %v1993_v11 = vpop.permute.xlu0 %1992  ;;  %v2101_v32 = vsel %vm2093_vm6, %v3861_v14, %v1329_v53 }
 0x1c9   : > { %v2453_v45 = vadd.f32 %v4384_v34, %v2417_v12  ;;  %v2257_v58 = vsel %vm2225_vm10, %v2224_v22, %v1993_v11 }
 0x1ca   : > { %v2445_v27 = vadd.f32 %v4384_v34, %v2409_v8  ;;  %2884 = vmatmul.msk.bf16.gmra.mxu3 %vm2278_vm11, %v2257_v58 }
 0x1cb   : > { %v2485_v3 = vmax.f32 %v2453_v45, 0.0 }
 0x1cc   : > { %v2477_v5 = vmax.f32 %v2445_v27, 0.0 }
 0x1cd   : > { %v2517_v49 = vpack.c.bf16 %v2485_v3, %v2485_v3 }
 0x1ce   : > { %v2509_v52 = vpack.c.bf16 %v2477_v5, %v2477_v5 }
 0x1cf   : > { %2550 = vst.msk [vmem:[%s4400_s22 + $0x24] sm:$0xf] %vm2540_vm12, %v2517_v49  ;;  %v1465_v2 = vpop.permute.xlu1 %1464 }
 0x1d0   : > { %2542 = vst.msk [vmem:[%s4400_s22 + $0x4] sm:$0xf] %vm2540_vm12, %v2509_v52  ;;  %v1457_v23 = vpop.permute.xlu0 %1456  ;;  %v2142_v0 = vsel %vm2126_vm7, %v2109_v44, %v1465_v2 }
 0x1d1   : > { %v2134_v30 = vsel %vm2126_vm7, %v2101_v32, %v1457_v23 }
 0x1d2   : > { %v2167_v13 = vsel %vm2159_vm8, %v2134_v30, %v1569_v29 }
 0x1d7   : > { %v1841_v54 = vpop.permute.xlu1 %1840 }
 0x1d8   : > { %v1577_v16 = vpop.permute.xlu0 %1576  ;;  %v2200_v6 = vsel %vm2192_vm9, %v2167_v13, %v1841_v54 }
 0x1d9   : > { %v2175_v1 = vsel %vm2159_vm8, %v2142_v0, %v1577_v16 }
 0x1da   : > { %v2208_v55 = vsel %vm2192_vm9, %v2175_v1, %v1849_v62 }
 0x1dc   : > { %v2369_v7 = vpop.f32.mrf.mxu2 }
 0x1dd   : > { %v2426_v35 = vmul.f32 %v4377_v17, %v2369_v7 }
 0x1de   : > { %v2389_v40 = vpop.f32.mrf.mxu3 }
 0x1df   : > { %v2462_v9 = vadd.f32 %v4384_v34, %v2426_v35  ;;  %v1977_v57 = vpop.permute.xlu1 %1976  ;;  %v2434_v61 = vmul.f32 %v4377_v17, %v2389_v40 }
 0x1e0   : > { %v2241_v14 = vsel %vm2225_vm10, %v2208_v55, %v1977_v57  ;;  %v1969_v20 = vpop.permute.xlu0 %1968 }
 0x1e1   : > { %v2494_v60 = vmax.f32 %v2462_v9, 0.0  ;;  %2876 = vmatmul.msk.bf16.gmra.mxu1 %vm2278_vm11, %v2241_v14  ;;  %v2470_v59 = vadd.f32 %v4384_v34, %v2434_v61  ;;  %v2233_v21 = vsel %vm2225_vm10, %v2200_v6, %v1969_v20 }
 0x1e2   : > { %2872 = vmatmul.msk.bf16.gmra.mxu0 %vm2278_vm11, %v2233_v21 }
 0x1e3   : > { %v2526_v48 = vpack.c.bf16 %v2494_v60, %v2494_v60  ;;  %v2502_v31 = vmax.f32 %v2470_v59, 0.0 }
 0x1e4   : > { %v2371_v25 = vpop.f32.mrf.mxu2 }
 0x1e5   : > { %2559 = vst.msk [vmem:[%s4400_s22 + $0x48] sm:$0xf] %vm2540_vm12, %v2526_v48  ;;  %v2427_v33 = vmul.f32 %v4377_v17, %v2371_v25  ;;  %v2534_v36 = vpack.c.bf16 %v2502_v31, %v2502_v31 }
 0x1e6   : > { %v2391_v28 = vpop.f32.mrf.mxu3 }
 0x1e7   : > { %v2463_v39 = vadd.f32 %v4384_v34, %v2427_v33  ;;  %2567 = vst.msk [vmem:[%s4400_s22 + $0x68] sm:$0xf] %vm2540_vm12, %v2534_v36  ;;  %v2435_v51 = vmul.f32 %v4377_v17, %v2391_v28 }
 0x1e9   : > { %v2495_v4 = vmax.f32 %v2463_v39, 0.0  ;;  %v2471_v26 = vadd.f32 %v4384_v34, %v2435_v51 }
 0x1eb   : > { %v2527_v24 = vpack.c.bf16 %v2495_v4, %v2495_v4  ;;  %v2503_v47 = vmax.f32 %v2471_v26, 0.0 }
 0x1ed   : > { %2560 = vst.msk [vmem:[%s4400_s22 + $0x4c] sm:$0xf] %vm2540_vm12, %v2527_v24  ;;  %v2535_v63 = vpack.c.bf16 %v2503_v47, %v2503_v47 }
 0x1ef   : > { %2568 = vst.msk [vmem:[%s4400_s22 + $0x6c] sm:$0xf] %vm2540_vm12, %v2535_v63 }
 0x1f0   : > { %v2329_v38 = vpop.f32.mrf.mxu0 }
 0x1f1   : > { %v2410_v42 = vmul.f32 %v4377_v17, %v2329_v38 }
 0x1f3   : > { %v2446_v10 = vadd.f32 %v4384_v34, %v2410_v42 }
 0x1f5   : > { %v2478_v43 = vmax.f32 %v2446_v10, 0.0 }
 0x1f7   : > { %v2510_v50 = vpack.c.bf16 %v2478_v43, %v2478_v43  ;;  %v2349_v46 = vpop.f32.mrf.mxu1 }
 0x1f8   : > { %v2418_v15 = vmul.f32 %v4377_v17, %v2349_v46  ;;  %v2331_v56 = vpop.f32.mrf.mxu0 }
 0x1f9   : > { %2543 = vst.msk [vmem:[%s4400_s22 + $0x8] sm:$0xf] %vm2540_vm12, %v2510_v50  ;;  %v2411_v18 = vmul.f32 %v4377_v17, %v2331_v56 }
 0x1fa   : > { %v2454_v12 = vadd.f32 %v4384_v34, %v2418_v15 }
 0x1fb   : > { %v2447_v53 = vadd.f32 %v4384_v34, %v2411_v18 }
 0x1fc   : > { %v2486_v41 = vmax.f32 %v2454_v12, 0.0 }
 0x1fd   : > { %v2479_v19 = vmax.f32 %v2447_v53, 0.0 }
 0x1fe   : > { %v2518_v22 = vpack.c.bf16 %v2486_v41, %v2486_v41 }
 0x1ff   : > { %v2511_v8 = vpack.c.bf16 %v2479_v19, %v2479_v19  ;;  %v2351_v45 = vpop.f32.mrf.mxu1 }
 0x200   : > { %2551 = vst.msk [vmem:[%s4400_s22 + $0x28] sm:$0xf] %vm2540_vm12, %v2518_v22  ;;  %v2419_v11 = vmul.f32 %v4377_v17, %v2351_v45 }
 0x201   : > { %2544 = vst.msk [vmem:[%s4400_s22 + $0xc] sm:$0xf] %vm2540_vm12, %v2511_v8 }
 0x202   : > { %v2455_v37 = vadd.f32 %v4384_v34, %v2419_v11 }
 0x204   : > { %v2487_v58 = vmax.f32 %v2455_v37, 0.0 }
 0x206   : > { %v2519_v27 = vpack.c.bf16 %v2487_v58, %v2487_v58 }
 0x208   : > { %2552 = vst.msk [vmem:[%s4400_s22 + $0x2c] sm:$0xf] %vm2540_vm12, %v2519_v27 }
 0x214   : > { %v2394_v3 = vpop.f32.mrf.mxu3 }
 0x215   : > { %v2436_v5 = vmul.f32 %v4377_v17, %v2394_v3  ;;  %v2374_v49 = vpop.f32.mrf.mxu2 }
 0x216   : > { %v2428_v52 = vmul.f32 %v4377_v17, %v2374_v49 }
 0x217   : > { %v2472_v2 = vadd.f32 %v4384_v34, %v2436_v5 }
 0x218   : > { %v2464_v23 = vadd.f32 %v4384_v34, %v2428_v52 }
 0x219   : > { %v2504_v29 = vmax.f32 %v2472_v2, 0.0 }
 0x21a   : > { %v2496_v54 = vmax.f32 %v2464_v23, 0.0 }
 0x21b   : > { %v2536_v16 = vpack.c.bf16 %v2504_v29, %v2504_v29 }
 0x21c   : > { %v2396_v44 = vpop.f32.mrf.mxu3  ;;  %v2528_v0 = vpack.c.bf16 %v2496_v54, %v2496_v54 }
 0x21d   : > { %2569 = vst.msk [vmem:[%s4400_s22 + $0x70] sm:$0xf] %vm2540_vm12, %v2536_v16  ;;  %v2437_v32 = vmul.f32 %v4377_v17, %v2396_v44  ;;  %v2376_v1 = vpop.f32.mrf.mxu2 }
 0x21e   : > { %2561 = vst.msk [vmem:[%s4400_s22 + $0x50] sm:$0xf] %vm2540_vm12, %v2528_v0  ;;  %v2429_v62 = vmul.f32 %v4377_v17, %v2376_v1 }
 0x21f   : > { %v2473_v7 = vadd.f32 %v4384_v34, %v2437_v32 }
 0x220   : > { %v2465_v30 = vadd.f32 %v4384_v34, %v2429_v62 }
 0x221   : > { %v2505_v35 = vmax.f32 %v2473_v7, 0.0 }
 0x222   : > { %v2497_v55 = vmax.f32 %v2465_v30, 0.0 }
 0x223   : > { %v2537_v9 = vpack.c.bf16 %v2505_v35, %v2505_v35 }
 0x224   : > { %v2529_v40 = vpack.c.bf16 %v2497_v55, %v2497_v55 }
 0x225   : > { %2570 = vst.msk [vmem:[%s4400_s22 + $0x74] sm:$0xf] %vm2540_vm12, %v2537_v9 }
 0x226   : > { %v2334_v57 = vpop.f32.mrf.mxu0  ;;  %2562 = vst.msk [vmem:[%s4400_s22 + $0x54] sm:$0xf] %vm2540_vm12, %v2529_v40 }
 0x227   : > { %v2412_v13 = vmul.f32 %v4377_v17, %v2334_v57 }
 0x228   : > { %v2354_v14 = vpop.f32.mrf.mxu1 }
 0x229   : > { %v2448_v61 = vadd.f32 %v4384_v34, %v2412_v13  ;;  %v2420_v6 = vmul.f32 %v4377_v17, %v2354_v14 }
 0x22b   : > { %v2480_v60 = vmax.f32 %v2448_v61, 0.0  ;;  %v2456_v20 = vadd.f32 %v4384_v34, %v2420_v6 }
 0x22d   : > { %v2512_v59 = vpack.c.bf16 %v2480_v60, %v2480_v60  ;;  %v2488_v21 = vmax.f32 %v2456_v20, 0.0 }
 0x22e   : > { %v2336_v48 = vpop.f32.mrf.mxu0 }
 0x22f   : > { %2545 = vst.msk [vmem:[%s4400_s22 + $0x10] sm:$0xf] %vm2540_vm12, %v2512_v59  ;;  %v2413_v31 = vmul.f32 %v4377_v17, %v2336_v48  ;;  %v2520_v25 = vpack.c.bf16 %v2488_v21, %v2488_v21 }
 0x230   : > { %v2356_v36 = vpop.f32.mrf.mxu1 }
 0x231   : > { %v2449_v33 = vadd.f32 %v4384_v34, %v2413_v31  ;;  %2553 = vst.msk [vmem:[%s4400_s22 + $0x30] sm:$0xf] %vm2540_vm12, %v2520_v25  ;;  %v2421_v39 = vmul.f32 %v4377_v17, %v2356_v36 }
 0x233   : > { %v2481_v28 = vmax.f32 %v2449_v33, 0.0  ;;  %v2457_v51 = vadd.f32 %v4384_v34, %v2421_v39 }
 0x235   : > { %v2513_v4 = vpack.c.bf16 %v2481_v28, %v2481_v28  ;;  %v2489_v26 = vmax.f32 %v2457_v51, 0.0 }
 0x237   : > { %2546 = vst.msk [vmem:[%s4400_s22 + $0x14] sm:$0xf] %vm2540_vm12, %v2513_v4  ;;  %v2521_v24 = vpack.c.bf16 %v2489_v26, %v2489_v26 }
 0x239   : > { %2554 = vst.msk [vmem:[%s4400_s22 + $0x34] sm:$0xf] %vm2540_vm12, %v2521_v24 }
 0x246   : > { %v2379_v47 = vpop.f32.mrf.mxu2 }
 0x247   : > { %v2430_v63 = vmul.f32 %v4377_v17, %v2379_v47 }
 0x249   : > { %v2466_v38 = vadd.f32 %v4384_v34, %v2430_v63 }
 0x24b   : > { %v2498_v42 = vmax.f32 %v2466_v38, 0.0 }
 0x24d   : > { %v2530_v10 = vpack.c.bf16 %v2498_v42, %v2498_v42  ;;  %v2399_v43 = vpop.f32.mrf.mxu3 }
 0x24e   : > { %v2438_v50 = vmul.f32 %v4377_v17, %v2399_v43  ;;  %v2381_v46 = vpop.f32.mrf.mxu2 }
 0x24f   : > { %2563 = vst.msk [vmem:[%s4400_s22 + $0x58] sm:$0xf] %vm2540_vm12, %v2530_v10  ;;  %v2431_v15 = vmul.f32 %v4377_v17, %v2381_v46 }
 0x250   : > { %v2474_v56 = vadd.f32 %v4384_v34, %v2438_v50 }
 0x251   : > { %v2467_v18 = vadd.f32 %v4384_v34, %v2431_v15 }
 0x252   : > { %v2506_v12 = vmax.f32 %v2474_v56, 0.0 }
 0x253   : > { %v2499_v53 = vmax.f32 %v2467_v18, 0.0 }
 0x254   : > { %v2538_v41 = vpack.c.bf16 %v2506_v12, %v2506_v12 }
 0x255   : > { %v2531_v19 = vpack.c.bf16 %v2499_v53, %v2499_v53  ;;  %v2401_v22 = vpop.f32.mrf.mxu3 }
 0x256   : > { %2571 = vst.msk [vmem:[%s4400_s22 + $0x78] sm:$0xf] %vm2540_vm12, %v2538_v41  ;;  %v2439_v8 = vmul.f32 %v4377_v17, %v2401_v22 }
 0x257   : > { %2564 = vst.msk [vmem:[%s4400_s22 + $0x5c] sm:$0xf] %vm2540_vm12, %v2531_v19 }
 0x258   : > { %v2475_v45 = vadd.f32 %v4384_v34, %v2439_v8 }
 0x25a   : > { %v2507_v11 = vmax.f32 %v2475_v45, 0.0 }
 0x25c   : > { %v2539_v37 = vpack.c.bf16 %v2507_v11, %v2507_v11 }
 0x25e   : > { %v2359_v58 = vpop.f32.mrf.mxu1  ;;  %2572 = vst.msk [vmem:[%s4400_s22 + $0x7c] sm:$0xf] %vm2540_vm12, %v2539_v37 }
 0x25f   : > { %v2422_v27 = vmul.f32 %v4377_v17, %v2359_v58  ;;  %v2339_v3 = vpop.f32.mrf.mxu0 }
 0x260   : > { %v2414_v5 = vmul.f32 %v4377_v17, %v2339_v3 }
 0x261   : > { %v2458_v49 = vadd.f32 %v4384_v34, %v2422_v27 }
 0x262   : > { %v2450_v52 = vadd.f32 %v4384_v34, %v2414_v5 }
 0x263   : > { %v2490_v2 = vmax.f32 %v2458_v49, 0.0 }
 0x264   : > { %v2482_v23 = vmax.f32 %v2450_v52, 0.0 }
 0x265   : > { %v2522_v29 = vpack.c.bf16 %v2490_v2, %v2490_v2 }
 0x266   : > { %v2361_v54 = vpop.f32.mrf.mxu1  ;;  %v2514_v16 = vpack.c.bf16 %v2482_v23, %v2482_v23 }
 0x267   : > { %2555 = vst.msk [vmem:[%s4400_s22 + $0x38] sm:$0xf] %vm2540_vm12, %v2522_v29  ;;  %v2423_v44 = vmul.f32 %v4377_v17, %v2361_v54  ;;  %v2341_v0 = vpop.f32.mrf.mxu0 }
 0x268   : > { %2547 = vst.msk [vmem:[%s4400_s22 + $0x18] sm:$0xf] %vm2540_vm12, %v2514_v16  ;;  %v2415_v32 = vmul.f32 %v4377_v17, %v2341_v0 }
 0x269   : > { %v2459_v1 = vadd.f32 %v4384_v34, %v2423_v44 }
 0x26a   : > { %v2451_v62 = vadd.f32 %v4384_v34, %v2415_v32 }
 0x26b   : > { %v2491_v7 = vmax.f32 %v2459_v1, 0.0 }
 0x26c   : > { %v2483_v30 = vmax.f32 %v2451_v62, 0.0 }
 0x26d   : > { %v2523_v35 = vpack.c.bf16 %v2491_v7, %v2491_v7 }
 0x26e   : > { %v2515_v55 = vpack.c.bf16 %v2483_v30, %v2483_v30 }
 0x26f   : > { %2556 = vst.msk [vmem:[%s4400_s22 + $0x3c] sm:$0xf] %vm2540_vm12, %v2523_v35 }
 0x270   : > { %2548 = vst.msk [vmem:[%s4400_s22 + $0x1c] sm:$0xf] %vm2540_vm12, %v2515_v55 }
 0x271 PF: > { %s14_s17 = sadd.s32 1, %s3224_s17   ;;  %s4576_s15 = smov %s3220_s16 }
 0x272   : > { %p11_p5 = scmp.ge.s32.totalorder %s14_s17, 4   ;;  %s4577_s16 = smov %s4579_s18 }
 0x274   :  { %13 = sbr.rel (!%p11_p5) target bundleno = 2 (0x2), region = 78 }

// kernel: std_conv_br.1
= control target key start
LH: loop header
LB: loop body
LE: loop exit
PB: predicated region body
PF: predicated region fallthrough
CT: control target
= control target key end

     0   :  { %s5300_s15 = smov 0   ;;  %s5302_s16 = smov 0   ;;  %s6799_s0 = inlined_call_operand.vmem [shape: bf16[2,18,18,4], index: 0, kind: input, shape index: {}]   ;;  %s6800_s1 = inlined_call_operand.vmem [shape: bf16[3,3,4,8], index: 1, kind: input, shape index: {}]   ;;  %s6801_s2 = inlined_call_operand.vmem [shape: f32[1,8], index: 2, kind: input, shape index: {}]   ;;  %s6802_s3 = inlined_call_operand.vmem [shape: f32[1,8], index: 3, kind: input, shape index: {}]   ;;  %s6803_s4 = inlined_call_operand.vmem [shape: bf16[2,16,16,8], index: 4, kind: output, shape index: {}]  }
   0x1   :  { %s5304_s17 = smov 0  }
   0x2 LB: > { %s33_s18 = sadd.s32 1, %s5269_s16  ;;  %p4530_p0 = scmp.ge.s32.totalorder %s5273_s17, 1  ;;  %s5273_s17 = sphi %s5304_s17, %s14_s17   ;;  %s5269_s16 = sphi %s5302_s16, %s6815_s16   ;;  %s5265_s15 = sphi %s5300_s15, %s6814_s15  }
   0x3   : > { %p35_p1 = scmp.ge.s32.totalorder %s33_s18, 2  ;;  %p210_p2 = scmp.lt.s32.totalorder %s5273_s17, 3 }
   0x5   : > { %s6817_s18 = smov (%p35_p1, %s33_s18), 0  ;;  %p211_p3 = pnand %p4530_p0, %p210_p2 }
   0x7   : > { %214 = sbr.rel (%p211_p3) target bundleno = 763 (0x2fb), region = 36 }
   0xc   : > { %v4534_v0 = vld [vmem:[%s6800_s1 + $0x2] sm:$0x3]  ;;  %vm823_vm0 = vcmask 1041408   ;;  %p254_p4 = scmp.lt.s32.totalorder %s5265_s15, 1  ;;  %v4647_v2 = vld [vmem:[%s6800_s1 + $0x4] sm:$0x3] }
   0xd   : > { %v825_v1 = vsel %vm823_vm0, %v4534_v0, 0  ;;  %v1398_v3 = vsel %vm823_vm0, %v4647_v2, 0  ;;  %v4696_v4 = vld [vmem:[%s6800_s1 + $0x6] sm:$0x3]  ;;  %v320_v5 = vld [vmem:[%s6800_s1] sm:$0x3] }
   0xe   : > { %5169 = vmatpush.bf16.msra.mxu1 %v825_v1  ;;  %5170 = vmatpush.bf16.msra.mxu2 %v825_v1  ;;  %s6819_s15 = smov (!%p254_p4, %s5265_s15), 1  ;;  %v4825_v6 = vld [vmem:[%s6800_s1 + $0x8] sm:$0x3]  ;;  %v1688_v7 = vsel %vm823_vm0, %v4696_v4, 0  ;;  %v1045_v8 = vsel %vm823_vm0, %v320_v5, 0  ;;  %vm774_vm4 = vcmask 31744  }
   0xf   : > { %5171 = vmatpush.bf16.msra.mxu3 %v825_v1  ;;  %834 = vmatpush.bf16.msra.mxu0 %v825_v1  ;;  %s5172_s29 = smul.u32 216, %s6819_s15  ;;  %v2342_v9 = vsel %vm823_vm0, %v4825_v6, 0  ;;  %vm337_vm1 = vsmask.f32 3328  ;;  %vm338_vm2 = vsmask.f32 7440 }
  0x10   : > { %vm5356_vm3 = vmor %vm337_vm1, %vm338_vm2  ;;  %vm1184_vm5 = vcmask 1042432   ;;  %vm1185_vm6 = vcmask 1046532   ;;  %s5120_s23 = sshll.u32 %s6819_s15, 7  ;;  %vm4341_vm8 = vcmask 60416  }
  0x11   : > { %s5344_s6 = scalar_lea.vmem %s6799_s0, %s5172_s29  ;;  %vm5530_vm7 = vmor %vm1184_vm5, %vm1185_vm6  ;;  %s6429_s25 = scalar_lea.vmem %s6803_s4, %s5120_s23 }
  0x12   : > { %1407 = vmatpush.bf16.msrb.mxu2 %v1398_v3  ;;  %1054 = vmatpush.bf16.msrb.mxu1 %v1045_v8  ;;  %v296_v10 = vld [vmem:[%s5344_s6 + $0x30] sm:$0xf]  ;;  %v297_v11 = vld [vmem:[%s5344_s6 + $0x34] sm:$0xf]  ;;  %v325_v12 = vld [vmem:[%s5344_s6 + $0x38] sm:$0x1] }
  0x13   : > { %1697 = vmatpush.bf16.msrb.mxu3 %v1688_v7  ;;  %2351 = vmatpush.bf16.msrb.mxu0 %v2342_v9  ;;  %v437_v13 = vshrl.u32 %v296_v10, 16  ;;  %v440_v14 = vshll.u32 %v296_v10, 16  ;;  %v446_v15 = vshll.u32 %v297_v11, 16  ;;  %v450_v16 = vshrl.u32 %v297_v11, 16  ;;  %v304_v17 = vld [vmem:[%s5344_s6 + $0x60] sm:$0xf] }
  0x14   : > { %v456_v18 = vshll.u32 %v325_v12, 16  ;;  %v305_v19 = vld [vmem:[%s5344_s6 + $0x64] sm:$0xf]  ;;  %v329_v20 = vld [vmem:[%s5344_s6 + $0x68] sm:$0x1]  ;;  %v533_v21 = vshrl.u32 %v304_v17, 16 }
  0x15   : > { %v439_v22 = vrot.slane %v437_v13, 4  ;;  %v442_v23 = vrot.slane %v440_v14, 5  ;;  %v448_v24 = vrot.slane %v446_v15, 5  ;;  %v452_v25 = vrot.slane %v450_v16, 4  ;;  %v312_v26 = vld [vmem:[%s5344_s6 + $0x90] sm:$0xf] }
  0x16   : > { %v458_v27 = vrot.slane %v456_v18, 5  ;;  %v535_v28 = vrot.slane %v533_v21, 4  ;;  %v536_v29 = vshll.u32 %v304_v17, 16  ;;  %v542_v30 = vshll.u32 %v305_v19, 16  ;;  %v313_v35 = vld [vmem:[%s5344_s6 + $0x94] sm:$0xf] }
  0x17   : > { %v443_v31 = vor.u32 %v442_v23, %v439_v22  ;;  %v453_v32 = vor.u32 %v452_v25, %v448_v24  ;;  %v546_v33 = vshrl.u32 %v305_v19, 16  ;;  %v552_v34 = vshll.u32 %v329_v20, 16  ;;  %v333_v45 = vld [vmem:[%s5344_s6 + $0x98] sm:$0x1]  ;;  %v288_v61 = vld [vmem:[%s5344_s6] sm:$0xf] }
  0x18   : > { %v538_v37 = vrot.slane %v536_v29, 5  ;;  %v544_v38 = vrot.slane %v542_v30, 5  ;;  %v629_v39 = vshrl.u32 %v312_v26, 16  ;;  %v632_v47 = vshll.u32 %v312_v26, 16  ;;  %v5369_v1 = vld [vmem:[%s5344_s6 + $0x4] sm:$0xf] }
  0x19   : > { %v444_v40 = vrot.slane %v443_v31, 4  ;;  %v454_v41 = vrot.slane %v453_v32, 4  ;;  %v548_v42 = vrot.slane %v546_v33, 4  ;;  %v554_v43 = vrot.slane %v552_v34, 5  ;;  %v5372_v2 = vld [vmem:[%s5344_s6 + $0x8] sm:$0x1] }
  0x1a   : > { %v539_v44 = vor.u32 %v538_v37, %v535_v28  ;;  %v631_v46 = vrot.slane %v629_v39, 4  ;;  %v638_v48 = vshll.u32 %v313_v35, 16  ;;  %v642_v52 = vshrl.u32 %v313_v35, 16  ;;  %v298_v19 = vld [vmem:[%s5344_s6 + $0x3c] sm:$0xf] }
  0x1b   : > { %v449_v49 = vsel %vm5356_vm3, %v444_v40, %v448_v24  ;;  %v459_v50 = vsel %vm5356_vm3, %v454_v41, %v458_v27  ;;  %v549_v51 = vor.u32 %v548_v42, %v544_v38  ;;  %v634_v56 = vrot.slane %v632_v47, 5  ;;  %v5384_v20 = vld [vmem:[%s5344_s6 + $0x40] sm:$0xf]  ;;  %v5389_v25 = vld [vmem:[%s5344_s6 + $0x44] sm:$0x1] }
  0x1c   : > { %v734_v53 = vunpack.c.l.b16 %v449_v49  ;;  %v735_v54 = vunpack.c.l.b16 %v459_v50  ;;  %v540_v55 = vrot.slane %v539_v44, 4  ;;  %v640_v58 = vrot.slane %v638_v48, 5  ;;  %v306_v33 = vld [vmem:[%s5344_s6 + $0x6c] sm:$0xf]  ;;  %v330_v47 = vld [vmem:[%s5344_s6 + $0x74] sm:$0x1] }
  0x1d   : > { %v550_v57 = vrot.slane %v549_v51, 4  ;;  %v644_v59 = vrot.slane %v642_v52, 4  ;;  %v648_v60 = vshll.u32 %v333_v45, 16  ;;  %v635_v0 = vor.u32 %v634_v56, %v631_v46 }
  0x1e   : > { %v762_v62 = vpack.c.b16 %v735_v54, %v734_v53  ;;  %v545_v63 = vsel %vm5356_vm3, %v540_v55, %v544_v38  ;;  %v341_v9 = vshrl.u32 %v288_v61, 16  ;;  %v344_v10 = vshll.u32 %v288_v61, 16  ;;  %v314_v61 = vld [vmem:[%s5344_s6 + $0x9c] sm:$0xf] }
  0x1f   : > { %v555_v3 = vsel %vm5356_vm3, %v550_v57, %v554_v43  ;;  %v742_v4 = vunpack.c.l.b16 %v545_v63  ;;  %v645_v5 = vor.u32 %v644_v59, %v640_v58  ;;  %v650_v6 = vrot.slane %v648_v60, 5  ;;  %v307_v43 = vld [vmem:[%s5344_s6 + $0x70] sm:$0xf] }
  0x20   : > { %4539 = vmatmul.msk.bf16.vlgmr.msra.gmra.mxu1 %vm774_vm4, %v762_v62  ;;  %v743_v7 = vunpack.c.l.b16 %v555_v3  ;;  %v636_v8 = vrot.slane %v635_v0, 4  ;;  %v350_v12 = vshll.u32 %v5369_v1, 16  ;;  %v354_v13 = vshrl.u32 %v5369_v1, 16  ;;  %v315_v3 = vld [vmem:[%s5344_s6 + $0xa0] sm:$0xf] }
  0x21   : > { %v646_v11 = vrot.slane %v645_v5, 4  ;;  %v360_v14 = vshll.u32 %v5372_v2, 16  ;;  %v343_v17 = vrot.slane %v341_v9, 4  ;;  %v346_v18 = vrot.slane %v344_v10, 5 }
  0x22   : > { %v766_v15 = vpack.c.b16 %v743_v7, %v742_v4  ;;  %v641_v16 = vsel %vm5356_vm3, %v636_v8, %v640_v58  ;;  %v352_v23 = vrot.slane %v350_v12, 5  ;;  %v356_v24 = vrot.slane %v354_v13, 4  ;;  %v334_v8 = vld [vmem:[%s5344_s6 + $0xa4] sm:$0x1] }
  0x23   : > { %v651_v21 = vsel %vm5356_vm3, %v646_v11, %v650_v6  ;;  %v750_v22 = vunpack.c.l.b16 %v641_v16  ;;  %v347_v27 = vor.u32 %v346_v18, %v343_v17  ;;  %v362_v28 = vrot.slane %v360_v14, 5 }
  0x24   : > { %4543 = vmatmul.msk.bf16.vlgmr.msra.gmra.mxu2 %vm774_vm4, %v766_v15  ;;  %v751_v26 = vunpack.c.l.b16 %v651_v21  ;;  %v357_v29 = vor.u32 %v356_v24, %v352_v23  ;;  %v461_v30 = vshrl.u32 %v298_v19, 16  ;;  %v464_v31 = vshll.u32 %v298_v19, 16 }
  0x25   : > { %v470_v32 = vshll.u32 %v5384_v20, 16  ;;  %v348_v35 = vrot.slane %v347_v27, 4  ;;  %v474_v37 = vshrl.u32 %v5384_v20, 16  ;;  %v480_v38 = vshll.u32 %v5389_v25, 16 }
  0x26   : > { %v770_v34 = vpack.c.b16 %v751_v26, %v750_v22  ;;  %v358_v39 = vrot.slane %v357_v29, 4  ;;  %v463_v40 = vrot.slane %v461_v30, 4  ;;  %v466_v41 = vrot.slane %v464_v31, 5  ;;  %v290_v22 = vld [vmem:[%s5344_s6 + $0xc] sm:$0xf] }
  0x27   : > { %v472_v42 = vrot.slane %v470_v32, 5  ;;  %v353_v44 = vsel %vm5356_vm3, %v348_v35, %v352_v23  ;;  %v476_v45 = vrot.slane %v474_v37, 4  ;;  %v482_v46 = vrot.slane %v480_v38, 5  ;;  %v5418_v32 = vld [vmem:[%s5344_s6 + $0x14] sm:$0x1] }
  0x28   : > { %4547 = vmatmul.msk.bf16.vlgmr.msra.gmra.mxu3 %vm774_vm4, %v770_v34  ;;  %v557_v48 = vshrl.u32 %v306_v33, 16  ;;  %v363_v49 = vsel %vm5356_vm3, %v358_v39, %v362_v28  ;;  %v726_v50 = vunpack.c.l.b16 %v353_v44  ;;  %v467_v51 = vor.u32 %v466_v41, %v463_v40  ;;  %v5415_v28 = vld [vmem:[%s5344_s6 + $0x10] sm:$0xf] }
  0x29   : > { %v560_v52 = vshll.u32 %v306_v33, 16  ;;  %v727_v53 = vunpack.c.l.b16 %v363_v49  ;;  %v477_v54 = vor.u32 %v476_v45, %v472_v42  ;;  %v566_v56 = vshll.u32 %v307_v43, 16 }
  0x2a   : > { %v559_v55 = vrot.slane %v557_v48, 4  ;;  %v468_v57 = vrot.slane %v467_v51, 4  ;;  %v570_v59 = vshrl.u32 %v307_v43, 16  ;;  %v576_v60 = vshll.u32 %v330_v47, 16  ;;  %v5428_v47 = vld [vmem:[%s5344_s6 + $0x4c] sm:$0xf] }
  0x2b   : > { %v562_v58 = vrot.slane %v560_v52, 5  ;;  %v758_v62 = vpack.c.b16 %v727_v53, %v726_v50  ;;  %v478_v63 = vrot.slane %v477_v54, 4  ;;  %v568_v0 = vrot.slane %v566_v56, 5  ;;  %v5433_v56 = vld [vmem:[%s5344_s6 + $0x50] sm:$0x1] }
  0x2c   : > { %v473_v4 = vsel %vm5356_vm3, %v468_v57, %v472_v42  ;;  %v572_v6 = vrot.slane %v570_v59, 4  ;;  %v578_v7 = vrot.slane %v576_v60, 5  ;;  %v653_v11 = vshrl.u32 %v314_v61, 16  ;;  %v300_v42 = vld [vmem:[%s5344_s6 + $0x48] sm:$0xf] }
  0x2d   : > { %v563_v5 = vor.u32 %v562_v58, %v559_v55  ;;  %4535 = vmatmul.msk.bf16.vlgmr.msra.gmra.mxu0 %vm774_vm4, %v758_v62  ;;  %v483_v9 = vsel %vm5356_vm3, %v478_v63, %v482_v46  ;;  %v736_v10 = vunpack.c.l.b16 %v473_v4  ;;  %v656_v12 = vshll.u32 %v314_v61, 16 }
  0x2e   : > { %v737_v13 = vunpack.c.l.b16 %v483_v9  ;;  %v573_v15 = vor.u32 %v572_v6, %v568_v0  ;;  %v662_v16 = vshll.u32 %v315_v3, 16  ;;  %v655_v17 = vrot.slane %v653_v11, 4 }
  0x2f   : > { %v564_v14 = vrot.slane %v563_v5, 4  ;;  %v658_v18 = vrot.slane %v656_v12, 5  ;;  %v666_v19 = vshrl.u32 %v315_v3, 16  ;;  %v672_v21 = vshll.u32 %v334_v8, 16  ;;  %v308_v3 = vld [vmem:[%s5344_s6 + $0x78] sm:$0xf] }
  0x30   : > { %v763_v23 = vpack.c.b16 %v737_v13, %v736_v10  ;;  %v574_v26 = vrot.slane %v573_v15, 4  ;;  %v664_v27 = vrot.slane %v662_v16, 5  ;;  %v365_v35 = vshrl.u32 %v290_v22, 16  ;;  %v309_v8 = vld [vmem:[%s5344_s6 + $0x7c] sm:$0xf] }
  0x31   : > { %v569_v24 = vsel %vm5356_vm3, %v564_v14, %v568_v0  ;;  %v659_v30 = vor.u32 %v658_v18, %v655_v17  ;;  %v668_v31 = vrot.slane %v666_v19, 4  ;;  %v674_v34 = vrot.slane %v672_v21, 5  ;;  %v331_v16 = vld [vmem:[%s5344_s6 + $0x80] sm:$0x1] }
  0x32   : > { %v744_v29 = vunpack.c.l.b16 %v569_v24  ;;  %4540 = vmatmul.msk.bf16.gmra.mxu1 %vm774_vm4, %v763_v23  ;;  %v579_v33 = vsel %vm5356_vm3, %v574_v26, %v578_v7  ;;  %v368_v37 = vshll.u32 %v290_v22, 16  ;;  %v374_v41 = vshll.u32 %v5415_v28, 16 }
  0x33   : > { %v745_v38 = vunpack.c.l.b16 %v579_v33  ;;  %v660_v39 = vrot.slane %v659_v30, 4  ;;  %v669_v40 = vor.u32 %v668_v31, %v664_v27  ;;  %v367_v43 = vrot.slane %v365_v35, 4 }
  0x34   : > { %v370_v44 = vrot.slane %v368_v37, 5  ;;  %v378_v45 = vshrl.u32 %v5415_v28, 16  ;;  %v384_v46 = vshll.u32 %v5418_v32, 16  ;;  %v376_v51 = vrot.slane %v374_v41, 5 }
  0x35   : > { %v767_v48 = vpack.c.b16 %v745_v38, %v744_v29  ;;  %v665_v49 = vsel %vm5356_vm3, %v660_v39, %v664_v27  ;;  %v670_v50 = vrot.slane %v669_v40, 4  ;;  %v485_v58 = vshrl.u32 %v300_v42, 16  ;;  %v317_v39 = vld [vmem:[%s5344_s6 + $0xac] sm:$0xf]  ;;  %v335_v40 = vld [vmem:[%s5344_s6 + $0xb0] sm:$0x1] }
  0x36   : > { %v752_v52 = vunpack.c.l.b16 %v665_v49  ;;  %v371_v53 = vor.u32 %v370_v44, %v367_v43  ;;  %v380_v54 = vrot.slane %v378_v45, 4  ;;  %v386_v55 = vrot.slane %v384_v46, 5 }
  0x37   : > { %4544 = vmatmul.msk.bf16.gmra.mxu2 %vm774_vm4, %v767_v48  ;;  %v675_v57 = vsel %vm5356_vm3, %v670_v50, %v674_v34  ;;  %v488_v59 = vshll.u32 %v300_v42, 16  ;;  %v494_v60 = vshll.u32 %v5428_v47, 16  ;;  %v498_v0 = vshrl.u32 %v5428_v47, 16  ;;  %v316_v34 = vld [vmem:[%s5344_s6 + $0xa8] sm:$0xf] }
  0x38   : > { %v753_v61 = vunpack.c.l.b16 %v675_v57  ;;  %v372_v62 = vrot.slane %v371_v53, 4  ;;  %v381_v63 = vor.u32 %v380_v54, %v376_v51  ;;  %v487_v4 = vrot.slane %v485_v58, 4 }
  0x39   : > { %v490_v5 = vrot.slane %v488_v59, 5  ;;  %v496_v6 = vrot.slane %v494_v60, 5  ;;  %v504_v7 = vshll.u32 %v5433_v56, 16  ;;  %v500_v12 = vrot.slane %v498_v0, 4  ;;  %v292_v59 = vld [vmem:[%s5344_s6 + $0x18] sm:$0xf] }
  0x3a   : > { %v771_v9 = vpack.c.b16 %v753_v61, %v752_v52  ;;  %v377_v10 = vsel %vm5356_vm3, %v372_v62, %v376_v51  ;;  %v382_v11 = vrot.slane %v381_v63, 4  ;;  %v581_v17 = vshrl.u32 %v308_v3, 16  ;;  %v5461_v63 = vld [vmem:[%s5344_s6 + $0x1c] sm:$0xf]  ;;  %v5464_v0 = vld [vmem:[%s5344_s6 + $0x20] sm:$0x1] }
  0x3b   : > { %v728_v13 = vunpack.c.l.b16 %v377_v10  ;;  %v491_v14 = vor.u32 %v490_v5, %v487_v4  ;;  %v506_v15 = vrot.slane %v504_v7, 5  ;;  %v501_v19 = vor.u32 %v500_v12, %v496_v6 }
  0x3c   : > { %4548 = vmatmul.msk.bf16.gmra.mxu3 %vm774_vm4, %v771_v9  ;;  %v387_v18 = vsel %vm5356_vm3, %v382_v11, %v386_v55  ;;  %v584_v21 = vshll.u32 %v308_v3, 16  ;;  %v590_v22 = vshll.u32 %v309_v8, 16  ;;  %v583_v26 = vrot.slane %v581_v17, 4 }
  0x3d   : > { %v729_v23 = vunpack.c.l.b16 %v387_v18  ;;  %v492_v24 = vrot.slane %v491_v14, 4  ;;  %v594_v27 = vshrl.u32 %v309_v8, 16  ;;  %v502_v29 = vrot.slane %v501_v19, 4 }
  0x3e   : > { %v586_v30 = vrot.slane %v584_v21, 5  ;;  %v592_v31 = vrot.slane %v590_v22, 5  ;;  %v600_v33 = vshll.u32 %v331_v16, 16  ;;  %v677_v48 = vshrl.u32 %v316_v34, 16  ;;  %v5474_v21 = vld [vmem:[%s5344_s6 + $0x58] sm:$0xf] }
  0x3f   : > { %v759_v35 = vpack.c.b16 %v729_v23, %v728_v13  ;;  %v497_v37 = vsel %vm5356_vm3, %v492_v24, %v496_v6  ;;  %v596_v38 = vrot.slane %v594_v27, 4  ;;  %v507_v41 = vsel %vm5356_vm3, %v502_v29, %v506_v15  ;;  %v302_v15 = vld [vmem:[%s5344_s6 + $0x54] sm:$0xf]  ;;  %v5479_v27 = vld [vmem:[%s5344_s6 + $0x5c] sm:$0x1] }
  0x40   : > { %v738_v42 = vunpack.c.l.b16 %v497_v37  ;;  %v587_v43 = vor.u32 %v586_v30, %v583_v26  ;;  %v602_v44 = vrot.slane %v600_v33, 5  ;;  %v739_v45 = vunpack.c.l.b16 %v507_v41 }
  0x41   : > { %4536 = vmatmul.msk.bf16.gmra.mxu0 %vm774_vm4, %v759_v35  ;;  %v597_v46 = vor.u32 %v596_v38, %v592_v31  ;;  %v680_v49 = vshll.u32 %v316_v34, 16  ;;  %v686_v51 = vshll.u32 %v317_v39, 16  ;;  %v690_v52 = vshrl.u32 %v317_v39, 16  ;;  %v310_v39 = vld [vmem:[%s5344_s6 + $0x84] sm:$0xf] }
  0x42   : > { %v588_v50 = vrot.slane %v587_v43, 4  ;;  %v696_v53 = vshll.u32 %v335_v40, 16  ;;  %v764_v54 = vpack.c.b16 %v739_v45, %v738_v42  ;;  %v679_v57 = vrot.slane %v677_v48, 4 }
  0x43   : > { %v598_v55 = vrot.slane %v597_v46, 4  ;;  %v682_v58 = vrot.slane %v680_v49, 5  ;;  %v688_v61 = vrot.slane %v686_v51, 5  ;;  %v692_v62 = vrot.slane %v690_v52, 4  ;;  %v311_v49 = vld [vmem:[%s5344_s6 + $0x88] sm:$0xf] }
  0x44   : > { %v593_v60 = vsel %vm5356_vm3, %v588_v50, %v592_v31  ;;  %4541 = vmatmul.msk.bf16.gmra.mxu1 %vm774_vm4, %v764_v54  ;;  %v698_v6 = vrot.slane %v696_v53, 5  ;;  %v389_v9 = vshrl.u32 %v292_v59, 16  ;;  %v392_v10 = vshll.u32 %v292_v59, 16  ;;  %v332_v53 = vld [vmem:[%s5344_s6 + $0x8c] sm:$0x1] }
  0x45   : > { %v603_v3 = vsel %vm5356_vm3, %v598_v55, %v602_v44  ;;  %v746_v4 = vunpack.c.l.b16 %v593_v60  ;;  %v683_v5 = vor.u32 %v682_v58, %v679_v57  ;;  %v693_v8 = vor.u32 %v692_v62, %v688_v61 }
  0x46   : > { %v747_v7 = vunpack.c.l.b16 %v603_v3  ;;  %v398_v12 = vshll.u32 %v5461_v63, 16  ;;  %v402_v13 = vshrl.u32 %v5461_v63, 16  ;;  %v408_v14 = vshll.u32 %v5464_v0, 16 }
  0x47   : > { %v684_v11 = vrot.slane %v683_v5, 4  ;;  %v694_v17 = vrot.slane %v693_v8, 4  ;;  %v391_v18 = vrot.slane %v389_v9, 4  ;;  %v394_v19 = vrot.slane %v392_v10, 5  ;;  %v318_v8 = vld [vmem:[%s5344_s6 + $0xb4] sm:$0xf] }
  0x48   : > { %v768_v16 = vpack.c.b16 %v747_v7, %v746_v4  ;;  %v400_v23 = vrot.slane %v398_v12, 5  ;;  %v404_v24 = vrot.slane %v402_v13, 4  ;;  %v410_v26 = vrot.slane %v408_v14, 5  ;;  %v319_v12 = vld [vmem:[%s5344_s6 + $0xb8] sm:$0xf] }
  0x49   : > { %v689_v22 = vsel %vm5356_vm3, %v684_v11, %v688_v61  ;;  %v699_v29 = vsel %vm5356_vm3, %v694_v17, %v698_v6  ;;  %v395_v31 = vor.u32 %v394_v19, %v391_v18  ;;  %v509_v33 = vshrl.u32 %v302_v15, 16  ;;  %v336_v17 = vld [vmem:[%s5344_s6 + $0xbc] sm:$0x1] }
  0x4a   : > { %4545 = vmatmul.msk.bf16.gmra.mxu2 %vm774_vm4, %v768_v16  ;;  %v754_v30 = vunpack.c.l.b16 %v689_v22  ;;  %v755_v34 = vunpack.c.l.b16 %v699_v29  ;;  %v405_v35 = vor.u32 %v404_v24, %v400_v23  ;;  %v512_v37 = vshll.u32 %v302_v15, 16 }
  0x4b   : > { %v518_v38 = vshll.u32 %v5474_v21, 16  ;;  %v396_v40 = vrot.slane %v395_v31, 4  ;;  %v511_v41 = vrot.slane %v509_v33, 4  ;;  %v522_v42 = vshrl.u32 %v5474_v21, 16 }
  0x4c   : > { %v528_v43 = vshll.u32 %v5479_v27, 16  ;;  %v772_v44 = vpack.c.b16 %v755_v34, %v754_v30  ;;  %v406_v45 = vrot.slane %v405_v35, 4  ;;  %v514_v46 = vrot.slane %v512_v37, 5  ;;  %v294_v37 = vld [vmem:[%s5344_s6 + $0x24] sm:$0xf] }
  0x4d   : > { %v520_v48 = vrot.slane %v518_v38, 5  ;;  %v401_v50 = vsel %vm5356_vm3, %v396_v40, %v400_v23  ;;  %v524_v51 = vrot.slane %v522_v42, 4  ;;  %v605_v54 = vshrl.u32 %v310_v39, 16  ;;  %v5507_v42 = vld [vmem:[%s5344_s6 + $0x28] sm:$0xf] }
  0x4e   : > { %v530_v52 = vrot.slane %v528_v43, 5  ;;  %4549 = vmatmul.msk.bf16.gmra.mxu3 %vm774_vm4, %v772_v44  ;;  %v411_v55 = vsel %vm5356_vm3, %v406_v45, %v410_v26  ;;  %v730_v57 = vunpack.c.l.b16 %v401_v50  ;;  %v515_v58 = vor.u32 %v514_v46, %v511_v41 }
  0x4f   : > { %v608_v59 = vshll.u32 %v310_v39, 16  ;;  %v731_v60 = vunpack.c.l.b16 %v411_v55  ;;  %v525_v61 = vor.u32 %v524_v51, %v520_v48  ;;  %v607_v62 = vrot.slane %v605_v54, 4 }
  0x50   : > { %v614_v3 = vshll.u32 %v311_v49, 16  ;;  %v516_v4 = vrot.slane %v515_v58, 4  ;;  %v618_v6 = vshrl.u32 %v311_v49, 16  ;;  %v624_v7 = vshll.u32 %v332_v53, 16 }
  0x51   : > { %v610_v5 = vrot.slane %v608_v59, 5  ;;  %v760_v9 = vpack.c.b16 %v731_v60, %v730_v57  ;;  %v526_v10 = vrot.slane %v525_v61, 4  ;;  %v701_v22 = vshrl.u32 %v318_v8, 16  ;;  %v1136_v61 = vld [vmem:[%s5344_s6] sm:$0xe] }
  0x52   : > { %v616_v11 = vrot.slane %v614_v3, 5  ;;  %v521_v13 = vsel %vm5356_vm3, %v516_v4, %v520_v48  ;;  %v620_v15 = vrot.slane %v618_v6, 4  ;;  %v626_v16 = vrot.slane %v624_v7, 5  ;;  %v5511_v48 = vld [vmem:[%s5344_s6 + $0x2c] sm:$0x1] }
  0x53   : > { %v611_v14 = vor.u32 %v610_v5, %v607_v62  ;;  %4537 = vmatmul.msk.bf16.gmra.mxu0 %vm774_vm4, %v760_v9  ;;  %v531_v18 = vsel %vm5356_vm3, %v526_v10, %v530_v52  ;;  %v740_v19 = vunpack.c.l.b16 %v521_v13  ;;  %v704_v23 = vshll.u32 %v318_v8, 16  ;;  %v4777_v6 = vld [vmem:[%s5344_s6 + $0xc] sm:$0xf] }
  0x54   : > { %v741_v24 = vunpack.c.l.b16 %v531_v18  ;;  %v621_v29 = vor.u32 %v620_v15, %v616_v11  ;;  %v710_v30 = vshll.u32 %v319_v12, 16  ;;  %v703_v31 = vrot.slane %v701_v22, 4 }
  0x55   : > { %v612_v26 = vrot.slane %v611_v14, 4  ;;  %v706_v33 = vrot.slane %v704_v23, 5  ;;  %v714_v34 = vshrl.u32 %v319_v12, 16  ;;  %v720_v35 = vshll.u32 %v336_v17, 16  ;;  %v4778_v12 = vld [vmem:[%s5344_s6 + $0x10] sm:$0xf] }
  0x56   : > { %v765_v38 = vpack.c.b16 %v741_v24, %v740_v19  ;;  %v622_v40 = vrot.slane %v621_v29, 4  ;;  %v712_v41 = vrot.slane %v710_v30, 5  ;;  %v1192_v43 = vrot.slane %v5372_v2, 5 }
  0x57   : > { %v617_v39 = vsel %vm5356_vm3, %v612_v26, %v616_v11  ;;  %v707_v45 = vor.u32 %v706_v33, %v703_v31  ;;  %v716_v46 = vrot.slane %v714_v34, 4  ;;  %v722_v50 = vrot.slane %v720_v35, 5  ;;  %v4923_v11 = vld [vmem:[%s6800_s1 + $0xc] sm:$0x3] }
  0x58   : > { %v748_v44 = vunpack.c.l.b16 %v617_v39  ;;  %4542 = vmatmul.msk.bf16.gmra.mxu1 %vm774_vm4, %v765_v38  ;;  %v627_v49 = vsel %vm5356_vm3, %v622_v40, %v626_v16  ;;  %v413_v51 = vshrl.u32 %v294_v37, 16  ;;  %v416_v52 = vshll.u32 %v294_v37, 16  ;;  %v4779_v38 = vld [vmem:[%s5344_s6 + $0x14] sm:$0x1] }
  0x59   : > { %v749_v53 = vunpack.c.l.b16 %v627_v49  ;;  %v708_v54 = vrot.slane %v707_v45, 4  ;;  %v717_v55 = vor.u32 %v716_v46, %v712_v41  ;;  %v422_v2 = vshll.u32 %v5507_v42, 16  ;;  %v5052_v45 = vld [vmem:[%s6800_s1 + $0xe] sm:$0x3] }
  0x5a   : > { %v415_v57 = vrot.slane %v413_v51, 4  ;;  %v418_v58 = vrot.slane %v416_v52, 5  ;;  %v426_v59 = vshrl.u32 %v5507_v42, 16  ;;  %v432_v60 = vshll.u32 %v5511_v48, 16  ;;  %v5121_v51 = vld [vmem:[%s5344_s6] sm:$0xff] }
  0x5b   : > { %v769_v62 = vpack.c.b16 %v749_v53, %v748_v44  ;;  %v713_v3 = vsel %vm5356_vm3, %v708_v54, %v712_v41  ;;  %v718_v4 = vrot.slane %v717_v55, 4  ;;  %v424_v5 = vrot.slane %v422_v2, 5  ;;  %v5101_v2 = vld [vmem:[%s6800_s1 + $0x10] sm:$0x3] }
  0x5c   : > { %v756_v7 = vunpack.c.l.b16 %v713_v3  ;;  %v419_v8 = vor.u32 %v418_v58, %v415_v57  ;;  %v428_v9 = vrot.slane %v426_v59, 4  ;;  %v434_v10 = vrot.slane %v432_v60, 5 }
  0x5d   : > { %4546 = vmatmul.msk.bf16.gmra.mxu2 %vm774_vm4, %v769_v62  ;;  %v723_v13 = vsel %vm5356_vm3, %v718_v4, %v722_v50  ;;  %v4631_v14 = vrot.slane %v1136_v61, 9  ;;  %v1189_v19 = vrot.slane %v5369_v1, 5  ;;  %v3030_v22 = vsel %vm823_vm0, %v4923_v11, 0  ;;  %v4874_v50 = vld [vmem:[%s6800_s1 + $0xa] sm:$0x3] }
  0x5e   : > { %v757_v15 = vunpack.c.l.b16 %v723_v13  ;;  %v420_v16 = vrot.slane %v419_v8, 4  ;;  %v429_v17 = vor.u32 %v428_v9, %v424_v5  ;;  %v1860_v23 = vshrl.u32 %v4777_v6, 16  ;;  %3039 = vmatpush.bf16.msra.mxu2 %v3030_v22  ;;  %v1137_v8 = vld [vmem:[%s5344_s6 + $0xc] sm:$0xe] }
  0x5f   : > { %v1863_v24 = vshll.u32 %v4777_v6, 16  ;;  %v1869_v26 = vshll.u32 %v4778_v12, 16  ;;  %v1190_v33 = vsel %vm5530_vm7, %v4631_v14, %v1189_v19  ;;  %v1191_v35 = vrot.slane %v1189_v19, 4  ;;  %v4781_v6 = vld [vmem:[%s5344_s6 + $0x1c] sm:$0xf] }
  0x60   : > { %v773_v29 = vpack.c.b16 %v757_v15, %v756_v7  ;;  %v425_v30 = vsel %vm5356_vm3, %v420_v16, %v424_v5  ;;  %v430_v31 = vrot.slane %v429_v17, 4  ;;  %v1301_v37 = vunpack.c.l.b16 %v1190_v33  ;;  %v4780_v5 = vld [vmem:[%s5344_s6 + $0x18] sm:$0xf]  ;;  %v5137_v15 = vld [vmem:[%s5344_s6 + $0xc] sm:$0xff] }
  0x61   : > { %v732_v34 = vunpack.c.l.b16 %v425_v30  ;;  %v1862_v1 = vrot.slane %v1860_v23, 4  ;;  %v1865_v40 = vrot.slane %v1863_v24, 5  ;;  %v1871_v41 = vrot.slane %v1869_v26, 5  ;;  %v4782_v30 = vld [vmem:[%s5344_s6 + $0x20] sm:$0x1] }
  0x62   : > { %4550 = vmatmul.msk.bf16.gmra.mxu3 %vm774_vm4, %v773_v29  ;;  %v435_v39 = vsel %vm5356_vm3, %v430_v31, %v434_v10  ;;  %v1873_v44 = vshrl.u32 %v4778_v12, 16  ;;  %v1193_v49 = vsel %vm5530_vm7, %v1191_v35, %v1192_v43  ;;  %v1879_v55 = vshll.u32 %v4779_v38, 16  ;;  %v5122_v35 = vld [vmem:[%s5344_s6 + $0xc] sm:$0xff] }
  0x63   : > { %v733_v46 = vunpack.c.l.b16 %v435_v39  ;;  %v1302_v52 = vunpack.c.l.b16 %v1193_v49  ;;  %v1866_v53 = vor.u32 %v1865_v40, %v1862_v1  ;;  %v3684_v58 = vsel %vm823_vm0, %v5052_v45, 0 }
  0x64   : > { %v1875_v54 = vrot.slane %v1873_v44, 4  ;;  %3693 = vmatpush.bf16.msra.mxu3 %v3684_v58  ;;  %v2740_v60 = vsel %vm823_vm0, %v4874_v50, 0  ;;  %v4082_v61 = vsel %vm823_vm0, %v5101_v2, 0  ;;  %v1881_v4 = vrot.slane %v1879_v55, 5  ;;  %v1138_v50 = vld [vmem:[%s5344_s6 + $0x18] sm:$0xe] }
  0x65   : > { %v761_v57 = vpack.c.b16 %v733_v46, %v732_v34  ;;  %v1333_v43 = vpack.c.b16 %v1302_v52, %v1301_v37  ;;  %2749 = vmatpush.bf16.msra.mxu1 %v2740_v60  ;;  %v1867_v62 = vrot.slane %v1866_v53, 4  ;;  %4091 = vmatpush.bf16.msra.mxu0 %v4082_v61  ;;  %v1196_v7 = vrot.slane %v5415_v28, 5  ;;  %v4784_v46 = vld [vmem:[%s5344_s6 + $0x28] sm:$0xf] }
  0x66   : > { %v1876_v59 = vor.u32 %v1875_v54, %v1871_v41  ;;  %v1884_v9 = vshrl.u32 %v4780_v5, 16  ;;  %v1887_v10 = vshll.u32 %v4780_v5, 16  ;;  %v1893_v13 = vshll.u32 %v4781_v6, 16 }
  0x67   : > { %4538 = vmatmul.msk.bf16.gmra.mxu0 %vm774_vm4, %v761_v57  ;;  %v1872_v11 = vsel %vm5356_vm3, %v1867_v62, %v1871_v41  ;;  %v1897_v14 = vshrl.u32 %v4781_v6, 16  ;;  %v4632_v16 = vrot.slane %v1137_v8, 9  ;;  %v1198_v17 = vrot.slane %v1196_v7, 4  ;;  %v4783_v41 = vld [vmem:[%s5344_s6 + $0x24] sm:$0xf] }
  0x68   : > { %4615 = vmatmul.msk.bf16.vlgmr.msrb.gmra.mxu1 %vm774_vm4, %v5121_v51  ;;  %v1877_v3 = vrot.slane %v1876_v59, 4  ;;  %v1199_v28 = vrot.slane %v5418_v32, 5  ;;  %v2245_v19 = vunpack.c.l.b16 %v1872_v11  ;;  %v1886_v23 = vrot.slane %v1884_v9, 4  ;;  %v4785_v6 = vld [vmem:[%s5344_s6 + $0x2c] sm:$0x1] }
  0x69   : > { %v1889_v24 = vrot.slane %v1887_v10, 5  ;;  %v1895_v26 = vrot.slane %v1893_v13, 5  ;;  %v1899_v29 = vrot.slane %v1897_v14, 4  ;;  %v1197_v31 = vsel %vm5530_vm7, %v4632_v16, %v1196_v7 }
  0x6a   : > { %v1882_v12 = vsel %vm5356_vm3, %v1877_v3, %v1881_v4  ;;  %v1200_v33 = vsel %vm5530_vm7, %v1198_v17, %v1199_v28  ;;  %v1903_v38 = vshll.u32 %v4782_v30, 16  ;;  %v1303_v1 = vunpack.c.l.b16 %v1197_v31 }
  0x6b   : > { %v2246_v22 = vunpack.c.l.b16 %v1882_v12  ;;  %v1890_v32 = vor.u32 %v1889_v24, %v1886_v23  ;;  %v1900_v37 = vor.u32 %v1899_v29, %v1895_v26  ;;  %v1304_v39 = vunpack.c.l.b16 %v1200_v33  ;;  %v5123_v12 = vld [vmem:[%s5344_s6 + $0x18] sm:$0xff]  ;;  %v1139_v29 = vld [vmem:[%s5344_s6 + $0x24] sm:$0xe] }
  0x6c   : > { %v1905_v45 = vrot.slane %v1903_v38, 5  ;;  %v1203_v51 = vrot.slane %v5461_v63, 5  ;;  %v1908_v52 = vshrl.u32 %v4783_v41, 16  ;;  %v1911_v54 = vshll.u32 %v4783_v41, 16 }
  0x6d   : > { %4648 = vmatmul.msk.bf16.vlgmr.msrb.gmra.mxu2 %vm774_vm4, %v1333_v43  ;;  %v2277_v34 = vpack.c.b16 %v2246_v22, %v2245_v19  ;;  %v1891_v40 = vrot.slane %v1890_v32, 4  ;;  %v1901_v44 = vrot.slane %v1900_v37, 4  ;;  %v1334_v49 = vpack.c.b16 %v1304_v39, %v1303_v1  ;;  %v5138_v43 = vld [vmem:[%s5344_s6 + $0x18] sm:$0xff]  ;;  %v4786_v19 = vld [vmem:[%s5344_s6 + $0x30] sm:$0xf]  ;;  %v5139_v32 = vld [vmem:[%s5344_s6 + $0x24] sm:$0xff] }
  0x6e   : > { %v1917_v55 = vshll.u32 %v4784_v46, 16  ;;  %v1921_v2 = vshrl.u32 %v4784_v46, 16  ;;  %v4633_v58 = vrot.slane %v1138_v50, 9  ;;  %v1205_v60 = vrot.slane %v1203_v51, 4  ;;  %v4787_v22 = vld [vmem:[%s5344_s6 + $0x34] sm:$0xf] }
  0x6f   : > { %v1896_v53 = vsel %vm5356_vm3, %v1891_v40, %v1895_v26  ;;  %v1906_v57 = vsel %vm5356_vm3, %v1901_v44, %v1905_v45  ;;  %v1206_v63 = vrot.slane %v5464_v0, 5  ;;  %v1910_v61 = vrot.slane %v1908_v52, 4  ;;  %v4788_v45 = vld [vmem:[%s5344_s6 + $0x38] sm:$0x1] }
  0x70   : > { %v2247_v59 = vunpack.c.l.b16 %v1896_v53  ;;  %v2248_v62 = vunpack.c.l.b16 %v1906_v57  ;;  %v1913_v3 = vrot.slane %v1911_v54, 5  ;;  %v1919_v4 = vrot.slane %v1917_v55, 5  ;;  %v4790_v57 = vld [vmem:[%s5344_s6 + $0x40] sm:$0xf] }
  0x71   : > { %v1923_v5 = vrot.slane %v1921_v2, 4  ;;  %v1204_v7 = vsel %vm5530_vm7, %v4633_v58, %v1203_v51  ;;  %v1207_v8 = vsel %vm5530_vm7, %v1205_v60, %v1206_v63  ;;  %v1927_v0 = vshll.u32 %v4785_v6, 16  ;;  %v4789_v2 = vld [vmem:[%s5344_s6 + $0x3c] sm:$0xf]  ;;  %v5199_v63 = vld [vmem:[%s5344_s6 + $0x34] sm:$0xf] }
  0x72   : > { %4761 = vmatmul.msk.bf16.vlgmr.msrb.gmra.mxu3 %vm774_vm4, %v5137_v15  ;;  %v2278_v9 = vpack.c.b16 %v2248_v62, %v2247_v59  ;;  %v1914_v10 = vor.u32 %v1913_v3, %v1910_v61  ;;  %v1305_v13 = vunpack.c.l.b16 %v1204_v7  ;;  %v1306_v14 = vunpack.c.l.b16 %v1207_v8  ;;  %v1140_v62 = vld [vmem:[%s5344_s6 + $0x30] sm:$0xe] }
  0x73   : > { %v1924_v11 = vor.u32 %v1923_v5, %v1919_v4  ;;  %v1929_v17 = vrot.slane %v1927_v0, 5  ;;  %v1210_v23 = vrot.slane %v5507_v42, 5  ;;  %v1932_v30 = vshrl.u32 %v4786_v19, 16  ;;  %v5200_v0 = vld [vmem:[%s5344_s6 + $0x38] sm:$0x1] }
  0x74   : > { %v1915_v15 = vrot.slane %v1914_v10, 4  ;;  %v1335_v28 = vpack.c.b16 %v1306_v14, %v1305_v13  ;;  %v1935_v31 = vshll.u32 %v4786_v19, 16  ;;  %v1941_v33 = vshll.u32 %v4787_v22, 16  ;;  %v5140_v13 = vld [vmem:[%s5344_s6 + $0x30] sm:$0xff] }
  0x75   : > { %v1925_v16 = vrot.slane %v1924_v11, 4  ;;  %v1212_v37 = vrot.slane %v1210_v23, 4  ;;  %v1213_v42 = vrot.slane %v5511_v48, 5  ;;  %v1934_v39 = vrot.slane %v1932_v30, 4  ;;  %v5124_v48 = vld [vmem:[%s5344_s6 + $0x24] sm:$0xff] }
  0x76   : > { %v1920_v24 = vsel %vm5356_vm3, %v1915_v15, %v1919_v4  ;;  %v1937_v40 = vrot.slane %v1935_v31, 5  ;;  %v1943_v41 = vrot.slane %v1941_v33, 5  ;;  %v1951_v53 = vshll.u32 %v4788_v45, 16  ;;  %v5125_v33 = vld [vmem:[%s5344_s6 + $0x30] sm:$0xff] }
  0x77   : > { %4826 = vmatmul.msk.bf16.vlgmr.msrb.gmra.mxu0 %vm774_vm4, %v2277_v34  ;;  %v1930_v26 = vsel %vm5356_vm3, %v1925_v16, %v1929_v17  ;;  %v1945_v34 = vshrl.u32 %v4787_v22, 16  ;;  %v2249_v38 = vunpack.c.l.b16 %v1920_v24  ;;  %v1217_v61 = vrot.slane %v5199_v63, 5  ;;  %v4791_v22 = vld [vmem:[%s5344_s6 + $0x44] sm:$0x1] }
  0x78   : > { %4616 = vmatmul.msk.bf16.gmra.mxu1 %vm774_vm4, %v5122_v35  ;;  %v4634_v35 = vrot.slane %v1139_v29, 9  ;;  %v2250_v1 = vunpack.c.l.b16 %v1930_v26  ;;  %v1938_v51 = vor.u32 %v1937_v40, %v1934_v39  ;;  %v1953_v59 = vrot.slane %v1951_v53, 5  ;;  %v4792_v39 = vld [vmem:[%s5344_s6 + $0x48] sm:$0xf]  ;;  %v4793_v40 = vld [vmem:[%s5344_s6 + $0x4c] sm:$0xf] }
  0x79   : > { %v1947_v44 = vrot.slane %v1945_v34, 4  ;;  %v1956_v3 = vshrl.u32 %v4789_v2, 16  ;;  %v1959_v4 = vshll.u32 %v4789_v2, 16  ;;  %v1965_v5 = vshll.u32 %v4790_v57, 16  ;;  %v5141_v2 = vld [vmem:[%s5344_s6 + $0x3c] sm:$0xff] }
  0x7a   : > { %v1211_v46 = vsel %vm5530_vm7, %v4634_v35, %v1210_v23  ;;  %v2279_v50 = vpack.c.b16 %v2250_v1, %v2249_v38  ;;  %v1939_v58 = vrot.slane %v1938_v51, 4  ;;  %v1969_v6 = vshrl.u32 %v4790_v57, 16 }
  0x7b   : > { %v1948_v52 = vor.u32 %v1947_v44, %v1943_v41  ;;  %v1307_v54 = vunpack.c.l.b16 %v1211_v46  ;;  %v4635_v10 = vrot.slane %v1140_v62, 9  ;;  %v1219_v11 = vrot.slane %v1217_v61, 4 }
  0x7c   : > { %v1944_v8 = vsel %vm5356_vm3, %v1939_v58, %v1943_v41  ;;  %v1958_v14 = vrot.slane %v1956_v3, 4  ;;  %v1961_v15 = vrot.slane %v1959_v4, 5  ;;  %v1967_v16 = vrot.slane %v1965_v5, 5  ;;  %v4794_v4 = vld [vmem:[%s5344_s6 + $0x50] sm:$0x1] }
  0x7d   : > { %4649 = vmatmul.msk.bf16.gmra.mxu2 %vm774_vm4, %v1334_v49  ;;  %v1214_v49 = vsel %vm5530_vm7, %v1212_v37, %v1213_v42  ;;  %v1971_v17 = vrot.slane %v1969_v6, 4  ;;  %v1218_v23 = vsel %vm5530_vm7, %v4635_v10, %v1217_v61  ;;  %v1975_v30 = vshll.u32 %v4791_v22, 16 }
  0x7e   : > { %v1308_v55 = vunpack.c.l.b16 %v1214_v49  ;;  %v1962_v26 = vor.u32 %v1961_v15, %v1958_v14  ;;  %v1980_v51 = vshrl.u32 %v4792_v39, 16  ;;  %v1989_v53 = vshll.u32 %v4793_v40, 16 }
  0x7f   : > { %v1972_v29 = vor.u32 %v1971_v17, %v1967_v16  ;;  %v1977_v1 = vrot.slane %v1975_v30, 5 }
  0x80   : > { %v1336_v60 = vpack.c.b16 %v1308_v55, %v1307_v54  ;;  %v1963_v42 = vrot.slane %v1962_v26, 4  ;;  %v1993_v54 = vshrl.u32 %v4793_v40, 16  ;;  %v1991_v62 = vrot.slane %v1989_v53, 5 }
  0x81   : > { %v1973_v38 = vrot.slane %v1972_v29, 4  ;;  %v1231_v26 = vrot.slane %v5428_v47, 5 }
  0x82   : > { %4762 = vmatmul.msk.bf16.gmra.mxu3 %vm774_vm4, %v5138_v43  ;;  %v1949_v43 = vrot.slane %v1948_v52, 4  ;;  %v1968_v45 = vsel %vm5356_vm3, %v1963_v42, %v1967_v16  ;;  %v1983_v52 = vshll.u32 %v4792_v39, 16  ;;  %v1995_v3 = vrot.slane %v1993_v54, 4  ;;  %v4797_v54 = vld [vmem:[%s5344_s6 + $0x5c] sm:$0x1] }
  0x83   : > { %v1978_v46 = vsel %vm5356_vm3, %v1973_v38, %v1977_v1  ;;  %v2253_v55 = vunpack.c.l.b16 %v1968_v45  ;;  %v5142_v1 = vld [vmem:[%s5344_s6 + $0x48] sm:$0xff]  ;;  %v1233_v40 = vrot.slane %v1231_v26, 4 }
  0x84   : > { %v2254_v57 = vunpack.c.l.b16 %v1978_v46  ;;  %v1985_v61 = vrot.slane %v1983_v52, 5  ;;  %v1996_v10 = vor.u32 %v1995_v3, %v1991_v62 }
  0x86   : > { %v1997_v16 = vrot.slane %v1996_v10, 4 }
  0x87   : > { %4827 = vmatmul.msk.bf16.gmra.mxu0 %vm774_vm4, %v2278_v9  ;;  %v1954_v9 = vsel %vm5356_vm3, %v1949_v43, %v1953_v59 }
  0x88   : > { %4617 = vmatmul.msk.bf16.gmra.mxu1 %vm774_vm4, %v5123_v12  ;;  %v1220_v12 = vrot.slane %v5200_v0, 5  ;;  %v2252_v19 = vunpack.c.l.b16 %v1954_v9 }
  0x8a   : > { %v1221_v24 = vsel %vm5530_vm7, %v1219_v11, %v1220_v12  ;;  %v1999_v11 = vshll.u32 %v4794_v4, 16  ;;  %v5126_v12 = vld [vmem:[%s5344_s6 + $0x3c] sm:$0xff] }
  0x8b   : > { %v1310_v35 = vunpack.c.l.b16 %v1221_v24  ;;  %v4796_v24 = vld [vmem:[%s5344_s6 + $0x58] sm:$0xf]  ;;  %v4798_v4 = vld [vmem:[%s5344_s6 + $0x60] sm:$0xf] }
  0x8c   : > { %v2001_v17 = vrot.slane %v1999_v11, 5  ;;  %v2017_v42 = vshrl.u32 %v4796_v24, 16 }
  0x8d   : > { %4650 = vmatmul.msk.bf16.gmra.mxu2 %vm774_vm4, %v1335_v28  ;;  %v2251_v28 = vunpack.c.l.b16 %v1944_v8  ;;  %v2281_v8 = vpack.c.b16 %v2254_v57, %v2253_v55 }
  0x8e   : > { %v2002_v30 = vsel %vm5356_vm3, %v1997_v16, %v2001_v17  ;;  %v2019_v52 = vrot.slane %v2017_v42, 4 }
  0x8f   : > { %v2280_v31 = vpack.c.b16 %v2252_v19, %v2251_v28  ;;  %v2256_v46 = vunpack.c.l.b16 %v2002_v30 }
  0x92   : > { %4763 = vmatmul.msk.bf16.gmra.mxu3 %vm774_vm4, %v5139_v32  ;;  %v1309_v32 = vunpack.c.l.b16 %v1218_v23  ;;  %v4795_v23 = vld [vmem:[%s5344_s6 + $0x54] sm:$0xf] }
  0x94   : > { %v1337_v44 = vpack.c.b16 %v1310_v35, %v1309_v32  ;;  %v2007_v32 = vshll.u32 %v4795_v23, 16  ;;  %v2013_v35 = vshll.u32 %v4796_v24, 16 }
  0x97   : > { %4828 = vmatmul.msk.bf16.gmra.mxu0 %vm774_vm4, %v2279_v50  ;;  %v1224_v50 = vrot.slane %v5384_v20, 5  ;;  %v1982_v20 = vrot.slane %v1980_v51, 4  ;;  %v2015_v51 = vrot.slane %v2013_v35, 5  ;;  %v1241_v35 = vrot.slane %v5479_v27, 5 }
  0x98   : > { %4618 = vmatmul.msk.bf16.gmra.mxu1 %vm774_vm4, %v5124_v48  ;;  %v1141_v48 = vld [vmem:[%s5344_s6 + $0x3c] sm:$0xe] }
  0x99   : > { %v4636_v43 = vrot.slane %v1141_v48, 9  ;;  %v1226_v59 = vrot.slane %v1224_v50, 4  ;;  %v2009_v48 = vrot.slane %v2007_v32, 5 }
  0x9b   : > { %v1225_v5 = vsel %vm5530_vm7, %v4636_v43, %v1224_v50  ;;  %v5127_v43 = vld [vmem:[%s5344_s6 + $0x48] sm:$0xff] }
  0x9d   : > { %v5625_v7 = vpop.f32.mrf.mxu1  ;;  %4651 = vmatmul.msk.bf16.gmra.mxu2 %vm774_vm4, %v1336_v60  ;;  %v1227_v60 = vrot.slane %v5389_v25, 5  ;;  %v1986_v25 = vor.u32 %v1985_v61, %v1982_v20  ;;  %v2023_v20 = vshll.u32 %v4797_v54, 16  ;;  %v5128_v54 = vld [vmem:[%s5344_s6 + $0x54] sm:$0xff] }
  0x9f   : > { %v1228_v6 = vsel %vm5530_vm7, %v1226_v59, %v1227_v60  ;;  %v1987_v15 = vrot.slane %v1986_v25, 4  ;;  %v2020_v60 = vor.u32 %v2019_v52, %v2015_v51  ;;  %v2025_v10 = vrot.slane %v2023_v20, 5 }
  0xa0   : > { %v1312_v14 = vunpack.c.l.b16 %v1228_v6 }
  0xa1   : > { %v1992_v29 = vsel %vm5356_vm3, %v1987_v15, %v1991_v62  ;;  %v2021_v25 = vrot.slane %v2020_v60, 4  ;;  %v1238_v15 = vrot.slane %v5474_v21, 5 }
  0xa2   : > { %4764 = vmatmul.msk.bf16.gmra.mxu3 %vm774_vm4, %v5140_v13  ;;  %v1311_v13 = vunpack.c.l.b16 %v1225_v5  ;;  %v2255_v45 = vunpack.c.l.b16 %v1992_v29  ;;  %v4799_v5 = vld [vmem:[%s5344_s6 + $0x64] sm:$0xf] }
  0xa3   : > { %v2041_v16 = vshrl.u32 %v4799_v5, 16  ;;  %v2026_v24 = vsel %vm5356_vm3, %v2021_v25, %v2025_v10  ;;  %v1240_v32 = vrot.slane %v1238_v15, 4  ;;  %v5201_v10 = vld [vmem:[%s5344_s6 + $0x64] sm:$0xf] }
  0xa4   : > { %v1338_v19 = vpack.c.b16 %v1312_v14, %v1311_v13  ;;  %v2282_v57 = vpack.c.b16 %v2256_v46, %v2255_v45  ;;  %v2031_v13 = vshll.u32 %v4798_v4, 16  ;;  %v2037_v14 = vshll.u32 %v4799_v5, 16 }
  0xa5   : > { %v5641_v34 = vpop.f32.mrf.mxu1  ;;  %v2043_v42 = vrot.slane %v2041_v16, 4 }
  0xa6   : > { %v2033_v30 = vrot.slane %v2031_v13, 5  ;;  %v1144_v13 = vld [vmem:[%s5344_s6 + $0x60] sm:$0xe] }
  0xa7   : > { %v5643_v37 = vpop.f32.mrf.mxu2  ;;  %4829 = vmatmul.msk.bf16.gmra.mxu0 %vm774_vm4, %v2280_v31  ;;  %v1142_v31 = vld [vmem:[%s5344_s6 + $0x48] sm:$0xe] }
  0xa8   : > { %4619 = vmatmul.msk.bf16.gmra.mxu1 %vm774_vm4, %v5125_v33  ;;  %v2004_v33 = vshrl.u32 %v4795_v23, 16  ;;  %v4637_v47 = vrot.slane %v1142_v31, 9  ;;  %v2039_v31 = vrot.slane %v2037_v14, 5 }
  0xaa   : > { %v5649_v41 = vpop.f32.mrf.mxu0  ;;  %v2006_v50 = vrot.slane %v2004_v33, 4  ;;  %v5143_v33 = vld [vmem:[%s5344_s6 + $0x54] sm:$0xff]  ;;  %v2044_v27 = vor.u32 %v2043_v42, %v2039_v31 }
  0xab   : > { %v5655_v49 = vpop.f32.mrf.mxu3 }
  0xac   : > { %v2010_v59 = vor.u32 %v2009_v48, %v2006_v50  ;;  %v1242_v48 = vsel %vm5530_vm7, %v1240_v32, %v1241_v35  ;;  %v2045_v60 = vrot.slane %v2044_v27, 4 }
  0xad   : > { %4652 = vmatmul.msk.bf16.gmra.mxu2 %vm774_vm4, %v1337_v44  ;;  %v1234_v44 = vrot.slane %v5433_v56, 5 }
  0xaf   : > { %v5661_v58 = vpop.f32.mrf.mxu1  ;;  %v5664_v63 = vpop.f32.mrf.mxu2  ;;  %v1235_v56 = vsel %vm5530_vm7, %v1233_v40, %v1234_v44  ;;  %v4800_v40 = vld [vmem:[%s5344_s6 + $0x68] sm:$0x1] }
  0xb0   : > { %v1314_v62 = vunpack.c.l.b16 %v1235_v56 }
  0xb2   : > { %4765 = vmatmul.msk.bf16.gmra.mxu3 %vm774_vm4, %v5141_v2  ;;  %v5672_v9 = vpop.f32.mrf.mxu0  ;;  %v1232_v2 = vsel %vm5530_vm7, %v4637_v47, %v1231_v26  ;;  %v2258_v47 = vunpack.c.l.b16 %v2026_v24 }
  0xb3   : > { %v5674_v0 = vpop.f32.mrf.mxu3  ;;  %v1313_v61 = vunpack.c.l.b16 %v1232_v2 }
  0xb5   : > { %v1339_v11 = vpack.c.b16 %v1314_v62, %v1313_v61  ;;  %v4801_v61 = vld [vmem:[%s5344_s6 + $0x6c] sm:$0xf]  ;;  %v4802_v62 = vld [vmem:[%s5344_s6 + $0x70] sm:$0xf] }
  0xb6   : > { %v2052_v14 = vshrl.u32 %v4801_v61, 16  ;;  %v2061_v16 = vshll.u32 %v4802_v62, 16 }
  0xb7   : > { %4830 = vmatmul.msk.bf16.gmra.mxu0 %vm774_vm4, %v2281_v8  ;;  %v5678_v28 = vpop.f32.mrf.mxu1  ;;  %v2011_v8 = vrot.slane %v2010_v59, 4 }
  0xb8   : > { %4620 = vmatmul.msk.bf16.gmra.mxu1 %vm774_vm4, %v5126_v12  ;;  %v2028_v12 = vshrl.u32 %v4798_v4, 16  ;;  %v2054_v35 = vrot.slane %v2052_v14, 4  ;;  %v4805_v14 = vld [vmem:[%s5344_s6 + $0x7c] sm:$0xf] }
  0xb9   : > { %v2016_v23 = vsel %vm5356_vm3, %v2011_v8, %v2015_v51  ;;  %v2047_v51 = vshll.u32 %v4800_v40, 16 }
  0xba   : > { %v5681_v22 = vpop.f32.mrf.mxu2  ;;  %v2030_v29 = vrot.slane %v2028_v12, 4 }
  0xbb   : > { %v2049_v20 = vrot.slane %v2047_v51, 5 }
  0xbc   : > { %v2034_v46 = vor.u32 %v2033_v30, %v2030_v29  ;;  %v5144_v30 = vld [vmem:[%s5344_s6 + $0x60] sm:$0xff] }
  0xbd   : > { %4653 = vmatmul.msk.bf16.gmra.mxu2 %vm774_vm4, %v1338_v19  ;;  %v1143_v19 = vld [vmem:[%s5344_s6 + $0x54] sm:$0xe]  ;;  %v2050_v25 = vsel %vm5356_vm3, %v2045_v60, %v2049_v20 }
  0xbe   : > { %v5691_v38 = vpop.f32.mrf.mxu0  ;;  %v4638_v21 = vrot.slane %v1143_v19, 9  ;;  %v2035_v59 = vrot.slane %v2034_v46, 4  ;;  %v2065_v19 = vshrl.u32 %v4802_v62, 16  ;;  %v4803_v46 = vld [vmem:[%s5344_s6 + $0x74] sm:$0x1] }
  0xbf   : > { %v5695_v39 = vpop.f32.mrf.mxu3 }
  0xc0   : > { %v1239_v50 = vsel %vm5530_vm7, %v4638_v21, %v1238_v15  ;;  %v2040_v8 = vsel %vm5356_vm3, %v2035_v59, %v2039_v31  ;;  %v2055_v15 = vshll.u32 %v4801_v61, 16  ;;  %v4639_v21 = vrot.slane %v1144_v13, 9  ;;  %v4804_v13 = vld [vmem:[%s5344_s6 + $0x78] sm:$0xf] }
  0xc1   : > { %v5698_v53 = vpop.f32.mrf.mxu1  ;;  %v1315_v56 = vunpack.c.l.b16 %v1239_v50  ;;  %v2259_v31 = vunpack.c.l.b16 %v2040_v8 }
  0xc2   : > { %4766 = vmatmul.msk.bf16.gmra.mxu3 %vm774_vm4, %v5142_v1  ;;  %v5702_v55 = vpop.f32.mrf.mxu2  ;;  %v2257_v1 = vunpack.c.l.b16 %v2016_v23  ;;  %v5202_v23 = vld [vmem:[%s5344_s6 + $0x68] sm:$0x1]  ;;  %v2057_v42 = vrot.slane %v2055_v15, 5  ;;  %v5203_v15 = vld [vmem:[%s5344_s6 + $0x70] sm:$0xf] }
  0xc3   : > { %v1248_v24 = vrot.slane %v5202_v23, 5  ;;  %v1145_v23 = vld [vmem:[%s5344_s6 + $0x6c] sm:$0xe] }
  0xc4   : > { %v2283_v52 = vpack.c.b16 %v2258_v47, %v2257_v1  ;;  %v2063_v1 = vrot.slane %v2061_v16, 5  ;;  %v2067_v47 = vrot.slane %v2065_v19, 4  ;;  %v2058_v51 = vor.u32 %v2057_v42, %v2054_v35  ;;  %v5204_v42 = vld [vmem:[%s5344_s6 + $0x74] sm:$0x1] }
  0xc5   : > { %v1252_v16 = vrot.slane %v5203_v15, 5 }
  0xc6   : > { %v5709_v3 = vpop.f32.mrf.mxu0 }
  0xc7   : > { %4831 = vmatmul.msk.bf16.gmra.mxu0 %vm774_vm4, %v2282_v57  ;;  %v5714_v6 = vpop.f32.mrf.mxu3  ;;  %v1316_v57 = vunpack.c.l.b16 %v1242_v48 }
  0xc8   : > { %4621 = vmatmul.msk.bf16.gmra.mxu1 %vm774_vm4, %v5127_v43 }
  0xc9   : > { %v5718_v17 = vpop.f32.mrf.mxu1  ;;  %v1340_v4 = vpack.c.b16 %v1316_v57, %v1315_v56  ;;  %v5129_v57 = vld [vmem:[%s5344_s6 + $0x60] sm:$0xff] }
  0xcd   : > { %v5725_v26 = vpop.f32.mrf.mxu2  ;;  %4654 = vmatmul.msk.bf16.gmra.mxu2 %vm774_vm4, %v1339_v11  ;;  %v1245_v11 = vrot.slane %v5201_v10, 5 }
  0xcf   : > { %v1247_v32 = vrot.slane %v1245_v11, 4  ;;  %v1246_v50 = vsel %vm5530_vm7, %v4639_v21, %v1245_v11  ;;  %v2089_v21 = vshrl.u32 %v4805_v14, 16 }
  0xd0   : > { %v5731_v44 = vpop.f32.mrf.mxu0  ;;  %v1317_v20 = vunpack.c.l.b16 %v1246_v50  ;;  %v4640_v50 = vrot.slane %v1145_v23, 9 }
  0xd1   : > { %v5733_v45 = vpop.f32.mrf.mxu3  ;;  %v1249_v48 = vsel %vm5530_vm7, %v1247_v32, %v1248_v24 }
  0xd2   : > { %4767 = vmatmul.msk.bf16.gmra.mxu3 %vm774_vm4, %v5143_v33  ;;  %v2260_v33 = vunpack.c.l.b16 %v2050_v25  ;;  %v1318_v61 = vunpack.c.l.b16 %v1249_v48  ;;  %v1254_v48 = vrot.slane %v1252_v16, 4 }
  0xd4   : > { %v2284_v27 = vpack.c.b16 %v2260_v33, %v2259_v31  ;;  %v1341_v11 = vpack.c.b16 %v1318_v61, %v1317_v20  ;;  %v2079_v31 = vshll.u32 %v4804_v13, 16  ;;  %v2085_v33 = vshll.u32 %v4805_v14, 16 }
  0xd5   : > { %v5741_v2 = vpop.f32.mrf.mxu1  ;;  %v5743_v43 = vpop.f32.mrf.mxu2  ;;  %v2091_v20 = vrot.slane %v2089_v21, 4 }
  0xd7   : > { %4832 = vmatmul.msk.bf16.gmra.mxu0 %vm774_vm4, %v2283_v52  ;;  %v2068_v52 = vor.u32 %v2067_v47, %v2063_v1  ;;  %v1255_v47 = vrot.slane %v5204_v42, 5 }
  0xd8   : > { %4622 = vmatmul.msk.bf16.gmra.mxu1 %vm774_vm4, %v5128_v54  ;;  %v5749_v5 = vpop.f32.mrf.mxu0  ;;  %v2071_v54 = vshll.u32 %v4803_v46, 16  ;;  %v5145_v46 = vld [vmem:[%s5344_s6 + $0x6c] sm:$0xff] }
  0xd9   : > { %v5756_v12 = vpop.f32.mrf.mxu3  ;;  %v2069_v8 = vrot.slane %v2068_v52, 4 }
  0xda   : > { %v2073_v25 = vrot.slane %v2071_v54, 5 }
  0xdd   : > { %4655 = vmatmul.msk.bf16.gmra.mxu2 %vm774_vm4, %v1340_v4  ;;  %v5761_v29 = vpop.f32.mrf.mxu1  ;;  %v2059_v4 = vrot.slane %v2058_v51, 4 }
  0xdf   : > { %v2064_v19 = vsel %vm5356_vm3, %v2059_v4, %v2063_v1  ;;  %v4806_v4 = vld [vmem:[%s5344_s6 + $0x80] sm:$0x1] }
  0xe0   : > { %v5764_v40 = vpop.f32.mrf.mxu2 }
  0xe2   : > { %4768 = vmatmul.msk.bf16.gmra.mxu3 %vm774_vm4, %v5144_v30  ;;  %v2076_v30 = vshrl.u32 %v4804_v13, 16  ;;  %v5130_v13 = vld [vmem:[%s5344_s6 + $0x6c] sm:$0xff] }
  0xe4   : > { %v5772_v56 = vpop.f32.mrf.mxu0  ;;  %v2078_v54 = vrot.slane %v2076_v30, 4 }
  0xe5   : > { %v5775_v59 = vpop.f32.mrf.mxu3  ;;  %v1056_v60 = vpop.f32.mrf.mxu1 }
  0xe6   : > { %v1057_v62 = vadd.f32 %v1056_v60, %v5649_v41  ;;  %v2074_v41 = vsel %vm5356_vm3, %v2069_v8, %v2073_v25  ;;  %v2087_v60 = vrot.slane %v2085_v33, 5  ;;  %v1253_v8 = vsel %vm5530_vm7, %v4640_v50, %v1252_v16 }
  0xe7   : > { %4833 = vmatmul.msk.bf16.gmra.mxu0 %vm774_vm4, %v2284_v27  ;;  %v2261_v27 = vunpack.c.l.b16 %v2064_v19  ;;  %v2262_v51 = vunpack.c.l.b16 %v2074_v41  ;;  %v2095_v19 = vshll.u32 %v4806_v4, 16 }
  0xe8   : > { %v5779_v10 = vpop.f32.mrf.mxu2  ;;  %4623 = vmatmul.msk.bf16.gmra.mxu1 %vm774_vm4, %v5129_v57  ;;  %v2081_v57 = vrot.slane %v2079_v31, 5  ;;  %v2092_v15 = vor.u32 %v2091_v20, %v2087_v60 }
  0xe9   : > { %v2285_v25 = vpack.c.b16 %v2262_v51, %v2261_v27  ;;  %v2097_v42 = vrot.slane %v2095_v19, 5  ;;  %v4808_v27 = vld [vmem:[%s5344_s6 + $0x88] sm:$0xf]  ;;  %v5205_v51 = vld [vmem:[%s5344_s6 + $0x7c] sm:$0xf] }
  0xea   : > { %v2082_v14 = vor.u32 %v2081_v57, %v2078_v54  ;;  %v1146_v54 = vld [vmem:[%s5344_s6 + $0x78] sm:$0xe] }
  0xec   : > { %v5790_v24 = vpop.f32.mrf.mxu0  ;;  %v2083_v21 = vrot.slane %v2082_v14, 4 }
  0xed   : > { %v5792_v32 = vpop.f32.mrf.mxu3  ;;  %4656 = vmatmul.msk.bf16.gmra.mxu2 %vm774_vm4, %v1341_v11  ;;  %v1058_v35 = vpop.f32.mrf.mxu1 }
  0xee   : > { %v1059_v1 = vadd.f32 %v1058_v35, %v5672_v9  ;;  %v1256_v9 = vsel %vm5530_vm7, %v1254_v48, %v1255_v47  ;;  %v2093_v35 = vrot.slane %v2092_v15, 4  ;;  %v4807_v47 = vld [vmem:[%s5344_s6 + $0x84] sm:$0xf]  ;;  %v5146_v15 = vld [vmem:[%s5344_s6 + $0x78] sm:$0xff] }
  0xef   : > { %v1320_v30 = vunpack.c.l.b16 %v1256_v9  ;;  %v2103_v57 = vshll.u32 %v4807_v47, 16  ;;  %v2113_v9 = vshrl.u32 %v4808_v27, 16 }
  0xf0   : > { %v1409_v52 = vpop.f32.mrf.mxu2  ;;  %v2098_v4 = vsel %vm5356_vm3, %v2093_v35, %v2097_v42 }
  0xf1   : > { %v1489_v61 = vadd.f32 %v1409_v52, %v1057_v62  ;;  %v1319_v62 = vunpack.c.l.b16 %v1253_v8  ;;  %v1259_v52 = vrot.slane %v5205_v51, 5  ;;  %v2109_v8 = vshll.u32 %v4808_v27, 16 }
  0xf2   : > { %4769 = vmatmul.msk.bf16.gmra.mxu3 %vm774_vm4, %v5145_v46  ;;  %v2115_v35 = vrot.slane %v2113_v9, 4 }
  0xf3   : > { %v1342_v48 = vpack.c.b16 %v1320_v30, %v1319_v62 }
  0xf4   : > { %v2353_v11 = vpop.f32.mrf.mxu0 }
  0xf5   : > { %v1699_v41 = vpop.f32.mrf.mxu3  ;;  %v1061_v23 = vpop.f32.mrf.mxu1 }
  0xf6   : > { %v1779_v31 = vadd.f32 %v1699_v41, %v1489_v61  ;;  %v1062_v16 = vadd.f32 %v1061_v23, %v5691_v38  ;;  %v2100_v38 = vshrl.u32 %v4807_v47, 16  ;;  %v2088_v61 = vsel %vm5356_vm3, %v2083_v21, %v2087_v60 }
  0xf7   : > { %4834 = vmatmul.msk.bf16.gmra.mxu0 %vm774_vm4, %v2285_v25  ;;  %v5206_v25 = vld [vmem:[%s5344_s6 + $0x80] sm:$0x1]  ;;  %v4641_v41 = vrot.slane %v1146_v54, 9  ;;  %v1261_v23 = vrot.slane %v1259_v52, 4  ;;  %v2263_v62 = vunpack.c.l.b16 %v2088_v61  ;;  %v2264_v60 = vunpack.c.l.b16 %v2098_v4 }
  0xf8   : > { %v1411_v33 = vpop.f32.mrf.mxu2  ;;  %4624 = vmatmul.msk.bf16.gmra.mxu1 %vm774_vm4, %v5130_v13  ;;  %v5809_v46 = vadd.f32 %v2353_v11, %v1779_v31  ;;  %v1262_v11 = vrot.slane %v5206_v25, 5  ;;  %v2102_v30 = vrot.slane %v2100_v38, 4  ;;  %v2105_v31 = vrot.slane %v2103_v57, 5  ;;  %v5131_v38 = vld [vmem:[%s5344_s6 + $0x78] sm:$0xff] }
  0xf9   : > { %v1490_v50 = vadd.f32 %v1411_v33, %v1059_v1  ;;  %v2111_v21 = vrot.slane %v2109_v8, 5  ;;  %v2286_v27 = vpack.c.b16 %v2264_v60, %v2263_v62  ;;  %v4811_v62 = vld [vmem:[%s5344_s6 + $0x94] sm:$0xf]  ;;  %v5207_v60 = vld [vmem:[%s5344_s6 + $0x88] sm:$0xf] }
  0xfa   : > { %v2106_v51 = vor.u32 %v2105_v31, %v2102_v30  ;;  %v1266_v30 = vrot.slane %v5207_v60, 5  ;;  %v1147_v31 = vld [vmem:[%s5344_s6 + $0x84] sm:$0xe] }
  0xfb   : > { %v2116_v57 = vor.u32 %v2115_v35, %v2111_v21 }
  0xfc   : > { %v2355_v20 = vpop.f32.mrf.mxu0  ;;  %v2107_v25 = vrot.slane %v2106_v51, 4 }
  0xfd   : > { %v1701_v1 = vpop.f32.mrf.mxu3  ;;  %4657 = vmatmul.msk.bf16.gmra.mxu2 %vm774_vm4, %v1342_v48  ;;  %v1063_v13 = vpop.f32.mrf.mxu1  ;;  %v4809_v48 = vld [vmem:[%s5344_s6 + $0x8c] sm:$0x1] }
  0xfe   : > { %v1780_v14 = vadd.f32 %v1701_v1, %v1490_v50  ;;  %v1064_v19 = vadd.f32 %v1063_v13, %v5709_v3  ;;  %v1260_v50 = vsel %vm5530_vm7, %v4641_v41, %v1259_v52  ;;  %v1263_v3 = vsel %vm5530_vm7, %v1261_v23, %v1262_v11 }
  0xff   : > { %v2119_v61 = vshll.u32 %v4809_v48, 16  ;;  %v1322_v8 = vunpack.c.l.b16 %v1263_v3  ;;  %v2117_v1 = vrot.slane %v2116_v57, 4  ;;  %v2137_v3 = vshrl.u32 %v4811_v62, 16  ;;  %v5147_v57 = vld [vmem:[%s5344_s6 + $0x84] sm:$0xff] }
 0x100   : > { %v1414_v33 = vpop.f32.mrf.mxu2  ;;  %v5822_v42 = vadd.f32 %v2355_v20, %v1780_v14  ;;  %v4810_v14 = vld [vmem:[%s5344_s6 + $0x90] sm:$0xf] }
 0x101   : > { %v1491_v47 = vadd.f32 %v1414_v33, %v1062_v16  ;;  %v1321_v16 = vunpack.c.l.b16 %v1260_v50  ;;  %v2121_v13 = vrot.slane %v2119_v61, 5  ;;  %v2124_v33 = vshrl.u32 %v4810_v14, 16 }
 0x102   : > { %4770 = vmatmul.msk.bf16.gmra.mxu3 %vm774_vm4, %v5146_v15  ;;  %v2127_v48 = vshll.u32 %v4810_v14, 16  ;;  %v2133_v50 = vshll.u32 %v4811_v62, 16  ;;  %v4642_v61 = vrot.slane %v1147_v31, 9 }
 0x103   : > { %v1343_v23 = vpack.c.b16 %v1322_v8, %v1321_v16  ;;  %v2126_v8 = vrot.slane %v2124_v33, 4 }
 0x104   : > { %v2358_v54 = vpop.f32.mrf.mxu0 }
 0x105   : > { %v1704_v4 = vpop.f32.mrf.mxu3  ;;  %v1066_v20 = vpop.f32.mrf.mxu1 }
 0x106   : > { %v1781_v9 = vadd.f32 %v1704_v4, %v1491_v47  ;;  %v1067_v52 = vadd.f32 %v1066_v20, %v5731_v44  ;;  %v2112_v44 = vsel %vm5356_vm3, %v2107_v25, %v2111_v21  ;;  %v2122_v47 = vsel %vm5356_vm3, %v2117_v1, %v2121_v13 }
 0x107   : > { %4835 = vmatmul.msk.bf16.gmra.mxu0 %vm774_vm4, %v2286_v27  ;;  %v5208_v27 = vld [vmem:[%s5344_s6 + $0x8c] sm:$0x1]  ;;  %v1268_v4 = vrot.slane %v1266_v30, 4  ;;  %v2265_v20 = vunpack.c.l.b16 %v2112_v44  ;;  %v2266_v16 = vunpack.c.l.b16 %v2122_v47  ;;  %v2129_v25 = vrot.slane %v2127_v48, 5  ;;  %v5132_v44 = vld [vmem:[%s5344_s6 + $0x84] sm:$0xff] }
 0x108   : > { %v1416_v11 = vpop.f32.mrf.mxu2  ;;  %4625 = vmatmul.msk.bf16.gmra.mxu1 %vm774_vm4, %v5131_v38  ;;  %v5835_v15 = vadd.f32 %v2358_v54, %v1781_v9  ;;  %v1269_v51 = vrot.slane %v5208_v27, 5  ;;  %v2139_v1 = vrot.slane %v2137_v3, 4 }
 0x109   : > { %v1492_v41 = vadd.f32 %v1416_v11, %v1064_v19  ;;  %v2135_v11 = vrot.slane %v2133_v50, 5  ;;  %v2287_v62 = vpack.c.b16 %v2266_v16, %v2265_v20  ;;  %v2130_v31 = vor.u32 %v2129_v25, %v2126_v8  ;;  %v4814_v20 = vld [vmem:[%s5344_s6 + $0xa0] sm:$0xf]  ;;  %v1148_v25 = vld [vmem:[%s5344_s6 + $0x90] sm:$0xe] }
 0x10b   : > { %v2140_v33 = vor.u32 %v2139_v1, %v2135_v11 }
 0x10c   : > { %v2360_v35 = vpop.f32.mrf.mxu0 }
 0x10d   : > { %v1706_v19 = vpop.f32.mrf.mxu3  ;;  %4658 = vmatmul.msk.bf16.gmra.mxu2 %vm774_vm4, %v1343_v23  ;;  %v1068_v54 = vpop.f32.mrf.mxu1  ;;  %v4812_v23 = vld [vmem:[%s5344_s6 + $0x98] sm:$0x1] }
 0x10e   : > { %v1782_v38 = vadd.f32 %v1706_v19, %v1492_v41  ;;  %v1069_v21 = vadd.f32 %v1068_v54, %v5749_v5  ;;  %v1267_v5 = vsel %vm5530_vm7, %v4642_v61, %v1266_v30  ;;  %v1270_v41 = vsel %vm5530_vm7, %v1268_v4, %v1269_v51  ;;  %v4813_v30 = vld [vmem:[%s5344_s6 + $0x9c] sm:$0xf] }
 0x10f   : > { %v2143_v47 = vshll.u32 %v4812_v23, 16  ;;  %v1324_v50 = vunpack.c.l.b16 %v1270_v41  ;;  %v2131_v19 = vrot.slane %v2130_v31, 4  ;;  %v2141_v54 = vrot.slane %v2140_v33, 4 }
 0x110   : > { %v1419_v9 = vpop.f32.mrf.mxu2  ;;  %v5848_v13 = vadd.f32 %v2360_v35, %v1782_v38  ;;  %v2148_v16 = vshrl.u32 %v4813_v30, 16  ;;  %v2151_v8 = vshll.u32 %v4813_v30, 16  ;;  %v2161_v41 = vshrl.u32 %v4814_v20, 16 }
 0x111   : > { %v1493_v14 = vadd.f32 %v1419_v9, %v1067_v52  ;;  %v1323_v52 = vunpack.c.l.b16 %v1267_v5  ;;  %v2145_v38 = vrot.slane %v2143_v47, 5  ;;  %v5209_v9 = vld [vmem:[%s5344_s6 + $0x94] sm:$0xf]  ;;  %v2157_v5 = vshll.u32 %v4814_v20, 16 }
 0x112   : > { %4771 = vmatmul.msk.bf16.gmra.mxu3 %vm774_vm4, %v5147_v57  ;;  %v2150_v31 = vrot.slane %v2148_v16, 4  ;;  %v2153_v33 = vrot.slane %v2151_v8, 5 }
 0x113   : > { %v1344_v4 = vpack.c.b16 %v1324_v50, %v1323_v52  ;;  %v2146_v23 = vsel %vm5356_vm3, %v2141_v54, %v2145_v38  ;;  %v4643_v52 = vrot.slane %v1148_v25, 9 }
 0x114   : > { %v2363_v60 = vpop.f32.mrf.mxu0  ;;  %v2154_v20 = vor.u32 %v2153_v33, %v2150_v31  ;;  %v4817_v31 = vld [vmem:[%s5344_s6 + $0xac] sm:$0xf] }
 0x115   : > { %v1709_v48 = vpop.f32.mrf.mxu3  ;;  %v1071_v35 = vpop.f32.mrf.mxu1 }
 0x116   : > { %v1783_v3 = vadd.f32 %v1709_v48, %v1493_v14  ;;  %v1072_v27 = vadd.f32 %v1071_v35, %v5772_v56  ;;  %v1273_v56 = vrot.slane %v5209_v9, 5  ;;  %v2136_v14 = vsel %vm5356_vm3, %v2131_v19, %v2135_v11  ;;  %v5148_v48 = vld [vmem:[%s5344_s6 + $0x90] sm:$0xff] }
 0x117   : > { %4836 = vmatmul.msk.bf16.gmra.mxu0 %vm774_vm4, %v2287_v62  ;;  %v5210_v62 = vld [vmem:[%s5344_s6 + $0x98] sm:$0x1]  ;;  %v2267_v50 = vunpack.c.l.b16 %v2136_v14  ;;  %v2163_v19 = vrot.slane %v2161_v41, 4  ;;  %v5133_v9 = vld [vmem:[%s5344_s6 + $0x90] sm:$0xff] }
 0x118   : > { %v1421_v51 = vpop.f32.mrf.mxu2  ;;  %4626 = vmatmul.msk.bf16.gmra.mxu1 %vm774_vm4, %v5132_v44  ;;  %v5861_v57 = vadd.f32 %v2363_v60, %v1783_v3  ;;  %v1276_v60 = vrot.slane %v5210_v62, 5  ;;  %v1275_v11 = vrot.slane %v1273_v56, 4  ;;  %v2268_v3 = vunpack.c.l.b16 %v2146_v23 }
 0x119   : > { %v1494_v61 = vadd.f32 %v1421_v51, %v1069_v21  ;;  %v2159_v51 = vrot.slane %v2157_v5, 5  ;;  %v2155_v62 = vrot.slane %v2154_v20, 4  ;;  %v5212_v20 = vld [vmem:[%s5344_s6 + $0xa4] sm:$0x1] }
 0x11a   : > { %v2288_v16 = vpack.c.b16 %v2268_v3, %v2267_v50  ;;  %v5211_v50 = vld [vmem:[%s5344_s6 + $0xa0] sm:$0xf] }
 0x11b   : > { %v2164_v25 = vor.u32 %v2163_v19, %v2159_v51  ;;  %v1280_v3 = vrot.slane %v5211_v50, 5  ;;  %v1149_v19 = vld [vmem:[%s5344_s6 + $0x9c] sm:$0xe] }
 0x11c   : > { %v2365_v1 = vpop.f32.mrf.mxu0 }
 0x11d   : > { %v1711_v21 = vpop.f32.mrf.mxu3  ;;  %4659 = vmatmul.msk.bf16.gmra.mxu2 %vm774_vm4, %v1344_v4  ;;  %v1073_v44 = vpop.f32.mrf.mxu1  ;;  %v4815_v4 = vld [vmem:[%s5344_s6 + $0xa4] sm:$0x1] }
 0x11e   : > { %v1784_v47 = vadd.f32 %v1711_v21, %v1494_v61  ;;  %v1074_v35 = vadd.f32 %v1073_v44, %v5790_v24  ;;  %v1274_v61 = vsel %vm5530_vm7, %v4643_v52, %v1273_v56  ;;  %v1277_v24 = vsel %vm5530_vm7, %v1275_v11, %v1276_v60  ;;  %v4816_v21 = vld [vmem:[%s5344_s6 + $0xa8] sm:$0xf] }
 0x11f   : > { %v2167_v14 = vshll.u32 %v4815_v4, 16  ;;  %v1326_v5 = vunpack.c.l.b16 %v1277_v24  ;;  %v2165_v60 = vrot.slane %v2164_v25, 4  ;;  %v2172_v52 = vshrl.u32 %v4816_v21, 16 }
 0x120   : > { %v1424_v30 = vpop.f32.mrf.mxu2  ;;  %v5874_v54 = vadd.f32 %v2365_v1, %v1784_v47  ;;  %v2160_v11 = vsel %vm5356_vm3, %v2155_v62, %v2159_v51  ;;  %v2185_v4 = vshrl.u32 %v4817_v31, 16 }
 0x121   : > { %v1495_v38 = vadd.f32 %v1424_v30, %v1072_v27  ;;  %v1325_v27 = vunpack.c.l.b16 %v1274_v61  ;;  %v2169_v44 = vrot.slane %v2167_v14, 5  ;;  %v2175_v30 = vshll.u32 %v4816_v21, 16  ;;  %v5149_v14 = vld [vmem:[%s5344_s6 + $0x9c] sm:$0xff] }
 0x122   : > { %4772 = vmatmul.msk.bf16.gmra.mxu3 %vm774_vm4, %v5148_v48  ;;  %v2174_v51 = vrot.slane %v2172_v52, 4 }
 0x123   : > { %v1345_v48 = vpack.c.b16 %v1326_v5, %v1325_v27  ;;  %v2170_v24 = vsel %vm5356_vm3, %v2165_v60, %v2169_v44  ;;  %v1282_v27 = vrot.slane %v1280_v3, 4  ;;  %v2177_v5 = vrot.slane %v2175_v30, 5  ;;  %v4818_v44 = vld [vmem:[%s5344_s6 + $0xb0] sm:$0x1] }
 0x124   : > { %v2368_v8 = vpop.f32.mrf.mxu0  ;;  %v2270_v62 = vunpack.c.l.b16 %v2170_v24 }
 0x125   : > { %v1714_v1 = vpop.f32.mrf.mxu3  ;;  %v1076_v23 = vpop.f32.mrf.mxu1  ;;  %v2178_v52 = vor.u32 %v2177_v5, %v2174_v51 }
 0x126   : > { %v1785_v41 = vadd.f32 %v1714_v1, %v1495_v38  ;;  %v2181_v38 = vshll.u32 %v4817_v31, 16  ;;  %v4644_v1 = vrot.slane %v1149_v19, 9  ;;  %v5134_v19 = vld [vmem:[%s5344_s6 + $0x9c] sm:$0xff] }
 0x127   : > { %4837 = vmatmul.msk.bf16.gmra.mxu0 %vm774_vm4, %v2288_v16  ;;  %v1283_v16 = vrot.slane %v5212_v20, 5 }
 0x128   : > { %v1426_v56 = vpop.f32.mrf.mxu2  ;;  %4627 = vmatmul.msk.bf16.gmra.mxu1 %vm774_vm4, %v5133_v9  ;;  %v5887_v33 = vadd.f32 %v2368_v8, %v1785_v41  ;;  %v2269_v8 = vunpack.c.l.b16 %v2160_v11  ;;  %v1077_v41 = vadd.f32 %v1076_v23, %v5625_v7  ;;  %v2183_v21 = vrot.slane %v2181_v38, 5 }
 0x129   : > { %v1496_v47 = vadd.f32 %v1426_v56, %v1074_v35  ;;  %v2187_v56 = vrot.slane %v2185_v4, 4  ;;  %v2191_v11 = vshll.u32 %v4818_v44, 16 }
 0x12a   : > { %v2289_v7 = vpack.c.b16 %v2270_v62, %v2269_v8  ;;  %v4819_v8 = vld [vmem:[%s5344_s6 + $0xb4] sm:$0xf] }
 0x12b   : > { %v2188_v23 = vor.u32 %v2187_v56, %v2183_v21  ;;  %v2193_v51 = vrot.slane %v2191_v11, 5  ;;  %v2199_v44 = vshll.u32 %v4819_v8, 16 }
 0x12c   : > { %v2370_v61 = vpop.f32.mrf.mxu0 }
 0x12d   : > { %v1716_v35 = vpop.f32.mrf.mxu3  ;;  %4660 = vmatmul.msk.bf16.gmra.mxu2 %vm774_vm4, %v1345_v48  ;;  %v1078_v9 = vpop.f32.mrf.mxu1  ;;  %v1284_v48 = vsel %vm5530_vm7, %v1282_v27, %v1283_v16  ;;  %v2189_v16 = vrot.slane %v2188_v23, 4 }
 0x12e   : > { %v1786_v25 = vadd.f32 %v1716_v35, %v1496_v47  ;;  %v1281_v47 = vsel %vm5530_vm7, %v4644_v1, %v1280_v3  ;;  %v1328_v24 = vunpack.c.l.b16 %v1284_v48  ;;  %v2179_v35 = vrot.slane %v2178_v52, 4  ;;  %v5214_v52 = vld [vmem:[%s5344_s6 + $0xb0] sm:$0x1] }
 0x12f   : > { %v1079_v3 = vadd.f32 %v1078_v9, %v5641_v34  ;;  %v2196_v34 = vshrl.u32 %v4819_v8, 16  ;;  %v2194_v9 = vsel %vm5356_vm3, %v2189_v16, %v2193_v51 }
 0x130   : > { %v1429_v60 = vpop.f32.mrf.mxu2  ;;  %v5900_v31 = vadd.f32 %v2370_v61, %v1786_v25  ;;  %v1327_v61 = vunpack.c.l.b16 %v1281_v47  ;;  %v2184_v56 = vsel %vm5356_vm3, %v2179_v35, %v2183_v21 }
 0x131   : > { %v1497_v50 = vadd.f32 %v1429_v60, %v1077_v41  ;;  %v5213_v41 = vld [vmem:[%s5344_s6 + $0xac] sm:$0xf]  ;;  %v1150_v60 = vld [vmem:[%s5344_s6 + $0xa8] sm:$0xe] }
 0x132   : > { %4773 = vmatmul.msk.bf16.gmra.mxu3 %vm774_vm4, %v5149_v14  ;;  %v4820_v14 = vld [vmem:[%s5344_s6 + $0xb8] sm:$0xf]  ;;  %v1346_v5 = vpack.c.b16 %v1328_v24, %v1327_v61  ;;  %v1287_v62 = vrot.slane %v5213_v41, 5  ;;  %v2271_v61 = vunpack.c.l.b16 %v2184_v56  ;;  %v2272_v24 = vunpack.c.l.b16 %v2194_v9  ;;  %v4821_v41 = vld [vmem:[%s5344_s6 + $0xbc] sm:$0x1] }
 0x133   : > { %v2209_v47 = vshrl.u32 %v4820_v14, 16 }
 0x134   : > { %v2373_v30 = vpop.f32.mrf.mxu0 }
 0x135   : > { %v1719_v38 = vpop.f32.mrf.mxu3  ;;  %v1081_v4 = vpop.f32.mrf.mxu1  ;;  %v2211_v51 = vrot.slane %v2209_v47, 4 }
 0x136   : > { %v1787_v20 = vadd.f32 %v1719_v38, %v1497_v50  ;;  %v2205_v50 = vshll.u32 %v4820_v14, 16  ;;  %v5150_v38 = vld [vmem:[%s5344_s6 + $0xa8] sm:$0xff]  ;;  %v1082_v35 = vadd.f32 %v1081_v4, %v5661_v58  ;;  %v2290_v58 = vpack.c.b16 %v2272_v24, %v2271_v61 }
 0x137   : > { %4838 = vmatmul.msk.bf16.gmra.mxu0 %vm774_vm4, %v2289_v7  ;;  %v1290_v7 = vrot.slane %v5214_v52, 5 }
 0x138   : > { %v1431_v25 = vpop.f32.mrf.mxu2  ;;  %4628 = vmatmul.msk.bf16.gmra.mxu1 %vm774_vm4, %v5134_v19  ;;  %v5913_v1 = vadd.f32 %v2373_v30, %v1787_v20  ;;  %v4645_v30 = vrot.slane %v1150_v60, 9  ;;  %v1289_v19 = vrot.slane %v1287_v62, 4  ;;  %v2198_v20 = vrot.slane %v2196_v34, 4  ;;  %v5135_v34 = vld [vmem:[%s5344_s6 + $0xa8] sm:$0xff] }
 0x139   : > { %v1498_v27 = vadd.f32 %v1431_v25, %v1079_v3  ;;  %v2201_v3 = vrot.slane %v2199_v44, 5  ;;  %v5925_v16 = vrot.slane %v2205_v50, 5  ;;  %v2215_v50 = vshll.u32 %v4821_v41, 16 }
 0x13b   : > { %v2202_v4 = vor.u32 %v2201_v3, %v2198_v20  ;;  %v2212_v56 = vor.u32 %v2211_v51, %v5925_v16  ;;  %v2217_v20 = vrot.slane %v2215_v50, 5 }
 0x13c   : > { %v2375_v48 = vpop.f32.mrf.mxu0 }
 0x13d   : > { %v1721_v23 = vpop.f32.mrf.mxu3  ;;  %4661 = vmatmul.msk.bf16.gmra.mxu2 %vm774_vm4, %v1346_v5  ;;  %v1083_v11 = vpop.f32.mrf.mxu1  ;;  %v1288_v5 = vsel %vm5530_vm7, %v4645_v30, %v1287_v62  ;;  %v4822_v62 = vld [vmem:[%s5344_s6 + $0xc0] sm:$0xf]  ;;  %v5215_v30 = vld [vmem:[%s5344_s6 + $0x10] sm:$0xf] }
 0x13e   : > { %v1788_v21 = vadd.f32 %v1721_v23, %v1498_v27  ;;  %v1291_v27 = vsel %vm5530_vm7, %v1289_v19, %v1290_v7  ;;  %v1329_v9 = vunpack.c.l.b16 %v1288_v5  ;;  %v4823_v23 = vld [vmem:[%s5344_s6 + $0xc4] sm:$0xf]  ;;  %v2531_v7 = vrot.slane %v5215_v30, 5 }
 0x13f   : > { %v1330_v44 = vunpack.c.l.b16 %v1291_v27  ;;  %v1084_v19 = vadd.f32 %v1083_v11, %v5678_v28  ;;  %v2223_v3 = vshll.u32 %v4822_v62, 16  ;;  %v5216_v27 = vld [vmem:[%s5344_s6 + $0xb8] sm:$0xf]  ;;  %v1151_v11 = vld [vmem:[%s5344_s6 + $0xb4] sm:$0xe] }
 0x140   : > { %v1434_v8 = vpop.f32.mrf.mxu2  ;;  %v5927_v25 = vadd.f32 %v2375_v48, %v1788_v21  ;;  %v2203_v21 = vrot.slane %v2202_v4, 4  ;;  %v1294_v41 = vrot.slane %v5216_v27, 5  ;;  %v2533_v4 = vrot.slane %v2531_v7, 4  ;;  %v5151_v27 = vld [vmem:[%s5344_s6 + $0xb4] sm:$0xff] }
 0x141   : > { %v1499_v14 = vadd.f32 %v1434_v8, %v1082_v35  ;;  %v1347_v24 = vpack.c.b16 %v1330_v44, %v1329_v9  ;;  %v2220_v35 = vshrl.u32 %v4822_v62, 16  ;;  %v2229_v8 = vshll.u32 %v4823_v23, 16 }
 0x142   : > { %4774 = vmatmul.msk.bf16.gmra.mxu3 %vm774_vm4, %v5150_v38  ;;  %v2213_v38 = vrot.slane %v2212_v56, 4  ;;  %v5218_v56 = vld [vmem:[%s5344_s6 + $0x14] sm:$0x1]  ;;  %v2208_v9 = vsel %vm5356_vm3, %v2203_v21, %v5925_v16 }
 0x143   : > { %v2222_v62 = vrot.slane %v2220_v35, 4  ;;  %v2273_v21 = vunpack.c.l.b16 %v2208_v9 }
 0x144   : > { %v2378_v60 = vpop.f32.mrf.mxu0  ;;  %v2218_v44 = vsel %vm5356_vm3, %v2213_v38, %v2217_v20 }
 0x145   : > { %v1724_v47 = vpop.f32.mrf.mxu3  ;;  %v1086_v48 = vpop.f32.mrf.mxu1  ;;  %v2274_v38 = vunpack.c.l.b16 %v2218_v44 }
 0x146   : > { %v1789_v52 = vadd.f32 %v1724_v47, %v1499_v14  ;;  %v2233_v14 = vshrl.u32 %v4823_v23, 16  ;;  %v2534_v47 = vrot.slane %v5218_v56, 5  ;;  %v5955_v23 = vrot.slane %v2229_v8, 5 }
 0x147   : > { %4839 = vmatmul.msk.bf16.gmra.mxu0 %vm774_vm4, %v2290_v58  ;;  %v5217_v58 = vld [vmem:[%s5344_s6 + $0xbc] sm:$0x1]  ;;  %v1296_v56 = vrot.slane %v1294_v41, 4  ;;  %v1087_v16 = vadd.f32 %v1086_v48, %v5698_v53 }
 0x148   : > { %v1436_v61 = vpop.f32.mrf.mxu2  ;;  %4629 = vmatmul.msk.bf16.gmra.mxu1 %vm774_vm4, %v5135_v34  ;;  %v5943_v5 = vadd.f32 %v2378_v60, %v1789_v52  ;;  %v1297_v28 = vrot.slane %v5217_v58, 5  ;;  %v2225_v52 = vrot.slane %v2223_v3, 5  ;;  %v2235_v30 = vrot.slane %v2233_v14, 4 }
 0x149   : > { %v1500_v51 = vadd.f32 %v1436_v61, %v1084_v19  ;;  %v4842_v19 = vld [vmem:[%s5344_s6 + $0xc] sm:$0xe]  ;;  %v4646_v58 = vrot.slane %v1151_v11, 9  ;;  %v2535_v3 = vsel %vm5530_vm7, %v2533_v4, %v2534_v47  ;;  %v5004_v4 = vld [vmem:[%s5344_s6 + $0x18] sm:$0xf] }
 0x14a   : > { %6808 = vst [vmem:[#allocation2_spill] sm:$0xff] %v5943_v5  ;;  %v4858_v5 = vrot.slane %v4842_v19, 9  ;;  %v2226_v8 = vor.u32 %v2225_v52, %v2222_v62  ;;  %v2644_v11 = vunpack.c.l.b16 %v2535_v3  ;;  %v1298_v48 = vsel %vm5530_vm7, %v1296_v56, %v1297_v28  ;;  %v5136_v62 = vld [vmem:[%s5344_s6 + $0xb4] sm:$0xff]  ;;  %v5978_v52 = vld [vmem:[%s5344_s6 + $0x1c] sm:$0xf] }
 0x14b   : > { %v1295_v53 = vsel %vm5530_vm7, %v4646_v58, %v1294_v41  ;;  %v2236_v9 = vor.u32 %v2235_v30, %v5955_v23  ;;  %v1332_v41 = vunpack.c.l.b16 %v1298_v48  ;;  %v3202_v56 = vshrl.u32 %v5004_v4, 16 }
 0x14c   : > { %v2380_v34 = vpop.f32.mrf.mxu0  ;;  %v2532_v35 = vsel %vm5530_vm7, %v4858_v5, %v2531_v7  ;;  %v2291_v7 = vpack.c.b16 %v2274_v38, %v2273_v21  ;;  %v2227_v58 = vrot.slane %v2226_v8, 4  ;;  %v3205_v30 = vshll.u32 %v5004_v4, 16 }
 0x14d   : > { %v1726_v60 = vpop.f32.mrf.mxu3  ;;  %4662 = vmatmul.msk.bf16.gmra.mxu2 %vm774_vm4, %v1347_v24  ;;  %v1088_v50 = vpop.f32.mrf.mxu1  ;;  %v4824_v24 = vld [vmem:[%s5344_s6 + $0xc8] sm:$0x1]  ;;  %v2643_v14 = vunpack.c.l.b16 %v2532_v35  ;;  %v2237_v28 = vrot.slane %v2236_v9, 4  ;;  %v3215_v38 = vshrl.u32 %v5978_v52, 16  ;;  %v3204_v8 = vrot.slane %v3202_v56, 4 }
 0x14e   : > { %v1790_v61 = vadd.f32 %v1726_v60, %v1500_v51  ;;  %v2239_v5 = vshll.u32 %v4824_v24, 16  ;;  %v1089_v21 = vadd.f32 %v1088_v50, %v5718_v17  ;;  %v2232_v17 = vsel %vm5356_vm3, %v2227_v58, %v5955_v23  ;;  %v5006_v9 = vld [vmem:[%s5344_s6 + $0x20] sm:$0x1]  ;;  %v5007_v56 = vld [vmem:[%s5344_s6 + $0x24] sm:$0xf] }
 0x14f   : > { %v5971_v44 = vpack.c.b16 %v2644_v11, %v2643_v14  ;;  %v3207_v14 = vrot.slane %v3205_v30, 5  ;;  %v3221_v58 = vshll.u32 %v5006_v9, 16  ;;  %v5998_v30 = vld [vmem:[%s5344_s6 + $0x28] sm:$0xf] }
 0x150   : > { %v1439_v20 = vpop.f32.mrf.mxu2  ;;  %v5974_v47 = vadd.f32 %v2380_v34, %v1790_v61  ;;  %v2241_v34 = vrot.slane %v2239_v5, 5  ;;  %v3211_v61 = vshll.u32 %v5978_v52, 16 }
 0x151   : > { %v1501_v51 = vadd.f32 %v1439_v20, %v1087_v16  ;;  %v1331_v16 = vunpack.c.l.b16 %v1295_v53  ;;  %v3217_v53 = vrot.slane %v3215_v38, 4  ;;  %v3223_v38 = vrot.slane %v3221_v58, 5 }
 0x152   : > { %4775 = vmatmul.msk.bf16.gmra.mxu3 %vm774_vm4, %v5151_v27  ;;  %v2242_v50 = vsel %vm5356_vm3, %v2237_v28, %v2241_v34  ;;  %v3213_v11 = vrot.slane %v3211_v61, 5 }
 0x153   : > { %v1348_v3 = vpack.c.b16 %v1332_v41, %v1331_v16  ;;  %v3208_v16 = vor.u32 %v3207_v14, %v3204_v8  ;;  %v3229_v8 = vshll.u32 %v5007_v56, 16  ;;  %v3235_v14 = vshll.u32 %v5998_v30, 16 }
 0x154   : > { %v2383_v60 = vpop.f32.mrf.mxu0  ;;  %v3218_v41 = vor.u32 %v3217_v53, %v3213_v11 }
 0x155   : > { %v1729_v19 = vpop.f32.mrf.mxu3  ;;  %v1091_v27 = vpop.f32.mrf.mxu1  ;;  %v3209_v34 = vrot.slane %v3208_v16, 4 }
 0x156   : > { %v1791_v20 = vadd.f32 %v1729_v19, %v1501_v51  ;;  %v2276_v19 = vunpack.c.l.b16 %v2242_v50  ;;  %v1092_v23 = vadd.f32 %v1091_v27, %v5741_v2  ;;  %v3219_v61 = vrot.slane %v3218_v41, 4 }
 0x157   : > { %4840 = vmatmul.msk.bf16.gmra.mxu0 %vm774_vm4, %v2291_v7 }
 0x158   : > { %v1441_v24 = vpop.f32.mrf.mxu2  ;;  %4630 = vmatmul.msk.bf16.gmra.mxu1 %vm774_vm4, %v5136_v62  ;;  %v5985_v51 = vadd.f32 %v2383_v60, %v1791_v20  ;;  %v5152_v60 = vld [vmem:[%s5344_s6 + $0xc0] sm:$0xff]  ;;  %v2275_v62 = vunpack.c.l.b16 %v2232_v17  ;;  %v3239_v17 = vshrl.u32 %v5998_v30, 16  ;;  %v3224_v41 = vsel %vm5356_vm3, %v3219_v61, %v3223_v38  ;;  %v6024_v38 = vld [vmem:[%s5344_s6 + $0x2c] sm:$0x1] }
 0x159   : > { %v1502_v35 = vadd.f32 %v1441_v24, %v1089_v21  ;;  %v5069_v24 = vld [vmem:[%s5344_s6 + $0x18] sm:$0xe]  ;;  %v3588_v61 = vunpack.c.l.b16 %v3224_v41 }
 0x15a   : > { %v2292_v21 = vpack.c.b16 %v2276_v19, %v2275_v62  ;;  %v5220_v62 = vld [vmem:[%s5344_s6 + $0x20] sm:$0x1] }
 0x15b   : > { %v2541_v19 = vrot.slane %v5220_v62, 5 }
 0x15c   : > { %v2385_v48 = vpop.f32.mrf.mxu0 }
 0x15d   : > { %v1731_v7 = vpop.f32.mrf.mxu3  ;;  %4663 = vmatmul.msk.bf16.gmra.mxu2 %vm774_vm4, %v1348_v3  ;;  %v1093_v5 = vpop.f32.mrf.mxu1  ;;  %v3226_v3 = vshrl.u32 %v5007_v56, 16 }
 0x15e   : > { %v1792_v4 = vadd.f32 %v1731_v7, %v1502_v35  ;;  %v3873_v35 = vrot.slane %v5978_v52, 5  ;;  %v5219_v7 = vld [vmem:[%s5344_s6 + $0x1c] sm:$0xf]  ;;  %v3214_v52 = vsel %vm5356_vm3, %v3209_v34, %v3213_v11  ;;  %v3241_v11 = vrot.slane %v3239_v17, 4 }
 0x160   : > { %v1444_v20 = vpop.f32.mrf.mxu2  ;;  %v6003_v2 = vadd.f32 %v2385_v48, %v1792_v4  ;;  %v5085_v48 = vrot.slane %v5069_v24, 9  ;;  %v4843_v4 = vld [vmem:[%s5344_s6 + $0x18] sm:$0xe]  ;;  %v3875_v58 = vrot.slane %v3873_v35, 4 }
 0x161   : > { %v1503_v28 = vadd.f32 %v1444_v20, %v1092_v23  ;;  %v1094_v23 = vadd.f32 %v1093_v5, %v5761_v29  ;;  %v3876_v20 = vrot.slane %v5006_v9, 5  ;;  %v5153_v24 = vld [vmem:[%s5344_s6 + $0x18] sm:$0xff]  ;;  %v3587_v5 = vunpack.c.l.b16 %v3214_v52 }
 0x162   : > { %4776 = vmatmul.msk.bf16.gmra.mxu3 %vm774_vm4, %v5152_v60  ;;  %6809 = vst [vmem:[#allocation3_spill] sm:$0xff] %v6003_v2  ;;  %v2538_v60 = vrot.slane %v5219_v7, 5  ;;  %v6018_v7 = vrot.slane %v3235_v14, 5  ;;  %v3874_v2 = vsel %vm5530_vm7, %v5085_v48, %v3873_v35  ;;  %v3245_v35 = vshll.u32 %v6024_v38, 16 }
 0x163   : > { %v3619_v48 = vpack.c.b16 %v3588_v61, %v3587_v5  ;;  %v5221_v5 = vld [vmem:[%s5344_s6 + $0x28] sm:$0xf] }
 0x164   : > { %v2388_v27 = vpop.f32.mrf.mxu0  ;;  %v2540_v62 = vrot.slane %v2538_v60, 4  ;;  %v2545_v61 = vrot.slane %v5221_v5, 5 }
 0x165   : > { %v1734_v50 = vpop.f32.mrf.mxu3  ;;  %v1096_v53 = vpop.f32.mrf.mxu1 }
 0x166   : > { %v1793_v16 = vadd.f32 %v1734_v50, %v1503_v28  ;;  %v3228_v28 = vrot.slane %v3226_v3, 4  ;;  %v3231_v50 = vrot.slane %v3229_v8, 5  ;;  %v2542_v17 = vsel %vm5530_vm7, %v2540_v62, %v2541_v19  ;;  %v6043_v62 = vld [vmem:[%s5344_s6 + $0x34] sm:$0xf] }
 0x167   : > { %4841 = vmatmul.msk.bf16.gmra.mxu0 %vm774_vm4, %v2292_v21  ;;  %v4859_v21 = vrot.slane %v4843_v4, 9  ;;  %v1097_v4 = vadd.f32 %v1096_v53, %v5643_v37 }
 0x168   : > { %v1446_v56 = vpop.f32.mrf.mxu2  ;;  %4875 = vmatmul.msk.bf16.vlgmr.msra.gmra.mxu1 %vm774_vm4, %v5971_v44  ;;  %v6021_v29 = vadd.f32 %v2388_v27, %v1793_v16  ;;  %v3877_v44 = vsel %vm5530_vm7, %v3875_v58, %v3876_v20  ;;  %v3232_v3 = vor.u32 %v3231_v50, %v3228_v28  ;;  %v3242_v16 = vor.u32 %v3241_v11, %v6018_v7  ;;  %v5070_v11 = vld [vmem:[%s5344_s6 + $0x24] sm:$0xe] }
 0x169   : > { %v1504_v34 = vadd.f32 %v1446_v56, %v1094_v23  ;;  %v2539_v27 = vsel %vm5530_vm7, %v4859_v21, %v2538_v60  ;;  %v3985_v23 = vunpack.c.l.b16 %v3874_v2  ;;  %v3986_v41 = vunpack.c.l.b16 %v3877_v44 }
 0x16a   : > { %v2645_v20 = vunpack.c.l.b16 %v2539_v27  ;;  %v2646_v60 = vunpack.c.l.b16 %v2542_v17  ;;  %v3233_v28 = vrot.slane %v3232_v3, 4  ;;  %v3243_v19 = vrot.slane %v3242_v16, 4 }
 0x16b   : > { %v3247_v50 = vrot.slane %v3245_v35, 5  ;;  %v3880_v21 = vrot.slane %v5998_v30, 5  ;;  %v5086_v17 = vrot.slane %v5070_v11, 9  ;;  %v4844_v30 = vld [vmem:[%s5344_s6 + $0x24] sm:$0xe] }
 0x16c   : > { %v2390_v9 = vpop.f32.mrf.mxu0  ;;  %v2676_v53 = vpack.c.b16 %v2646_v60, %v2645_v20 }
 0x16d   : > { %v1736_v8 = vpop.f32.mrf.mxu3  ;;  %4988 = vmatmul.msk.bf16.vlgmr.msra.gmra.mxu2 %vm774_vm4, %v5153_v24  ;;  %v1098_v14 = vpop.f32.mrf.mxu1  ;;  %v5010_v24 = vld [vmem:[%s5344_s6 + $0x30] sm:$0xf]  ;;  %v3248_v27 = vsel %vm5356_vm3, %v3243_v19, %v3247_v50  ;;  %v5154_v50 = vld [vmem:[%s5344_s6 + $0x24] sm:$0xff] }
 0x16e   : > { %v1794_v52 = vadd.f32 %v1736_v8, %v1504_v34  ;;  %v4017_v34 = vpack.c.b16 %v3986_v41, %v3985_v23  ;;  %v3238_v8 = vsel %vm5356_vm3, %v3233_v28, %v6018_v7  ;;  %v3250_v16 = vshrl.u32 %v5010_v24, 16  ;;  %v5222_v41 = vld [vmem:[%s5344_s6 + $0x2c] sm:$0x1] }
 0x16f   : > { %v3882_v23 = vrot.slane %v3880_v21, 4  ;;  %v3883_v7 = vrot.slane %v6024_v38, 5  ;;  %v3589_v60 = vunpack.c.l.b16 %v3238_v8  ;;  %v2547_v28 = vrot.slane %v2545_v61, 4 }
 0x170   : > { %v1449_v58 = vpop.f32.mrf.mxu2  ;;  %v6045_v37 = vadd.f32 %v2390_v9, %v1794_v52  ;;  %v3253_v9 = vshll.u32 %v5010_v24, 16  ;;  %v3259_v52 = vshll.u32 %v6043_v62, 16  ;;  %v3590_v11 = vunpack.c.l.b16 %v3248_v27 }
 0x171   : > { %v1505_v56 = vadd.f32 %v1449_v58, %v1097_v4  ;;  %v1099_v4 = vadd.f32 %v1098_v14, %v5664_v63  ;;  %v2548_v58 = vrot.slane %v5222_v41, 5  ;;  %v3881_v24 = vsel %vm5530_vm7, %v5086_v17, %v3880_v21 }
 0x172   : > { %5053 = vmatmul.msk.bf16.vlgmr.msra.gmra.mxu3 %vm774_vm4, %v3619_v48  ;;  %v3263_v48 = vshrl.u32 %v6043_v62, 16  ;;  %v3252_v63 = vrot.slane %v3250_v16, 4  ;;  %v3255_v14 = vrot.slane %v3253_v9, 5  ;;  %v6066_v38 = vrot.slane %v3259_v52, 5 }
 0x173   : > { %v2549_v27 = vsel %vm5530_vm7, %v2547_v28, %v2548_v58  ;;  %v3987_v17 = vunpack.c.l.b16 %v3881_v24  ;;  %v5071_v24 = vld [vmem:[%s5344_s6 + $0x30] sm:$0xe] }
 0x174   : > { %v2393_v2 = vpop.f32.mrf.mxu0  ;;  %v3265_v5 = vrot.slane %v3263_v48, 4  ;;  %v3256_v52 = vor.u32 %v3255_v14, %v3252_v63 }
 0x175   : > { %v1739_v44 = vpop.f32.mrf.mxu3  ;;  %v1101_v3 = vpop.f32.mrf.mxu1 }
 0x176   : > { %v1795_v35 = vadd.f32 %v1739_v44, %v1505_v56  ;;  %v4860_v56 = vrot.slane %v4844_v30, 9  ;;  %v6075_v30 = vld [vmem:[%s5344_s6 + $0x38] sm:$0x1]  ;;  %v3266_v48 = vor.u32 %v3265_v5, %v6066_v38  ;;  %v3257_v28 = vrot.slane %v3256_v52, 4 }
 0x177   : > { %5102 = vmatmul.msk.bf16.vlgmr.msra.gmra.mxu0 %vm774_vm4, %v4017_v34 }
 0x178   : > { %v1451_v20 = vpop.f32.mrf.mxu2  ;;  %4876 = vmatmul.msk.bf16.gmra.mxu1 %vm774_vm4, %v2676_v53  ;;  %v6064_v34 = vadd.f32 %v2393_v2, %v1795_v35  ;;  %v3884_v53 = vsel %vm5530_vm7, %v3882_v23, %v3883_v7  ;;  %v2546_v8 = vsel %vm5530_vm7, %v4860_v56, %v2545_v61  ;;  %v3620_v2 = vpack.c.b16 %v3590_v11, %v3589_v60  ;;  %v6083_v56 = vld [vmem:[%s5344_s6 + $0x40] sm:$0xf] }
 0x179   : > { %v1506_v19 = vadd.f32 %v1451_v20, %v1099_v4  ;;  %v3988_v9 = vunpack.c.l.b16 %v3884_v53  ;;  %v1102_v61 = vadd.f32 %v1101_v3, %v5681_v22  ;;  %v2647_v4 = vunpack.c.l.b16 %v2546_v8  ;;  %v5013_v20 = vld [vmem:[%s5344_s6 + $0x3c] sm:$0xf] }
 0x17a   : > { %v2648_v23 = vunpack.c.l.b16 %v2549_v27  ;;  %v3269_v7 = vshll.u32 %v6075_v30, 16  ;;  %v3887_v22 = vrot.slane %v6043_v62, 5  ;;  %v3274_v14 = vshrl.u32 %v5013_v20, 16 }
 0x17b   : > { %v4018_v60 = vpack.c.b16 %v3988_v9, %v3987_v17  ;;  %v3277_v5 = vshll.u32 %v5013_v20, 16  ;;  %v3283_v53 = vshll.u32 %v6083_v56, 16  ;;  %v3287_v8 = vshrl.u32 %v6083_v56, 16  ;;  %v5224_v9 = vld [vmem:[%s5344_s6 + $0x38] sm:$0x1] }
 0x17c   : > { %v2395_v44 = vpop.f32.mrf.mxu0  ;;  %v3271_v11 = vrot.slane %v3269_v7, 5  ;;  %v2555_v52 = vrot.slane %v5224_v9, 5  ;;  %v3890_v62 = vrot.slane %v6075_v30, 5  ;;  %v3889_v7 = vrot.slane %v3887_v22, 4  ;;  %v6110_v9 = vld [vmem:[%s5344_s6 + $0x44] sm:$0x1] }
 0x17d   : > { %v1741_v21 = vpop.f32.mrf.mxu3  ;;  %4989 = vmatmul.msk.bf16.gmra.mxu2 %vm774_vm4, %v5154_v50  ;;  %v1103_v16 = vpop.f32.mrf.mxu1  ;;  %v2677_v50 = vpack.c.b16 %v2648_v23, %v2647_v4  ;;  %v3262_v4 = vsel %vm5356_vm3, %v3257_v28, %v6066_v38  ;;  %v3279_v20 = vrot.slane %v3277_v5, 5  ;;  %v6104_v30 = vrot.slane %v3283_v53, 5 }
 0x17e   : > { %v1796_v35 = vadd.f32 %v1741_v21, %v1506_v19  ;;  %v3267_v19 = vrot.slane %v3266_v48, 4  ;;  %v3591_v38 = vunpack.c.l.b16 %v3262_v4 }
 0x180   : > { %v1454_v41 = vpop.f32.mrf.mxu2  ;;  %v6088_v3 = vadd.f32 %v2395_v44, %v1796_v35  ;;  %v4845_v44 = vld [vmem:[%s5344_s6 + $0x30] sm:$0xe]  ;;  %v1104_v35 = vadd.f32 %v1103_v16, %v5702_v55  ;;  %v3272_v23 = vsel %vm5356_vm3, %v3267_v19, %v3271_v11 }
 0x181   : > { %v1507_v58 = vadd.f32 %v1454_v41, %v1102_v61  ;;  %v5087_v61 = vrot.slane %v5071_v24, 9  ;;  %v3289_v24 = vrot.slane %v3287_v8, 4  ;;  %v4861_v55 = vrot.slane %v4845_v44, 9 }
 0x182   : > { %5054 = vmatmul.msk.bf16.gmra.mxu3 %vm774_vm4, %v3620_v2  ;;  %v5223_v2 = vld [vmem:[%s5344_s6 + $0x34] sm:$0xf]  ;;  %v3592_v28 = vunpack.c.l.b16 %v3272_v23 }
 0x183   : > { %v2552_v17 = vrot.slane %v5223_v2, 5  ;;  %v3888_v11 = vsel %vm5530_vm7, %v5087_v61, %v3887_v22  ;;  %v3293_v22 = vshll.u32 %v6110_v9, 16 }
 0x184   : > { %v2398_v63 = vpop.f32.mrf.mxu0  ;;  %v3621_v44 = vpack.c.b16 %v3592_v28, %v3591_v38  ;;  %v5225_v28 = vld [vmem:[%s5344_s6 + $0x40] sm:$0xf] }
 0x185   : > { %v1744_v27 = vpop.f32.mrf.mxu3  ;;  %v1106_v21 = vpop.f32.mrf.mxu1  ;;  %v2554_v16 = vrot.slane %v2552_v17, 4 }
 0x186   : > { %v1797_v48 = vadd.f32 %v1744_v27, %v1507_v58  ;;  %v3276_v58 = vrot.slane %v3274_v14, 4  ;;  %v5155_v27 = vld [vmem:[%s5344_s6 + $0x30] sm:$0xff] }
 0x187   : > { %5103 = vmatmul.msk.bf16.gmra.mxu0 %vm774_vm4, %v4018_v60  ;;  %v2556_v8 = vsel %vm5530_vm7, %v2554_v16, %v2555_v52  ;;  %v6129_v16 = vld [vmem:[%s5344_s6 + $0x4c] sm:$0xf] }
 0x188   : > { %v1456_v41 = vpop.f32.mrf.mxu2  ;;  %4877 = vmatmul.msk.bf16.gmra.mxu1 %vm774_vm4, %v2677_v50  ;;  %v6107_v2 = vadd.f32 %v2398_v63, %v1797_v48  ;;  %v3891_v50 = vsel %vm5530_vm7, %v3889_v7, %v3890_v62  ;;  %v3280_v14 = vor.u32 %v3279_v20, %v3276_v58  ;;  %v2553_v63 = vsel %vm5530_vm7, %v4861_v55, %v2552_v17 }
 0x189   : > { %v1508_v60 = vadd.f32 %v1456_v41, %v1104_v35  ;;  %v3290_v48 = vor.u32 %v3289_v24, %v6104_v30  ;;  %v1107_v62 = vadd.f32 %v1106_v21, %v5725_v26  ;;  %v3989_v35 = vunpack.c.l.b16 %v3888_v11  ;;  %v5072_v24 = vld [vmem:[%s5344_s6 + $0x3c] sm:$0xe] }
 0x18a   : > { %v3990_v4 = vunpack.c.l.b16 %v3891_v50  ;;  %v2649_v7 = vunpack.c.l.b16 %v2553_v63  ;;  %v2650_v17 = vunpack.c.l.b16 %v2556_v8  ;;  %v3281_v58 = vrot.slane %v3280_v14, 4 }
 0x18b   : > { %v3291_v52 = vrot.slane %v3290_v48, 4  ;;  %v3295_v20 = vrot.slane %v3293_v22, 5  ;;  %v3894_v55 = vrot.slane %v6083_v56, 5  ;;  %v2559_v11 = vrot.slane %v5225_v28, 5  ;;  %v4846_v56 = vld [vmem:[%s5344_s6 + $0x3c] sm:$0xe] }
 0x18c   : > { %v2400_v19 = vpop.f32.mrf.mxu0  ;;  %v2678_v38 = vpack.c.b16 %v2650_v17, %v2649_v7  ;;  %v5088_v8 = vrot.slane %v5072_v24, 9 }
 0x18d   : > { %v1746_v5 = vpop.f32.mrf.mxu3  ;;  %4990 = vmatmul.msk.bf16.gmra.mxu2 %vm774_vm4, %v5155_v27  ;;  %v1108_v53 = vpop.f32.mrf.mxu1  ;;  %v5016_v27 = vld [vmem:[%s5344_s6 + $0x48] sm:$0xf]  ;;  %v3296_v63 = vsel %vm5356_vm3, %v3291_v52, %v3295_v20  ;;  %v5156_v20 = vld [vmem:[%s5344_s6 + $0x3c] sm:$0xff] }
 0x18e   : > { %v1798_v61 = vadd.f32 %v1746_v5, %v1508_v60  ;;  %v4019_v60 = vpack.c.b16 %v3990_v4, %v3989_v35  ;;  %v3286_v5 = vsel %vm5356_vm3, %v3281_v58, %v6104_v30  ;;  %v3298_v48 = vshrl.u32 %v5016_v27, 16  ;;  %v5226_v4 = vld [vmem:[%s5344_s6 + $0x44] sm:$0x1] }
 0x18f   : > { %v3896_v35 = vrot.slane %v3894_v55, 4  ;;  %v3897_v30 = vrot.slane %v6110_v9, 5  ;;  %v3593_v17 = vunpack.c.l.b16 %v3286_v5  ;;  %v2561_v58 = vrot.slane %v2559_v11, 4 }
 0x190   : > { %v1459_v23 = vpop.f32.mrf.mxu2  ;;  %v6131_v26 = vadd.f32 %v2400_v19, %v1798_v61  ;;  %v3301_v19 = vshll.u32 %v5016_v27, 16  ;;  %v3307_v61 = vshll.u32 %v6129_v16, 16  ;;  %v3594_v24 = vunpack.c.l.b16 %v3296_v63 }
 0x191   : > { %v1509_v41 = vadd.f32 %v1459_v23, %v1107_v62  ;;  %v1109_v62 = vadd.f32 %v1108_v53, %v5743_v43  ;;  %v2562_v23 = vrot.slane %v5226_v4, 5  ;;  %v3895_v27 = vsel %vm5530_vm7, %v5088_v8, %v3894_v55 }
 0x192   : > { %5055 = vmatmul.msk.bf16.gmra.mxu3 %vm774_vm4, %v3621_v44  ;;  %v3311_v44 = vshrl.u32 %v6129_v16, 16  ;;  %v3300_v43 = vrot.slane %v3298_v48, 4  ;;  %v3303_v53 = vrot.slane %v3301_v19, 5  ;;  %v6152_v9 = vrot.slane %v3307_v61, 5 }
 0x193   : > { %v2563_v63 = vsel %vm5530_vm7, %v2561_v58, %v2562_v23  ;;  %v3991_v8 = vunpack.c.l.b16 %v3895_v27  ;;  %v5073_v27 = vld [vmem:[%s5344_s6 + $0x48] sm:$0xe] }
 0x194   : > { %v2403_v21 = vpop.f32.mrf.mxu0  ;;  %v3313_v28 = vrot.slane %v3311_v44, 4  ;;  %v3304_v61 = vor.u32 %v3303_v53, %v3300_v43 }
 0x195   : > { %v1749_v50 = vpop.f32.mrf.mxu3  ;;  %v1111_v14 = vpop.f32.mrf.mxu1 }
 0x196   : > { %v1799_v22 = vadd.f32 %v1749_v50, %v1509_v41  ;;  %v4862_v41 = vrot.slane %v4846_v56, 9  ;;  %v6161_v56 = vld [vmem:[%s5344_s6 + $0x50] sm:$0x1]  ;;  %v3314_v44 = vor.u32 %v3313_v28, %v6152_v9  ;;  %v3305_v58 = vrot.slane %v3304_v61, 4 }
 0x197   : > { %5104 = vmatmul.msk.bf16.gmra.mxu0 %vm774_vm4, %v4019_v60 }
 0x198   : > { %v1461_v7 = vpop.f32.mrf.mxu2  ;;  %4878 = vmatmul.msk.bf16.gmra.mxu1 %vm774_vm4, %v2678_v38  ;;  %v6150_v60 = vadd.f32 %v2403_v21, %v1799_v22  ;;  %v3898_v38 = vsel %vm5530_vm7, %v3896_v35, %v3897_v30  ;;  %v2560_v5 = vsel %vm5530_vm7, %v4862_v41, %v2559_v11  ;;  %v3622_v21 = vpack.c.b16 %v3594_v24, %v3593_v17  ;;  %v6169_v41 = vld [vmem:[%s5344_s6 + $0x58] sm:$0xf] }
 0x199   : > { %v1510_v52 = vadd.f32 %v1461_v7, %v1109_v62  ;;  %v3992_v19 = vunpack.c.l.b16 %v3898_v38  ;;  %v1112_v11 = vadd.f32 %v1111_v14, %v5764_v40  ;;  %v2651_v62 = vunpack.c.l.b16 %v2560_v5  ;;  %v5019_v7 = vld [vmem:[%s5344_s6 + $0x54] sm:$0xf] }
 0x19a   : > { %v2652_v35 = vunpack.c.l.b16 %v2563_v63  ;;  %v3317_v30 = vshll.u32 %v6161_v56, 16  ;;  %v3901_v40 = vrot.slane %v6129_v16, 5  ;;  %v3322_v53 = vshrl.u32 %v5019_v7, 16 }
 0x19b   : > { %v4020_v17 = vpack.c.b16 %v3992_v19, %v3991_v8  ;;  %v3325_v28 = vshll.u32 %v5019_v7, 16  ;;  %v3331_v38 = vshll.u32 %v6169_v41, 16  ;;  %v3335_v5 = vshrl.u32 %v6169_v41, 16  ;;  %v5228_v19 = vld [vmem:[%s5344_s6 + $0x50] sm:$0x1] }
 0x19c   : > { %v2405_v50 = vpop.f32.mrf.mxu0  ;;  %v3319_v24 = vrot.slane %v3317_v30, 5  ;;  %v2569_v61 = vrot.slane %v5228_v19, 5  ;;  %v3904_v16 = vrot.slane %v6161_v56, 5  ;;  %v3903_v30 = vrot.slane %v3901_v40, 4  ;;  %v6196_v19 = vld [vmem:[%s5344_s6 + $0x5c] sm:$0x1] }
 0x19d   : > { %v1751_v55 = vpop.f32.mrf.mxu3  ;;  %4991 = vmatmul.msk.bf16.gmra.mxu2 %vm774_vm4, %v5156_v20  ;;  %v1113_v48 = vpop.f32.mrf.mxu1  ;;  %v2679_v20 = vpack.c.b16 %v2652_v35, %v2651_v62  ;;  %v3310_v62 = vsel %vm5356_vm3, %v3305_v58, %v6152_v9  ;;  %v3327_v7 = vrot.slane %v3325_v28, 5  ;;  %v6190_v56 = vrot.slane %v3331_v38, 5 }
 0x19e   : > { %v1800_v22 = vadd.f32 %v1751_v55, %v1510_v52  ;;  %v3315_v52 = vrot.slane %v3314_v44, 4  ;;  %v3595_v9 = vunpack.c.l.b16 %v3310_v62 }
 0x1a0   : > { %v1464_v4 = vpop.f32.mrf.mxu2  ;;  %v6174_v14 = vadd.f32 %v2405_v50, %v1800_v22  ;;  %v4847_v50 = vld [vmem:[%s5344_s6 + $0x48] sm:$0xe]  ;;  %v1114_v22 = vadd.f32 %v1113_v48, %v5779_v10  ;;  %v3320_v35 = vsel %vm5356_vm3, %v3315_v52, %v3319_v24 }
 0x1a1   : > { %v1511_v23 = vadd.f32 %v1464_v4, %v1112_v11  ;;  %v5089_v11 = vrot.slane %v5073_v27, 9  ;;  %v3337_v27 = vrot.slane %v3335_v5, 4  ;;  %v4863_v10 = vrot.slane %v4847_v50, 9 }
 0x1a2   : > { %5056 = vmatmul.msk.bf16.gmra.mxu3 %vm774_vm4, %v3622_v21  ;;  %v5227_v21 = vld [vmem:[%s5344_s6 + $0x4c] sm:$0xf]  ;;  %v3596_v58 = vunpack.c.l.b16 %v3320_v35 }
 0x1a3   : > { %v2566_v8 = vrot.slane %v5227_v21, 5  ;;  %v3902_v24 = vsel %vm5530_vm7, %v5089_v11, %v3901_v40  ;;  %v3341_v40 = vshll.u32 %v6196_v19, 16 }
 0x1a4   : > { %v2408_v43 = vpop.f32.mrf.mxu0  ;;  %v3623_v50 = vpack.c.b16 %v3596_v58, %v3595_v9  ;;  %v5229_v58 = vld [vmem:[%s5344_s6 + $0x58] sm:$0xf] }
 0x1a5   : > { %v1754_v63 = vpop.f32.mrf.mxu3  ;;  %v1116_v55 = vpop.f32.mrf.mxu1  ;;  %v2568_v48 = vrot.slane %v2566_v8, 4 }
 0x1a6   : > { %v1801_v44 = vadd.f32 %v1754_v63, %v1511_v23  ;;  %v3324_v23 = vrot.slane %v3322_v53, 4  ;;  %v5157_v63 = vld [vmem:[%s5344_s6 + $0x48] sm:$0xff] }
 0x1a7   : > { %5105 = vmatmul.msk.bf16.gmra.mxu0 %vm774_vm4, %v4020_v17  ;;  %v2570_v5 = vsel %vm5530_vm7, %v2568_v48, %v2569_v61  ;;  %v6215_v48 = vld [vmem:[%s5344_s6 + $0x64] sm:$0xf] }
 0x1a8   : > { %v1466_v4 = vpop.f32.mrf.mxu2  ;;  %4879 = vmatmul.msk.bf16.gmra.mxu1 %vm774_vm4, %v2679_v20  ;;  %v6193_v21 = vadd.f32 %v2408_v43, %v1801_v44  ;;  %v3905_v20 = vsel %vm5530_vm7, %v3903_v30, %v3904_v16  ;;  %v3328_v53 = vor.u32 %v3327_v7, %v3324_v23  ;;  %v2567_v43 = vsel %vm5530_vm7, %v4863_v10, %v2566_v8 }
 0x1a9   : > { %v1512_v17 = vadd.f32 %v1466_v4, %v1114_v22  ;;  %v3338_v44 = vor.u32 %v3337_v27, %v6190_v56  ;;  %v1117_v16 = vadd.f32 %v1116_v55, %v5655_v49  ;;  %v3993_v22 = vunpack.c.l.b16 %v3902_v24  ;;  %v5074_v27 = vld [vmem:[%s5344_s6 + $0x54] sm:$0xe] }
 0x1aa   : > { %v3994_v62 = vunpack.c.l.b16 %v3905_v20  ;;  %v2653_v30 = vunpack.c.l.b16 %v2567_v43  ;;  %v2654_v8 = vunpack.c.l.b16 %v2570_v5  ;;  %v3329_v23 = vrot.slane %v3328_v53, 4 }
 0x1ab   : > { %v3339_v61 = vrot.slane %v3338_v44, 4  ;;  %v3343_v7 = vrot.slane %v3341_v40, 5  ;;  %v3908_v10 = vrot.slane %v6169_v41, 5  ;;  %v2573_v24 = vrot.slane %v5229_v58, 5  ;;  %v4848_v41 = vld [vmem:[%s5344_s6 + $0x54] sm:$0xe] }
 0x1ac   : > { %v2410_v52 = vpop.f32.mrf.mxu0  ;;  %v2680_v9 = vpack.c.b16 %v2654_v8, %v2653_v30  ;;  %v5090_v5 = vrot.slane %v5074_v27, 9 }
 0x1ad   : > { %v1756_v28 = vpop.f32.mrf.mxu3  ;;  %4992 = vmatmul.msk.bf16.gmra.mxu2 %vm774_vm4, %v5157_v63  ;;  %v1118_v38 = vpop.f32.mrf.mxu1  ;;  %v5022_v63 = vld [vmem:[%s5344_s6 + $0x60] sm:$0xf]  ;;  %v3344_v43 = vsel %vm5356_vm3, %v3339_v61, %v3343_v7  ;;  %v5158_v7 = vld [vmem:[%s5344_s6 + $0x54] sm:$0xff] }
 0x1ae   : > { %v1802_v11 = vadd.f32 %v1756_v28, %v1512_v17  ;;  %v4021_v17 = vpack.c.b16 %v3994_v62, %v3993_v22  ;;  %v3334_v28 = vsel %vm5356_vm3, %v3329_v23, %v6190_v56  ;;  %v3346_v44 = vshrl.u32 %v5022_v63, 16  ;;  %v5230_v62 = vld [vmem:[%s5344_s6 + $0x5c] sm:$0x1] }
 0x1af   : > { %v3910_v22 = vrot.slane %v3908_v10, 4  ;;  %v3911_v56 = vrot.slane %v6196_v19, 5  ;;  %v3597_v8 = vunpack.c.l.b16 %v3334_v28  ;;  %v2575_v23 = vrot.slane %v2573_v24, 4 }
 0x1b0   : > { %v1469_v35 = vpop.f32.mrf.mxu2  ;;  %v6217_v49 = vadd.f32 %v2410_v52, %v1802_v11  ;;  %v3349_v52 = vshll.u32 %v5022_v63, 16  ;;  %v3355_v11 = vshll.u32 %v6215_v48, 16  ;;  %v3598_v27 = vunpack.c.l.b16 %v3344_v43 }
 0x1b1   : > { %v1513_v4 = vadd.f32 %v1469_v35, %v1117_v16  ;;  %v1119_v16 = vadd.f32 %v1118_v38, %v5674_v0  ;;  %v2576_v35 = vrot.slane %v5230_v62, 5  ;;  %v3909_v63 = vsel %vm5530_vm7, %v5090_v5, %v3908_v10 }
 0x1b2   : > { %5057 = vmatmul.msk.bf16.gmra.mxu3 %vm774_vm4, %v3623_v50  ;;  %v3359_v50 = vshrl.u32 %v6215_v48, 16  ;;  %v3348_v0 = vrot.slane %v3346_v44, 4  ;;  %v3351_v38 = vrot.slane %v3349_v52, 5  ;;  %v6238_v19 = vrot.slane %v3355_v11, 5 }
 0x1b3   : > { %v2577_v43 = vsel %vm5530_vm7, %v2575_v23, %v2576_v35  ;;  %v3995_v5 = vunpack.c.l.b16 %v3909_v63  ;;  %v5075_v63 = vld [vmem:[%s5344_s6 + $0x60] sm:$0xe] }
 0x1b4   : > { %v2413_v55 = vpop.f32.mrf.mxu0  ;;  %v3361_v58 = vrot.slane %v3359_v50, 4  ;;  %v3352_v11 = vor.u32 %v3351_v38, %v3348_v0 }
 0x1b5   : > { %v1759_v20 = vpop.f32.mrf.mxu3  ;;  %v1121_v53 = vpop.f32.mrf.mxu1 }
 0x1b6   : > { %v1803_v40 = vadd.f32 %v1759_v20, %v1513_v4  ;;  %v4864_v4 = vrot.slane %v4848_v41, 9  ;;  %v6247_v41 = vld [vmem:[%s5344_s6 + $0x68] sm:$0x1]  ;;  %v3362_v50 = vor.u32 %v3361_v58, %v6238_v19  ;;  %v3353_v23 = vrot.slane %v3352_v11, 4 }
 0x1b7   : > { %5106 = vmatmul.msk.bf16.gmra.mxu0 %vm774_vm4, %v4021_v17 }
 0x1b8   : > { %v1471_v30 = vpop.f32.mrf.mxu2  ;;  %4880 = vmatmul.msk.bf16.gmra.mxu1 %vm774_vm4, %v2680_v9  ;;  %v6236_v17 = vadd.f32 %v2413_v55, %v1803_v40  ;;  %v3912_v9 = vsel %vm5530_vm7, %v3910_v22, %v3911_v56  ;;  %v2574_v28 = vsel %vm5530_vm7, %v4864_v4, %v2573_v24  ;;  %v3624_v55 = vpack.c.b16 %v3598_v27, %v3597_v8  ;;  %v6255_v4 = vld [vmem:[%s5344_s6 + $0x70] sm:$0xf] }
 0x1b9   : > { %v1514_v61 = vadd.f32 %v1471_v30, %v1119_v16  ;;  %v3996_v52 = vunpack.c.l.b16 %v3912_v9  ;;  %v1122_v24 = vadd.f32 %v1121_v53, %v5695_v39  ;;  %v2655_v16 = vunpack.c.l.b16 %v2574_v28  ;;  %v5025_v30 = vld [vmem:[%s5344_s6 + $0x6c] sm:$0xf] }
 0x1ba   : > { %v2656_v22 = vunpack.c.l.b16 %v2577_v43  ;;  %v3365_v56 = vshll.u32 %v6247_v41, 16  ;;  %v3915_v39 = vrot.slane %v6215_v48, 5  ;;  %v3370_v38 = vshrl.u32 %v5025_v30, 16 }
 0x1bb   : > { %v4022_v8 = vpack.c.b16 %v3996_v52, %v3995_v5  ;;  %v3373_v58 = vshll.u32 %v5025_v30, 16  ;;  %v3379_v9 = vshll.u32 %v6255_v4, 16  ;;  %v3383_v28 = vshrl.u32 %v6255_v4, 16  ;;  %v5232_v52 = vld [vmem:[%s5344_s6 + $0x68] sm:$0x1] }
 0x1bc   : > { %v2415_v20 = vpop.f32.mrf.mxu0  ;;  %v3367_v27 = vrot.slane %v3365_v56, 5  ;;  %v2583_v11 = vrot.slane %v5232_v52, 5  ;;  %v3918_v48 = vrot.slane %v6247_v41, 5  ;;  %v3917_v56 = vrot.slane %v3915_v39, 4 }
 0x1bd   : > { %v1761_v10 = vpop.f32.mrf.mxu3  ;;  %4993 = vmatmul.msk.bf16.gmra.mxu2 %vm774_vm4, %v5158_v7  ;;  %v1123_v44 = vpop.f32.mrf.mxu1  ;;  %v2681_v7 = vpack.c.b16 %v2656_v22, %v2655_v16  ;;  %v3358_v16 = vsel %vm5356_vm3, %v3353_v23, %v6238_v19  ;;  %v3375_v30 = vrot.slane %v3373_v58, 5  ;;  %v3381_v41 = vrot.slane %v3379_v9, 5  ;;  %v6280_v23 = vld [vmem:[%s5344_s6 + $0x74] sm:$0x1] }
 0x1be   : > { %v1804_v40 = vadd.f32 %v1761_v10, %v1514_v61  ;;  %v3363_v61 = vrot.slane %v3362_v50, 4  ;;  %v3599_v52 = vunpack.c.l.b16 %v3358_v16 }
 0x1c0   : > { %v1474_v62 = vpop.f32.mrf.mxu2  ;;  %v6260_v53 = vadd.f32 %v2415_v20, %v1804_v40  ;;  %v4849_v20 = vld [vmem:[%s5344_s6 + $0x60] sm:$0xe]  ;;  %v1124_v40 = vadd.f32 %v1123_v44, %v5714_v6  ;;  %v3368_v22 = vsel %vm5356_vm3, %v3363_v61, %v3367_v27 }
 0x1c1   : > { %v1515_v35 = vadd.f32 %v1474_v62, %v1122_v24  ;;  %v5091_v24 = vrot.slane %v5075_v63, 9  ;;  %v3385_v63 = vrot.slane %v3383_v28, 4  ;;  %v3600_v19 = vunpack.c.l.b16 %v3368_v22 }
 0x1c2   : > { %5058 = vmatmul.msk.bf16.gmra.mxu3 %vm774_vm4, %v3624_v55  ;;  %6810 = vst [vmem:[#allocation4_spill] sm:$0xff] %v6260_v53  ;;  %v5231_v55 = vld [vmem:[%s5344_s6 + $0x64] sm:$0xf] }
 0x1c3   : > { %v2580_v5 = vrot.slane %v5231_v55, 5  ;;  %v4865_v55 = vrot.slane %v4849_v20, 9  ;;  %v3916_v61 = vsel %vm5530_vm7, %v5091_v24, %v3915_v39  ;;  %v3386_v28 = vor.u32 %v3385_v63, %v3381_v41 }
 0x1c4   : > { %v2418_v0 = vpop.f32.mrf.mxu0  ;;  %v3625_v24 = vpack.c.b16 %v3600_v19, %v3599_v52  ;;  %v3997_v20 = vunpack.c.l.b16 %v3916_v61 }
 0x1c5   : > { %v1764_v43 = vpop.f32.mrf.mxu3  ;;  %v1126_v10 = vpop.f32.mrf.mxu1  ;;  %v2582_v6 = vrot.slane %v2580_v5, 4 }
 0x1c6   : > { %v1805_v50 = vadd.f32 %v1764_v43, %v1515_v35  ;;  %v3372_v35 = vrot.slane %v3370_v38, 4 }
 0x1c7   : > { %5107 = vmatmul.msk.bf16.gmra.mxu0 %vm774_vm4, %v4022_v8  ;;  %v5159_v8 = vld [vmem:[%s5344_s6 + $0x60] sm:$0xff]  ;;  %v2584_v9 = vsel %vm5530_vm7, %v2582_v6, %v2583_v11  ;;  %v3922_v6 = vrot.slane %v6255_v4, 5 }
 0x1c8   : > { %v1476_v62 = vpop.f32.mrf.mxu2  ;;  %4881 = vmatmul.msk.bf16.gmra.mxu1 %vm774_vm4, %v2681_v7  ;;  %v6277_v44 = vadd.f32 %v2418_v0, %v1805_v50  ;;  %v3919_v7 = vsel %vm5530_vm7, %v3917_v56, %v3918_v48  ;;  %v3376_v27 = vor.u32 %v3375_v30, %v3372_v35  ;;  %v2581_v0 = vsel %vm5530_vm7, %v4865_v55, %v2580_v5  ;;  %v5028_v30 = vld [vmem:[%s5344_s6 + $0x78] sm:$0xf]  ;;  %v5076_v55 = vld [vmem:[%s5344_s6 + $0x6c] sm:$0xe] }
 0x1c9   : > { %v1516_v43 = vadd.f32 %v1476_v62, %v1124_v40  ;;  %v3389_v50 = vshll.u32 %v6280_v23, 16  ;;  %v1127_v48 = vadd.f32 %v1126_v10, %v5733_v45  ;;  %v3998_v40 = vunpack.c.l.b16 %v3919_v7 }
 0x1ca   : > { %v2657_v22 = vunpack.c.l.b16 %v2581_v0  ;;  %v2658_v56 = vunpack.c.l.b16 %v2584_v9  ;;  %v3377_v5 = vrot.slane %v3376_v27, 4  ;;  %v3387_v35 = vrot.slane %v3386_v28, 4  ;;  %v4850_v27 = vld [vmem:[%s5344_s6 + $0x6c] sm:$0xe] }
 0x1cb   : > { %v3391_v11 = vrot.slane %v3389_v50, 5  ;;  %v4023_v63 = vpack.c.b16 %v3998_v40, %v3997_v20  ;;  %v3394_v9 = vshrl.u32 %v5028_v30, 16  ;;  %v3397_v28 = vshll.u32 %v5028_v30, 16 }
 0x1cc   : > { %v2420_v53 = vpop.f32.mrf.mxu0  ;;  %v2682_v10 = vpack.c.b16 %v2658_v56, %v2657_v22  ;;  %v3382_v61 = vsel %vm5356_vm3, %v3377_v5, %v3381_v41  ;;  %v5092_v41 = vrot.slane %v5076_v55, 9  ;;  %v4866_v22 = vrot.slane %v4850_v27, 9 }
 0x1cd   : > { %v1766_v38 = vpop.f32.mrf.mxu3  ;;  %4994 = vmatmul.msk.bf16.gmra.mxu2 %vm774_vm4, %v5159_v8  ;;  %v1128_v58 = vpop.f32.mrf.mxu1  ;;  %v3392_v7 = vsel %vm5356_vm3, %v3387_v35, %v3391_v11  ;;  %v3601_v20 = vunpack.c.l.b16 %v3382_v61  ;;  %v5234_v35 = vld [vmem:[%s5344_s6 + $0x74] sm:$0x1]  ;;  %v6325_v61 = vld [vmem:[%s5344_s6 + $0x80] sm:$0x1] }
 0x1ce   : > { %v1806_v39 = vadd.f32 %v1766_v38, %v1516_v43  ;;  %v6296_v43 = vld [vmem:[%s5344_s6 + $0x7c] sm:$0xf]  ;;  %v5233_v38 = vld [vmem:[%s5344_s6 + $0x70] sm:$0xf]  ;;  %v3602_v40 = vunpack.c.l.b16 %v3392_v7  ;;  %v2590_v11 = vrot.slane %v5234_v35, 5 }
 0x1cf   : > { %v2587_v0 = vrot.slane %v5233_v38, 5  ;;  %v3403_v50 = vshll.u32 %v6296_v43, 16  ;;  %v3407_v4 = vshrl.u32 %v6296_v43, 16 }
 0x1d0   : > { %v1479_v16 = vpop.f32.mrf.mxu2  ;;  %v6298_v8 = vadd.f32 %v2420_v53, %v1806_v39  ;;  %v1129_v39 = vadd.f32 %v1128_v58, %v5756_v12  ;;  %v3399_v12 = vrot.slane %v3397_v28, 5 }
 0x1d1   : > { %v1517_v62 = vadd.f32 %v1479_v16, %v1127_v48  ;;  %v3924_v16 = vrot.slane %v3922_v6, 4  ;;  %v2589_v5 = vrot.slane %v2587_v0, 4  ;;  %v6318_v58 = vrot.slane %v3403_v50, 5 }
 0x1d2   : > { %5059 = vmatmul.msk.bf16.gmra.mxu3 %vm774_vm4, %v3625_v24  ;;  %v3925_v24 = vrot.slane %v6280_v23, 5  ;;  %v3409_v23 = vrot.slane %v3407_v4, 4  ;;  %v2588_v27 = vsel %vm5530_vm7, %v4866_v22, %v2587_v0  ;;  %v5031_v22 = vld [vmem:[%s5344_s6 + $0x84] sm:$0xf] }
 0x1d3   : > { %v2591_v38 = vsel %vm5530_vm7, %v2589_v5, %v2590_v11  ;;  %v5077_v5 = vld [vmem:[%s5344_s6 + $0x78] sm:$0xe] }
 0x1d4   : > { %v2423_v45 = vpop.f32.mrf.mxu0 }
 0x1d5   : > { %v1769_v52 = vpop.f32.mrf.mxu3  ;;  %v1131_v19 = vpop.f32.mrf.mxu1 }
 0x1d6   : > { %v1807_v53 = vadd.f32 %v1769_v52, %v1517_v62  ;;  %v5160_v62 = vld [vmem:[%s5344_s6 + $0x6c] sm:$0xff]  ;;  %v3926_v52 = vsel %vm5530_vm7, %v3924_v16, %v3925_v24  ;;  %v1132_v50 = vadd.f32 %v1131_v19, %v5775_v59  ;;  %v2660_v16 = vunpack.c.l.b16 %v2591_v38  ;;  %v6340_v19 = vld [vmem:[%s5344_s6 + $0x88] sm:$0xf] }
 0x1d7   : > { %5108 = vmatmul.msk.bf16.gmra.mxu0 %vm774_vm4, %v4023_v63  ;;  %v3396_v63 = vrot.slane %v3394_v9, 4  ;;  %v3929_v59 = vrot.slane %v6296_v43, 5  ;;  %v3431_v43 = vshrl.u32 %v6340_v19, 16 }
 0x1d8   : > { %v1481_v48 = vpop.f32.mrf.mxu2  ;;  %4882 = vmatmul.msk.bf16.gmra.mxu1 %vm774_vm4, %v2682_v10  ;;  %v6316_v30 = vadd.f32 %v2423_v45, %v1807_v53  ;;  %v3923_v10 = vsel %vm5530_vm7, %v5092_v41, %v3922_v6  ;;  %v3626_v53 = vpack.c.b16 %v3602_v40, %v3601_v20  ;;  %v3410_v6 = vor.u32 %v3409_v23, %v6318_v58 }
 0x1d9   : > { %v1518_v56 = vadd.f32 %v1481_v48, %v1129_v39  ;;  %v3400_v28 = vor.u32 %v3399_v12, %v3396_v63  ;;  %v3999_v4 = vunpack.c.l.b16 %v3923_v10  ;;  %v4000_v39 = vunpack.c.l.b16 %v3926_v52 }
 0x1da   : > { %v3413_v41 = vshll.u32 %v6325_v61, 16  ;;  %v2659_v48 = vunpack.c.l.b16 %v2588_v27  ;;  %v3411_v40 = vrot.slane %v3410_v6, 4  ;;  %v3418_v63 = vshrl.u32 %v5031_v22, 16  ;;  %v5235_v27 = vld [vmem:[%s5344_s6 + $0x7c] sm:$0xf] }
 0x1db   : > { %v3401_v20 = vrot.slane %v3400_v28, 4  ;;  %v3421_v12 = vshll.u32 %v5031_v22, 16  ;;  %v2594_v38 = vrot.slane %v5235_v27, 5  ;;  %v5093_v28 = vrot.slane %v5077_v5, 9  ;;  %v5161_v22 = vld [vmem:[%s5344_s6 + $0x78] sm:$0xff] }
 0x1dc   : > { %v2425_v55 = vpop.f32.mrf.mxu0  ;;  %v2683_v11 = vpack.c.b16 %v2660_v16, %v2659_v48  ;;  %v3427_v6 = vshll.u32 %v6340_v19, 16  ;;  %v3420_v48 = vrot.slane %v3418_v63, 4 }
 0x1dd   : > { %v1771_v7 = vpop.f32.mrf.mxu3  ;;  %4995 = vmatmul.msk.bf16.gmra.mxu2 %vm774_vm4, %v5160_v62  ;;  %v1133_v45 = vpop.f32.mrf.mxu1  ;;  %v3415_v62 = vrot.slane %v3413_v41, 5  ;;  %v3931_v41 = vrot.slane %v3929_v59, 4  ;;  %v3423_v16 = vrot.slane %v3421_v12, 5 }
 0x1de   : > { %v1808_v9 = vadd.f32 %v1771_v7, %v1518_v56  ;;  %v4024_v56 = vpack.c.b16 %v4000_v39, %v3999_v4  ;;  %v4851_v7 = vld [vmem:[%s5344_s6 + $0x78] sm:$0xe]  ;;  %v3932_v4 = vrot.slane %v6325_v61, 5  ;;  %v6362_v61 = vld [vmem:[%s5344_s6 + $0x8c] sm:$0x1] }
 0x1df   : > { %v3424_v12 = vor.u32 %v3423_v16, %v3420_v48  ;;  %v5034_v16 = vld [vmem:[%s5344_s6 + $0x90] sm:$0xf] }
 0x1e0   : > { %v1484_v24 = vpop.f32.mrf.mxu2  ;;  %v6342_v23 = vadd.f32 %v2425_v55, %v1808_v9  ;;  %v3406_v55 = vsel %vm5356_vm3, %v3401_v20, %v6318_v58  ;;  %v3416_v9 = vsel %vm5356_vm3, %v3411_v40, %v3415_v62  ;;  %v3429_v40 = vrot.slane %v3427_v6, 5 }
 0x1e1   : > { %v1519_v0 = vadd.f32 %v1484_v24, %v1132_v50  ;;  %v1134_v50 = vadd.f32 %v1133_v45, %v5792_v32  ;;  %v4867_v24 = vrot.slane %v4851_v7, 9  ;;  %v2596_v32 = vrot.slane %v2594_v38, 4  ;;  %v5236_v45 = vld [vmem:[%s5344_s6 + $0x80] sm:$0x1] }
 0x1e2   : > { %5060 = vmatmul.msk.bf16.gmra.mxu3 %vm774_vm4, %v3626_v53  ;;  %v3603_v58 = vunpack.c.l.b16 %v3406_v55  ;;  %v3604_v20 = vunpack.c.l.b16 %v3416_v9  ;;  %v3433_v62 = vrot.slane %v3431_v43, 4  ;;  %v3933_v63 = vsel %vm5530_vm7, %v3931_v41, %v3932_v4 }
 0x1e3   : > { %v2595_v27 = vsel %vm5530_vm7, %v4867_v24, %v2594_v38  ;;  %v4002_v55 = vunpack.c.l.b16 %v3933_v63  ;;  %v3425_v48 = vrot.slane %v3424_v12, 4 }
 0x1e4   : > { %v2428_v35 = vpop.f32.mrf.mxu0  ;;  %v3627_v43 = vpack.c.b16 %v3604_v20, %v3603_v58  ;;  %v3442_v58 = vshrl.u32 %v5034_v16, 16 }
 0x1e5   : > { %v1774_v10 = vpop.f32.mrf.mxu3  ;;  %v2751_v52 = vpop.f32.mrf.mxu1 }
 0x1e6   : > { %v1809_v53 = vadd.f32 %v1774_v10, %v1519_v0  ;;  %v2831_v9 = vadd.f32 %v2751_v52, %v5809_v46 }
 0x1e7   : > { %5109 = vmatmul.msk.bf16.gmra.mxu0 %vm774_vm4, %v4024_v56  ;;  %v2597_v56 = vrot.slane %v5236_v45, 5  ;;  %v5078_v45 = vld [vmem:[%s5344_s6 + $0x84] sm:$0xe] }
 0x1e8   : > { %v1486_v39 = vpop.f32.mrf.mxu2  ;;  %4883 = vmatmul.msk.bf16.gmra.mxu1 %vm774_vm4, %v2683_v11  ;;  %v6359_v5 = vadd.f32 %v2428_v35, %v1809_v53  ;;  %v3930_v11 = vsel %vm5530_vm7, %v5093_v28, %v3929_v59  ;;  %v3437_v59 = vshll.u32 %v6362_v61, 16 }
 0x1e9   : > { %v1520_v0 = vadd.f32 %v1486_v39, %v1134_v50  ;;  %v2598_v53 = vsel %vm5530_vm7, %v2596_v32, %v2597_v56  ;;  %v3434_v50 = vor.u32 %v3433_v62, %v3429_v40  ;;  %v4001_v28 = vunpack.c.l.b16 %v3930_v11 }
 0x1ea   : > { %v2661_v39 = vunpack.c.l.b16 %v2595_v27  ;;  %v2662_v41 = vunpack.c.l.b16 %v2598_v53  ;;  %v3936_v56 = vrot.slane %v6340_v19, 5  ;;  %v3430_v62 = vsel %vm5356_vm3, %v3425_v48, %v3429_v40  ;;  %v5237_v27 = vld [vmem:[%s5344_s6 + $0x88] sm:$0xf]  ;;  %v6393_v19 = vld [vmem:[%s6801_s2] ss:$0 sm:$0xff] }
 0x1eb   : > { %v3435_v24 = vrot.slane %v3434_v50, 4  ;;  %v4025_v32 = vpack.c.b16 %v4002_v55, %v4001_v28  ;;  %v3445_v11 = vshll.u32 %v5034_v16, 16  ;;  %v2601_v53 = vrot.slane %v5237_v27, 5  ;;  %v6420_v27 = vld [vmem:[%s5344_s6 + $0x98] sm:$0x1] }
 0x1ec   : > { %v2430_v10 = vpop.f32.mrf.mxu0  ;;  %v2684_v20 = vpack.c.b16 %v2662_v41, %v2661_v39  ;;  %v3938_v28 = vrot.slane %v3936_v56, 4  ;;  %v3939_v55 = vrot.slane %v6362_v61, 5  ;;  %v6402_v39 = vld [vmem:[%s6802_s3] ss:$0 sm:$0xff] }
 0x1ed   : > { %v1776_v7 = vpop.f32.mrf.mxu3  ;;  %4996 = vmatmul.msk.bf16.gmra.mxu2 %vm774_vm4, %v5161_v22  ;;  %v2753_v35 = vpop.f32.mrf.mxu1  ;;  %v6378_v22 = vld [vmem:[%s5344_s6 + $0x94] sm:$0xf] }
 0x1ee   : > { %v1810_v6 = vadd.f32 %v1776_v7, %v1520_v0  ;;  %v3439_v0 = vrot.slane %v3437_v59, 5  ;;  %v4852_v7 = vld [vmem:[%s5344_s6 + $0x84] sm:$0xe]  ;;  %v3455_v50 = vshrl.u32 %v6378_v22, 16  ;;  %v2832_v41 = vadd.f32 %v2753_v35, %v5822_v42 }
 0x1ef   : > { %v4868_v16 = vrot.slane %v4852_v7, 9  ;;  %v3940_v35 = vsel %vm5530_vm7, %v3938_v28, %v3939_v55 }
 0x1f0   : > { %v3041_v4 = vpop.f32.mrf.mxu2  ;;  %v6382_v46 = vadd.f32 %v2430_v10, %v1810_v6  ;;  %v3440_v40 = vsel %vm5356_vm3, %v3435_v24, %v3439_v0  ;;  %v5094_v10 = vrot.slane %v5078_v45, 9  ;;  %v3605_v6 = vunpack.c.l.b16 %v3430_v62  ;;  %v5162_v24 = vld [vmem:[%s5344_s6 + $0x84] sm:$0xff] }
 0x1f1   : > { %v3121_v38 = vadd.f32 %v3041_v4, %v2831_v9  ;;  %v3444_v9 = vrot.slane %v3442_v58, 4  ;;  %v2603_v0 = vrot.slane %v2601_v53, 4  ;;  %v3457_v58 = vrot.slane %v3455_v50, 4 }
 0x1f2   : > { %5061 = vmatmul.msk.bf16.gmra.mxu3 %vm774_vm4, %v3627_v43  ;;  %v3451_v43 = vshll.u32 %v6378_v22, 16  ;;  %v3937_v42 = vsel %vm5530_vm7, %v5094_v10, %v3936_v56  ;;  %v2602_v7 = vsel %vm5530_vm7, %v4868_v16, %v2601_v53 }
 0x1f3   : > { %v4003_v50 = vunpack.c.l.b16 %v3937_v42  ;;  %v2663_v53 = vunpack.c.l.b16 %v2602_v7  ;;  %v6440_v42 = vld [vmem:[%s5344_s6 + $0xa0] sm:$0xf] }
 0x1f4   : > { %v4093_v52 = vpop.f32.mrf.mxu0  ;;  %v6408_v45 = vrot.slane %v3451_v43, 5 }
 0x1f5   : > { %v3695_v63 = vpop.f32.mrf.mxu3  ;;  %v2756_v12 = vpop.f32.mrf.mxu1 }
 0x1f6   : > { %v3775_v59 = vadd.f32 %v3695_v63, %v3121_v38  ;;  %v3447_v38 = vrot.slane %v3445_v11, 5  ;;  %v3606_v63 = vunpack.c.l.b16 %v3440_v40  ;;  %v3458_v10 = vor.u32 %v3457_v58, %v6408_v45 }
 0x1f7   : > { %5110 = vmatmul.msk.bf16.gmra.mxu0 %vm774_vm4, %v4025_v32  ;;  %v5238_v32 = vld [vmem:[%s5344_s6 + $0x8c] sm:$0x1] }
 0x1f8   : > { %v4173_v4 = vadd.f32 %v4093_v52, %v3775_v59  ;;  %v3043_v48 = vpop.f32.mrf.mxu2  ;;  %4884 = vmatmul.msk.bf16.gmra.mxu1 %vm774_vm4, %v2684_v20  ;;  %v2604_v61 = vrot.slane %v5238_v32, 5  ;;  %v3448_v40 = vor.u32 %v3447_v38, %v3444_v9  ;;  %v2833_v38 = vadd.f32 %v2756_v12, %v5835_v15 }
 0x1f9   : > { %v3122_v62 = vadd.f32 %v3043_v48, %v2832_v41  ;;  %v4004_v41 = vunpack.c.l.b16 %v3940_v35  ;;  %v3461_v48 = vshll.u32 %v6420_v27, 16  ;;  %v3943_v15 = vrot.slane %v6378_v22, 5 }
 0x1fa   : > { %v4209_v52 = vmul.f32 %v6393_v19, %v4173_v4  ;;  %v2605_v56 = vsel %vm5530_vm7, %v2603_v0, %v2604_v61  ;;  %v3628_v4 = vpack.c.b16 %v3606_v63, %v3605_v6  ;;  %v5037_v6 = vld [vmem:[%s5344_s6 + $0x9c] sm:$0xf]  ;;  %v3449_v32 = vrot.slane %v3448_v40, 4  ;;  %v5079_v63 = vld [vmem:[%s5344_s6 + $0x90] sm:$0xe] }
 0x1fb   : > { %v2664_v0 = vunpack.c.l.b16 %v2605_v56  ;;  %v3459_v61 = vrot.slane %v3458_v10, 4  ;;  %v3463_v35 = vrot.slane %v3461_v48, 5  ;;  %v3466_v12 = vshrl.u32 %v5037_v6, 16 }
 0x1fc   : > { %v4245_v20 = vadd.f32 %v6402_v39, %v4209_v52  ;;  %v4095_v11 = vpop.f32.mrf.mxu0  ;;  %v4026_v52 = vpack.c.b16 %v4004_v41, %v4003_v50  ;;  %v5095_v10 = vrot.slane %v5079_v63, 9  ;;  %v3475_v50 = vshll.u32 %v6440_v42, 16 }
 0x1fd   : > { %v3697_v43 = vpop.f32.mrf.mxu3  ;;  %4997 = vmatmul.msk.bf16.gmra.mxu2 %vm774_vm4, %v5162_v24  ;;  %v2758_v59 = vpop.f32.mrf.mxu1  ;;  %v3479_v41 = vshrl.u32 %v6440_v42, 16  ;;  %v3454_v22 = vsel %vm5356_vm3, %v3449_v32, %v6408_v45  ;;  %v5163_v32 = vld [vmem:[%s5344_s6 + $0x90] sm:$0xff] }
 0x1fe   : > { %v4277_v28 = vmax.f32 %v4245_v20, 0.0  ;;  %v3776_v55 = vadd.f32 %v3697_v43, %v3122_v62  ;;  %v3469_v20 = vshll.u32 %v5037_v6, 16  ;;  %v2685_v43 = vpack.c.b16 %v2664_v0, %v2663_v53 }
 0x1ff   : > { %v3946_v53 = vrot.slane %v6420_v27, 5 }
 0x200   : > { %v4309_v16 = vpack.c.bf16 %v4277_v28, %v4277_v28  ;;  %v4174_v9 = vadd.f32 %v4095_v11, %v3776_v55  ;;  %v3046_v24 = vpop.f32.mrf.mxu2  ;;  %v4853_v28 = vld [vmem:[%s5344_s6 + $0x90] sm:$0xe]  ;;  %v5239_v55 = vld [vmem:[%s5344_s6 + $0x94] sm:$0xf]  ;;  %v3471_v0 = vrot.slane %v3469_v20, 5  ;;  %v3607_v20 = vunpack.c.l.b16 %v3454_v22 }
 0x201   : > { %v3123_v62 = vadd.f32 %v3046_v24, %v2833_v38  ;;  %v3945_v38 = vrot.slane %v3943_v15, 4  ;;  %v3468_v24 = vrot.slane %v3466_v12, 4  ;;  %v4869_v45 = vrot.slane %v4853_v28, 9 }
 0x202   : > { %4342 = vst.msk [vmem:[%s6429_s25] sm:$0xf] %vm4341_vm8, %v4309_v16  ;;  %v4210_v58 = vmul.f32 %v6393_v19, %v4174_v9  ;;  %5062 = vmatmul.msk.bf16.gmra.mxu3 %vm774_vm4, %v3628_v4  ;;  %v2608_v4 = vrot.slane %v5239_v55, 5  ;;  %v3464_v9 = vsel %vm5356_vm3, %v3459_v61, %v3463_v35  ;;  %v3481_v61 = vrot.slane %v3479_v41, 4  ;;  %v6465_v55 = vld [vmem:[%s5344_s6 + $0xa4] sm:$0x1] }
 0x203   : > { %v3947_v28 = vsel %vm5530_vm7, %v3945_v38, %v3946_v53  ;;  %v3472_v22 = vor.u32 %v3471_v0, %v3468_v24  ;;  %v6482_v24 = vld [vmem:[%s5344_s6 + $0xac] sm:$0xf] }
 0x204   : > { %v4246_v11 = vadd.f32 %v6402_v39, %v4210_v58  ;;  %v4098_v7 = vpop.f32.mrf.mxu0  ;;  %v2610_v27 = vrot.slane %v2608_v4, 4 }
 0x205   : > { %v3700_v56 = vpop.f32.mrf.mxu3  ;;  %v2761_v40 = vpop.f32.mrf.mxu1  ;;  %v3473_v0 = vrot.slane %v3472_v22, 4 }
 0x206   : > { %v4278_v48 = vmax.f32 %v4246_v11, 0.0  ;;  %v3777_v16 = vadd.f32 %v3700_v56, %v3123_v62  ;;  %v2834_v62 = vadd.f32 %v2758_v59, %v5848_v13  ;;  %v5240_v11 = vld [vmem:[%s5344_s6 + $0x98] sm:$0x1]  ;;  %v6459_v56 = vrot.slane %v3475_v50, 5 }
 0x207   : > { %5111 = vmatmul.msk.bf16.gmra.mxu0 %vm774_vm4, %v4026_v52  ;;  %v2611_v52 = vrot.slane %v5240_v11, 5  ;;  %v2609_v50 = vsel %vm5530_vm7, %v4869_v45, %v2608_v4 }
 0x208   : > { %v4310_v6 = vpack.c.bf16 %v4278_v48, %v4278_v48  ;;  %v4175_v58 = vadd.f32 %v4098_v7, %v3777_v16  ;;  %v3048_v63 = vpop.f32.mrf.mxu2  ;;  %4885 = vmatmul.msk.bf16.gmra.mxu1 %vm774_vm4, %v2685_v43  ;;  %v3608_v7 = vunpack.c.l.b16 %v3464_v9  ;;  %v3944_v43 = vsel %vm5530_vm7, %v5095_v10, %v3943_v15 }
 0x209   : > { %v3124_v12 = vadd.f32 %v3048_v63, %v2834_v62  ;;  %v2612_v16 = vsel %vm5530_vm7, %v2610_v27, %v2611_v52  ;;  %v3482_v9 = vor.u32 %v3481_v61, %v6459_v56  ;;  %v3485_v15 = vshll.u32 %v6465_v55, 16  ;;  %v5040_v62 = vld [vmem:[%s5344_s6 + $0xa8] sm:$0xf] }
 0x20a   : > { %4343 = vst.msk [vmem:[%s6429_s25 + $0x4] sm:$0xf] %vm4341_vm8, %v4310_v6  ;;  %v4211_v35 = vmul.f32 %v6393_v19, %v4175_v58  ;;  %v3629_v53 = vpack.c.b16 %v3608_v7, %v3607_v20  ;;  %v4005_v38 = vunpack.c.l.b16 %v3944_v43  ;;  %v4006_v58 = vunpack.c.l.b16 %v3947_v28  ;;  %v5080_v20 = vld [vmem:[%s5344_s6 + $0x9c] sm:$0xe] }
 0x20b   : > { %v2665_v4 = vunpack.c.l.b16 %v2609_v50  ;;  %v2666_v11 = vunpack.c.l.b16 %v2612_v16  ;;  %v3483_v52 = vrot.slane %v3482_v9, 4  ;;  %v3487_v61 = vrot.slane %v3485_v15, 5 }
 0x20c   : > { %v4247_v13 = vadd.f32 %v6402_v39, %v4211_v35  ;;  %v4100_v59 = vpop.f32.mrf.mxu0  ;;  %v3490_v7 = vshrl.u32 %v5040_v62, 16  ;;  %v3503_v43 = vshrl.u32 %v6482_v24, 16  ;;  %v3478_v9 = vsel %vm5356_vm3, %v3473_v0, %v6459_v56 }
 0x20d   : > { %v3702_v41 = vpop.f32.mrf.mxu3  ;;  %4998 = vmatmul.msk.bf16.gmra.mxu2 %vm774_vm4, %v5163_v32  ;;  %v2763_v48 = vpop.f32.mrf.mxu1  ;;  %v2835_v32 = vadd.f32 %v2761_v40, %v5861_v57  ;;  %v4027_v57 = vpack.c.b16 %v4006_v58, %v4005_v38  ;;  %v3950_v40 = vrot.slane %v6440_v42, 5  ;;  %v3488_v15 = vsel %vm5356_vm3, %v3483_v52, %v3487_v61  ;;  %v5241_v42 = vld [vmem:[%s5344_s6 + $0xa0] sm:$0xf] }
 0x20e   : > { %v4279_v10 = vmax.f32 %v4247_v13, 0.0  ;;  %v3778_v6 = vadd.f32 %v3702_v41, %v3124_v12  ;;  %v3493_v13 = vshll.u32 %v5040_v62, 16  ;;  %v2686_v41 = vpack.c.b16 %v2666_v11, %v2665_v4 }
 0x20f   : > { %v3492_v62 = vrot.slane %v3490_v7, 4  ;;  %v3952_v4 = vrot.slane %v3950_v40, 4  ;;  %v2836_v0 = vadd.f32 %v2763_v48, %v5874_v54  ;;  %v3610_v7 = vunpack.c.l.b16 %v3488_v15 }
 0x210   : > { %v4311_v63 = vpack.c.bf16 %v4279_v10, %v4279_v10  ;;  %v4176_v45 = vadd.f32 %v4100_v59, %v3778_v6  ;;  %v3051_v27 = vpop.f32.mrf.mxu2  ;;  %v3499_v59 = vshll.u32 %v6482_v24, 16  ;;  %v5096_v10 = vrot.slane %v5080_v20, 9  ;;  %v4854_v6 = vld [vmem:[%s5344_s6 + $0x9c] sm:$0xe] }
 0x211   : > { %v3125_v12 = vadd.f32 %v3051_v27, %v2835_v32  ;;  %v3505_v32 = vrot.slane %v3503_v43, 4  ;;  %v4870_v61 = vrot.slane %v4854_v6, 9  ;;  %v3609_v20 = vunpack.c.l.b16 %v3478_v9 }
 0x212   : > { %4344 = vst.msk [vmem:[%s6429_s25 + $0x8] sm:$0xf] %vm4341_vm8, %v4311_v63  ;;  %v4212_v35 = vmul.f32 %v6393_v19, %v4176_v45  ;;  %5063 = vmatmul.msk.bf16.gmra.mxu3 %vm774_vm4, %v3629_v53  ;;  %v2615_v53 = vrot.slane %v5241_v42, 5  ;;  %v3495_v63 = vrot.slane %v3493_v13, 5  ;;  %v3953_v45 = vrot.slane %v6465_v55, 5 }
 0x213   : > { %v3501_v56 = vrot.slane %v3499_v59, 5  ;;  %v3951_v54 = vsel %vm5530_vm7, %v5096_v10, %v3950_v40  ;;  %v3630_v42 = vpack.c.b16 %v3610_v7, %v3609_v20 }
 0x214   : > { %v4248_v28 = vadd.f32 %v6402_v39, %v4212_v35  ;;  %v4103_v50 = vpop.f32.mrf.mxu0  ;;  %v6505_v35 = vld [vmem:[%s5344_s6 + $0xb0] sm:$0x1]  ;;  %v2617_v13 = vrot.slane %v2615_v53, 4  ;;  %v3496_v43 = vor.u32 %v3495_v63, %v3492_v62  ;;  %v3954_v9 = vsel %vm5530_vm7, %v3952_v4, %v3953_v45 }
 0x215   : > { %v3705_v16 = vpop.f32.mrf.mxu3  ;;  %v2766_v22 = vpop.f32.mrf.mxu1  ;;  %v3506_v48 = vor.u32 %v3505_v32, %v3501_v56  ;;  %v2616_v15 = vsel %vm5530_vm7, %v4870_v61, %v2615_v53  ;;  %v4007_v62 = vunpack.c.l.b16 %v3951_v54  ;;  %v4008_v32 = vunpack.c.l.b16 %v3954_v9  ;;  %v5081_v54 = vld [vmem:[%s5344_s6 + $0xa8] sm:$0xe]  ;;  %v5243_v9 = vld [vmem:[%s5344_s6 + $0xac] sm:$0xf] }
 0x216   : > { %v4280_v38 = vmax.f32 %v4248_v28, 0.0  ;;  %v3779_v58 = vadd.f32 %v3705_v16, %v3125_v12  ;;  %v5164_v12 = vld [vmem:[%s5344_s6 + $0x9c] sm:$0xff]  ;;  %v3497_v63 = vrot.slane %v3496_v43, 4 }
 0x217   : > { %5112 = vmatmul.msk.bf16.gmra.mxu0 %vm774_vm4, %v4027_v57  ;;  %v5242_v57 = vld [vmem:[%s5344_s6 + $0xa4] sm:$0x1]  ;;  %v3507_v4 = vrot.slane %v3506_v48, 4 }
 0x218   : > { %v4312_v27 = vpack.c.bf16 %v4280_v38, %v4280_v38  ;;  %v4177_v11 = vadd.f32 %v4103_v50, %v3779_v58  ;;  %v3053_v52 = vpop.f32.mrf.mxu2  ;;  %4886 = vmatmul.msk.bf16.gmra.mxu1 %vm774_vm4, %v2686_v41  ;;  %v2618_v28 = vrot.slane %v5242_v57, 5  ;;  %v3509_v50 = vshll.u32 %v6505_v35, 16 }
 0x219   : > { %v3126_v59 = vadd.f32 %v3053_v52, %v2836_v0  ;;  %v2837_v0 = vadd.f32 %v2766_v22, %v5887_v33  ;;  %v3502_v7 = vsel %vm5356_vm3, %v3497_v63, %v3501_v56  ;;  %v4028_v57 = vpack.c.b16 %v4008_v32, %v4007_v62  ;;  %v6533_v33 = vld [vmem:[%s5344_s6 + $0xb8] sm:$0xf] }
 0x21a   : > { %4345 = vst.msk [vmem:[%s6429_s25 + $0xc] sm:$0xf] %vm4341_vm8, %v4312_v27  ;;  %v4213_v55 = vmul.f32 %v6393_v19, %v4177_v11  ;;  %v2619_v40 = vsel %vm5530_vm7, %v2617_v13, %v2618_v28  ;;  %v2667_v27 = vunpack.c.l.b16 %v2616_v15  ;;  %v3511_v45 = vrot.slane %v3509_v50, 5  ;;  %v5043_v13 = vld [vmem:[%s5344_s6 + $0xb4] sm:$0xf] }
 0x21b   : > { %v2668_v61 = vunpack.c.l.b16 %v2619_v40  ;;  %v3957_v28 = vrot.slane %v6482_v24, 5  ;;  %v2622_v56 = vrot.slane %v5243_v9, 5  ;;  %v3514_v15 = vshrl.u32 %v5043_v13, 16 }
 0x21c   : > { %v4249_v41 = vadd.f32 %v6402_v39, %v4213_v55  ;;  %v4105_v16 = vpop.f32.mrf.mxu0  ;;  %v3512_v43 = vsel %vm5356_vm3, %v3507_v4, %v3511_v45  ;;  %v3523_v40 = vshll.u32 %v6533_v33, 16  ;;  %v5097_v62 = vrot.slane %v5081_v54, 9 }
 0x21d   : > { %v3707_v6 = vpop.f32.mrf.mxu3  ;;  %4999 = vmatmul.msk.bf16.gmra.mxu2 %vm774_vm4, %v5164_v12  ;;  %v2768_v38 = vpop.f32.mrf.mxu1  ;;  %v3959_v63 = vrot.slane %v3957_v28, 4  ;;  %v3960_v32 = vrot.slane %v6505_v35, 5 }
 0x21e   : > { %v4281_v10 = vmax.f32 %v4249_v41, 0.0  ;;  %v3780_v58 = vadd.f32 %v3707_v6, %v3126_v59  ;;  %v2687_v59 = vpack.c.b16 %v2668_v61, %v2667_v27  ;;  %v3611_v41 = vunpack.c.l.b16 %v3502_v7  ;;  %v5244_v61 = vld [vmem:[%s5344_s6 + $0xb0] sm:$0x1] }
 0x21f   : > { %v3517_v6 = vshll.u32 %v5043_v13, 16  ;;  %v2838_v45 = vadd.f32 %v2768_v38, %v5900_v31 }
 0x220   : > { %v4313_v53 = vpack.c.bf16 %v4281_v10, %v4281_v10  ;;  %v4178_v11 = vadd.f32 %v4105_v16, %v3780_v58  ;;  %v3056_v52 = vpop.f32.mrf.mxu2  ;;  %v4855_v16 = vld [vmem:[%s5344_s6 + $0xa8] sm:$0xe]  ;;  %v3527_v10 = vshrl.u32 %v6533_v33, 16  ;;  %v3612_v58 = vunpack.c.l.b16 %v3512_v43 }
 0x221   : > { %v3127_v20 = vadd.f32 %v3056_v52, %v2837_v0  ;;  %v5165_v0 = vld [vmem:[%s5344_s6 + $0xa8] sm:$0xff]  ;;  %v2624_v52 = vrot.slane %v2622_v56, 4  ;;  %v3519_v7 = vrot.slane %v3517_v6, 5  ;;  %v3961_v43 = vsel %vm5530_vm7, %v3959_v63, %v3960_v32 }
 0x222   : > { %4346 = vst.msk [vmem:[%s6429_s25 + $0x10] sm:$0xf] %vm4341_vm8, %v4313_v53  ;;  %v4214_v12 = vmul.f32 %v6393_v19, %v4178_v11  ;;  %5064 = vmatmul.msk.bf16.gmra.mxu3 %vm774_vm4, %v3630_v42  ;;  %v4871_v11 = vrot.slane %v4855_v16, 9  ;;  %v3631_v16 = vpack.c.b16 %v3612_v58, %v3611_v41 }
 0x224   : > { %v4250_v22 = vadd.f32 %v6402_v39, %v4214_v12  ;;  %v4108_v55 = vpop.f32.mrf.mxu0  ;;  %v2625_v12 = vrot.slane %v5244_v61, 5  ;;  %v2623_v54 = vsel %vm5530_vm7, %v4871_v11, %v2622_v56  ;;  %v4010_v56 = vunpack.c.l.b16 %v3961_v43  ;;  %v6576_v61 = vld [vmem:[%s5344_s6 + $0xc4] sm:$0xf]  ;;  %v4856_v43 = vld [vmem:[%s5344_s6 + $0xb4] sm:$0xe] }
 0x225   : > { %v3710_v48 = vpop.f32.mrf.mxu3  ;;  %v2771_v50 = vpop.f32.mrf.mxu1 }
 0x226   : > { %v4282_v24 = vmax.f32 %v4250_v22, 0.0  ;;  %v3781_v42 = vadd.f32 %v3710_v48, %v3127_v20  ;;  %v3516_v20 = vrot.slane %v3514_v15, 4  ;;  %v3529_v22 = vrot.slane %v3527_v10, 4 }
 0x227   : > { %5113 = vmatmul.msk.bf16.gmra.mxu0 %vm774_vm4, %v4028_v57  ;;  %v6552_v57 = vrot.slane %v3523_v40, 5  ;;  %v2626_v15 = vsel %vm5530_vm7, %v2624_v52, %v2625_v12  ;;  %v2839_v58 = vadd.f32 %v2771_v50, %v5913_v1  ;;  %v3964_v1 = vrot.slane %v6533_v33, 5 }
 0x228   : > { %v4314_v27 = vpack.c.bf16 %v4282_v24, %v4282_v24  ;;  %v4179_v4 = vadd.f32 %v4108_v55, %v3781_v42  ;;  %v3058_v53 = vpop.f32.mrf.mxu2  ;;  %4887 = vmatmul.msk.bf16.gmra.mxu1 %vm774_vm4, %v2687_v59  ;;  %v6555_v55 = vld [vmem:[%s5344_s6 + $0xbc] sm:$0x1]  ;;  %v3958_v59 = vsel %vm5530_vm7, %v5097_v62, %v3957_v28  ;;  %v3520_v6 = vor.u32 %v3519_v7, %v3516_v20  ;;  %v5082_v20 = vld [vmem:[%s5344_s6 + $0xb4] sm:$0xe] }
 0x229   : > { %v3128_v35 = vadd.f32 %v3058_v53, %v2838_v45  ;;  %v3530_v28 = vor.u32 %v3529_v22, %v6552_v57  ;;  %v3533_v40 = vshll.u32 %v6555_v55, 16  ;;  %v4009_v10 = vunpack.c.l.b16 %v3958_v59 }
 0x22a   : > { %4347 = vst.msk [vmem:[%s6429_s25 + $0x14] sm:$0xf] %vm4341_vm8, %v4314_v27  ;;  %v4215_v13 = vmul.f32 %v6393_v19, %v4179_v4  ;;  %v2669_v62 = vunpack.c.l.b16 %v2623_v54  ;;  %v2670_v27 = vunpack.c.l.b16 %v2626_v15  ;;  %v5046_v4 = vld [vmem:[%s5344_s6 + $0xc0] sm:$0xf]  ;;  %v3521_v45 = vrot.slane %v3520_v6, 4 }
 0x22b   : > { %v3535_v52 = vrot.slane %v3533_v40, 5  ;;  %v4029_v12 = vpack.c.b16 %v4010_v56, %v4009_v10  ;;  %v3538_v50 = vshrl.u32 %v5046_v4, 16  ;;  %v3541_v7 = vshll.u32 %v5046_v4, 16  ;;  %v5245_v54 = vld [vmem:[%s5344_s6 + $0xb8] sm:$0xf] }
 0x22c   : > { %v4251_v31 = vadd.f32 %v6402_v39, %v4215_v13  ;;  %v4110_v38 = vpop.f32.mrf.mxu0  ;;  %v2688_v22 = vpack.c.b16 %v2670_v27, %v2669_v62  ;;  %v3526_v59 = vsel %vm5356_vm3, %v3521_v45, %v6552_v57  ;;  %v3551_v15 = vshrl.u32 %v6576_v61, 16  ;;  %v5246_v4 = vld [vmem:[%s5344_s6 + $0xbc] sm:$0x1] }
 0x22d   : > { %v3712_v48 = vpop.f32.mrf.mxu3  ;;  %5000 = vmatmul.msk.bf16.gmra.mxu2 %vm774_vm4, %v5165_v0  ;;  %v2773_v9 = vpop.f32.mrf.mxu1  ;;  %v3531_v0 = vrot.slane %v3530_v28, 4  ;;  %v3966_v28 = vrot.slane %v3964_v1, 4  ;;  %v3967_v57 = vrot.slane %v6555_v55, 5  ;;  %v3540_v40 = vrot.slane %v3538_v50, 4 }
 0x22e   : > { %v4283_v24 = vmax.f32 %v4251_v31, 0.0  ;;  %v3782_v42 = vadd.f32 %v3712_v48, %v3128_v35  ;;  %v2629_v48 = vrot.slane %v5245_v54, 5  ;;  %v3543_v10 = vrot.slane %v3541_v7, 5 }
 0x22f   : > { %v2632_v45 = vrot.slane %v5246_v4, 5  ;;  %v3968_v7 = vsel %vm5530_vm7, %v3966_v28, %v3967_v57  ;;  %v6811_v28 = vld [vmem:[#allocation2_spill] sm:$0xff] }
 0x230   : > { %v4315_v63 = vpack.c.bf16 %v4283_v24, %v4283_v24  ;;  %v4180_v41 = vadd.f32 %v4110_v38, %v3782_v42  ;;  %v3061_v32 = vpop.f32.mrf.mxu2  ;;  %v3536_v24 = vsel %vm5356_vm3, %v3531_v0, %v3535_v52  ;;  %v5098_v42 = vrot.slane %v5082_v20, 9  ;;  %v6602_v20 = vld [vmem:[%s5344_s6 + $0xc8] sm:$0x1] }
 0x231   : > { %v3129_v11 = vadd.f32 %v3061_v32, %v2839_v58  ;;  %v4872_v58 = vrot.slane %v4856_v43, 9  ;;  %v5166_v32 = vld [vmem:[%s5344_s6 + $0xb4] sm:$0xff]  ;;  %v2631_v27 = vrot.slane %v2629_v48, 4  ;;  %v3613_v52 = vunpack.c.l.b16 %v3526_v59 }
 0x232   : > { %4348 = vst.msk [vmem:[%s6429_s25 + $0x18] sm:$0xf] %vm4341_vm8, %v4315_v63  ;;  %v4216_v53 = vmul.f32 %v6393_v19, %v4180_v41  ;;  %5065 = vmatmul.msk.bf16.gmra.mxu3 %vm774_vm4, %v3631_v16  ;;  %v3547_v16 = vshll.u32 %v6576_v61, 16  ;;  %v2840_v63 = vadd.f32 %v2773_v9, %v5927_v25  ;;  %v3965_v50 = vsel %vm5530_vm7, %v5098_v42, %v3964_v1 }
 0x233   : > { %v3544_v59 = vor.u32 %v3543_v10, %v3540_v40  ;;  %v3557_v54 = vshll.u32 %v6602_v20, 16 }
 0x234   : > { %v4252_v13 = vadd.f32 %v6402_v39, %v4216_v53  ;;  %v4113_v35 = vpop.f32.mrf.mxu0  ;;  %v6596_v53 = vrot.slane %v3547_v16, 5 }
 0x235   : > { %v3715_v31 = vpop.f32.mrf.mxu3  ;;  %v2776_v38 = vpop.f32.mrf.mxu1  ;;  %v3545_v10 = vrot.slane %v3544_v59, 4 }
 0x236   : > { %v4284_v33 = vmax.f32 %v4252_v13, 0.0  ;;  %v3783_v6 = vadd.f32 %v3715_v31, %v3129_v11  ;;  %v3553_v11 = vrot.slane %v3551_v15, 4  ;;  %v2630_v13 = vsel %vm5530_vm7, %v4872_v58, %v2629_v48 }
 0x237   : > { %5114 = vmatmul.msk.bf16.gmra.mxu0 %vm774_vm4, %v4029_v12  ;;  %v3614_v12 = vunpack.c.l.b16 %v3536_v24  ;;  %v2633_v31 = vsel %vm5530_vm7, %v2631_v27, %v2632_v45  ;;  %v2671_v48 = vunpack.c.l.b16 %v2630_v13  ;;  %v2841_v57 = vadd.f32 %v2776_v38, %v6811_v28 }
 0x238   : > { %v4316_v56 = vpack.c.bf16 %v4284_v33, %v4284_v33  ;;  %v4181_v62 = vadd.f32 %v4113_v35, %v3783_v6  ;;  %v3063_v41 = vpop.f32.mrf.mxu2  ;;  %4888 = vmatmul.msk.bf16.gmra.mxu1 %vm774_vm4, %v2688_v22  ;;  %v3554_v43 = vor.u32 %v3553_v11, %v6596_v53  ;;  %v4011_v33 = vunpack.c.l.b16 %v3965_v50 }
 0x239   : > { %v3130_v0 = vadd.f32 %v3063_v41, %v2840_v63  ;;  %v3632_v15 = vpack.c.b16 %v3614_v12, %v3613_v52  ;;  %v4012_v6 = vunpack.c.l.b16 %v3968_v7  ;;  %v2672_v40 = vunpack.c.l.b16 %v2633_v31  ;;  %v4857_v7 = vld [vmem:[%s5344_s6 + $0xc0] sm:$0xe] }
 0x23a   : > { %4349 = vst.msk [vmem:[%s6429_s25 + $0x1c] sm:$0xf] %vm4341_vm8, %v4316_v56  ;;  %v4217_v55 = vmul.f32 %v6393_v19, %v4181_v62  ;;  %v3555_v62 = vrot.slane %v3554_v43, 4  ;;  %v3559_v63 = vrot.slane %v3557_v54, 5  ;;  %v3971_v27 = vrot.slane %v6576_v61, 5 }
 0x23b   : > { %v4030_v38 = vpack.c.b16 %v4012_v6, %v4011_v33  ;;  %v2689_v11 = vpack.c.b16 %v2672_v40, %v2671_v48  ;;  %v5247_v61 = vld [vmem:[%s5344_s6 + $0xc4] sm:$0xf]  ;;  %v3974_v43 = vrot.slane %v6602_v20, 5 }
 0x23c   : > { %v4253_v25 = vadd.f32 %v6402_v39, %v4217_v55  ;;  %v4115_v9 = vpop.f32.mrf.mxu0  ;;  %v5049_v55 = vld [vmem:[%s5344_s6 + $0xcc] sm:$0xf]  ;;  %v2636_v13 = vrot.slane %v5247_v61, 5  ;;  %v3973_v59 = vrot.slane %v3971_v27, 4 }
 0x23d   : > { %v3717_v35 = vpop.f32.mrf.mxu3  ;;  %5001 = vmatmul.msk.bf16.gmra.mxu2 %vm774_vm4, %v5166_v32  ;;  %v2778_v22 = vpop.f32.mrf.mxu1  ;;  %v5083_v32 = vld [vmem:[%s5344_s6 + $0xc0] sm:$0xe]  ;;  %v3562_v54 = vshrl.u32 %v5049_v55, 16 }
 0x23e   : > { %v4285_v1 = vmax.f32 %v4253_v25, 0.0  ;;  %v3784_v16 = vadd.f32 %v3717_v35, %v3130_v0  ;;  %v6626_v0 = vld [vmem:[%s5344_s6 + $0xd0] sm:$0xf]  ;;  %v3550_v25 = vsel %vm5356_vm3, %v3545_v10, %v6596_v53  ;;  %v5099_v50 = vrot.slane %v5083_v32, 9 }
 0x23f   : > { %v3571_v53 = vshll.u32 %v6626_v0, 16  ;;  %v2842_v6 = vadd.f32 %v2778_v22, %v5974_v47  ;;  %v3615_v20 = vunpack.c.l.b16 %v3550_v25  ;;  %v3975_v47 = vsel %vm5530_vm7, %v3973_v59, %v3974_v43 }
 0x240   : > { %v4317_v24 = vpack.c.bf16 %v4285_v1, %v4285_v1  ;;  %v4182_v42 = vadd.f32 %v4115_v9, %v3784_v16  ;;  %v3066_v56 = vpop.f32.mrf.mxu2  ;;  %v3560_v9 = vsel %vm5356_vm3, %v3555_v62, %v3559_v63  ;;  %v3565_v1 = vshll.u32 %v5049_v55, 16 }
 0x241   : > { %v3131_v58 = vadd.f32 %v3066_v56, %v2841_v57  ;;  %v3575_v16 = vshrl.u32 %v6626_v0, 16  ;;  %v3616_v28 = vunpack.c.l.b16 %v3560_v9  ;;  %v2638_v57 = vrot.slane %v2636_v13, 4  ;;  %v5248_v56 = vld [vmem:[%s5344_s6 + $0xc8] sm:$0x1] }
 0x242   : > { %4350 = vst.msk [vmem:[%s6429_s25 + $0x20] sm:$0xf] %vm4341_vm8, %v4317_v24  ;;  %v4218_v41 = vmul.f32 %v6393_v19, %v4182_v42  ;;  %5066 = vmatmul.msk.bf16.gmra.mxu3 %vm774_vm4, %v3632_v15  ;;  %v4873_v24 = vrot.slane %v4857_v7, 9  ;;  %v5167_v42 = vld [vmem:[%s5344_s6 + $0xc0] sm:$0xff]  ;;  %v2639_v40 = vrot.slane %v5248_v56, 5  ;;  %v3972_v63 = vsel %vm5530_vm7, %v5099_v50, %v3971_v27 }
 0x243   : > { %v3564_v22 = vrot.slane %v3562_v54, 4  ;;  %v3577_v32 = vrot.slane %v3575_v16, 4  ;;  %v4013_v7 = vunpack.c.l.b16 %v3972_v63  ;;  %v4014_v61 = vunpack.c.l.b16 %v3975_v47  ;;  %v5084_v56 = vld [vmem:[%s5344_s6 + $0xcc] sm:$0xe] }
 0x244   : > { %v4254_v4 = vadd.f32 %v6402_v39, %v4218_v41  ;;  %v4118_v45 = vpop.f32.mrf.mxu0  ;;  %v3567_v41 = vrot.slane %v3565_v1, 5  ;;  %v2640_v25 = vsel %vm5530_vm7, %v2638_v57, %v2639_v40 }
 0x245   : > { %v3720_v52 = vpop.f32.mrf.mxu3  ;;  %v2781_v12 = vpop.f32.mrf.mxu1  ;;  %v2674_v16 = vunpack.c.l.b16 %v2640_v25 }
 0x246   : > { %v4286_v35 = vmax.f32 %v4254_v4, 0.0  ;;  %v3785_v31 = vadd.f32 %v3720_v52, %v3131_v58  ;;  %v3573_v58 = vrot.slane %v3571_v53, 5  ;;  %v3633_v52 = vpack.c.b16 %v3616_v28, %v3615_v20 }
 0x247   : > { %5115 = vmatmul.msk.bf16.gmra.mxu0 %vm774_vm4, %v4030_v38  ;;  %v2843_v1 = vadd.f32 %v2781_v12, %v5985_v51  ;;  %v3978_v51 = vrot.slane %v6626_v0, 5 }
 0x248   : > { %v4318_v15 = vpack.c.bf16 %v4286_v35, %v4286_v35  ;;  %v4183_v33 = vadd.f32 %v4118_v45, %v3785_v31  ;;  %v3068_v48 = vpop.f32.mrf.mxu2  ;;  %4889 = vmatmul.msk.bf16.gmra.mxu1 %vm774_vm4, %v2689_v11  ;;  %v2637_v45 = vsel %vm5530_vm7, %v4873_v24, %v2636_v13  ;;  %v5051_v11 = vld [vmem:[%s5344_s6 + $0xd4] sm:$0x1]  ;;  %v3568_v31 = vor.u32 %v3567_v41, %v3564_v22 }
 0x249   : > { %v3132_v62 = vadd.f32 %v3068_v48, %v2842_v6  ;;  %v2673_v35 = vunpack.c.l.b16 %v2637_v45  ;;  %v3578_v59 = vor.u32 %v3577_v32, %v3573_v58  ;;  %v3581_v43 = vshll.u32 %v5051_v11, 16 }
 0x24a   : > { %4351 = vst.msk [vmem:[%s6429_s25 + $0x24] sm:$0xf] %vm4341_vm8, %v4318_v15  ;;  %v4219_v10 = vmul.f32 %v6393_v19, %v4183_v33  ;;  %v4031_v6 = vpack.c.b16 %v4014_v61, %v4013_v7  ;;  %v3569_v48 = vrot.slane %v3568_v31, 4  ;;  %v5100_v22 = vrot.slane %v5084_v56, 9 }
 0x24b   : > { %v3579_v24 = vrot.slane %v3578_v59, 4  ;;  %v2690_v57 = vpack.c.b16 %v2674_v16, %v2673_v35  ;;  %v3981_v41 = vrot.slane %v5051_v11, 5 }
 0x24c   : > { %v4255_v38 = vadd.f32 %v6402_v39, %v4219_v10  ;;  %v4120_v4 = vpop.f32.mrf.mxu0  ;;  %v3574_v63 = vsel %vm5356_vm3, %v3569_v48, %v3573_v58  ;;  %v3979_v7 = vsel %vm5530_vm7, %v5100_v22, %v3978_v51 }
 0x24d   : > { %v3722_v55 = vpop.f32.mrf.mxu3  ;;  %5002 = vmatmul.msk.bf16.gmra.mxu2 %vm774_vm4, %v5167_v42  ;;  %v2783_v27 = vpop.f32.mrf.mxu1  ;;  %v3583_v42 = vrot.slane %v3581_v43, 5  ;;  %v3617_v58 = vunpack.c.l.b16 %v3574_v63 }
 0x24e   : > { %v4287_v9 = vmax.f32 %v4255_v38, 0.0  ;;  %v3786_v50 = vadd.f32 %v3722_v55, %v3132_v62  ;;  %v3980_v55 = vrot.slane %v3978_v51, 4 }
 0x24f   : > { %v3584_v47 = vsel %vm5356_vm3, %v3579_v24, %v3583_v42 }
 0x250   : > { %v4319_v54 = vpack.c.bf16 %v4287_v9, %v4287_v9  ;;  %v4184_v13 = vadd.f32 %v4120_v4, %v3786_v50  ;;  %v3071_v53 = vpop.f32.mrf.mxu2  ;;  %v6812_v4 = vld [vmem:[#allocation3_spill] sm:$0xff]  ;;  %v3618_v50 = vunpack.c.l.b16 %v3584_v47 }
 0x251   : > { %v3133_v33 = vadd.f32 %v3071_v53, %v2843_v1  ;;  %v2844_v0 = vadd.f32 %v2783_v27, %v6812_v4  ;;  %v3982_v27 = vsel %vm5530_vm7, %v3980_v55, %v3981_v41 }
 0x252   : > { %4352 = vst.msk [vmem:[%s6429_s25 + $0x28] sm:$0xf] %vm4341_vm8, %v4319_v54  ;;  %v4220_v15 = vmul.f32 %v6393_v19, %v4184_v13  ;;  %5067 = vmatmul.msk.bf16.gmra.mxu3 %vm774_vm4, %v3633_v52  ;;  %v5168_v52 = vld [vmem:[%s5344_s6 + $0xcc] sm:$0xff]  ;;  %v3634_v43 = vpack.c.b16 %v3618_v50, %v3617_v58  ;;  %v4015_v54 = vunpack.c.l.b16 %v3979_v7  ;;  %v4016_v13 = vunpack.c.l.b16 %v3982_v27 }
 0x254   : > { %v4256_v20 = vadd.f32 %v6402_v39, %v4220_v15  ;;  %v4123_v28 = vpop.f32.mrf.mxu0 }
 0x255   : > { %v3725_v12 = vpop.f32.mrf.mxu3  ;;  %v2786_v40 = vpop.f32.mrf.mxu1 }
 0x256   : > { %v4288_v10 = vmax.f32 %v4256_v20, 0.0  ;;  %v3787_v62 = vadd.f32 %v3725_v12, %v3133_v33  ;;  %v2845_v16 = vadd.f32 %v2786_v40, %v6021_v29 }
 0x257   : > { %5116 = vmatmul.msk.bf16.gmra.mxu0 %vm774_vm4, %v4031_v6  ;;  %v4032_v6 = vpack.c.b16 %v4016_v13, %v4015_v54 }
 0x258   : > { %v4320_v32 = vpack.c.bf16 %v4288_v10, %v4288_v10  ;;  %v4185_v38 = vadd.f32 %v4123_v28, %v3787_v62  ;;  %v3073_v45 = vpop.f32.mrf.mxu2  ;;  %4890 = vmatmul.msk.bf16.gmra.mxu1 %vm774_vm4, %v2690_v57 }
 0x259   : > { %v3134_v9 = vadd.f32 %v3073_v45, %v2844_v0 }
 0x25a   : > { %4353 = vst.msk [vmem:[%s6429_s25 + $0x2c] sm:$0xf] %vm4341_vm8, %v4320_v32  ;;  %v4221_v25 = vmul.f32 %v6393_v19, %v4185_v38 }
 0x25c   : > { %v4257_v36 = vadd.f32 %v6402_v39, %v4221_v25  ;;  %v4125_v11 = vpop.f32.mrf.mxu0 }
 0x25d   : > { %v3727_v61 = vpop.f32.mrf.mxu3  ;;  %5003 = vmatmul.msk.bf16.gmra.mxu2 %vm774_vm4, %v5168_v52  ;;  %v2788_v35 = vpop.f32.mrf.mxu1 }
 0x25e   : > { %v4289_v31 = vmax.f32 %v4257_v36, 0.0  ;;  %v3788_v59 = vadd.f32 %v3727_v61, %v3134_v9  ;;  %v2846_v51 = vadd.f32 %v2788_v35, %v6045_v37 }
 0x260   : > { %v4321_v1 = vpack.c.bf16 %v4289_v31, %v4289_v31  ;;  %v4186_v53 = vadd.f32 %v4125_v11, %v3788_v59  ;;  %v3076_v15 = vpop.f32.mrf.mxu2 }
 0x261   : > { %v3135_v33 = vadd.f32 %v3076_v15, %v2845_v16 }
 0x262   : > { %4354 = vst.msk [vmem:[%s6429_s25 + $0x30] sm:$0xf] %vm4341_vm8, %v4321_v1  ;;  %v4222_v18 = vmul.f32 %v6393_v19, %v4186_v53  ;;  %5068 = vmatmul.msk.bf16.gmra.mxu3 %vm774_vm4, %v3634_v43 }
 0x264   : > { %v4258_v48 = vadd.f32 %v6402_v39, %v4222_v18  ;;  %v4128_v24 = vpop.f32.mrf.mxu0 }
 0x265   : > { %v3730_v42 = vpop.f32.mrf.mxu3  ;;  %v2791_v20 = vpop.f32.mrf.mxu1 }
 0x266   : > { %v4290_v28 = vmax.f32 %v4258_v48, 0.0  ;;  %v3789_v57 = vadd.f32 %v3730_v42, %v3135_v33  ;;  %v2847_v0 = vadd.f32 %v2791_v20, %v6064_v34  ;;  %v6716_v33 = vld [vmem:[%s6802_s3] ss:$0 sm:$0xff] }
 0x267   : > { %5117 = vmatmul.msk.bf16.gmra.mxu0 %vm774_vm4, %v4032_v6 }
 0x268   : > { %v4322_v29 = vpack.c.bf16 %v4290_v28, %v4290_v28  ;;  %v4187_v56 = vadd.f32 %v4128_v24, %v3789_v57  ;;  %v3078_v12 = vpop.f32.mrf.mxu2 }
 0x269   : > { %v3136_v10 = vadd.f32 %v3078_v12, %v2846_v51 }
 0x26a   : > { %4355 = vst.msk [vmem:[%s6429_s25 + $0x34] sm:$0xf] %vm4341_vm8, %v4322_v29  ;;  %v4223_v40 = vmul.f32 %v6393_v19, %v4187_v56 }
 0x26c   : > { %v4259_v62 = vadd.f32 %v6402_v39, %v4223_v40  ;;  %v4130_v63 = vpop.f32.mrf.mxu0 }
 0x26d   : > { %v3732_v47 = vpop.f32.mrf.mxu3  ;;  %v2793_v22 = vpop.f32.mrf.mxu1 }
 0x26e   : > { %v4291_v41 = vmax.f32 %v4259_v62, 0.0  ;;  %v3790_v32 = vadd.f32 %v3732_v47, %v3136_v10  ;;  %v2848_v27 = vadd.f32 %v2793_v22, %v6088_v3  ;;  %v6710_v3 = vld [vmem:[%s6801_s2] ss:$0 sm:$0xff] }
 0x270   : > { %v4323_v38 = vpack.c.bf16 %v4291_v41, %v4291_v41  ;;  %v4188_v4 = vadd.f32 %v4130_v63, %v3790_v32  ;;  %v3081_v45 = vpop.f32.mrf.mxu2 }
 0x271   : > { %v3137_v55 = vadd.f32 %v3081_v45, %v2847_v0 }
 0x272   : > { %4356 = vst.msk [vmem:[%s6429_s25 + $0x38] sm:$0xf] %vm4341_vm8, %v4323_v38  ;;  %v4224_v37 = vmul.f32 %v6393_v19, %v4188_v4 }
 0x274   : > { %v4260_v52 = vadd.f32 %v6402_v39, %v4224_v37  ;;  %v4133_v25 = vpop.f32.mrf.mxu0 }
 0x275   : > { %v3735_v9 = vpop.f32.mrf.mxu3  ;;  %v2796_v58 = vpop.f32.mrf.mxu1 }
 0x276   : > { %v4292_v50 = vmax.f32 %v4260_v52, 0.0  ;;  %v3791_v36 = vadd.f32 %v3735_v9, %v3137_v55  ;;  %v2849_v15 = vadd.f32 %v2796_v58, %v6107_v2 }
 0x278   : > { %v4324_v11 = vpack.c.bf16 %v4292_v50, %v4292_v50  ;;  %v4189_v7 = vadd.f32 %v4133_v25, %v3791_v36  ;;  %v3083_v61 = vpop.f32.mrf.mxu2 }
 0x279   : > { %v3138_v35 = vadd.f32 %v3083_v61, %v2848_v27 }
 0x27a   : > { %4357 = vst.msk [vmem:[%s6429_s25 + $0x3c] sm:$0xf] %vm4341_vm8, %v4324_v11  ;;  %v4225_v34 = vmul.f32 %v6393_v19, %v4189_v7 }
 0x27c   : > { %v4261_v31 = vadd.f32 %v6402_v39, %v4225_v34  ;;  %v4135_v59 = vpop.f32.mrf.mxu0 }
 0x27d   : > { %v3737_v43 = vpop.f32.mrf.mxu3  ;;  %v2798_v54 = vpop.f32.mrf.mxu1 }
 0x27e   : > { %v4293_v13 = vmax.f32 %v4261_v31, 0.0  ;;  %v3792_v1 = vadd.f32 %v3737_v43, %v3138_v35  ;;  %v2850_v29 = vadd.f32 %v2798_v54, %v6131_v26 }
 0x280   : > { %v4325_v53 = vpack.c.bf16 %v4293_v13, %v4293_v13  ;;  %v4190_v16 = vadd.f32 %v4135_v59, %v3792_v1  ;;  %v3086_v18 = vpop.f32.mrf.mxu2 }
 0x281   : > { %v3139_v39 = vadd.f32 %v3086_v18, %v2849_v15 }
 0x282   : > { %4358 = vst.msk [vmem:[%s6429_s25 + $0x40] sm:$0xf] %vm4341_vm8, %v4325_v53  ;;  %v4226_v19 = vmul.f32 %v6710_v3, %v4190_v16 }
 0x284   : > { %v4262_v6 = vadd.f32 %v6716_v33, %v4226_v19  ;;  %v4138_v2 = vpop.f32.mrf.mxu0 }
 0x285   : > { %v3740_v48 = vpop.f32.mrf.mxu3  ;;  %v2801_v24 = vpop.f32.mrf.mxu1 }
 0x286   : > { %v4294_v42 = vmax.f32 %v4262_v6, 0.0  ;;  %v3793_v20 = vadd.f32 %v3740_v48, %v3139_v39  ;;  %v2851_v38 = vadd.f32 %v2801_v24, %v6150_v60 }
 0x288   : > { %v4326_v28 = vpack.c.bf16 %v4294_v42, %v4294_v42  ;;  %v4191_v57 = vadd.f32 %v4138_v2, %v3793_v20  ;;  %v3088_v56 = vpop.f32.mrf.mxu2 }
 0x289   : > { %v3140_v12 = vadd.f32 %v3088_v56, %v2850_v29 }
 0x28a   : > { %4359 = vst.msk [vmem:[%s6429_s25 + $0x44] sm:$0xf] %vm4341_vm8, %v4326_v28  ;;  %v4227_v51 = vmul.f32 %v6710_v3, %v4191_v57 }
 0x28c   : > { %v4263_v40 = vadd.f32 %v6716_v33, %v4227_v51  ;;  %v4140_v10 = vpop.f32.mrf.mxu0 }
 0x28d   : > { %v3742_v62 = vpop.f32.mrf.mxu3  ;;  %v2803_v63 = vpop.f32.mrf.mxu1 }
 0x28e   : > { %v4295_v47 = vmax.f32 %v4263_v40, 0.0  ;;  %v3794_v22 = vadd.f32 %v3742_v62, %v3140_v12  ;;  %v2852_v36 = vadd.f32 %v2803_v63, %v6174_v14 }
 0x290   : > { %v4327_v41 = vpack.c.bf16 %v4295_v47, %v4295_v47  ;;  %v4192_v32 = vadd.f32 %v4140_v10, %v3794_v22  ;;  %v3091_v4 = vpop.f32.mrf.mxu2 }
 0x291   : > { %v3141_v0 = vadd.f32 %v3091_v4, %v2851_v38 }
 0x292   : > { %4360 = vst.msk [vmem:[%s6429_s25 + $0x48] sm:$0xf] %vm4341_vm8, %v4327_v41  ;;  %v4228_v26 = vmul.f32 %v6710_v3, %v4192_v32 }
 0x294   : > { %v4264_v45 = vadd.f32 %v6716_v33, %v4228_v26  ;;  %v4143_v37 = vpop.f32.mrf.mxu0 }
 0x295   : > { %v3745_v55 = vpop.f32.mrf.mxu3  ;;  %v2806_v52 = vpop.f32.mrf.mxu1 }
 0x296   : > { %v4296_v25 = vmax.f32 %v4264_v45, 0.0  ;;  %v3795_v9 = vadd.f32 %v3745_v55, %v3141_v0  ;;  %v2853_v13 = vadd.f32 %v2806_v52, %v6193_v21 }
 0x298   : > { %v4328_v58 = vpack.c.bf16 %v4296_v25, %v4296_v25  ;;  %v4193_v50 = vadd.f32 %v4143_v37, %v3795_v9  ;;  %v3093_v11 = vpop.f32.mrf.mxu2  ;;  %v6813_v37 = vld [vmem:[#allocation4_spill] sm:$0xff] }
 0x299   : > { %v3142_v7 = vadd.f32 %v3093_v11, %v2852_v36 }
 0x29a   : > { %4361 = vst.msk [vmem:[%s6429_s25 + $0x4c] sm:$0xf] %vm4341_vm8, %v4328_v58  ;;  %v4229_v60 = vmul.f32 %v6710_v3, %v4193_v50 }
 0x29c   : > { %v4265_v27 = vadd.f32 %v6716_v33, %v4229_v60  ;;  %v4145_v61 = vpop.f32.mrf.mxu0 }
 0x29d   : > { %v3747_v34 = vpop.f32.mrf.mxu3  ;;  %v2808_v35 = vpop.f32.mrf.mxu1 }
 0x29e   : > { %v4297_v31 = vmax.f32 %v4265_v27, 0.0  ;;  %v3796_v59 = vadd.f32 %v3747_v34, %v3142_v7  ;;  %v2854_v24 = vadd.f32 %v2808_v35, %v6217_v49 }
 0x2a0   : > { %v4329_v43 = vpack.c.bf16 %v4297_v31, %v4297_v31  ;;  %v4194_v54 = vadd.f32 %v4145_v61, %v3796_v59  ;;  %v3096_v1 = vpop.f32.mrf.mxu2 }
 0x2a1   : > { %v3143_v53 = vadd.f32 %v3096_v1, %v2853_v13 }
 0x2a2   : > { %4362 = vst.msk [vmem:[%s6429_s25 + $0x50] sm:$0xf] %vm4341_vm8, %v4329_v43  ;;  %v4230_v14 = vmul.f32 %v6710_v3, %v4194_v54 }
 0x2a4   : > { %v4266_v16 = vadd.f32 %v6716_v33, %v4230_v14  ;;  %v4148_v15 = vpop.f32.mrf.mxu0 }
 0x2a5   : > { %v3750_v18 = vpop.f32.mrf.mxu3  ;;  %v2811_v19 = vpop.f32.mrf.mxu1 }
 0x2a6   : > { %v4298_v39 = vmax.f32 %v4266_v16, 0.0  ;;  %v3797_v6 = vadd.f32 %v3750_v18, %v3143_v53  ;;  %v2855_v62 = vadd.f32 %v2811_v19, %v6236_v17 }
 0x2a8   : > { %v4330_v2 = vpack.c.bf16 %v4298_v39, %v4298_v39  ;;  %v4195_v48 = vadd.f32 %v4148_v15, %v3797_v6  ;;  %v3098_v42 = vpop.f32.mrf.mxu2 }
 0x2a9   : > { %v3144_v20 = vadd.f32 %v3098_v42, %v2854_v24 }
 0x2aa   : > { %4363 = vst.msk [vmem:[%s6429_s25 + $0x54] sm:$0xf] %vm4341_vm8, %v4330_v2  ;;  %v4231_v21 = vmul.f32 %v6710_v3, %v4195_v48 }
 0x2ac   : > { %v4267_v28 = vadd.f32 %v6716_v33, %v4231_v21  ;;  %v4150_v57 = vpop.f32.mrf.mxu0 }
 0x2ad   : > { %v3752_v29 = vpop.f32.mrf.mxu3  ;;  %v2813_v56 = vpop.f32.mrf.mxu1 }
 0x2ae   : > { %v4299_v51 = vmax.f32 %v4267_v28, 0.0  ;;  %v3798_v12 = vadd.f32 %v3752_v29, %v3144_v20  ;;  %v2856_v55 = vadd.f32 %v2813_v56, %v6813_v37 }
 0x2b0   : > { %v4331_v40 = vpack.c.bf16 %v4299_v51, %v4299_v51  ;;  %v4196_v10 = vadd.f32 %v4150_v57, %v3798_v12  ;;  %v3101_v63 = vpop.f32.mrf.mxu2 }
 0x2b1   : > { %v3145_v47 = vadd.f32 %v3101_v63, %v2855_v62 }
 0x2b2   : > { %4364 = vst.msk [vmem:[%s6429_s25 + $0x58] sm:$0xf] %vm4341_vm8, %v4331_v40  ;;  %v4232_v49 = vmul.f32 %v6710_v3, %v4196_v10 }
 0x2b4   : > { %v4268_v22 = vadd.f32 %v6716_v33, %v4232_v49  ;;  %v4153_v41 = vpop.f32.mrf.mxu0 }
 0x2b5   : > { %v3755_v32 = vpop.f32.mrf.mxu3  ;;  %v2816_v38 = vpop.f32.mrf.mxu1 }
 0x2b6   : > { %v4300_v4 = vmax.f32 %v4268_v22, 0.0  ;;  %v3799_v26 = vadd.f32 %v3755_v32, %v3145_v47  ;;  %v2857_v61 = vadd.f32 %v2816_v38, %v6277_v44 }
 0x2b8   : > { %v4332_v0 = vpack.c.bf16 %v4300_v4, %v4300_v4  ;;  %v4197_v45 = vadd.f32 %v4153_v41, %v3799_v26  ;;  %v3103_v52 = vpop.f32.mrf.mxu2 }
 0x2b9   : > { %v3146_v25 = vadd.f32 %v3103_v52, %v2856_v55 }
 0x2ba   : > { %4365 = vst.msk [vmem:[%s6429_s25 + $0x5c] sm:$0xf] %vm4341_vm8, %v4332_v0  ;;  %v4233_v17 = vmul.f32 %v6710_v3, %v4197_v45 }
 0x2bc   : > { %v4269_v9 = vadd.f32 %v6716_v33, %v4233_v17  ;;  %v4155_v58 = vpop.f32.mrf.mxu0 }
 0x2bd   : > { %v3757_v50 = vpop.f32.mrf.mxu3  ;;  %v2818_v36 = vpop.f32.mrf.mxu1 }
 0x2be   : > { %v4301_v11 = vmax.f32 %v4269_v9, 0.0  ;;  %v3800_v60 = vadd.f32 %v3757_v50, %v3146_v25  ;;  %v2858_v15 = vadd.f32 %v2818_v36, %v6298_v8 }
 0x2c0   : > { %v4333_v7 = vpack.c.bf16 %v4301_v11, %v4301_v11  ;;  %v4198_v27 = vadd.f32 %v4155_v58, %v3800_v60  ;;  %v3106_v34 = vpop.f32.mrf.mxu2 }
 0x2c1   : > { %v3147_v31 = vadd.f32 %v3106_v34, %v2857_v61 }
 0x2c2   : > { %4366 = vst.msk [vmem:[%s6429_s25 + $0x60] sm:$0xf] %vm4341_vm8, %v4333_v7  ;;  %v4234_v35 = vmul.f32 %v6710_v3, %v4198_v27 }
 0x2c4   : > { %v4270_v59 = vadd.f32 %v6716_v33, %v4234_v35  ;;  %v4158_v43 = vpop.f32.mrf.mxu0 }
 0x2c5   : > { %v3760_v54 = vpop.f32.mrf.mxu3  ;;  %v2821_v14 = vpop.f32.mrf.mxu1 }
 0x2c6   : > { %v4302_v13 = vmax.f32 %v4270_v59, 0.0  ;;  %v3801_v1 = vadd.f32 %v3760_v54, %v3147_v31  ;;  %v2859_v20 = vadd.f32 %v2821_v14, %v6316_v30 }
 0x2c8   : > { %v4334_v53 = vpack.c.bf16 %v4302_v13, %v4302_v13  ;;  %v4199_v16 = vadd.f32 %v4158_v43, %v3801_v1  ;;  %v3108_v18 = vpop.f32.mrf.mxu2 }
 0x2c9   : > { %v3148_v19 = vadd.f32 %v3108_v18, %v2858_v15 }
 0x2ca   : > { %4367 = vst.msk [vmem:[%s6429_s25 + $0x64] sm:$0xf] %vm4341_vm8, %v4334_v53  ;;  %v4235_v44 = vmul.f32 %v6710_v3, %v4199_v16 }
 0x2cc   : > { %v4271_v39 = vadd.f32 %v6716_v33, %v4235_v44  ;;  %v4160_v6 = vpop.f32.mrf.mxu0 }
 0x2cd   : > { %v3762_v2 = vpop.f32.mrf.mxu3  ;;  %v2823_v57 = vpop.f32.mrf.mxu1 }
 0x2ce   : > { %v4303_v48 = vmax.f32 %v4271_v39, 0.0  ;;  %v3802_v24 = vadd.f32 %v3762_v2, %v3148_v19  ;;  %v2860_v49 = vadd.f32 %v2823_v57, %v6342_v23 }
 0x2d0   : > { %v4335_v42 = vpack.c.bf16 %v4303_v48, %v4303_v48  ;;  %v4200_v21 = vadd.f32 %v4160_v6, %v3802_v24  ;;  %v3111_v28 = vpop.f32.mrf.mxu2 }
 0x2d1   : > { %v3149_v29 = vadd.f32 %v3111_v28, %v2859_v20 }
 0x2d2   : > { %4368 = vst.msk [vmem:[%s6429_s25 + $0x68] sm:$0xf] %vm4341_vm8, %v4335_v42  ;;  %v4236_v8 = vmul.f32 %v6710_v3, %v4200_v21 }
 0x2d4   : > { %v4272_v56 = vadd.f32 %v6716_v33, %v4236_v8  ;;  %v4163_v51 = vpop.f32.mrf.mxu0 }
 0x2d5   : > { %v3765_v12 = vpop.f32.mrf.mxu3  ;;  %v2826_v41 = vpop.f32.mrf.mxu1 }
 0x2d6   : > { %v4304_v40 = vmax.f32 %v4272_v56, 0.0  ;;  %v3803_v10 = vadd.f32 %v3765_v12, %v3149_v29  ;;  %v2861_v55 = vadd.f32 %v2826_v41, %v6359_v5 }
 0x2d8   : > { %v4336_v62 = vpack.c.bf16 %v4304_v40, %v4304_v40  ;;  %v4201_v63 = vadd.f32 %v4163_v51, %v3803_v10  ;;  %v3113_v47 = vpop.f32.mrf.mxu2 }
 0x2d9   : > { %v3150_v22 = vadd.f32 %v3113_v47, %v2860_v49 }
 0x2da   : > { %4369 = vst.msk [vmem:[%s6429_s25 + $0x6c] sm:$0xf] %vm4341_vm8, %v4336_v62  ;;  %v4237_v30 = vmul.f32 %v6710_v3, %v4201_v63 }
 0x2dc   : > { %v4273_v32 = vadd.f32 %v6716_v33, %v4237_v30  ;;  %v4165_v38 = vpop.f32.mrf.mxu0 }
 0x2dd   : > { %v3767_v4 = vpop.f32.mrf.mxu3  ;;  %v2828_v9 = vpop.f32.mrf.mxu1 }
 0x2de   : > { %v4305_v26 = vmax.f32 %v4273_v32, 0.0  ;;  %v3804_v0 = vadd.f32 %v3767_v4, %v3150_v22  ;;  %v2862_v27 = vadd.f32 %v2828_v9, %v6382_v46 }
 0x2e0   : > { %v4337_v45 = vpack.c.bf16 %v4305_v26, %v4305_v26  ;;  %v4202_v37 = vadd.f32 %v4165_v38, %v3804_v0  ;;  %v3116_v52 = vpop.f32.mrf.mxu2 }
 0x2e1   : > { %v3151_v17 = vadd.f32 %v3116_v52, %v2861_v55 }
 0x2e2   : > { %4370 = vst.msk [vmem:[%s6429_s25 + $0x70] sm:$0xf] %vm4341_vm8, %v4337_v45  ;;  %v4238_v23 = vmul.f32 %v6710_v3, %v4202_v37 }
 0x2e4   : > { %v4274_v25 = vadd.f32 %v6716_v33, %v4238_v23  ;;  %v4168_v58 = vpop.f32.mrf.mxu0 }
 0x2e5   : > { %v3770_v50 = vpop.f32.mrf.mxu3 }
 0x2e6   : > { %v4306_v36 = vmax.f32 %v4274_v25, 0.0  ;;  %v3805_v11 = vadd.f32 %v3770_v50, %v3151_v17 }
 0x2e8   : > { %v4338_v60 = vpack.c.bf16 %v4306_v36, %v4306_v36  ;;  %v4203_v7 = vadd.f32 %v4168_v58, %v3805_v11  ;;  %v3118_v61 = vpop.f32.mrf.mxu2 }
 0x2e9   : > { %v3152_v34 = vadd.f32 %v3118_v61, %v2862_v27 }
 0x2ea   : > { %4371 = vst.msk [vmem:[%s6429_s25 + $0x74] sm:$0xf] %vm4341_vm8, %v4338_v60  ;;  %v4239_v5 = vmul.f32 %v6710_v3, %v4203_v7 }
 0x2ec   : > { %v4275_v35 = vadd.f32 %v6716_v33, %v4239_v5  ;;  %v4170_v54 = vpop.f32.mrf.mxu0 }
 0x2ed   : > { %v3772_v31 = vpop.f32.mrf.mxu3 }
 0x2ee   : > { %v4307_v59 = vmax.f32 %v4275_v35, 0.0  ;;  %v3806_v43 = vadd.f32 %v3772_v31, %v3152_v34 }
 0x2f0   : > { %v4339_v13 = vpack.c.bf16 %v4307_v59, %v4307_v59  ;;  %v4204_v1 = vadd.f32 %v4170_v54, %v3806_v43 }
 0x2f2   : > { %4372 = vst.msk [vmem:[%s6429_s25 + $0x78] sm:$0xf] %vm4341_vm8, %v4339_v13  ;;  %v4240_v14 = vmul.f32 %v6710_v3, %v4204_v1 }
 0x2f4   : > { %v4276_v46 = vadd.f32 %v6716_v33, %v4240_v14 }
 0x2f6   : > { %v4308_v53 = vmax.f32 %v4276_v46, 0.0 }
 0x2f8   : > { %v4340_v16 = vpack.c.bf16 %v4308_v53, %v4308_v53 }
 0x2fa   : > { %4373 = vst.msk [vmem:[%s6429_s25 + $0x7c] sm:$0xf] %vm4341_vm8, %v4340_v16 }
 0x2fb PF: > { %s14_s17 = sadd.s32 1, %s5273_s17   ;;  %s6814_s15 = smov %s5269_s16 }
 0x2fc   : > { %p11_p5 = scmp.ge.s32.totalorder %s14_s17, 4   ;;  %s6815_s16 = smov %s6817_s18 }
 0x2fe   :  { %13 = sbr.rel (!%p11_p5) target bundleno = 2 (0x2), region = 86 }

</bundles_post_ra>
